<compile_context>
chip_gen: v6e
topology: v6e:2x2x1
jax: 0.10.0
libtpu: 0.0.40
codegen_flags: <defaults>
</compile_context>

<pallas_src>
import numpy as np

import jax
import jax.numpy as jnp
from jax.experimental import pallas as pl
from jax.experimental.pallas import tpu as pltpu

EPS = 1e-5
C1, K1 = 20, 19                               # conv1 out_channels, kernel_size
POOL_K, POOL_S = 4, 2                         # pool1
H1 = 150                                      # l1 out_features
H1_PAD = 256                                  # lane-padded hidden width
OUT = 1                                       # l_out out_features (output_size)
L_IN = 250                                    # implied by x.view(-1, 20*115)
L_PAD = 256                                   # lane-padded input length
L_CONV = L_IN - K1 + 1                        # 232 conv outputs
L_POOL = (L_CONV - POOL_K) // POOL_S + 1      # 115 pooled outputs per channel
N_PHASE = POOL_K                              # 4 pool-window phases y[2t+j]
S = C1 * 128                                  # 2560 = lane-aligned flat slab width
FLAT = C1 * L_POOL                            # 2300 logical flat features


def _round_up(n, m):
    return ((n + m - 1) // m) * m


def _fused_net_kernel(x_ref, wband_ref, b1_ref, wl1_ref, b3_ref, wo_ref, o_ref):
    """Whole Net.forward (eval mode) for one batch tile, MXU-centric.

    x_ref     : (TN, 256)         f32   zero-padded input rows (x[250:256] == 0).
    wband_ref : (256, 4*2560)     bf16  banded conv1 weight * bn1 scale; column
                                        (j*20+c)*128+t holds tap w[c,k] at row 2t+j+k,
                                        so the matmul emits y[c, 2t+j] per phase j.
    b1_ref    : (1, 2560)         f32   folded conv bias + bn1 shift, broadcast over
                                        each channel's 128-lane slot.
    wl1_ref   : (2560, 256)       bf16  l1 weight^T * bn3 scale; row c*128+t maps to
                                        torch flat index c*115+t (t<115); pad rows/cols 0.
    b3_ref    : (1, 256)          f32   folded l1 bias + bn3 shift (cols >= 150 zero).
    wo_ref    : (1, 256)          f32   l_out weight row (cols >= 150 zero).
    o_ref     : (TN, 1)           f32   sigmoid output.
    """
    xb = x_ref[...].astype(jnp.bfloat16)                                  # (TN, 256)

    # conv1 (+ folded bn1 scale) as a single bf16 MXU matmul, fp32 accumulation.
    y = jnp.dot(xb, wband_ref[...], preferred_element_type=jnp.float32)   # (TN, 4*2560)

    # MaxPool1d(4, stride=2) == elementwise max over the 4 lane-aligned phase blocks:
    #   m[:, c*128+t] = max(y[c,2t], y[c,2t+1], y[c,2t+2], y[c,2t+3])   (valid t<115)
    m = jnp.maximum(jnp.maximum(y[:, 0 * S:1 * S], y[:, 1 * S:2 * S]),
                    jnp.maximum(y[:, 2 * S:3 * S], y[:, 3 * S:4 * S]))    # (TN, 2560)

    # dropout = identity (eval); bn1 shift; relu.  relu(max(.)+b) == maxpool(relu(.+b)).
    # Pad lanes (t in 115..127 per channel) are finite garbage; wl1 rows there are 0.
    flat = jnp.maximum(m + b1_ref[...], 0.0).astype(jnp.bfloat16)         # (TN, 2560)

    # l1 (+ folded bn3 scale/shift) on the MXU; dropout = identity; relu.
    h = jnp.dot(flat, wl1_ref[...], preferred_element_type=jnp.float32)   # (TN, 256)
    h = jnp.maximum(h + b3_ref[...], 0.0)

    # l_out (150 -> 1, no bias) as VPU multiply + lane reduction; sigmoid.
    logit = jnp.sum(h * wo_ref[...], axis=1, keepdims=True)               # (TN, 1)
    o_ref[...] = 1.0 / (1.0 + jnp.exp(-logit))


def prepack_params(p):
    """One-time repack of PyTorch-shaped parameters (eval-mode BN/dropout folding)."""
    cw = np.asarray(p["conv_w"], np.float32)[:, 0, :]                       # (C1, K1)
    sc1 = (np.asarray(p["bn1_g"], np.float32) /
           np.sqrt(np.asarray(p["bn1_v"], np.float32) + EPS))               # (C1,)
    w1s = cw * sc1[:, None]                                                 # bn1 scale in taps
    bias1 = ((np.asarray(p["conv_b"], np.float32) -
              np.asarray(p["bn1_m"], np.float32)) * sc1 +
             np.asarray(p["bn1_b"], np.float32))                            # (C1,)

    # Banded conv weight: y[n, (j*C1+c)*128 + t] = sum_k w1s[c,k] * x[n, 2t+j+k].
    # For every valid pooled lane (t <= 114) all indices 2t+j+k <= 249 < 250, so the
    # result is the exact (bn1-scaled) conv output; pad lanes are finite don't-cares.
    wband = np.zeros((L_PAD, N_PHASE * S), np.float32)
    t = np.arange(128)
    for j in range(N_PHASE):
        for k in range(K1):
            rows = 2 * t + j + k
            ok = rows < L_PAD
            for c in range(C1):
                cols = (j * C1 + c) * 128 + t
                wband[rows[ok], cols[ok]] = w1s[c, k]

    b1row = np.repeat(bias1, 128)[None, :]                                  # (1, 2560)

    sc3 = (np.asarray(p["bn3_g"], np.float32) /
           np.sqrt(np.asarray(p["bn3_v"], np.float32) + EPS))               # (H1,)
    wl1 = np.asarray(p["l1_w"], np.float32).T * sc3[None, :]                # (2300, 150)
    wl1_slab = np.zeros((S, H1_PAD), np.float32)                            # 128-aligned slots
    for c in range(C1):
        wl1_slab[c * 128:c * 128 + L_POOL, :H1] = wl1[c * L_POOL:(c + 1) * L_POOL, :]

    b3 = np.zeros((1, H1_PAD), np.float32)
    b3[0, :H1] = ((np.asarray(p["l1_b"], np.float32) -
                   np.asarray(p["bn3_m"], np.float32)) * sc3 +
                  np.asarray(p["bn3_b"], np.float32))
    wo = np.zeros((1, H1_PAD), np.float32)
    wo[0, :H1] = np.asarray(p["lout_w"], np.float32)[0]

    return {
        "wband": jnp.asarray(wband, dtype=jnp.bfloat16),   # 2.6 MB resident
        "b1row": jnp.asarray(b1row, dtype=jnp.float32),
        "wl1": jnp.asarray(wl1_slab, dtype=jnp.bfloat16),  # 1.3 MB resident
        "b3": jnp.asarray(b3, dtype=jnp.float32),
        "wo": jnp.asarray(wo, dtype=jnp.float32),
    }


@jax.jit
def net_forward(x, pp):
    """x: (N, 1, 250) float32 -> (N, 1) float32.  pp: output of prepack_params."""
    N = x.shape[0]
    # >= 2 grid steps whenever N > 8, so both v7x TensorCores get work; tile <= 128 rows.
    TN = min(128, max(8, _round_up(-(-N // 2), 8)))
    NP = _round_up(N, TN)

    # Only input-side glue: zero-pad batch and lane dims (no even/odd deinterleave).
    x2 = jnp.pad(x[:, 0, :], ((0, NP - N), (0, L_PAD - L_IN)))              # (NP, 256)

    out = pl.pallas_call(
        _fused_net_kernel,
        out_shape=jax.ShapeDtypeStruct((NP, OUT), jnp.float32),
        grid=(NP // TN,),
        in_specs=[
            pl.BlockSpec((TN, L_PAD), lambda i: (i, 0)),              # x tile
            pl.BlockSpec((L_PAD, N_PHASE * S), lambda i: (0, 0)),     # banded conv weight
            pl.BlockSpec((1, S), lambda i: (0, 0)),                   # folded conv/bn1 bias
            pl.BlockSpec((S, H1_PAD), lambda i: (0, 0)),              # l1 weight slab
            pl.BlockSpec((1, H1_PAD), lambda i: (0, 0)),              # folded l1/bn3 bias
            pl.BlockSpec((1, H1_PAD), lambda i: (0, 0)),              # l_out row
        ],
        out_specs=pl.BlockSpec((TN, OUT), lambda i: (i, 0)),
        compiler_params=pltpu.CompilerParams(
            dimension_semantics=("parallel",),
            vmem_limit_bytes=32 * 1024 * 1024,
        ),
    )(x2, pp["wband"], pp["b1row"], pp["wl1"], pp["b3"], pp["wo"])
    return out[:N]


def reference_forward(x, p):
    """Pure-JAX fp32 reference mirroring the PyTorch forward (eval mode)."""
    hp = jax.lax.Precision.HIGHEST
    y = jax.lax.conv_general_dilated(
        x, p["conv_w"], window_strides=(1,), padding="VALID",
        dimension_numbers=("NCH", "OIH", "NCH"), precision=hp)
    y = y + p["conv_b"][None, :, None]
    s1 = p["bn1_g"] / jnp.sqrt(p["bn1_v"] + EPS)
    y = (y - p["bn1_m"][None, :, None]) * s1[None, :, None] + p["bn1_b"][None, :, None]
    y = jnp.maximum(y, 0.0)
    y = jax.lax.reduce_window(y, -jnp.inf, jax.lax.max,
                              (1, 1, POOL_K), (1, 1, POOL_S), "VALID")
    f = y.reshape(x.shape[0], FLAT)
    h = jnp.dot(f, p["l1_w"].T, precision=hp) + p["l1_b"]
    s3 = p["bn3_g"] / jnp.sqrt(p["bn3_v"] + EPS)
    h = (h - p["bn3_m"]) * s3 + p["bn3_b"]
    h = jnp.maximum(h, 0.0)
    o = jnp.dot(h, p["lout_w"].T, precision=hp)
    return 1.0 / (1.0 + jnp.exp(-o))


def init_params(key):
    ks = jax.random.split(key, 14)
    p = {}
    p["conv_w"] = jax.random.normal(ks[0], (C1, 1, K1), jnp.float32) * 0.1
    p["conv_b"] = jax.random.normal(ks[1], (C1,), jnp.float32) * 0.1
    p["bn1_g"] = jax.random.uniform(ks[2], (C1,), jnp.float32, 0.5, 1.5)
    p["bn1_b"] = jax.random.normal(ks[3], (C1,), jnp.float32) * 0.1
    p["bn1_m"] = jax.random.normal(ks[4], (C1,), jnp.float32) * 0.1
    p["bn1_v"] = jax.random.uniform(ks[5], (C1,), jnp.float32, 0.5, 1.5)
    p["l1_w"] = jax.random.normal(ks[6], (H1, FLAT), jnp.float32) * 0.02
    p["l1_b"] = jax.random.normal(ks[7], (H1,), jnp.float32) * 0.1
    p["bn3_g"] = jax.random.uniform(ks[8], (H1,), jnp.float32, 0.5, 1.5)
    p["bn3_b"] = jax.random.normal(ks[9], (H1,), jnp.float32) * 0.1
    p["bn3_m"] = jax.random.normal(ks[10], (H1,), jnp.float32) * 0.1
    p["bn3_v"] = jax.random.uniform(ks[11], (H1,), jnp.float32, 0.5, 1.5)
    p["lout_w"] = jax.random.normal(ks[12], (OUT, H1), jnp.float32) * 0.1
    return p


if __name__ == "__main__":
    key = jax.random.PRNGKey(0)
    kp, kx = jax.random.split(key)
    params = init_params(kp)
    packed = prepack_params(params)            # one-time prepack (not per call)
    x = jax.random.normal(kx, (2, 1, L_IN), jnp.float32)   # batch=2, NCL like PyTorch

    out = jax.block_until_ready(net_forward(x, packed))
    assert out.shape == (2, OUT), out.shape

    ref = jax.block_until_ready(reference_forward(x, params))
    # conv1 + l1 run in bf16 on the MXU (fp32 accumulation), loosening agreement vs
    # the fp32 HIGHEST-precision reference; a genuinely wrong forward would be off
    # by >> 0.05 on the sigmoid output.
    if not jnp.allclose(out, ref, rtol=2e-2, atol=1e-2):
        raise AssertionError(f"mismatch vs reference: {out} vs {ref}")

    print("KERNEL_OK")
</pallas_src>

<mosaic_0001>
module attributes {stable_mosaic.version = 11 : i64} {
  func.func @_fused_net_kernel(%arg0: i32, %arg1: memref<8x256xf32, #tpu.memory_space<vmem>>, %arg2: memref<256x10240xbf16, #tpu.memory_space<vmem>>, %arg3: memref<1x2560xf32, #tpu.memory_space<vmem>>, %arg4: memref<2560x256xbf16, #tpu.memory_space<vmem>>, %arg5: memref<1x256xf32, #tpu.memory_space<vmem>>, %arg6: memref<1x256xf32, #tpu.memory_space<vmem>>, %arg7: memref<8x1xf32, #tpu.memory_space<vmem>>) attributes {dimension_semantics = [#tpu.dimension_semantics<parallel>], iteration_bounds = array<i64: 1>, scalar_prefetch = 0 : i64, scratch_operands = 0 : i64, tpu.core_type = #tpu.core_type<tc>, window_params = [{transform_indices = @transform_0, window_bounds = array<i64: 8, 256>}, {pipeline_mode = #tpu.pipeline_mode<synchronous>, transform_indices = @transform_1, window_bounds = array<i64: 256, 10240>}, {pipeline_mode = #tpu.pipeline_mode<synchronous>, transform_indices = @transform_2, window_bounds = array<i64: 1, 2560>}, {pipeline_mode = #tpu.pipeline_mode<synchronous>, transform_indices = @transform_3, window_bounds = array<i64: 2560, 256>}, {pipeline_mode = #tpu.pipeline_mode<synchronous>, transform_indices = @transform_4, window_bounds = array<i64: 1, 256>}, {pipeline_mode = #tpu.pipeline_mode<synchronous>, transform_indices = @transform_5, window_bounds = array<i64: 1, 256>}, {transform_indices = @transform_6, window_bounds = array<i64: 8, 1>}]} {
    %c0 = arith.constant 0 : index
    %c0_0 = arith.constant 0 : index
    %0 = vector.load %arg1[%c0, %c0_0] : memref<8x256xf32, #tpu.memory_space<vmem>>, vector<8x256xf32>
    %1 = arith.truncf %0 : vector<8x256xf32> to vector<8x256xbf16>
    %c0_1 = arith.constant 0 : index
    %c0_2 = arith.constant 0 : index
    %2 = vector.load %arg2[%c0_1, %c0_2] : memref<256x10240xbf16, #tpu.memory_space<vmem>>, vector<256x10240xbf16>
    %cst = arith.constant dense<0.000000e+00> : vector<8x10240xf32>
    %3 = tpu.matmul %1, %2, %cst {dimension_numbers = #tpu.dot_dimension_numbers<[1], [0], [0], [1], [0, 0, 1, 1], [], []>} : vector<8x256xbf16>, vector<256x10240xbf16>, vector<8x10240xf32> -> vector<8x10240xf32>
    %4 = vector.extract_strided_slice %3 {offsets = [0, 0], sizes = [8, 2560], strides = [1, 1]} : vector<8x10240xf32> to vector<8x2560xf32>
    %5 = vector.extract_strided_slice %3 {offsets = [0, 2560], sizes = [8, 2560], strides = [1, 1]} : vector<8x10240xf32> to vector<8x2560xf32>
    %6 = arith.maximumf %4, %5 : vector<8x2560xf32>
    %7 = vector.extract_strided_slice %3 {offsets = [0, 5120], sizes = [8, 2560], strides = [1, 1]} : vector<8x10240xf32> to vector<8x2560xf32>
    %8 = vector.extract_strided_slice %3 {offsets = [0, 7680], sizes = [8, 2560], strides = [1, 1]} : vector<8x10240xf32> to vector<8x2560xf32>
    %9 = arith.maximumf %7, %8 : vector<8x2560xf32>
    %10 = arith.maximumf %6, %9 : vector<8x2560xf32>
    %c0_3 = arith.constant 0 : index
    %c0_4 = arith.constant 0 : index
    %11 = vector.load %arg3[%c0_3, %c0_4] : memref<1x2560xf32, #tpu.memory_space<vmem>>, vector<1x2560xf32>
    %12 = vector.broadcast %11 : vector<1x2560xf32> to vector<8x2560xf32>
    %13 = arith.addf %10, %12 : vector<8x2560xf32>
    %cst_5 = arith.constant 0.000000e+00 : f32
    %14 = vector.broadcast %cst_5 : f32 to vector<8x2560xf32>
    %15 = arith.maximumf %13, %14 : vector<8x2560xf32>
    %16 = arith.truncf %15 : vector<8x2560xf32> to vector<8x2560xbf16>
    %c0_6 = arith.constant 0 : index
    %c0_7 = arith.constant 0 : index
    %17 = vector.load %arg4[%c0_6, %c0_7] : memref<2560x256xbf16, #tpu.memory_space<vmem>>, vector<2560x256xbf16>
    %cst_8 = arith.constant dense<0.000000e+00> : vector<8x256xf32>
    %18 = tpu.matmul %16, %17, %cst_8 {dimension_numbers = #tpu.dot_dimension_numbers<[1], [0], [0], [1], [0, 0, 1, 1], [], []>} : vector<8x2560xbf16>, vector<2560x256xbf16>, vector<8x256xf32> -> vector<8x256xf32>
    %c0_9 = arith.constant 0 : index
    %c0_10 = arith.constant 0 : index
    %19 = vector.load %arg5[%c0_9, %c0_10] : memref<1x256xf32, #tpu.memory_space<vmem>>, vector<1x256xf32>
    %20 = vector.broadcast %19 : vector<1x256xf32> to vector<8x256xf32>
    %21 = arith.addf %18, %20 : vector<8x256xf32>
    %cst_11 = arith.constant 0.000000e+00 : f32
    %22 = vector.broadcast %cst_11 : f32 to vector<8x256xf32>
    %23 = arith.maximumf %21, %22 : vector<8x256xf32>
    %c0_12 = arith.constant 0 : index
    %c0_13 = arith.constant 0 : index
    %24 = vector.load %arg6[%c0_12, %c0_13] : memref<1x256xf32, #tpu.memory_space<vmem>>, vector<1x256xf32>
    %25 = vector.broadcast %24 : vector<1x256xf32> to vector<8x256xf32>
    %26 = arith.mulf %23, %25 : vector<8x256xf32>
    %cst_14 = arith.constant dense<0.000000e+00> : vector<8xf32>
    %27 = vector.multi_reduction <add>, %26, %cst_14 [1] : vector<8x256xf32> to vector<8xf32>
    %28 = vector.shape_cast %27 : vector<8xf32> to vector<8x1xf32>
    %cst_15 = arith.constant 0.000000e+00 : f32
    %29 = vector.broadcast %cst_15 : f32 to vector<8x1xf32>
    %30 = arith.subf %29, %28 : vector<8x1xf32>
    %31 = math.exp %30 : vector<8x1xf32>
    %cst_16 = arith.constant 1.000000e+00 : f32
    %32 = vector.broadcast %cst_16 : f32 to vector<8x1xf32>
    %33 = arith.addf %32, %31 : vector<8x1xf32>
    %cst_17 = arith.constant 1.000000e+00 : f32
    %34 = vector.broadcast %cst_17 : f32 to vector<8x1xf32>
    %35 = arith.divf %34, %33 : vector<8x1xf32>
    %c0_18 = arith.constant 0 : index
    %c0_19 = arith.constant 0 : index
    %36 = vector.load %arg7[%c0_18, %c0_19] : memref<8x1xf32, #tpu.memory_space<vmem>>, vector<8x1xf32>
    tpu.vector_store %arg7[%c0_18, %c0_19], %35 {strides = array<i32>} : memref<8x1xf32, #tpu.memory_space<vmem>>, vector<8x1xf32>,
    return
  }
  func.func @transform_0(%arg0: i32) -> (i32, i32) {
    %c0_i32 = arith.constant 0 : i32
    %c0_i32_0 = arith.constant 0 : i32
    return %arg0, %c0_i32 : i32, i32
  }
  func.func @transform_1(%arg0: i32) -> (i32, i32) {
    %c0_i32 = arith.constant 0 : i32
    %c0_i32_0 = arith.constant 0 : i32
    %c0_i32_1 = arith.constant 0 : i32
    return %c0_i32, %c0_i32_0 : i32, i32
  }
  func.func @transform_2(%arg0: i32) -> (i32, i32) {
    %c0_i32 = arith.constant 0 : i32
    %c0_i32_0 = arith.constant 0 : i32
    %c0_i32_1 = arith.constant 0 : i32
    return %c0_i32, %c0_i32_0 : i32, i32
  }
  func.func @transform_3(%arg0: i32) -> (i32, i32) {
    %c0_i32 = arith.constant 0 : i32
    %c0_i32_0 = arith.constant 0 : i32
    %c0_i32_1 = arith.constant 0 : i32
    return %c0_i32, %c0_i32_0 : i32, i32
  }
  func.func @transform_4(%arg0: i32) -> (i32, i32) {
    %c0_i32 = arith.constant 0 : i32
    %c0_i32_0 = arith.constant 0 : i32
    %c0_i32_1 = arith.constant 0 : i32
    return %c0_i32, %c0_i32_0 : i32, i32
  }
  func.func @transform_5(%arg0: i32) -> (i32, i32) {
    %c0_i32 = arith.constant 0 : i32
    %c0_i32_0 = arith.constant 0 : i32
    %c0_i32_1 = arith.constant 0 : i32
    return %c0_i32, %c0_i32_0 : i32, i32
  }
  func.func @transform_6(%arg0: i32) -> (i32, i32) {
    %c0_i32 = arith.constant 0 : i32
    %c0_i32_0 = arith.constant 0 : i32
    return %arg0, %c0_i32 : i32, i32
  }
}

</mosaic_0001>

<bundles_post_ra>
// kernel: net_forward.1
= control target key start
LH: loop header
LB: loop body
LE: loop exit
PB: predicated region body
PF: predicated region fallthrough
CT: control target
= control target key end

     0   :  { %11 = vsyncpa [#allocation3], 0  ;;  %s14684_s0 = inlined_call_operand.vmem [shape: f32[8,256], index: 0, kind: input, shape index: {}]   ;;  %s14685_s1 = inlined_call_operand.hbm [shape: bf16[256,10240], index: 1, kind: input, shape index: {}]   ;;  %s14686_s2 = inlined_call_operand.hbm [shape: f32[1,2560], index: 2, kind: input, shape index: {}]   ;;  %s14687_s3 = inlined_call_operand.hbm [shape: bf16[2560,256], index: 3, kind: input, shape index: {}]   ;;  %s14688_s4 = inlined_call_operand.hbm [shape: f32[1,256], index: 4, kind: input, shape index: {}]   ;;  %s14689_s5 = inlined_call_operand.hbm [shape: f32[1,256], index: 5, kind: input, shape index: {}]   ;;  %s14690_s6 = inlined_call_operand.vmem [shape: f32[8,1], index: 6, kind: output, shape index: {}]  }
   0x1   :  { %12 = vsyncpa [#allocation5], 0 }
   0x2   :  { %13 = vsyncpa [#allocation8], 0  ;;  %s14210_s21 = smov [#allocation4]   ;;  %s14211_s23 = smov [#allocation7]  }
   0x3   :  { %s34_s22 = sshll.u32 %s14210_s21, 4  ;;  %s56_s24 = sshll.u32 %s14211_s23, 4  ;;  %s35_s22 = int_to_ptr.vmem [resolvable:$true] %s34_s22  ;;  %s57_s24 = int_to_ptr.vmem [resolvable:$true] %s56_s24 }
   0x4   :  { %s14112_s25 = scalar_lea.vmem %s35_s22, 320  ;;  %p14117_p1 = scmp.lt.s32.totalorder %s35_s22, %s35_s22 }
   0x5   :  { %p14113_p0 = scmp.ne.s32.totalorder %s35_s22, %s14112_s25  ;;  %p14118_p2 = scmp.lt.s32.totalorder %s14112_s25, %s14112_s25 }
   0x7   :  { %p14119_p3 = por %p14118_p2, %p14117_p1 }
   0x9   :  { %p14120_p4 = pnand %p14119_p3, %p14113_p0 }
   0xb   :  { %14123 = shalt.err (!%p14120_p4)
}
   0xc   :  { %37 = dma.hbm_to_vmem [thread:$0]  %s14686_s2, 320, %s35_s22, [#allocation5]  }
   0xd   :  { %s14132_s28 = scalar_lea.vmem %s57_s24, 32  ;;  %p14137_p6 = scmp.lt.s32.totalorder %s57_s24, %s57_s24 }
   0xe   :  { %p14133_p5 = scmp.ne.s32.totalorder %s57_s24, %s14132_s28  ;;  %p14138_p7 = scmp.lt.s32.totalorder %s14132_s28, %s14132_s28 }
  0x10   :  { %p14139_p8 = por %p14138_p7, %p14137_p6 }
  0x12   :  { %p14140_p9 = pnand %p14139_p8, %p14133_p5 }
  0x14   :  { %14143 = shalt.err (!%p14140_p9)
}
  0x15   :  { %59 = dma.hbm_to_vmem [thread:$0]  %s14688_s4, 32, %s57_s24, [#allocation8]  }
  0x16   :  { %s14212_s7 = smov [#allocation2]  }
  0x17   :  { %s21_s8 = sshll.u32 %s14212_s7, 4  ;;  %s22_s8 = int_to_ptr.vmem [resolvable:$true] %s21_s8 }
  0x18   :  { %s14152_s9 = scalar_lea.vmem %s22_s8, 163840  ;;  %p14157_p11 = scmp.lt.s32.totalorder %s22_s8, %s22_s8 }
  0x19   :  { %p14153_p10 = scmp.ne.s32.totalorder %s22_s8, %s14152_s9  ;;  %p14158_p12 = scmp.lt.s32.totalorder %s14152_s9, %s14152_s9 }
  0x1b   :  { %p14159_p13 = por %p14158_p12, %p14157_p11 }
  0x1d   :  { %p14160_p0 = pnand %p14159_p13, %p14153_p10 }
  0x1f   :  { %14163 = shalt.err (!%p14160_p0)
}
  0x20   :  { %s14213_s2 = smov 5120   ;;  %s14214_s10 = smov 320  }
  0x21   :  { %27 = dma.hbm_to_vmem [thread:$0]  %s14685_s1, 163840, %s22_s8, [#allocation3], %s14213_s2, %s14213_s2, %s14214_s10  }
  0x22   :  { %s14215_s13 = smov [#allocation6]  }
  0x23   :  { %s43_s14 = sshll.u32 %s14215_s13, 4  ;;  %s44_s14 = int_to_ptr.vmem [resolvable:$true] %s43_s14 }
  0x24   :  { %s14172_s4 = scalar_lea.vmem %s44_s14, 40960  ;;  %p14177_p2 = scmp.lt.s32.totalorder %s44_s14, %s44_s14 }
  0x25   :  { %p14173_p1 = scmp.ne.s32.totalorder %s44_s14, %s14172_s4  ;;  %p14178_p3 = scmp.lt.s32.totalorder %s14172_s4, %s14172_s4 }
  0x27   :  { %p14179_p4 = por %p14178_p3, %p14177_p2 }
  0x29   :  { %p14180_p5 = pnand %p14179_p4, %p14173_p1 }
  0x2b   :  { %14183 = shalt.err (!%p14180_p5)
}
  0x2c   :  { %s14216_s15 = smov 128   ;;  %s14217_s16 = smov 8  }
  0x2d   :  { %49 = dma.hbm_to_vmem [thread:$0]  %s14687_s3, 40960, %s44_s14, [#allocation5], %s14216_s15, %s14216_s15, %s14217_s16  }
  0x2e   :  { %s14218_s19 = smov [#allocation9]  }
  0x2f   :  { %s66_s20 = sshll.u32 %s14218_s19, 4  ;;  %s67_s20 = int_to_ptr.vmem [resolvable:$true] %s66_s20 }
  0x30   :  { %s14192_s1 = scalar_lea.vmem %s67_s20, 32  ;;  %p14197_p7 = scmp.lt.s32.totalorder %s67_s20, %s67_s20 }
  0x31   :  { %p14193_p6 = scmp.ne.s32.totalorder %s67_s20, %s14192_s1  ;;  %p14198_p8 = scmp.lt.s32.totalorder %s14192_s1, %s14192_s1 }
  0x33   :  { %p14199_p9 = por %p14198_p8, %p14197_p7 }
  0x35   :  { %p14200_p10 = pnand %p14199_p9, %p14193_p6 }
  0x37   :  { %14203 = shalt.err (!%p14200_p10)
}
  0x38   :  { %69 = dma.hbm_to_vmem [thread:$0]  %s14689_s5, 32, %s67_s20, [#allocation8]  }
  0x39   :  { %14204 = dma.done.wait [#allocation3], 163840  }
  0x3a   :  { %14205 = vsyncadd [#allocation3], 4294803456 }
  0x3b   :  { %14206 = dma.done.wait [#allocation5], 41280  }
  0x3c   :  { %14207 = vsyncadd [#allocation5], 4294926016 }
  0x3d   :  { %14208 = dma.done.wait [#allocation8], 64  }
  0x3e   :  { %14209 = vsyncadd [#allocation8], 4294967232  ;;  %v649_v0 = vld [vmem:[#allocation2 + $0x1180] sm:$0xff]  ;;  %v650_v2 = vld [vmem:[#allocation2 + $0x1188] sm:$0xff]  ;;  %vm12002_vm0 = vcmask 7168  }
  0x3f   :  { %v689_v1 = vld [vmem:[#allocation2 + $0x12c0] sm:$0xff]  ;;  %v690_v4 = vld [vmem:[#allocation2 + $0x12c8] sm:$0xff] }
  0x40   :  { %v12572_v3 = vcombine.high %v649_v0, %v689_v1  ;;  %v12571_v5 = vcombine.low %v649_v0, %v689_v1  ;;  %v569_v6 = vld [vmem:[#allocation2 + $0xf00] sm:$0xff]  ;;  %v12574_v8 = vcombine.high %v650_v2, %v690_v4  ;;  %v12573_v9 = vcombine.low %v650_v2, %v690_v4  ;;  %v570_v11 = vld [vmem:[#allocation2 + $0xf08] sm:$0xff] }
  0x41   :  { %v609_v7 = vld [vmem:[#allocation2 + $0x1040] sm:$0xff]  ;;  %v610_v12 = vld [vmem:[#allocation2 + $0x1048] sm:$0xff] }
  0x42   :  { %v12492_v10 = vcombine.high %v569_v6, %v609_v7  ;;  %v489_v13 = vld [vmem:[#allocation2 + $0xc80] sm:$0xff]  ;;  %7769 = vmatprep.subr.bf16.mxu0 %v12572_v3  ;;  %v12494_v14 = vcombine.high %v570_v11, %v610_v12  ;;  %v490_v16 = vld [vmem:[#allocation2 + $0xc88] sm:$0xff]  ;;  %7810 = vmatprep.subr.bf16.mxu1 %v12574_v8  ;;  %v12491_v18 = vcombine.low %v569_v6, %v609_v7 }
  0x43   :  { %v529_v15 = vld [vmem:[#allocation2 + $0xdc0] sm:$0xff]  ;;  %v530_v17 = vld [vmem:[#allocation2 + $0xdc8] sm:$0xff]  ;;  %7770 = vmatpush1.bf16.msra.mxu0 %v12571_v5  ;;  %7811 = vmatpush1.bf16.msra.mxu1 %v12573_v9  ;;  %v12493_v19 = vcombine.low %v570_v11, %v610_v12 }
  0x44   :  { %7771 = vmatprep.subr.bf16.mxu0 %v12492_v10  ;;  %v12412_v20 = vcombine.high %v489_v13, %v529_v15  ;;  %7812 = vmatprep.subr.bf16.mxu1 %v12494_v14  ;;  %v12414_v21 = vcombine.high %v490_v16, %v530_v17  ;;  %v409_v22 = vld [vmem:[#allocation2 + $0xa00] sm:$0xff]  ;;  %v410_v24 = vld [vmem:[#allocation2 + $0xa08] sm:$0xff]  ;;  %v12411_v26 = vcombine.low %v489_v13, %v529_v15 }
  0x45   :  { %v449_v23 = vld [vmem:[#allocation2 + $0xb40] sm:$0xff]  ;;  %v450_v25 = vld [vmem:[#allocation2 + $0xb48] sm:$0xff]  ;;  %v12413_v27 = vcombine.low %v490_v16, %v530_v17 }
  0x46   :  { %v12332_v28 = vcombine.high %v409_v22, %v449_v23  ;;  %v12334_v29 = vcombine.high %v410_v24, %v450_v25  ;;  %v329_v30 = vld [vmem:[#allocation2 + $0x780] sm:$0xff]  ;;  %v330_v32 = vld [vmem:[#allocation2 + $0x788] sm:$0xff]  ;;  %v12331_v34 = vcombine.low %v409_v22, %v449_v23  ;;  %v12333_v35 = vcombine.low %v410_v24, %v450_v25 }
  0x47   :  { %7772 = vmatpush1.bf16.msra.mxu0 %v12491_v18  ;;  %7813 = vmatpush1.bf16.msra.mxu1 %v12493_v19  ;;  %v369_v31 = vld [vmem:[#allocation2 + $0x8c0] sm:$0xff]  ;;  %v370_v33 = vld [vmem:[#allocation2 + $0x8c8] sm:$0xff] }
  0x48   :  { %7773 = vmatprep.subr.bf16.mxu0 %v12412_v20  ;;  %7814 = vmatprep.subr.bf16.mxu1 %v12414_v21  ;;  %v12252_v36 = vcombine.high %v329_v30, %v369_v31  ;;  %v12254_v37 = vcombine.high %v330_v32, %v370_v33  ;;  %v249_v38 = vld [vmem:[#allocation2 + $0x500] sm:$0xff]  ;;  %v250_v40 = vld [vmem:[#allocation2 + $0x508] sm:$0xff]  ;;  %v12251_v42 = vcombine.low %v329_v30, %v369_v31 }
  0x49   :  { %v289_v39 = vld [vmem:[#allocation2 + $0x640] sm:$0xff]  ;;  %v290_v41 = vld [vmem:[#allocation2 + $0x648] sm:$0xff]  ;;  %v12253_v43 = vcombine.low %v330_v32, %v370_v33 }
  0x4a   :  { %v12172_v44 = vcombine.high %v249_v38, %v289_v39  ;;  %v12174_v45 = vcombine.high %v250_v40, %v290_v41  ;;  %v169_v46 = vld [vmem:[#allocation2 + $0x280] sm:$0xff]  ;;  %v170_v48 = vld [vmem:[#allocation2 + $0x288] sm:$0xff]  ;;  %v12171_v50 = vcombine.low %v249_v38, %v289_v39  ;;  %v12173_v51 = vcombine.low %v250_v40, %v290_v41 }
  0x4b   :  { %7774 = vmatpush1.bf16.msra.mxu0 %v12411_v26  ;;  %7815 = vmatpush1.bf16.msra.mxu1 %v12413_v27  ;;  %v209_v47 = vld [vmem:[#allocation2 + $0x3c0] sm:$0xff]  ;;  %v210_v49 = vld [vmem:[#allocation2 + $0x3c8] sm:$0xff] }
  0x4c   :  { %7775 = vmatprep.subr.bf16.mxu0 %v12332_v28  ;;  %7816 = vmatprep.subr.bf16.mxu1 %v12334_v29  ;;  %v12092_v52 = vcombine.high %v169_v46, %v209_v47  ;;  %v86_v53 = vld [vmem:[%s14684_s0 + $0x8] sm:$0xff]  ;;  %v12094_v54 = vcombine.high %v170_v48, %v210_v49  ;;  %v89_v55 = vld [vmem:[#allocation2] sm:$0xff]  ;;  %v12091_v60 = vcombine.low %v169_v46, %v209_v47 }
  0x4d   :  { %v129_v56 = vld [vmem:[#allocation2 + $0x140] sm:$0xff]  ;;  %v14272_v57 = vpack.c.bf16 %v86_v53, %v86_v53  ;;  %v90_v58 = vld [vmem:[#allocation2 + $0x8] sm:$0xff]  ;;  %v12093_v61 = vcombine.low %v170_v48, %v210_v49 }
  0x4e   :  { %v130_v59 = vld [vmem:[#allocation2 + $0x148] sm:$0xff]  ;;  %v12012_v62 = vcombine.high %v89_v55, %v129_v56  ;;  %v1289_v0 = vld [vmem:[#allocation2 + $0x2580] sm:$0xff]  ;;  %v12011_v4 = vcombine.low %v89_v55, %v129_v56 }
  0x4f   :  { %7776 = vmatpush1.bf16.msra.mxu0 %v12331_v34  ;;  %7817 = vmatpush1.bf16.msra.mxu1 %v12333_v35  ;;  %v12014_v63 = vcombine.high %v90_v58, %v130_v59  ;;  %v1329_v1 = vld [vmem:[#allocation2 + $0x26c0] sm:$0xff]  ;;  %v1290_v2 = vld [vmem:[#allocation2 + $0x2588] sm:$0xff]  ;;  %v12013_v5 = vcombine.low %v90_v58, %v130_v59 }
  0x50   :  { %7777 = vmatprep.subr.bf16.mxu0 %v12252_v36  ;;  %7818 = vmatprep.subr.bf16.mxu1 %v12254_v37  ;;  %v1330_v3 = vld [vmem:[#allocation2 + $0x26c8] sm:$0xff]  ;;  %v13212_v6 = vcombine.high %v1289_v0, %v1329_v1  ;;  %v1209_v8 = vld [vmem:[#allocation2 + $0x2300] sm:$0xff]  ;;  %v13211_v12 = vcombine.low %v1289_v0, %v1329_v1  ;;  %v651_v1 = vld [vmem:[#allocation2 + $0x1190] sm:$0xff] }
  0x51   :  { %7801 = vmatprep.mubr.bf16.mxu0 %v14272_v57  ;;  %7842 = vmatprep.mubr.bf16.mxu1 %v14272_v57  ;;  %v13214_v7 = vcombine.high %v1290_v2, %v1330_v3  ;;  %v1249_v9 = vld [vmem:[#allocation2 + $0x2440] sm:$0xff]  ;;  %v1210_v10 = vld [vmem:[#allocation2 + $0x2308] sm:$0xff]  ;;  %v13213_v13 = vcombine.low %v1290_v2, %v1330_v3  ;;  %v691_v2 = vld [vmem:[#allocation2 + $0x12d0] sm:$0xff] }
  0x52   :  { %v1250_v11 = vld [vmem:[#allocation2 + $0x2448] sm:$0xff]  ;;  %v13132_v14 = vcombine.high %v1209_v8, %v1249_v9  ;;  %v1129_v16 = vld [vmem:[#allocation2 + $0x2080] sm:$0xff]  ;;  %v13131_v20 = vcombine.low %v1209_v8, %v1249_v9  ;;  %v652_v3 = vld [vmem:[#allocation2 + $0x1198] sm:$0xff]  ;;  %v12576_v8 = vcombine.high %v651_v1, %v691_v2 }
  0x53   :  { %7778 = vmatpush1.bf16.msra.mxu0 %v12251_v42  ;;  %7819 = vmatpush1.bf16.msra.mxu1 %v12253_v43  ;;  %v13134_v15 = vcombine.high %v1210_v10, %v1250_v11  ;;  %v1169_v17 = vld [vmem:[#allocation2 + $0x21c0] sm:$0xff]  ;;  %v1130_v18 = vld [vmem:[#allocation2 + $0x2088] sm:$0xff]  ;;  %v13133_v21 = vcombine.low %v1210_v10, %v1250_v11  ;;  %v571_v10 = vld [vmem:[#allocation2 + $0xf10] sm:$0xff] }
  0x54   :  { %7779 = vmatprep.subr.bf16.mxu0 %v12172_v44  ;;  %7820 = vmatprep.subr.bf16.mxu1 %v12174_v45  ;;  %v1170_v19 = vld [vmem:[#allocation2 + $0x21c8] sm:$0xff]  ;;  %v13052_v22 = vcombine.high %v1129_v16, %v1169_v17  ;;  %v1049_v24 = vld [vmem:[#allocation2 + $0x1e00] sm:$0xff]  ;;  %v13051_v28 = vcombine.low %v1129_v16, %v1169_v17  ;;  %v611_v11 = vld [vmem:[#allocation2 + $0x1050] sm:$0xff] }
  0x55   :  { %v13054_v23 = vcombine.high %v1130_v18, %v1170_v19  ;;  %v1089_v25 = vld [vmem:[#allocation2 + $0x1f40] sm:$0xff]  ;;  %v1050_v26 = vld [vmem:[#allocation2 + $0x1e08] sm:$0xff]  ;;  %v13053_v29 = vcombine.low %v1130_v18, %v1170_v19  ;;  %v12496_v17 = vcombine.high %v571_v10, %v611_v11  ;;  %v491_v18 = vld [vmem:[#allocation2 + $0xc90] sm:$0xff] }
  0x56   :  { %v1090_v27 = vld [vmem:[#allocation2 + $0x1f48] sm:$0xff]  ;;  %v12972_v30 = vcombine.high %v1049_v24, %v1089_v25  ;;  %v969_v32 = vld [vmem:[#allocation2 + $0x1b80] sm:$0xff]  ;;  %v12971_v36 = vcombine.low %v1049_v24, %v1089_v25  ;;  %v531_v19 = vld [vmem:[#allocation2 + $0xdd0] sm:$0xff] }
  0x57   :  { %7780 = vmatpush1.bf16.msra.mxu0 %v12171_v50  ;;  %7821 = vmatpush1.bf16.msra.mxu1 %v12173_v51  ;;  %v12974_v31 = vcombine.high %v1050_v26, %v1090_v27  ;;  %v1009_v33 = vld [vmem:[#allocation2 + $0x1cc0] sm:$0xff]  ;;  %v970_v34 = vld [vmem:[#allocation2 + $0x1b88] sm:$0xff]  ;;  %v12973_v37 = vcombine.low %v1050_v26, %v1090_v27  ;;  %v12416_v25 = vcombine.high %v491_v18, %v531_v19  ;;  %v411_v26 = vld [vmem:[#allocation2 + $0xa10] sm:$0xff] }
  0x58   :  { %7781 = vmatprep.subr.bf16.mxu0 %v12092_v52  ;;  %7822 = vmatprep.subr.bf16.mxu1 %v12094_v54  ;;  %v1010_v35 = vld [vmem:[#allocation2 + $0x1cc8] sm:$0xff]  ;;  %v12892_v38 = vcombine.high %v969_v32, %v1009_v33  ;;  %v889_v40 = vld [vmem:[#allocation2 + $0x1900] sm:$0xff]  ;;  %v12891_v44 = vcombine.low %v969_v32, %v1009_v33  ;;  %v451_v27 = vld [vmem:[#allocation2 + $0xb50] sm:$0xff] }
  0x59   :  { %v12894_v39 = vcombine.high %v970_v34, %v1010_v35  ;;  %v929_v41 = vld [vmem:[#allocation2 + $0x1a40] sm:$0xff]  ;;  %v890_v42 = vld [vmem:[#allocation2 + $0x1908] sm:$0xff]  ;;  %v12893_v45 = vcombine.low %v970_v34, %v1010_v35  ;;  %v12336_v33 = vcombine.high %v411_v26, %v451_v27  ;;  %v331_v34 = vld [vmem:[#allocation2 + $0x790] sm:$0xff] }
  0x5a   :  { %v930_v43 = vld [vmem:[#allocation2 + $0x1a48] sm:$0xff]  ;;  %v12812_v46 = vcombine.high %v889_v40, %v929_v41  ;;  %v809_v48 = vld [vmem:[#allocation2 + $0x1680] sm:$0xff]  ;;  %v12811_v52 = vcombine.low %v889_v40, %v929_v41  ;;  %v371_v35 = vld [vmem:[#allocation2 + $0x8d0] sm:$0xff] }
  0x5b   :  { %7782 = vmatpush1.bf16.msra.mxu0 %v12091_v60  ;;  %7823 = vmatpush1.bf16.msra.mxu1 %v12093_v61  ;;  %v12814_v47 = vcombine.high %v890_v42, %v930_v43  ;;  %v849_v49 = vld [vmem:[#allocation2 + $0x17c0] sm:$0xff]  ;;  %v810_v50 = vld [vmem:[#allocation2 + $0x1688] sm:$0xff]  ;;  %v12813_v53 = vcombine.low %v890_v42, %v930_v43  ;;  %v12256_v41 = vcombine.high %v331_v34, %v371_v35  ;;  %v251_v42 = vld [vmem:[#allocation2 + $0x510] sm:$0xff] }
  0x5c   :  { %7783 = vmatprep.subr.bf16.mxu0 %v12012_v62  ;;  %7824 = vmatprep.subr.bf16.mxu1 %v12014_v63  ;;  %v850_v51 = vld [vmem:[#allocation2 + $0x17c8] sm:$0xff]  ;;  %v12732_v54 = vcombine.high %v809_v48, %v849_v49  ;;  %v729_v56 = vld [vmem:[#allocation2 + $0x1400] sm:$0xff]  ;;  %v12731_v61 = vcombine.low %v809_v48, %v849_v49  ;;  %v291_v43 = vld [vmem:[#allocation2 + $0x650] sm:$0xff] }
  0x5d   :  { %v12734_v55 = vcombine.high %v810_v50, %v850_v51  ;;  %v769_v58 = vld [vmem:[#allocation2 + $0x1540] sm:$0xff]  ;;  %v730_v59 = vld [vmem:[#allocation2 + $0x1408] sm:$0xff]  ;;  %v12733_v62 = vcombine.low %v810_v50, %v850_v51  ;;  %v12176_v49 = vcombine.high %v251_v42, %v291_v43  ;;  %v171_v50 = vld [vmem:[#allocation2 + $0x290] sm:$0xff] }
  0x5e   :  { %v770_v60 = vld [vmem:[#allocation2 + $0x1548] sm:$0xff]  ;;  %v12652_v63 = vcombine.high %v729_v56, %v769_v58  ;;  %v211_v51 = vld [vmem:[#allocation2 + $0x3d0] sm:$0xff] }
  0x5f   :  { %7784 = vmatpush1.bf16.msra.mxu0 %v12011_v4  ;;  %7825 = vmatpush1.bf16.msra.mxu1 %v12013_v5  ;;  %v12654_v0 = vcombine.high %v730_v59, %v770_v60  ;;  %v692_v4 = vld [vmem:[#allocation2 + $0x12d8] sm:$0xff]  ;;  %v12651_v5 = vcombine.low %v729_v56, %v769_v58  ;;  %v12096_v58 = vcombine.high %v171_v50, %v211_v51 }
  0x60   :  { %7785 = vmatprep.subr.bf16.mxu0 %v13212_v6  ;;  %7826 = vmatprep.subr.bf16.mxu1 %v13214_v7  ;;  %v85_v6 = vld [vmem:[%s14684_s0] sm:$0xff]  ;;  %v12653_v7 = vcombine.low %v730_v59, %v770_v60  ;;  %v12578_v9 = vcombine.high %v652_v3, %v692_v4  ;;  %v12577_v16 = vcombine.low %v652_v3, %v692_v4  ;;  %v91_v59 = vld [vmem:[#allocation2 + $0x10] sm:$0xff] }
  0x61   :  { %v131_v60 = vld [vmem:[#allocation2 + $0x150] sm:$0xff] }
  0x62   :  { %v1291_v3 = vld [vmem:[#allocation2 + $0x2590] sm:$0xff] }
  0x63   :  { %7786 = vmatpush2.bf16.msra.mxu0 %v13211_v12  ;;  %7827 = vmatpush2.bf16.msra.mxu1 %v13213_v13  ;;  %v14279_v12 = vpack.c.bf16 %v85_v6, %v85_v6  ;;  %v572_v13 = vld [vmem:[#allocation2 + $0xf18] sm:$0xff]  ;;  %v1331_v4 = vld [vmem:[#allocation2 + $0x26d0] sm:$0xff] }
  0x64   :  { %7787 = vmatprep.subr.bf16.mxu0 %v13132_v14  ;;  %7828 = vmatprep.subr.bf16.mxu1 %v13134_v15  ;;  %v612_v14 = vld [vmem:[#allocation2 + $0x1058] sm:$0xff]  ;;  %v12575_v15 = vcombine.low %v651_v1, %v691_v2  ;;  %v12016_v2 = vcombine.high %v91_v59, %v131_v60 }
  0x65   :  { %v12497_v24 = vcombine.low %v572_v13, %v612_v14 }
  0x67   :  { %7788 = vmatpush2.bf16.msra.mxu0 %v13131_v20  ;;  %7829 = vmatpush2.bf16.msra.mxu1 %v13133_v21  ;;  %v492_v20 = vld [vmem:[#allocation2 + $0xc98] sm:$0xff]  ;;  %v12498_v21 = vcombine.high %v572_v13, %v612_v14  ;;  %v1251_v13 = vld [vmem:[#allocation2 + $0x2450] sm:$0xff] }
  0x68   :  { %7789 = vmatprep.subr.bf16.mxu0 %v13052_v22  ;;  %7830 = vmatprep.subr.bf16.mxu1 %v13054_v23  ;;  %v532_v22 = vld [vmem:[#allocation2 + $0xdd8] sm:$0xff]  ;;  %v12495_v23 = vcombine.low %v571_v10, %v611_v11  ;;  %v13216_v10 = vcombine.high %v1291_v3, %v1331_v4  ;;  %v1211_v11 = vld [vmem:[#allocation2 + $0x2310] sm:$0xff] }
  0x69   :  { %v12417_v32 = vcombine.low %v492_v20, %v532_v22  ;;  %v1212_v14 = vld [vmem:[#allocation2 + $0x2318] sm:$0xff] }
  0x6b   :  { %7790 = vmatpush2.bf16.msra.mxu0 %v13051_v28  ;;  %7831 = vmatpush2.bf16.msra.mxu1 %v13053_v29  ;;  %v412_v28 = vld [vmem:[#allocation2 + $0xa18] sm:$0xff]  ;;  %v12418_v29 = vcombine.high %v492_v20, %v532_v22  ;;  %v1131_v20 = vld [vmem:[#allocation2 + $0x2090] sm:$0xff] }
  0x6c   :  { %7791 = vmatprep.subr.bf16.mxu0 %v12972_v30  ;;  %7832 = vmatprep.subr.bf16.mxu1 %v12974_v31  ;;  %v452_v30 = vld [vmem:[#allocation2 + $0xb58] sm:$0xff]  ;;  %v12415_v31 = vcombine.low %v491_v18, %v531_v19  ;;  %v13136_v19 = vcombine.high %v1211_v11, %v1251_v13 }
  0x6d   :  { %v12337_v40 = vcombine.low %v412_v28, %v452_v30  ;;  %v1132_v22 = vld [vmem:[#allocation2 + $0x2098] sm:$0xff] }
  0x6f   :  { %7792 = vmatpush2.bf16.msra.mxu0 %v12971_v36  ;;  %7833 = vmatpush2.bf16.msra.mxu1 %v12973_v37  ;;  %v332_v36 = vld [vmem:[#allocation2 + $0x798] sm:$0xff]  ;;  %v12338_v37 = vcombine.high %v412_v28, %v452_v30  ;;  %v1051_v28 = vld [vmem:[#allocation2 + $0x1e10] sm:$0xff] }
  0x70   :  { %7793 = vmatprep.subr.bf16.mxu0 %v12892_v38  ;;  %7834 = vmatprep.subr.bf16.mxu1 %v12894_v39  ;;  %v372_v38 = vld [vmem:[#allocation2 + $0x8d8] sm:$0xff]  ;;  %v12335_v39 = vcombine.low %v411_v26, %v451_v27 }
  0x71   :  { %v12257_v48 = vcombine.low %v332_v36, %v372_v38  ;;  %v1052_v30 = vld [vmem:[#allocation2 + $0x1e18] sm:$0xff] }
  0x73   :  { %7794 = vmatpush2.bf16.msra.mxu0 %v12891_v44  ;;  %7835 = vmatpush2.bf16.msra.mxu1 %v12893_v45  ;;  %v252_v44 = vld [vmem:[#allocation2 + $0x518] sm:$0xff]  ;;  %v12258_v45 = vcombine.high %v332_v36, %v372_v38  ;;  %v971_v36 = vld [vmem:[#allocation2 + $0x1b90] sm:$0xff] }
  0x74   :  { %7795 = vmatprep.subr.bf16.mxu0 %v12812_v46  ;;  %7836 = vmatprep.subr.bf16.mxu1 %v12814_v47  ;;  %v292_v46 = vld [vmem:[#allocation2 + $0x658] sm:$0xff]  ;;  %v12255_v47 = vcombine.low %v331_v34, %v371_v35 }
  0x75   :  { %v12177_v56 = vcombine.low %v252_v44, %v292_v46  ;;  %v972_v38 = vld [vmem:[#allocation2 + $0x1b98] sm:$0xff] }
  0x77   :  { %7796 = vmatpush2.bf16.msra.mxu0 %v12811_v52  ;;  %7837 = vmatpush2.bf16.msra.mxu1 %v12813_v53  ;;  %v172_v52 = vld [vmem:[#allocation2 + $0x298] sm:$0xff]  ;;  %v12178_v53 = vcombine.high %v252_v44, %v292_v46  ;;  %v891_v44 = vld [vmem:[#allocation2 + $0x1910] sm:$0xff] }
  0x78   :  { %7797 = vmatprep.subr.bf16.mxu0 %v12732_v54  ;;  %7838 = vmatprep.subr.bf16.mxu1 %v12734_v55  ;;  %v212_v54 = vld [vmem:[#allocation2 + $0x3d8] sm:$0xff]  ;;  %v12175_v55 = vcombine.low %v251_v42, %v291_v43 }
  0x79   :  { %v12097_v1 = vcombine.low %v172_v52, %v212_v54  ;;  %v892_v46 = vld [vmem:[#allocation2 + $0x1918] sm:$0xff] }
  0x7b   :  { %7798 = vmatpush2.bf16.msra.mxu0 %v12731_v61  ;;  %7839 = vmatpush2.bf16.msra.mxu1 %v12733_v62  ;;  %v92_v61 = vld [vmem:[#allocation2 + $0x18] sm:$0xff]  ;;  %v12098_v62 = vcombine.high %v172_v52, %v212_v54  ;;  %v811_v52 = vld [vmem:[#allocation2 + $0x1690] sm:$0xff] }
  0x7c   :  { %7799 = vmatprep.subr.bf16.mxu0 %v12652_v63  ;;  %7840 = vmatprep.subr.bf16.mxu1 %v12654_v0  ;;  %v132_v63 = vld [vmem:[#allocation2 + $0x158] sm:$0xff]  ;;  %v12095_v0 = vcombine.low %v171_v50, %v211_v51 }
  0x7d   :  { %v12018_v6 = vcombine.high %v92_v61, %v132_v63  ;;  %v812_v54 = vld [vmem:[#allocation2 + $0x1698] sm:$0xff] }
  0x7f   :  { %7800 = vmatpush2.bf16.msra.mxu0 %v12651_v5  ;;  %7841 = vmatpush2.bf16.msra.mxu1 %v12653_v7  ;;  %v1292_v5 = vld [vmem:[#allocation2 + $0x2598] sm:$0xff] }
  0x80   :  { %7851 = vmatprep.subr.bf16.mxu0 %v12576_v8  ;;  %7892 = vmatprep.subr.bf16.mxu1 %v12578_v9  ;;  %v1332_v7 = vld [vmem:[#allocation2 + $0x26d8] sm:$0xff]  ;;  %v12015_v8 = vcombine.low %v91_v59, %v131_v60  ;;  %v12017_v9 = vcombine.low %v92_v61, %v132_v63  ;;  %v731_v61 = vld [vmem:[#allocation2 + $0x1410] sm:$0xff] }
  0x81   :  { %v13217_v18 = vcombine.low %v1292_v5, %v1332_v7  ;;  %v732_v63 = vld [vmem:[#allocation2 + $0x1418] sm:$0xff] }
  0x82   :  { %7802 = vmatmul.mubr.bf16.vlgmr.msra.gmra.mxu0 %v14279_v12  ;;  %7843 = vmatmul.mubr.bf16.vlgmr.msra.gmra.mxu1 %v14279_v12 }
  0x83   :  { %7852 = vmatpush1.bf16.msra.mxu0 %v12575_v15  ;;  %7893 = vmatpush1.bf16.msra.mxu1 %v12577_v16  ;;  %v13218_v15 = vcombine.high %v1292_v5, %v1332_v7  ;;  %v1252_v16 = vld [vmem:[#allocation2 + $0x2458] sm:$0xff]  ;;  %v653_v5 = vld [vmem:[#allocation2 + $0x11a0] sm:$0xff]  ;;  %v654_v7 = vld [vmem:[#allocation2 + $0x11a8] sm:$0xff] }
  0x84   :  { %7853 = vmatprep.subr.bf16.mxu0 %v12496_v17  ;;  %7894 = vmatprep.subr.bf16.mxu1 %v12498_v21  ;;  %v13215_v17 = vcombine.low %v1291_v3, %v1331_v4  ;;  %v1171_v21 = vld [vmem:[#allocation2 + $0x21d0] sm:$0xff]  ;;  %v13137_v26 = vcombine.low %v1212_v14, %v1252_v16 }
  0x85   :  { %7883 = vmatprep.mubr.bf16.mxu0 %v14272_v57  ;;  %7924 = vmatprep.mubr.bf16.mxu1 %v14272_v57  ;;  %v13056_v27 = vcombine.high %v1131_v20, %v1171_v21 }
  0x87   :  { %7854 = vmatpush1.bf16.msra.mxu0 %v12495_v23  ;;  %7895 = vmatpush1.bf16.msra.mxu1 %v12497_v24  ;;  %v13138_v23 = vcombine.high %v1212_v14, %v1252_v16  ;;  %v1172_v24 = vld [vmem:[#allocation2 + $0x21d8] sm:$0xff]  ;;  %v573_v14 = vld [vmem:[#allocation2 + $0xf20] sm:$0xff]  ;;  %v574_v16 = vld [vmem:[#allocation2 + $0xf28] sm:$0xff] }
  0x88   :  { %7855 = vmatprep.subr.bf16.mxu0 %v12416_v25  ;;  %7896 = vmatprep.subr.bf16.mxu1 %v12418_v29  ;;  %v13135_v25 = vcombine.low %v1211_v11, %v1251_v13  ;;  %v1091_v29 = vld [vmem:[#allocation2 + $0x1f50] sm:$0xff]  ;;  %v13057_v34 = vcombine.low %v1132_v22, %v1172_v24 }
  0x89   :  { %v12976_v35 = vcombine.high %v1051_v28, %v1091_v29 }
  0x8b   :  { %7856 = vmatpush1.bf16.msra.mxu0 %v12415_v31  ;;  %7897 = vmatpush1.bf16.msra.mxu1 %v12417_v32  ;;  %v13058_v31 = vcombine.high %v1132_v22, %v1172_v24  ;;  %v1092_v32 = vld [vmem:[#allocation2 + $0x1f58] sm:$0xff]  ;;  %v493_v22 = vld [vmem:[#allocation2 + $0xca0] sm:$0xff]  ;;  %v494_v24 = vld [vmem:[#allocation2 + $0xca8] sm:$0xff] }
  0x8c   :  { %7857 = vmatprep.subr.bf16.mxu0 %v12336_v33  ;;  %7898 = vmatprep.subr.bf16.mxu1 %v12338_v37  ;;  %v13055_v33 = vcombine.low %v1131_v20, %v1171_v21  ;;  %v1011_v37 = vld [vmem:[#allocation2 + $0x1cd0] sm:$0xff]  ;;  %v12977_v42 = vcombine.low %v1052_v30, %v1092_v32 }
  0x8d   :  { %v12896_v43 = vcombine.high %v971_v36, %v1011_v37 }
  0x8f   :  { %7858 = vmatpush1.bf16.msra.mxu0 %v12335_v39  ;;  %7899 = vmatpush1.bf16.msra.mxu1 %v12337_v40  ;;  %v12978_v39 = vcombine.high %v1052_v30, %v1092_v32  ;;  %v1012_v40 = vld [vmem:[#allocation2 + $0x1cd8] sm:$0xff]  ;;  %v413_v30 = vld [vmem:[#allocation2 + $0xa20] sm:$0xff]  ;;  %v414_v32 = vld [vmem:[#allocation2 + $0xa28] sm:$0xff] }
  0x90   :  { %7859 = vmatprep.subr.bf16.mxu0 %v12256_v41  ;;  %7900 = vmatprep.subr.bf16.mxu1 %v12258_v45  ;;  %v12975_v41 = vcombine.low %v1051_v28, %v1091_v29  ;;  %v931_v45 = vld [vmem:[#allocation2 + $0x1a50] sm:$0xff]  ;;  %v12897_v50 = vcombine.low %v972_v38, %v1012_v40 }
  0x91   :  { %v12816_v51 = vcombine.high %v891_v44, %v931_v45 }
  0x93   :  { %7860 = vmatpush1.bf16.msra.mxu0 %v12255_v47  ;;  %7901 = vmatpush1.bf16.msra.mxu1 %v12257_v48  ;;  %v12898_v47 = vcombine.high %v972_v38, %v1012_v40  ;;  %v932_v48 = vld [vmem:[#allocation2 + $0x1a58] sm:$0xff]  ;;  %v333_v38 = vld [vmem:[#allocation2 + $0x7a0] sm:$0xff]  ;;  %v334_v40 = vld [vmem:[#allocation2 + $0x7a8] sm:$0xff] }
  0x94   :  { %7861 = vmatprep.subr.bf16.mxu0 %v12176_v49  ;;  %7902 = vmatprep.subr.bf16.mxu1 %v12178_v53  ;;  %v12895_v49 = vcombine.low %v971_v36, %v1011_v37  ;;  %v851_v53 = vld [vmem:[#allocation2 + $0x17d0] sm:$0xff]  ;;  %v12817_v59 = vcombine.low %v892_v46, %v932_v48 }
  0x95   :  { %v12736_v60 = vcombine.high %v811_v52, %v851_v53 }
  0x97   :  { %7862 = vmatpush1.bf16.msra.mxu0 %v12175_v55  ;;  %7903 = vmatpush1.bf16.msra.mxu1 %v12177_v56  ;;  %v12818_v55 = vcombine.high %v892_v46, %v932_v48  ;;  %v852_v56 = vld [vmem:[#allocation2 + $0x17d8] sm:$0xff]  ;;  %v253_v46 = vld [vmem:[#allocation2 + $0x520] sm:$0xff]  ;;  %v254_v48 = vld [vmem:[#allocation2 + $0x528] sm:$0xff] }
  0x98   :  { %7863 = vmatprep.subr.bf16.mxu0 %v12096_v58  ;;  %7904 = vmatprep.subr.bf16.mxu1 %v12098_v62  ;;  %v12815_v58 = vcombine.low %v891_v44, %v931_v45  ;;  %v771_v62 = vld [vmem:[#allocation2 + $0x1550] sm:$0xff]  ;;  %v12737_v3 = vcombine.low %v812_v54, %v852_v56 }
  0x99   :  { %v12656_v4 = vcombine.high %v731_v61, %v771_v62 }
  0x9b   :  { %7864 = vmatpush1.bf16.msra.mxu0 %v12095_v0  ;;  %7905 = vmatpush1.bf16.msra.mxu1 %v12097_v1  ;;  %v12738_v0 = vcombine.high %v812_v54, %v852_v56  ;;  %v772_v1 = vld [vmem:[#allocation2 + $0x1558] sm:$0xff]  ;;  %v173_v54 = vld [vmem:[#allocation2 + $0x2a0] sm:$0xff]  ;;  %v174_v56 = vld [vmem:[#allocation2 + $0x2a8] sm:$0xff] }
  0x9c   :  { %7865 = vmatprep.subr.bf16.mxu0 %v12016_v2  ;;  %7906 = vmatprep.subr.bf16.mxu1 %v12018_v6  ;;  %v12735_v2 = vcombine.low %v811_v52, %v851_v53  ;;  %v693_v6 = vld [vmem:[#allocation2 + $0x12e0] sm:$0xff]  ;;  %v12657_v11 = vcombine.low %v732_v63, %v772_v1 }
  0x9d   :  { %v12580_v13 = vcombine.high %v653_v5, %v693_v6 }
  0x9f   :  { %7866 = vmatpush1.bf16.msra.mxu0 %v12015_v8  ;;  %7907 = vmatpush1.bf16.msra.mxu1 %v12017_v9  ;;  %v12658_v8 = vcombine.high %v732_v63, %v772_v1  ;;  %v694_v9 = vld [vmem:[#allocation2 + $0x12e8] sm:$0xff]  ;;  %v93_v63 = vld [vmem:[#allocation2 + $0x20] sm:$0xff] }
  0xa0   :  { %7867 = vmatprep.subr.bf16.mxu0 %v13216_v10  ;;  %7908 = vmatprep.subr.bf16.mxu1 %v13218_v15  ;;  %v12655_v10 = vcombine.low %v731_v61, %v771_v62  ;;  %v613_v15 = vld [vmem:[#allocation2 + $0x1060] sm:$0xff]  ;;  %v12581_v20 = vcombine.low %v654_v7, %v694_v9  ;;  %v94_v1 = vld [vmem:[#allocation2 + $0x28] sm:$0xff] }
  0xa1   :  { %v12500_v21 = vcombine.high %v573_v14, %v613_v15 }
  0xa3   :  { %7868 = vmatpush2.bf16.msra.mxu0 %v13215_v17  ;;  %7909 = vmatpush2.bf16.msra.mxu1 %v13217_v18  ;;  %v12582_v17 = vcombine.high %v654_v7, %v694_v9  ;;  %v614_v18 = vld [vmem:[#allocation2 + $0x1068] sm:$0xff]  ;;  %v1293_v7 = vld [vmem:[#allocation2 + $0x25a0] sm:$0xff] }
  0xa4   :  { %7869 = vmatprep.subr.bf16.mxu0 %v13136_v19  ;;  %7910 = vmatprep.subr.bf16.mxu1 %v13138_v23  ;;  %v12579_v19 = vcombine.low %v653_v5, %v693_v6  ;;  %v533_v23 = vld [vmem:[#allocation2 + $0xde0] sm:$0xff]  ;;  %v12501_v28 = vcombine.low %v574_v16, %v614_v18  ;;  %v1294_v9 = vld [vmem:[#allocation2 + $0x25a8] sm:$0xff] }
  0xa5   :  { %v12420_v29 = vcombine.high %v493_v22, %v533_v23 }
  0xa7   :  { %7870 = vmatpush2.bf16.msra.mxu0 %v13135_v25  ;;  %7911 = vmatpush2.bf16.msra.mxu1 %v13137_v26  ;;  %v12502_v25 = vcombine.high %v574_v16, %v614_v18  ;;  %v534_v26 = vld [vmem:[#allocation2 + $0xde8] sm:$0xff]  ;;  %v1213_v16 = vld [vmem:[#allocation2 + $0x2320] sm:$0xff] }
  0xa8   :  { %7871 = vmatprep.subr.bf16.mxu0 %v13056_v27  ;;  %7912 = vmatprep.subr.bf16.mxu1 %v13058_v31  ;;  %v12499_v27 = vcombine.low %v573_v14, %v613_v15  ;;  %v453_v31 = vld [vmem:[#allocation2 + $0xb60] sm:$0xff]  ;;  %v12421_v36 = vcombine.low %v494_v24, %v534_v26  ;;  %v1214_v18 = vld [vmem:[#allocation2 + $0x2328] sm:$0xff] }
  0xa9   :  { %v12340_v37 = vcombine.high %v413_v30, %v453_v31 }
  0xab   :  { %7872 = vmatpush2.bf16.msra.mxu0 %v13055_v33  ;;  %7913 = vmatpush2.bf16.msra.mxu1 %v13057_v34  ;;  %v12422_v33 = vcombine.high %v494_v24, %v534_v26  ;;  %v454_v34 = vld [vmem:[#allocation2 + $0xb68] sm:$0xff]  ;;  %v1133_v24 = vld [vmem:[#allocation2 + $0x20a0] sm:$0xff] }
  0xac   :  { %7873 = vmatprep.subr.bf16.mxu0 %v12976_v35  ;;  %7914 = vmatprep.subr.bf16.mxu1 %v12978_v39  ;;  %v12419_v35 = vcombine.low %v493_v22, %v533_v23  ;;  %v373_v39 = vld [vmem:[#allocation2 + $0x8e0] sm:$0xff]  ;;  %v12341_v44 = vcombine.low %v414_v32, %v454_v34  ;;  %v1134_v26 = vld [vmem:[#allocation2 + $0x20a8] sm:$0xff] }
  0xad   :  { %v12260_v45 = vcombine.high %v333_v38, %v373_v39 }
  0xaf   :  { %7874 = vmatpush2.bf16.msra.mxu0 %v12975_v41  ;;  %7915 = vmatpush2.bf16.msra.mxu1 %v12977_v42  ;;  %v12342_v41 = vcombine.high %v414_v32, %v454_v34  ;;  %v374_v42 = vld [vmem:[#allocation2 + $0x8e8] sm:$0xff]  ;;  %v1053_v32 = vld [vmem:[#allocation2 + $0x1e20] sm:$0xff] }
  0xb0   :  { %7875 = vmatprep.subr.bf16.mxu0 %v12896_v43  ;;  %7916 = vmatprep.subr.bf16.mxu1 %v12898_v47  ;;  %v12339_v43 = vcombine.low %v413_v30, %v453_v31  ;;  %v293_v47 = vld [vmem:[#allocation2 + $0x660] sm:$0xff]  ;;  %v12261_v52 = vcombine.low %v334_v40, %v374_v42  ;;  %v1054_v34 = vld [vmem:[#allocation2 + $0x1e28] sm:$0xff] }
  0xb1   :  { %v12180_v53 = vcombine.high %v253_v46, %v293_v47 }
  0xb3   :  { %7876 = vmatpush2.bf16.msra.mxu0 %v12895_v49  ;;  %7917 = vmatpush2.bf16.msra.mxu1 %v12897_v50  ;;  %v12262_v49 = vcombine.high %v334_v40, %v374_v42  ;;  %v294_v50 = vld [vmem:[#allocation2 + $0x668] sm:$0xff]  ;;  %v973_v40 = vld [vmem:[#allocation2 + $0x1ba0] sm:$0xff] }
  0xb4   :  { %7877 = vmatprep.subr.bf16.mxu0 %v12816_v51  ;;  %7918 = vmatprep.subr.bf16.mxu1 %v12818_v55  ;;  %v12259_v51 = vcombine.low %v333_v38, %v373_v39  ;;  %v213_v55 = vld [vmem:[#allocation2 + $0x3e0] sm:$0xff]  ;;  %v12181_v61 = vcombine.low %v254_v48, %v294_v50  ;;  %v974_v42 = vld [vmem:[#allocation2 + $0x1ba8] sm:$0xff] }
  0xb5   :  { %v12100_v62 = vcombine.high %v173_v54, %v213_v55 }
  0xb7   :  { %7878 = vmatpush2.bf16.msra.mxu0 %v12815_v58  ;;  %7919 = vmatpush2.bf16.msra.mxu1 %v12817_v59  ;;  %v12182_v58 = vcombine.high %v254_v48, %v294_v50  ;;  %v214_v59 = vld [vmem:[#allocation2 + $0x3e8] sm:$0xff]  ;;  %v893_v48 = vld [vmem:[#allocation2 + $0x1920] sm:$0xff] }
  0xb8   :  { %7879 = vmatprep.subr.bf16.mxu0 %v12736_v60  ;;  %7920 = vmatprep.subr.bf16.mxu1 %v12738_v0  ;;  %v12179_v60 = vcombine.low %v253_v46, %v293_v47  ;;  %v133_v0 = vld [vmem:[#allocation2 + $0x160] sm:$0xff]  ;;  %v12101_v5 = vcombine.low %v174_v56, %v214_v59  ;;  %v894_v50 = vld [vmem:[#allocation2 + $0x1928] sm:$0xff] }
  0xb9   :  { %v12020_v6 = vcombine.high %v93_v63, %v133_v0 }
  0xbb   :  { %7880 = vmatpush2.bf16.msra.mxu0 %v12735_v2  ;;  %7921 = vmatpush2.bf16.msra.mxu1 %v12737_v3  ;;  %v12102_v2 = vcombine.high %v174_v56, %v214_v59  ;;  %v134_v3 = vld [vmem:[#allocation2 + $0x168] sm:$0xff]  ;;  %v813_v56 = vld [vmem:[#allocation2 + $0x16a0] sm:$0xff] }
  0xbc   :  { %7881 = vmatprep.subr.bf16.mxu0 %v12656_v4  ;;  %7922 = vmatprep.subr.bf16.mxu1 %v12658_v8  ;;  %v12099_v4 = vcombine.low %v173_v54, %v213_v55  ;;  %v1333_v8 = vld [vmem:[#allocation2 + $0x26e0] sm:$0xff]  ;;  %v12021_v14 = vcombine.low %v94_v1, %v134_v3  ;;  %v814_v59 = vld [vmem:[#allocation2 + $0x16a8] sm:$0xff] }
  0xbd   :  { %v13220_v15 = vcombine.high %v1293_v7, %v1333_v8 }
  0xbf   :  { %7882 = vmatpush2.bf16.msra.mxu0 %v12655_v10  ;;  %7923 = vmatpush2.bf16.msra.mxu1 %v12657_v11  ;;  %v12022_v10 = vcombine.high %v94_v1, %v134_v3  ;;  %v1334_v11 = vld [vmem:[#allocation2 + $0x26e8] sm:$0xff]  ;;  %v733_v1 = vld [vmem:[#allocation2 + $0x1420] sm:$0xff] }
  0xc0   :  { %7933 = vmatprep.subr.bf16.mxu0 %v12580_v13  ;;  %7974 = vmatprep.subr.bf16.mxu1 %v12582_v17  ;;  %v12019_v13 = vcombine.low %v93_v63, %v133_v0  ;;  %v1253_v17 = vld [vmem:[#allocation2 + $0x2460] sm:$0xff]  ;;  %v13221_v22 = vcombine.low %v1294_v9, %v1334_v11  ;;  %v734_v3 = vld [vmem:[#allocation2 + $0x1428] sm:$0xff] }
  0xc1   :  { %v13140_v23 = vcombine.high %v1213_v16, %v1253_v17 }
  0xc2   :  { %7884 = vmatmul.mubr.bf16.vlgmr.msra.gmra.mxu0 %v14279_v12  ;;  %7925 = vmatmul.mubr.bf16.vlgmr.msra.gmra.mxu1 %v14279_v12 }
  0xc3   :  { %7934 = vmatpush1.bf16.msra.mxu0 %v12579_v19  ;;  %7975 = vmatpush1.bf16.msra.mxu1 %v12581_v20  ;;  %v13222_v19 = vcombine.high %v1294_v9, %v1334_v11  ;;  %v1254_v20 = vld [vmem:[#allocation2 + $0x2468] sm:$0xff]  ;;  %v655_v9 = vld [vmem:[#allocation2 + $0x11b0] sm:$0xff]  ;;  %v656_v11 = vld [vmem:[#allocation2 + $0x11b8] sm:$0xff] }
  0xc4   :  { %7935 = vmatprep.subr.bf16.mxu0 %v12500_v21  ;;  %7976 = vmatprep.subr.bf16.mxu1 %v12502_v25  ;;  %v13219_v21 = vcombine.low %v1293_v7, %v1333_v8  ;;  %v1173_v25 = vld [vmem:[#allocation2 + $0x21e0] sm:$0xff]  ;;  %v13141_v30 = vcombine.low %v1214_v18, %v1254_v20 }
  0xc5   :  { %7965 = vmatprep.mubr.bf16.mxu0 %v14272_v57  ;;  %8006 = vmatprep.mubr.bf16.mxu1 %v14272_v57  ;;  %v13060_v31 = vcombine.high %v1133_v24, %v1173_v25 }
  0xc7   :  { %7936 = vmatpush1.bf16.msra.mxu0 %v12499_v27  ;;  %7977 = vmatpush1.bf16.msra.mxu1 %v12501_v28  ;;  %v13142_v27 = vcombine.high %v1214_v18, %v1254_v20  ;;  %v1174_v28 = vld [vmem:[#allocation2 + $0x21e8] sm:$0xff]  ;;  %v575_v18 = vld [vmem:[#allocation2 + $0xf30] sm:$0xff]  ;;  %v576_v20 = vld [vmem:[#allocation2 + $0xf38] sm:$0xff] }
  0xc8   :  { %7937 = vmatprep.subr.bf16.mxu0 %v12420_v29  ;;  %7978 = vmatprep.subr.bf16.mxu1 %v12422_v33  ;;  %v13139_v29 = vcombine.low %v1213_v16, %v1253_v17  ;;  %v1093_v33 = vld [vmem:[#allocation2 + $0x1f60] sm:$0xff]  ;;  %v13061_v38 = vcombine.low %v1134_v26, %v1174_v28 }
  0xc9   :  { %v12980_v39 = vcombine.high %v1053_v32, %v1093_v33 }
  0xcb   :  { %7938 = vmatpush1.bf16.msra.mxu0 %v12419_v35  ;;  %7979 = vmatpush1.bf16.msra.mxu1 %v12421_v36  ;;  %v13062_v35 = vcombine.high %v1134_v26, %v1174_v28  ;;  %v1094_v36 = vld [vmem:[#allocation2 + $0x1f68] sm:$0xff]  ;;  %v495_v26 = vld [vmem:[#allocation2 + $0xcb0] sm:$0xff]  ;;  %v496_v28 = vld [vmem:[#allocation2 + $0xcb8] sm:$0xff] }
  0xcc   :  { %7939 = vmatprep.subr.bf16.mxu0 %v12340_v37  ;;  %7980 = vmatprep.subr.bf16.mxu1 %v12342_v41  ;;  %v13059_v37 = vcombine.low %v1133_v24, %v1173_v25  ;;  %v1013_v41 = vld [vmem:[#allocation2 + $0x1ce0] sm:$0xff]  ;;  %v12981_v46 = vcombine.low %v1054_v34, %v1094_v36 }
  0xcd   :  { %v12900_v47 = vcombine.high %v973_v40, %v1013_v41 }
  0xcf   :  { %7940 = vmatpush1.bf16.msra.mxu0 %v12339_v43  ;;  %7981 = vmatpush1.bf16.msra.mxu1 %v12341_v44  ;;  %v12982_v43 = vcombine.high %v1054_v34, %v1094_v36  ;;  %v1014_v44 = vld [vmem:[#allocation2 + $0x1ce8] sm:$0xff]  ;;  %v415_v34 = vld [vmem:[#allocation2 + $0xa30] sm:$0xff]  ;;  %v416_v36 = vld [vmem:[#allocation2 + $0xa38] sm:$0xff] }
  0xd0   :  { %7941 = vmatprep.subr.bf16.mxu0 %v12260_v45  ;;  %7982 = vmatprep.subr.bf16.mxu1 %v12262_v49  ;;  %v12979_v45 = vcombine.low %v1053_v32, %v1093_v33  ;;  %v933_v49 = vld [vmem:[#allocation2 + $0x1a60] sm:$0xff]  ;;  %v12901_v54 = vcombine.low %v974_v42, %v1014_v44 }
  0xd1   :  { %v12820_v55 = vcombine.high %v893_v48, %v933_v49 }
  0xd3   :  { %7942 = vmatpush1.bf16.msra.mxu0 %v12259_v51  ;;  %7983 = vmatpush1.bf16.msra.mxu1 %v12261_v52  ;;  %v12902_v51 = vcombine.high %v974_v42, %v1014_v44  ;;  %v934_v52 = vld [vmem:[#allocation2 + $0x1a68] sm:$0xff]  ;;  %v335_v42 = vld [vmem:[#allocation2 + $0x7b0] sm:$0xff]  ;;  %v336_v44 = vld [vmem:[#allocation2 + $0x7b8] sm:$0xff] }
  0xd4   :  { %7943 = vmatprep.subr.bf16.mxu0 %v12180_v53  ;;  %7984 = vmatprep.subr.bf16.mxu1 %v12182_v58  ;;  %v12899_v53 = vcombine.low %v973_v40, %v1013_v41  ;;  %v853_v58 = vld [vmem:[#allocation2 + $0x17e0] sm:$0xff]  ;;  %v12821_v63 = vcombine.low %v894_v50, %v934_v52 }
  0xd5   :  { %v12740_v0 = vcombine.high %v813_v56, %v853_v58 }
  0xd7   :  { %7944 = vmatpush1.bf16.msra.mxu0 %v12179_v60  ;;  %7985 = vmatpush1.bf16.msra.mxu1 %v12181_v61  ;;  %v12822_v60 = vcombine.high %v894_v50, %v934_v52  ;;  %v854_v61 = vld [vmem:[#allocation2 + $0x17e8] sm:$0xff]  ;;  %v255_v50 = vld [vmem:[#allocation2 + $0x530] sm:$0xff]  ;;  %v256_v52 = vld [vmem:[#allocation2 + $0x538] sm:$0xff] }
  0xd8   :  { %7945 = vmatprep.subr.bf16.mxu0 %v12100_v62  ;;  %7986 = vmatprep.subr.bf16.mxu1 %v12102_v2  ;;  %v12819_v62 = vcombine.low %v893_v48, %v933_v49  ;;  %v773_v2 = vld [vmem:[#allocation2 + $0x1560] sm:$0xff]  ;;  %v12741_v7 = vcombine.low %v814_v59, %v854_v61 }
  0xd9   :  { %v12660_v8 = vcombine.high %v733_v1, %v773_v2 }
  0xdb   :  { %7946 = vmatpush1.bf16.msra.mxu0 %v12099_v4  ;;  %7987 = vmatpush1.bf16.msra.mxu1 %v12101_v5  ;;  %v12742_v4 = vcombine.high %v814_v59, %v854_v61  ;;  %v774_v5 = vld [vmem:[#allocation2 + $0x1568] sm:$0xff]  ;;  %v175_v59 = vld [vmem:[#allocation2 + $0x2b0] sm:$0xff]  ;;  %v176_v61 = vld [vmem:[#allocation2 + $0x2b8] sm:$0xff] }
  0xdc   :  { %7947 = vmatprep.subr.bf16.mxu0 %v12020_v6  ;;  %7988 = vmatprep.subr.bf16.mxu1 %v12022_v10  ;;  %v12739_v6 = vcombine.low %v813_v56, %v853_v58  ;;  %v695_v10 = vld [vmem:[#allocation2 + $0x12f0] sm:$0xff]  ;;  %v12661_v16 = vcombine.low %v734_v3, %v774_v5 }
  0xdd   :  { %v12584_v17 = vcombine.high %v655_v9, %v695_v10 }
  0xdf   :  { %7948 = vmatpush1.bf16.msra.mxu0 %v12019_v13  ;;  %7989 = vmatpush1.bf16.msra.mxu1 %v12021_v14  ;;  %v12662_v13 = vcombine.high %v734_v3, %v774_v5  ;;  %v696_v14 = vld [vmem:[#allocation2 + $0x12f8] sm:$0xff]  ;;  %v95_v3 = vld [vmem:[#allocation2 + $0x30] sm:$0xff] }
  0xe0   :  { %7949 = vmatprep.subr.bf16.mxu0 %v13220_v15  ;;  %7990 = vmatprep.subr.bf16.mxu1 %v13222_v19  ;;  %v12659_v15 = vcombine.low %v733_v1, %v773_v2  ;;  %v615_v19 = vld [vmem:[#allocation2 + $0x1070] sm:$0xff]  ;;  %v12585_v24 = vcombine.low %v656_v11, %v696_v14  ;;  %v96_v5 = vld [vmem:[#allocation2 + $0x38] sm:$0xff] }
  0xe1   :  { %v12504_v25 = vcombine.high %v575_v18, %v615_v19 }
  0xe3   :  { %7950 = vmatpush2.bf16.msra.mxu0 %v13219_v21  ;;  %7991 = vmatpush2.bf16.msra.mxu1 %v13221_v22  ;;  %v12586_v21 = vcombine.high %v656_v11, %v696_v14  ;;  %v616_v22 = vld [vmem:[#allocation2 + $0x1078] sm:$0xff]  ;;  %v1295_v11 = vld [vmem:[#allocation2 + $0x25b0] sm:$0xff] }
  0xe4   :  { %7951 = vmatprep.subr.bf16.mxu0 %v13140_v23  ;;  %7992 = vmatprep.subr.bf16.mxu1 %v13142_v27  ;;  %v12583_v23 = vcombine.low %v655_v9, %v695_v10  ;;  %v535_v27 = vld [vmem:[#allocation2 + $0xdf0] sm:$0xff]  ;;  %v12505_v32 = vcombine.low %v576_v20, %v616_v22  ;;  %v1296_v14 = vld [vmem:[#allocation2 + $0x25b8] sm:$0xff] }
  0xe5   :  { %v12424_v33 = vcombine.high %v495_v26, %v535_v27 }
  0xe7   :  { %7952 = vmatpush2.bf16.msra.mxu0 %v13139_v29  ;;  %7993 = vmatpush2.bf16.msra.mxu1 %v13141_v30  ;;  %v12506_v29 = vcombine.high %v576_v20, %v616_v22  ;;  %v536_v30 = vld [vmem:[#allocation2 + $0xdf8] sm:$0xff]  ;;  %v1215_v20 = vld [vmem:[#allocation2 + $0x2330] sm:$0xff] }
  0xe8   :  { %7953 = vmatprep.subr.bf16.mxu0 %v13060_v31  ;;  %7994 = vmatprep.subr.bf16.mxu1 %v13062_v35  ;;  %v12503_v31 = vcombine.low %v575_v18, %v615_v19  ;;  %v455_v35 = vld [vmem:[#allocation2 + $0xb70] sm:$0xff]  ;;  %v12425_v40 = vcombine.low %v496_v28, %v536_v30  ;;  %v1216_v22 = vld [vmem:[#allocation2 + $0x2338] sm:$0xff] }
  0xe9   :  { %v12344_v41 = vcombine.high %v415_v34, %v455_v35 }
  0xeb   :  { %7954 = vmatpush2.bf16.msra.mxu0 %v13059_v37  ;;  %7995 = vmatpush2.bf16.msra.mxu1 %v13061_v38  ;;  %v12426_v37 = vcombine.high %v496_v28, %v536_v30  ;;  %v456_v38 = vld [vmem:[#allocation2 + $0xb78] sm:$0xff]  ;;  %v1175_v30 = vld [vmem:[#allocation2 + $0x21f0] sm:$0xff] }
  0xec   :  { %7955 = vmatprep.subr.bf16.mxu0 %v12980_v39  ;;  %7996 = vmatprep.subr.bf16.mxu1 %v12982_v43  ;;  %v12423_v39 = vcombine.low %v495_v26, %v535_v27  ;;  %v375_v43 = vld [vmem:[#allocation2 + $0x8f0] sm:$0xff]  ;;  %v12345_v48 = vcombine.low %v416_v36, %v456_v38 }
  0xed   :  { %v12264_v49 = vcombine.high %v335_v42, %v375_v43 }
  0xef   :  { %7956 = vmatpush2.bf16.msra.mxu0 %v12979_v45  ;;  %7997 = vmatpush2.bf16.msra.mxu1 %v12981_v46  ;;  %v12346_v45 = vcombine.high %v416_v36, %v456_v38  ;;  %v376_v46 = vld [vmem:[#allocation2 + $0x8f8] sm:$0xff]  ;;  %v1095_v38 = vld [vmem:[#allocation2 + $0x1f70] sm:$0xff] }
  0xf0   :  { %7957 = vmatprep.subr.bf16.mxu0 %v12900_v47  ;;  %7998 = vmatprep.subr.bf16.mxu1 %v12902_v51  ;;  %v12343_v47 = vcombine.low %v415_v34, %v455_v35  ;;  %v295_v51 = vld [vmem:[#allocation2 + $0x670] sm:$0xff]  ;;  %v12265_v56 = vcombine.low %v336_v44, %v376_v46 }
  0xf1   :  { %v12184_v58 = vcombine.high %v255_v50, %v295_v51 }
  0xf3   :  { %7958 = vmatpush2.bf16.msra.mxu0 %v12899_v53  ;;  %7999 = vmatpush2.bf16.msra.mxu1 %v12901_v54  ;;  %v12266_v53 = vcombine.high %v336_v44, %v376_v46  ;;  %v296_v54 = vld [vmem:[#allocation2 + $0x678] sm:$0xff]  ;;  %v1015_v46 = vld [vmem:[#allocation2 + $0x1cf0] sm:$0xff] }
  0xf4   :  { %7959 = vmatprep.subr.bf16.mxu0 %v12820_v55  ;;  %8000 = vmatprep.subr.bf16.mxu1 %v12822_v60  ;;  %v12263_v55 = vcombine.low %v335_v42, %v375_v43  ;;  %v215_v60 = vld [vmem:[#allocation2 + $0x3f0] sm:$0xff]  ;;  %v12185_v1 = vcombine.low %v256_v52, %v296_v54 }
  0xf5   :  { %v12104_v2 = vcombine.high %v175_v59, %v215_v60 }
  0xf7   :  { %7960 = vmatpush2.bf16.msra.mxu0 %v12819_v62  ;;  %8001 = vmatpush2.bf16.msra.mxu1 %v12821_v63  ;;  %v12186_v62 = vcombine.high %v256_v52, %v296_v54  ;;  %v216_v63 = vld [vmem:[#allocation2 + $0x3f8] sm:$0xff]  ;;  %v935_v54 = vld [vmem:[#allocation2 + $0x1a70] sm:$0xff] }
  0xf8   :  { %7961 = vmatprep.subr.bf16.mxu0 %v12740_v0  ;;  %8002 = vmatprep.subr.bf16.mxu1 %v12742_v4  ;;  %v12183_v0 = vcombine.low %v255_v50, %v295_v51  ;;  %v135_v4 = vld [vmem:[#allocation2 + $0x170] sm:$0xff]  ;;  %v12105_v9 = vcombine.low %v176_v61, %v216_v63 }
  0xf9   :  { %v12024_v10 = vcombine.high %v95_v3, %v135_v4 }
  0xfb   :  { %7962 = vmatpush2.bf16.msra.mxu0 %v12739_v6  ;;  %8003 = vmatpush2.bf16.msra.mxu1 %v12741_v7  ;;  %v12106_v6 = vcombine.high %v176_v61, %v216_v63  ;;  %v136_v7 = vld [vmem:[#allocation2 + $0x178] sm:$0xff]  ;;  %v855_v63 = vld [vmem:[#allocation2 + $0x17f0] sm:$0xff] }
  0xfc   :  { %7963 = vmatprep.subr.bf16.mxu0 %v12660_v8  ;;  %8004 = vmatprep.subr.bf16.mxu1 %v12662_v13  ;;  %v12103_v8 = vcombine.low %v175_v59, %v215_v60  ;;  %v1335_v13 = vld [vmem:[#allocation2 + $0x26f0] sm:$0xff]  ;;  %v12025_v18 = vcombine.low %v96_v5, %v136_v7 }
  0xfd   :  { %v13224_v19 = vcombine.high %v1295_v11, %v1335_v13 }
  0xff   :  { %7964 = vmatpush2.bf16.msra.mxu0 %v12659_v15  ;;  %8005 = vmatpush2.bf16.msra.mxu1 %v12661_v16  ;;  %v12026_v15 = vcombine.high %v96_v5, %v136_v7  ;;  %v1336_v16 = vld [vmem:[#allocation2 + $0x26f8] sm:$0xff]  ;;  %v775_v7 = vld [vmem:[#allocation2 + $0x1570] sm:$0xff] }
 0x100   :  { %8015 = vmatprep.subr.bf16.mxu0 %v12584_v17  ;;  %8056 = vmatprep.subr.bf16.mxu1 %v12586_v21  ;;  %v12023_v17 = vcombine.low %v95_v3, %v135_v4  ;;  %v1255_v21 = vld [vmem:[#allocation2 + $0x2470] sm:$0xff]  ;;  %v13225_v26 = vcombine.low %v1296_v14, %v1336_v16 }
 0x101   :  { %v13144_v27 = vcombine.high %v1215_v20, %v1255_v21 }
 0x102   :  { %7966 = vmatmul.mubr.bf16.vlgmr.msra.gmra.mxu0 %v14279_v12  ;;  %8007 = vmatmul.mubr.bf16.vlgmr.msra.gmra.mxu1 %v14279_v12 }
 0x103   :  { %8016 = vmatpush1.bf16.msra.mxu0 %v12583_v23  ;;  %8057 = vmatpush1.bf16.msra.mxu1 %v12585_v24  ;;  %v13226_v23 = vcombine.high %v1296_v14, %v1336_v16  ;;  %v1256_v24 = vld [vmem:[#allocation2 + $0x2478] sm:$0xff]  ;;  %v697_v16 = vld [vmem:[#allocation2 + $0x1300] sm:$0xff] }
 0x104   :  { %8017 = vmatprep.subr.bf16.mxu0 %v12504_v25  ;;  %8058 = vmatprep.subr.bf16.mxu1 %v12506_v29  ;;  %v13223_v25 = vcombine.low %v1295_v11, %v1335_v13  ;;  %v13146_v28 = vcombine.high %v1216_v22, %v1256_v24  ;;  %v1135_v29 = vld [vmem:[#allocation2 + $0x20b0] sm:$0xff]  ;;  %v13145_v34 = vcombine.low %v1216_v22, %v1256_v24  ;;  %v617_v24 = vld [vmem:[#allocation2 + $0x1080] sm:$0xff] }
 0x105   :  { %8047 = vmatprep.mubr.bf16.mxu0 %v14272_v57  ;;  %8088 = vmatprep.mubr.bf16.mxu1 %v14272_v57  ;;  %v13064_v35 = vcombine.high %v1135_v29, %v1175_v30 }
 0x107   :  { %8018 = vmatpush1.bf16.msra.mxu0 %v12503_v31  ;;  %8059 = vmatpush1.bf16.msra.mxu1 %v12505_v32  ;;  %v1136_v31 = vld [vmem:[#allocation2 + $0x20b8] sm:$0xff] }
 0x108   :  { %8019 = vmatprep.subr.bf16.mxu0 %v12424_v33  ;;  %8060 = vmatprep.subr.bf16.mxu1 %v12426_v37  ;;  %v1176_v32 = vld [vmem:[#allocation2 + $0x21f8] sm:$0xff]  ;;  %v13143_v33 = vcombine.low %v1215_v20, %v1255_v21  ;;  %v1055_v37 = vld [vmem:[#allocation2 + $0x1e30] sm:$0xff] }
 0x109   :  { %v13066_v36 = vcombine.high %v1136_v31, %v1176_v32  ;;  %v13065_v42 = vcombine.low %v1136_v31, %v1176_v32  ;;  %v12984_v43 = vcombine.high %v1055_v37, %v1095_v38  ;;  %v497_v31 = vld [vmem:[#allocation2 + $0xcc0] sm:$0xff] }
 0x10a   :  { %v537_v32 = vld [vmem:[#allocation2 + $0xe00] sm:$0xff] }
 0x10b   :  { %8020 = vmatpush1.bf16.msra.mxu0 %v12423_v39  ;;  %8061 = vmatpush1.bf16.msra.mxu1 %v12425_v40  ;;  %v1056_v39 = vld [vmem:[#allocation2 + $0x1e38] sm:$0xff] }
 0x10c   :  { %8021 = vmatprep.subr.bf16.mxu0 %v12344_v41  ;;  %8062 = vmatprep.subr.bf16.mxu1 %v12346_v45  ;;  %v1096_v40 = vld [vmem:[#allocation2 + $0x1f78] sm:$0xff]  ;;  %v13063_v41 = vcombine.low %v1135_v29, %v1175_v30  ;;  %v975_v45 = vld [vmem:[#allocation2 + $0x1bb0] sm:$0xff] }
 0x10d   :  { %v12986_v44 = vcombine.high %v1056_v39, %v1096_v40  ;;  %v12985_v50 = vcombine.low %v1056_v39, %v1096_v40  ;;  %v12904_v51 = vcombine.high %v975_v45, %v1015_v46  ;;  %v12428_v40 = vcombine.high %v497_v31, %v537_v32 }
 0x10f   :  { %8022 = vmatpush1.bf16.msra.mxu0 %v12343_v47  ;;  %8063 = vmatpush1.bf16.msra.mxu1 %v12345_v48  ;;  %v976_v47 = vld [vmem:[#allocation2 + $0x1bb8] sm:$0xff] }
 0x110   :  { %8023 = vmatprep.subr.bf16.mxu0 %v12264_v49  ;;  %8064 = vmatprep.subr.bf16.mxu1 %v12266_v53  ;;  %v1016_v48 = vld [vmem:[#allocation2 + $0x1cf8] sm:$0xff]  ;;  %v12983_v49 = vcombine.low %v1055_v37, %v1095_v38  ;;  %v895_v53 = vld [vmem:[#allocation2 + $0x1930] sm:$0xff] }
 0x111   :  { %v12906_v52 = vcombine.high %v976_v47, %v1016_v48  ;;  %v12905_v59 = vcombine.low %v976_v47, %v1016_v48  ;;  %v12824_v60 = vcombine.high %v895_v53, %v935_v54  ;;  %v458_v47 = vld [vmem:[#allocation2 + $0xb88] sm:$0xff] }
 0x113   :  { %8024 = vmatpush1.bf16.msra.mxu0 %v12263_v55  ;;  %8065 = vmatpush1.bf16.msra.mxu1 %v12265_v56  ;;  %v896_v55 = vld [vmem:[#allocation2 + $0x1938] sm:$0xff] }
 0x114   :  { %8025 = vmatprep.subr.bf16.mxu0 %v12184_v58  ;;  %8066 = vmatprep.subr.bf16.mxu1 %v12186_v62  ;;  %v936_v56 = vld [vmem:[#allocation2 + $0x1a78] sm:$0xff]  ;;  %v12903_v58 = vcombine.low %v975_v45, %v1015_v46  ;;  %v815_v62 = vld [vmem:[#allocation2 + $0x16b0] sm:$0xff]  ;;  %v418_v46 = vld [vmem:[#allocation2 + $0xa48] sm:$0xff] }
 0x115   :  { %v12826_v61 = vcombine.high %v896_v55, %v936_v56  ;;  %v12825_v3 = vcombine.low %v896_v55, %v936_v56  ;;  %v12744_v4 = vcombine.high %v815_v62, %v855_v63  ;;  %v337_v55 = vld [vmem:[#allocation2 + $0x7c0] sm:$0xff] }
 0x116   :  { %v377_v56 = vld [vmem:[#allocation2 + $0x900] sm:$0xff] }
 0x117   :  { %8026 = vmatpush1.bf16.msra.mxu0 %v12183_v0  ;;  %8067 = vmatpush1.bf16.msra.mxu1 %v12185_v1  ;;  %v816_v0 = vld [vmem:[#allocation2 + $0x16b8] sm:$0xff] }
 0x118   :  { %8027 = vmatprep.subr.bf16.mxu0 %v12104_v2  ;;  %8068 = vmatprep.subr.bf16.mxu1 %v12106_v6  ;;  %v856_v1 = vld [vmem:[#allocation2 + $0x17f8] sm:$0xff]  ;;  %v12823_v2 = vcombine.low %v895_v53, %v935_v54  ;;  %v735_v6 = vld [vmem:[#allocation2 + $0x1430] sm:$0xff]  ;;  %v12350_v54 = vcombine.high %v418_v46, %v458_v47 }
 0x119   :  { %v12746_v5 = vcombine.high %v816_v0, %v856_v1  ;;  %v12745_v11 = vcombine.low %v816_v0, %v856_v1  ;;  %v12664_v13 = vcombine.high %v735_v6, %v775_v7  ;;  %v257_v0 = vld [vmem:[#allocation2 + $0x540] sm:$0xff] }
 0x11a   :  { %v297_v1 = vld [vmem:[#allocation2 + $0x680] sm:$0xff] }
 0x11b   :  { %8028 = vmatpush1.bf16.msra.mxu0 %v12103_v8  ;;  %8069 = vmatpush1.bf16.msra.mxu1 %v12105_v9  ;;  %v736_v8 = vld [vmem:[#allocation2 + $0x1438] sm:$0xff] }
 0x11c   :  { %8029 = vmatprep.subr.bf16.mxu0 %v12024_v10  ;;  %8070 = vmatprep.subr.bf16.mxu1 %v12026_v15  ;;  %v776_v9 = vld [vmem:[#allocation2 + $0x1578] sm:$0xff]  ;;  %v12743_v10 = vcombine.low %v815_v62, %v855_v63  ;;  %v657_v15 = vld [vmem:[#allocation2 + $0x11c0] sm:$0xff]  ;;  %v12268_v62 = vcombine.high %v337_v55, %v377_v56 }
 0x11d   :  { %v12666_v14 = vcombine.high %v736_v8, %v776_v9  ;;  %v12665_v20 = vcombine.low %v736_v8, %v776_v9  ;;  %v12588_v21 = vcombine.high %v657_v15, %v697_v16  ;;  %v177_v8 = vld [vmem:[#allocation2 + $0x2c0] sm:$0xff] }
 0x11e   :  { %v217_v9 = vld [vmem:[#allocation2 + $0x400] sm:$0xff] }
 0x11f   :  { %8030 = vmatpush1.bf16.msra.mxu0 %v12023_v17  ;;  %8071 = vmatpush1.bf16.msra.mxu1 %v12025_v18  ;;  %v658_v17 = vld [vmem:[#allocation2 + $0x11c8] sm:$0xff] }
 0x120   :  { %8031 = vmatprep.subr.bf16.mxu0 %v13224_v19  ;;  %8072 = vmatprep.subr.bf16.mxu1 %v13226_v23  ;;  %v698_v18 = vld [vmem:[#allocation2 + $0x1308] sm:$0xff]  ;;  %v12663_v19 = vcombine.low %v735_v6, %v775_v7  ;;  %v577_v23 = vld [vmem:[#allocation2 + $0xf40] sm:$0xff]  ;;  %v12188_v6 = vcombine.high %v257_v0, %v297_v1 }
 0x121   :  { %v12590_v22 = vcombine.high %v658_v17, %v698_v18  ;;  %v12508_v29 = vcombine.high %v577_v23, %v617_v24  ;;  %v12507_v37 = vcombine.low %v577_v23, %v617_v24 }
 0x123   :  { %8032 = vmatpush2.bf16.msra.mxu0 %v13223_v25  ;;  %8073 = vmatpush2.bf16.msra.mxu1 %v13225_v26  ;;  %v578_v25 = vld [vmem:[#allocation2 + $0xf48] sm:$0xff] }
 0x124   :  { %8033 = vmatprep.subr.bf16.mxu0 %v13144_v27  ;;  %8074 = vmatprep.subr.bf16.mxu1 %v13146_v28  ;;  %v618_v26 = vld [vmem:[#allocation2 + $0x1088] sm:$0xff]  ;;  %v12587_v27 = vcombine.low %v657_v15, %v697_v16  ;;  %v12589_v28 = vcombine.low %v658_v17, %v698_v18  ;;  %v12108_v15 = vcombine.high %v177_v8, %v217_v9  ;;  %v97_v17 = vld [vmem:[#allocation2 + $0x40] sm:$0xff] }
 0x125   :  { %v12510_v30 = vcombine.high %v578_v25, %v618_v26  ;;  %v12509_v39 = vcombine.low %v578_v25, %v618_v26  ;;  %v137_v18 = vld [vmem:[#allocation2 + $0x180] sm:$0xff] }
 0x126   :  { %v12028_v23 = vcombine.high %v97_v17, %v137_v18  ;;  %v1297_v25 = vld [vmem:[#allocation2 + $0x25c0] sm:$0xff] }
 0x127   :  { %8034 = vmatpush2.bf16.msra.mxu0 %v13143_v33  ;;  %8075 = vmatpush2.bf16.msra.mxu1 %v13145_v34  ;;  %v498_v34 = vld [vmem:[#allocation2 + $0xcc8] sm:$0xff]  ;;  %v1337_v26 = vld [vmem:[#allocation2 + $0x2700] sm:$0xff] }
 0x128   :  { %8035 = vmatprep.subr.bf16.mxu0 %v13064_v35  ;;  %8076 = vmatprep.subr.bf16.mxu1 %v13066_v36  ;;  %v538_v35 = vld [vmem:[#allocation2 + $0xe08] sm:$0xff] }
 0x12b   :  { %8036 = vmatpush2.bf16.msra.mxu0 %v13063_v41  ;;  %8077 = vmatpush2.bf16.msra.mxu1 %v13065_v42  ;;  %v12430_v42 = vcombine.high %v498_v34, %v538_v35 }
 0x12c   :  { %8037 = vmatprep.subr.bf16.mxu0 %v12984_v43  ;;  %8078 = vmatprep.subr.bf16.mxu1 %v12986_v44  ;;  %v417_v43 = vld [vmem:[#allocation2 + $0xa40] sm:$0xff] }
 0x12d   :  { %v457_v44 = vld [vmem:[#allocation2 + $0xb80] sm:$0xff] }
 0x12f   :  { %8038 = vmatpush2.bf16.msra.mxu0 %v12983_v49  ;;  %8079 = vmatpush2.bf16.msra.mxu1 %v12985_v50  ;;  %v12427_v49 = vcombine.low %v497_v31, %v537_v32  ;;  %v13228_v31 = vcombine.high %v1297_v25, %v1337_v26 }
 0x130   :  { %8039 = vmatprep.subr.bf16.mxu0 %v12904_v51  ;;  %8080 = vmatprep.subr.bf16.mxu1 %v12906_v52  ;;  %v12429_v51 = vcombine.low %v498_v34, %v538_v35  ;;  %v12348_v52 = vcombine.high %v417_v43, %v457_v44  ;;  %v1217_v34 = vld [vmem:[#allocation2 + $0x2340] sm:$0xff] }
 0x131   :  { %v1257_v35 = vld [vmem:[#allocation2 + $0x2480] sm:$0xff] }
 0x133   :  { %8040 = vmatpush2.bf16.msra.mxu0 %v12903_v58  ;;  %8081 = vmatpush2.bf16.msra.mxu1 %v12905_v59  ;;  %v338_v58 = vld [vmem:[#allocation2 + $0x7c8] sm:$0xff] }
 0x134   :  { %8041 = vmatprep.subr.bf16.mxu0 %v12824_v60  ;;  %8082 = vmatprep.subr.bf16.mxu1 %v12826_v61  ;;  %v378_v59 = vld [vmem:[#allocation2 + $0x908] sm:$0xff]  ;;  %v12347_v60 = vcombine.low %v417_v43, %v457_v44  ;;  %v12349_v61 = vcombine.low %v418_v46, %v458_v47  ;;  %v13148_v43 = vcombine.high %v1217_v34, %v1257_v35  ;;  %v1177_v46 = vld [vmem:[#allocation2 + $0x2200] sm:$0xff] }
 0x135   :  { %v12270_v63 = vcombine.high %v338_v58, %v378_v59  ;;  %v1138_v47 = vld [vmem:[#allocation2 + $0x20c8] sm:$0xff] }
 0x137   :  { %8042 = vmatpush2.bf16.msra.mxu0 %v12823_v2  ;;  %8083 = vmatpush2.bf16.msra.mxu1 %v12825_v3  ;;  %v258_v2 = vld [vmem:[#allocation2 + $0x548] sm:$0xff] }
 0x138   :  { %8043 = vmatprep.subr.bf16.mxu0 %v12744_v4  ;;  %8084 = vmatprep.subr.bf16.mxu1 %v12746_v5  ;;  %v298_v3 = vld [vmem:[#allocation2 + $0x688] sm:$0xff]  ;;  %v12267_v4 = vcombine.low %v337_v55, %v377_v56  ;;  %v12269_v5 = vcombine.low %v338_v58, %v378_v59 }
 0x139   :  { %v12190_v7 = vcombine.high %v258_v2, %v298_v3  ;;  %v1058_v55 = vld [vmem:[#allocation2 + $0x1e48] sm:$0xff] }
 0x13a   :  { %v1098_v56 = vld [vmem:[#allocation2 + $0x1f88] sm:$0xff] }
 0x13b   :  { %8044 = vmatpush2.bf16.msra.mxu0 %v12743_v10  ;;  %8085 = vmatpush2.bf16.msra.mxu1 %v12745_v11  ;;  %v178_v10 = vld [vmem:[#allocation2 + $0x2c8] sm:$0xff] }
 0x13c   :  { %8045 = vmatprep.subr.bf16.mxu0 %v12664_v13  ;;  %8086 = vmatprep.subr.bf16.mxu1 %v12666_v14  ;;  %v218_v11 = vld [vmem:[#allocation2 + $0x408] sm:$0xff]  ;;  %v12187_v13 = vcombine.low %v257_v0, %v297_v1  ;;  %v12189_v14 = vcombine.low %v258_v2, %v298_v3  ;;  %v12989_v3 = vcombine.low %v1058_v55, %v1098_v56 }
 0x13d   :  { %v12110_v16 = vcombine.high %v178_v10, %v218_v11  ;;  %v978_v0 = vld [vmem:[#allocation2 + $0x1bc8] sm:$0xff] }
 0x13e   :  { %v1018_v1 = vld [vmem:[#allocation2 + $0x1d08] sm:$0xff] }
 0x13f   :  { %8046 = vmatpush2.bf16.msra.mxu0 %v12663_v19  ;;  %8087 = vmatpush2.bf16.msra.mxu1 %v12665_v20  ;;  %v98_v19 = vld [vmem:[#allocation2 + $0x48] sm:$0xff] }
 0x140   :  { %8097 = vmatprep.subr.bf16.mxu0 %v12588_v21  ;;  %8138 = vmatprep.subr.bf16.mxu1 %v12590_v22  ;;  %v138_v20 = vld [vmem:[#allocation2 + $0x188] sm:$0xff]  ;;  %v12107_v21 = vcombine.low %v177_v8, %v217_v9  ;;  %v12109_v22 = vcombine.low %v178_v10, %v218_v11  ;;  %v12909_v11 = vcombine.low %v978_v0, %v1018_v1 }
 0x141   :  { %v12030_v24 = vcombine.high %v98_v19, %v138_v20  ;;  %v898_v8 = vld [vmem:[#allocation2 + $0x1948] sm:$0xff] }
 0x142   :  { %v14293_v33 = vpop.f32.mrf.mxu0  ;;  %8048 = vmatmul.mubr.bf16.vlgmr.msra.gmra.mxu0 %v14279_v12  ;;  %v14296_v36 = vpop.f32.mrf.mxu1  ;;  %8089 = vmatmul.mubr.bf16.vlgmr.msra.gmra.mxu1 %v14279_v12  ;;  %v938_v9 = vld [vmem:[#allocation2 + $0x1a88] sm:$0xff] }
 0x143   :  { %8098 = vmatpush1.bf16.msra.mxu0 %v12587_v27  ;;  %8139 = vmatpush1.bf16.msra.mxu1 %v12589_v28  ;;  %v1298_v27 = vld [vmem:[#allocation2 + $0x25c8] sm:$0xff] }
 0x144   :  { %v14299_v38 = vpop.f32.mrf.mxu0  ;;  %8099 = vmatprep.subr.bf16.mxu0 %v12508_v29  ;;  %v14301_v41 = vpop.f32.mrf.mxu1  ;;  %8140 = vmatprep.subr.bf16.mxu1 %v12510_v30  ;;  %v1338_v28 = vld [vmem:[#allocation2 + $0x2708] sm:$0xff]  ;;  %v12027_v29 = vcombine.low %v97_v17, %v137_v18  ;;  %v12029_v30 = vcombine.low %v98_v19, %v138_v20  ;;  %v12829_v20 = vcombine.low %v898_v8, %v938_v9 }
 0x145   :  { %8129 = vmatprep.mubr.bf16.mxu0 %v14272_v57  ;;  %8170 = vmatprep.mubr.bf16.mxu1 %v14272_v57  ;;  %v13230_v32 = vcombine.high %v1298_v27, %v1338_v28  ;;  %v818_v17 = vld [vmem:[#allocation2 + $0x16c8] sm:$0xff] }
 0x146   :  { %v7807_v45 = vpop.f32.mrf.mxu0  ;;  %v7848_v48 = vpop.f32.mrf.mxu1  ;;  %v858_v18 = vld [vmem:[#allocation2 + $0x1808] sm:$0xff] }
 0x147   :  { %8100 = vmatpush1.bf16.msra.mxu0 %v12507_v37  ;;  %8141 = vmatpush1.bf16.msra.mxu1 %v12509_v39  ;;  %v1218_v37 = vld [vmem:[#allocation2 + $0x2348] sm:$0xff]  ;;  %v1137_v45 = vld [vmem:[#allocation2 + $0x20c0] sm:$0xff] }
 0x148   :  { %v7808_v50 = vpop.f32.mrf.mxu0  ;;  %8101 = vmatprep.subr.bf16.mxu0 %v12428_v40  ;;  %v7849_v53 = vpop.f32.mrf.mxu1  ;;  %8142 = vmatprep.subr.bf16.mxu1 %v12430_v42  ;;  %v1258_v39 = vld [vmem:[#allocation2 + $0x2488] sm:$0xff]  ;;  %v13227_v40 = vcombine.low %v1297_v25, %v1337_v26  ;;  %v13229_v42 = vcombine.low %v1298_v27, %v1338_v28  ;;  %v13067_v58 = vcombine.low %v1137_v45, %v1177_v46 }
 0x149   :  { %v13150_v44 = vcombine.high %v1218_v37, %v1258_v39  ;;  %v1178_v48 = vld [vmem:[#allocation2 + $0x2208] sm:$0xff]  ;;  %v13149_v50 = vcombine.low %v1218_v37, %v1258_v39  ;;  %v1057_v53 = vld [vmem:[#allocation2 + $0x1e40] sm:$0xff]  ;;  %v12749_v28 = vcombine.low %v818_v17, %v858_v18 }
 0x14a   :  { %v13069_v59 = vcombine.low %v1138_v47, %v1178_v48  ;;  %v738_v25 = vld [vmem:[#allocation2 + $0x1448] sm:$0xff] }
 0x14b   :  { %8102 = vmatpush1.bf16.msra.mxu0 %v12427_v49  ;;  %8143 = vmatpush1.bf16.msra.mxu1 %v12429_v51  ;;  %v13147_v49 = vcombine.low %v1217_v34, %v1257_v35  ;;  %v13068_v51 = vcombine.high %v1137_v45, %v1177_v46  ;;  %v778_v26 = vld [vmem:[#allocation2 + $0x1588] sm:$0xff]  ;;  %v660_v34 = vld [vmem:[#allocation2 + $0x11d8] sm:$0xff] }
 0x14c   :  { %8103 = vmatprep.subr.bf16.mxu0 %v12348_v52  ;;  %8144 = vmatprep.subr.bf16.mxu1 %v12350_v54  ;;  %v13070_v52 = vcombine.high %v1138_v47, %v1178_v48  ;;  %v1097_v54 = vld [vmem:[#allocation2 + $0x1f80] sm:$0xff]  ;;  %v700_v35 = vld [vmem:[#allocation2 + $0x1318] sm:$0xff]  ;;  %v12669_v39 = vcombine.low %v738_v25, %v778_v26 }
 0x14d   :  { %v12987_v2 = vcombine.low %v1057_v53, %v1097_v54  ;;  %v580_v45 = vld [vmem:[#allocation2 + $0xf58] sm:$0xff]  ;;  %v12593_v48 = vcombine.low %v660_v34, %v700_v35 }
 0x14e   :  { %v620_v46 = vld [vmem:[#allocation2 + $0x1098] sm:$0xff] }
 0x14f   :  { %8104 = vmatpush1.bf16.msra.mxu0 %v12347_v60  ;;  %8145 = vmatpush1.bf16.msra.mxu1 %v12349_v61  ;;  %v12988_v60 = vcombine.high %v1057_v53, %v1097_v54  ;;  %v12990_v61 = vcombine.high %v1058_v55, %v1098_v56  ;;  %v500_v54 = vld [vmem:[#allocation2 + $0xcd8] sm:$0xff] }
 0x150   :  { %8105 = vmatprep.subr.bf16.mxu0 %v12268_v62  ;;  %8146 = vmatprep.subr.bf16.mxu1 %v12270_v63  ;;  %v977_v62 = vld [vmem:[#allocation2 + $0x1bc0] sm:$0xff]  ;;  %v540_v55 = vld [vmem:[#allocation2 + $0xe18] sm:$0xff] }
 0x151   :  { %v1017_v63 = vld [vmem:[#allocation2 + $0x1d00] sm:$0xff] }
 0x152   :  { %v12907_v10 = vcombine.low %v977_v62, %v1017_v63 }
 0x153   :  { %8106 = vmatpush1.bf16.msra.mxu0 %v12267_v4  ;;  %8147 = vmatpush1.bf16.msra.mxu1 %v12269_v5  ;;  %v12908_v4 = vcombine.high %v977_v62, %v1017_v63  ;;  %v12910_v5 = vcombine.high %v978_v0, %v1018_v1  ;;  %v12434_v63 = vcombine.high %v500_v54, %v540_v55  ;;  %v419_v0 = vld [vmem:[#allocation2 + $0xa50] sm:$0xff] }
 0x154   :  { %8107 = vmatprep.subr.bf16.mxu0 %v12188_v6  ;;  %8148 = vmatprep.subr.bf16.mxu1 %v12190_v7  ;;  %v897_v6 = vld [vmem:[#allocation2 + $0x1940] sm:$0xff]  ;;  %v459_v1 = vld [vmem:[#allocation2 + $0xb90] sm:$0xff] }
 0x155   :  { %v937_v7 = vld [vmem:[#allocation2 + $0x1a80] sm:$0xff] }
 0x156   :  { %v12827_v19 = vcombine.low %v897_v6, %v937_v7 }
 0x157   :  { %8108 = vmatpush1.bf16.msra.mxu0 %v12187_v13  ;;  %8149 = vmatpush1.bf16.msra.mxu1 %v12189_v14  ;;  %v12828_v13 = vcombine.high %v897_v6, %v937_v7  ;;  %v12830_v14 = vcombine.high %v898_v8, %v938_v9  ;;  %v12433_v8 = vcombine.low %v500_v54, %v540_v55 }
 0x158   :  { %8109 = vmatprep.subr.bf16.mxu0 %v12108_v15  ;;  %8150 = vmatprep.subr.bf16.mxu1 %v12110_v16  ;;  %v817_v15 = vld [vmem:[#allocation2 + $0x16c0] sm:$0xff]  ;;  %v12352_v9 = vcombine.high %v419_v0, %v459_v1 }
 0x159   :  { %v857_v16 = vld [vmem:[#allocation2 + $0x1800] sm:$0xff] }
 0x15a   :  { %v12747_v27 = vcombine.low %v817_v15, %v857_v16 }
 0x15b   :  { %8110 = vmatpush1.bf16.msra.mxu0 %v12107_v21  ;;  %8151 = vmatpush1.bf16.msra.mxu1 %v12109_v22  ;;  %v12748_v21 = vcombine.high %v817_v15, %v857_v16  ;;  %v12750_v22 = vcombine.high %v818_v17, %v858_v18  ;;  %v340_v15 = vld [vmem:[#allocation2 + $0x7d8] sm:$0xff]  ;;  %v12351_v17 = vcombine.low %v419_v0, %v459_v1 }
 0x15c   :  { %8111 = vmatprep.subr.bf16.mxu0 %v12028_v23  ;;  %8152 = vmatprep.subr.bf16.mxu1 %v12030_v24  ;;  %v737_v23 = vld [vmem:[#allocation2 + $0x1440] sm:$0xff]  ;;  %v380_v16 = vld [vmem:[#allocation2 + $0x918] sm:$0xff] }
 0x15d   :  { %v777_v24 = vld [vmem:[#allocation2 + $0x1580] sm:$0xff]  ;;  %v1220_v0 = vld [vmem:[#allocation2 + $0x2358] sm:$0xff] }
 0x15e   :  { %v12667_v37 = vcombine.low %v737_v23, %v777_v24  ;;  %v1260_v1 = vld [vmem:[#allocation2 + $0x2498] sm:$0xff] }
 0x15f   :  { %8112 = vmatpush1.bf16.msra.mxu0 %v12027_v29  ;;  %8153 = vmatpush1.bf16.msra.mxu1 %v12029_v30  ;;  %v12668_v29 = vcombine.high %v737_v23, %v777_v24  ;;  %v12670_v30 = vcombine.high %v738_v25, %v778_v26  ;;  %v260_v23 = vld [vmem:[#allocation2 + $0x558] sm:$0xff]  ;;  %v12273_v26 = vcombine.low %v340_v15, %v380_v16 }
 0x160   :  { %8113 = vmatprep.subr.bf16.mxu0 %v13228_v31  ;;  %8154 = vmatprep.subr.bf16.mxu1 %v13230_v32  ;;  %v659_v31 = vld [vmem:[#allocation2 + $0x11d0] sm:$0xff]  ;;  %v300_v24 = vld [vmem:[#allocation2 + $0x698] sm:$0xff] }
 0x161   :  { %v699_v32 = vld [vmem:[#allocation2 + $0x1310] sm:$0xff] }
 0x162   :  { %v12591_v47 = vcombine.low %v659_v31, %v699_v32 }
 0x163   :  { %8114 = vmatpush2.bf16.msra.mxu0 %v13227_v40  ;;  %8155 = vmatpush2.bf16.msra.mxu1 %v13229_v42  ;;  %v12592_v40 = vcombine.high %v659_v31, %v699_v32  ;;  %v12594_v42 = vcombine.high %v660_v34, %v700_v35  ;;  %v180_v31 = vld [vmem:[#allocation2 + $0x2d8] sm:$0xff]  ;;  %v12193_v35 = vcombine.low %v260_v23, %v300_v24 }
 0x164   :  { %8115 = vmatprep.subr.bf16.mxu0 %v13148_v43  ;;  %8156 = vmatprep.subr.bf16.mxu1 %v13150_v44  ;;  %v579_v43 = vld [vmem:[#allocation2 + $0xf50] sm:$0xff]  ;;  %v220_v32 = vld [vmem:[#allocation2 + $0x418] sm:$0xff] }
 0x165   :  { %v619_v44 = vld [vmem:[#allocation2 + $0x1090] sm:$0xff] }
 0x167   :  { %8116 = vmatpush2.bf16.msra.mxu0 %v13147_v49  ;;  %8157 = vmatpush2.bf16.msra.mxu1 %v13149_v50  ;;  %v12512_v49 = vcombine.high %v579_v43, %v619_v44  ;;  %v12514_v50 = vcombine.high %v580_v45, %v620_v46 }
 0x168   :  { %8117 = vmatprep.subr.bf16.mxu0 %v13068_v51  ;;  %8158 = vmatprep.subr.bf16.mxu1 %v13070_v52  ;;  %v499_v51 = vld [vmem:[#allocation2 + $0xcd0] sm:$0xff] }
 0x169   :  { %v539_v52 = vld [vmem:[#allocation2 + $0xe10] sm:$0xff] }
 0x16a   :  { %v12431_v6 = vcombine.low %v499_v51, %v539_v52 }
 0x16b   :  { %8118 = vmatpush2.bf16.msra.mxu0 %v13067_v58  ;;  %8159 = vmatpush2.bf16.msra.mxu1 %v13069_v59  ;;  %v12511_v58 = vcombine.low %v579_v43, %v619_v44  ;;  %v100_v43 = vld [vmem:[#allocation2 + $0x58] sm:$0xff] }
 0x16c   :  { %8119 = vmatprep.subr.bf16.mxu0 %v12988_v60  ;;  %8160 = vmatprep.subr.bf16.mxu1 %v12990_v61  ;;  %v12513_v60 = vcombine.low %v580_v45, %v620_v46  ;;  %v12432_v61 = vcombine.high %v499_v51, %v539_v52  ;;  %v140_v44 = vld [vmem:[#allocation2 + $0x198] sm:$0xff]  ;;  %v12113_v46 = vcombine.low %v180_v31, %v220_v32 }
 0x16d   :  { %v1300_v51 = vld [vmem:[#allocation2 + $0x25d8] sm:$0xff]  ;;  %v12033_v55 = vcombine.low %v100_v43, %v140_v44 }
 0x16e   :  { %v1340_v52 = vld [vmem:[#allocation2 + $0x2718] sm:$0xff] }
 0x16f   :  { %8120 = vmatpush2.bf16.msra.mxu0 %v12987_v2  ;;  %8161 = vmatpush2.bf16.msra.mxu1 %v12989_v3  ;;  %v420_v3 = vld [vmem:[#allocation2 + $0xa58] sm:$0xff] }
 0x170   :  { %8121 = vmatprep.subr.bf16.mxu0 %v12908_v4  ;;  %8162 = vmatprep.subr.bf16.mxu1 %v12910_v5  ;;  %v460_v4 = vld [vmem:[#allocation2 + $0xb98] sm:$0xff] }
 0x171   :  { %v12353_v18 = vcombine.low %v420_v3, %v460_v4 }
 0x173   :  { %8122 = vmatpush2.bf16.msra.mxu0 %v12907_v10  ;;  %8163 = vmatpush2.bf16.msra.mxu1 %v12909_v11  ;;  %v12354_v11 = vcombine.high %v420_v3, %v460_v4  ;;  %v13233_v3 = vcombine.low %v1300_v51, %v1340_v52 }
 0x174   :  { %8123 = vmatprep.subr.bf16.mxu0 %v12828_v13  ;;  %8164 = vmatprep.subr.bf16.mxu1 %v12830_v14  ;;  %v339_v13 = vld [vmem:[#allocation2 + $0x7d0] sm:$0xff] }
 0x175   :  { %v379_v14 = vld [vmem:[#allocation2 + $0x910] sm:$0xff] }
 0x176   :  { %v12271_v25 = vcombine.low %v339_v13, %v379_v14 }
 0x177   :  { %8124 = vmatpush2.bf16.msra.mxu0 %v12827_v19  ;;  %8165 = vmatpush2.bf16.msra.mxu1 %v12829_v20  ;;  %v12272_v19 = vcombine.high %v339_v13, %v379_v14  ;;  %v12274_v20 = vcombine.high %v340_v15, %v380_v16  ;;  %v1059_v15 = vld [vmem:[#allocation2 + $0x1e50] sm:$0xff] }
 0x178   :  { %8125 = vmatprep.subr.bf16.mxu0 %v12748_v21  ;;  %8166 = vmatprep.subr.bf16.mxu1 %v12750_v22  ;;  %v259_v21 = vld [vmem:[#allocation2 + $0x550] sm:$0xff] }
 0x179   :  { %v299_v22 = vld [vmem:[#allocation2 + $0x690] sm:$0xff] }
 0x17a   :  { %v12191_v34 = vcombine.low %v259_v21, %v299_v22  ;;  %v1099_v16 = vld [vmem:[#allocation2 + $0x1f90] sm:$0xff] }
 0x17b   :  { %8126 = vmatpush2.bf16.msra.mxu0 %v12747_v27  ;;  %8167 = vmatpush2.bf16.msra.mxu1 %v12749_v28  ;;  %v12192_v27 = vcombine.high %v259_v21, %v299_v22  ;;  %v12194_v28 = vcombine.high %v260_v23, %v300_v24  ;;  %v12992_v21 = vcombine.high %v1059_v15, %v1099_v16  ;;  %v979_v23 = vld [vmem:[#allocation2 + $0x1bd0] sm:$0xff] }
 0x17c   :  { %8127 = vmatprep.subr.bf16.mxu0 %v12668_v29  ;;  %8168 = vmatprep.subr.bf16.mxu1 %v12670_v30  ;;  %v179_v29 = vld [vmem:[#allocation2 + $0x2d0] sm:$0xff] }
 0x17d   :  { %v219_v30 = vld [vmem:[#allocation2 + $0x410] sm:$0xff] }
 0x17e   :  { %v12111_v45 = vcombine.low %v179_v29, %v219_v30  ;;  %v1019_v24 = vld [vmem:[#allocation2 + $0x1d10] sm:$0xff] }
 0x17f   :  { %8128 = vmatpush2.bf16.msra.mxu0 %v12667_v37  ;;  %8169 = vmatpush2.bf16.msra.mxu1 %v12669_v39  ;;  %v12112_v37 = vcombine.high %v179_v29, %v219_v30  ;;  %v12114_v39 = vcombine.high %v180_v31, %v220_v32  ;;  %v12912_v29 = vcombine.high %v979_v23, %v1019_v24  ;;  %v899_v31 = vld [vmem:[#allocation2 + $0x1950] sm:$0xff] }
 0x180   :  { %8179 = vmatprep.subr.bf16.mxu0 %v12592_v40  ;;  %8220 = vmatprep.subr.bf16.mxu1 %v12594_v42  ;;  %v99_v40 = vld [vmem:[#allocation2 + $0x50] sm:$0xff] }
 0x181   :  { %v139_v42 = vld [vmem:[#allocation2 + $0x190] sm:$0xff] }
 0x182   :  { %v14305_v53 = vpop.f32.mrf.mxu0  ;;  %8130 = vmatmul.mubr.bf16.vlgmr.msra.gmra.mxu0 %v14279_v12  ;;  %v14308_v56 = vpop.f32.mrf.mxu1  ;;  %8171 = vmatmul.mubr.bf16.vlgmr.msra.gmra.mxu1 %v14279_v12  ;;  %v12031_v54 = vcombine.low %v99_v40, %v139_v42  ;;  %v939_v32 = vld [vmem:[#allocation2 + $0x1a90] sm:$0xff] }
 0x183   :  { %8180 = vmatpush1.bf16.msra.mxu0 %v12591_v47  ;;  %8221 = vmatpush1.bf16.msra.mxu1 %v12593_v48  ;;  %v12032_v47 = vcombine.high %v99_v40, %v139_v42  ;;  %v12034_v48 = vcombine.high %v100_v43, %v140_v44  ;;  %v12832_v40 = vcombine.high %v899_v31, %v939_v32  ;;  %v819_v43 = vld [vmem:[#allocation2 + $0x16d0] sm:$0xff] }
 0x184   :  { %v14311_v59 = vpop.f32.mrf.mxu0  ;;  %8181 = vmatprep.subr.bf16.mxu0 %v12512_v49  ;;  %v14313_v62 = vpop.f32.mrf.mxu1  ;;  %8222 = vmatprep.subr.bf16.mxu1 %v12514_v50  ;;  %v1299_v49 = vld [vmem:[#allocation2 + $0x25d0] sm:$0xff] }
 0x185   :  { %8211 = vmatprep.mubr.bf16.mxu0 %v14272_v57  ;;  %8252 = vmatprep.mubr.bf16.mxu1 %v14272_v57  ;;  %v1339_v50 = vld [vmem:[#allocation2 + $0x2710] sm:$0xff] }
 0x186   :  { %v7889_v2 = vpop.f32.mrf.mxu0  ;;  %v7930_v5 = vpop.f32.mrf.mxu1  ;;  %v859_v44 = vld [vmem:[#allocation2 + $0x1810] sm:$0xff] }
 0x187   :  { %8182 = vmatpush1.bf16.msra.mxu0 %v12511_v58  ;;  %8223 = vmatpush1.bf16.msra.mxu1 %v12513_v60  ;;  %v13232_v58 = vcombine.high %v1299_v49, %v1339_v50  ;;  %v13234_v60 = vcombine.high %v1300_v51, %v1340_v52  ;;  %v13231_v2 = vcombine.low %v1299_v49, %v1339_v50  ;;  %v739_v51 = vld [vmem:[#allocation2 + $0x1450] sm:$0xff] }
 0x188   :  { %v7890_v7 = vpop.f32.mrf.mxu0  ;;  %8183 = vmatprep.subr.bf16.mxu0 %v12432_v61  ;;  %v7931_v10 = vpop.f32.mrf.mxu1  ;;  %8224 = vmatprep.subr.bf16.mxu1 %v12434_v63  ;;  %v1219_v61 = vld [vmem:[#allocation2 + $0x2350] sm:$0xff]  ;;  %v13154_v5 = vcombine.high %v1220_v0, %v1260_v1  ;;  %v12752_v49 = vcombine.high %v819_v43, %v859_v44 }
 0x189   :  { %v1259_v63 = vld [vmem:[#allocation2 + $0x2490] sm:$0xff] }
 0x18a   :  { %v13152_v4 = vcombine.high %v1219_v61, %v1259_v63  ;;  %v1179_v7 = vld [vmem:[#allocation2 + $0x2210] sm:$0xff]  ;;  %v13151_v10 = vcombine.low %v1219_v61, %v1259_v63 }
 0x18b   :  { %8184 = vmatpush1.bf16.msra.mxu0 %v12431_v6  ;;  %8225 = vmatpush1.bf16.msra.mxu1 %v12433_v8  ;;  %v1139_v6 = vld [vmem:[#allocation2 + $0x20d0] sm:$0xff]  ;;  %v1140_v8 = vld [vmem:[#allocation2 + $0x20d8] sm:$0xff] }
 0x18c   :  { %8185 = vmatprep.subr.bf16.mxu0 %v12352_v9  ;;  %8226 = vmatprep.subr.bf16.mxu1 %v12354_v11  ;;  %v1180_v9 = vld [vmem:[#allocation2 + $0x2218] sm:$0xff]  ;;  %v13153_v11 = vcombine.low %v1220_v0, %v1260_v1  ;;  %v13072_v13 = vcombine.high %v1139_v6, %v1179_v7  ;;  %v779_v52 = vld [vmem:[#allocation2 + $0x1590] sm:$0xff]  ;;  %v661_v0 = vld [vmem:[#allocation2 + $0x11e0] sm:$0xff] }
 0x18d   :  { %v13074_v14 = vcombine.high %v1140_v8, %v1180_v9  ;;  %v12672_v61 = vcombine.high %v739_v51, %v779_v52  ;;  %v701_v1 = vld [vmem:[#allocation2 + $0x1320] sm:$0xff] }
 0x18f   :  { %8186 = vmatpush1.bf16.msra.mxu0 %v12351_v17  ;;  %8227 = vmatpush1.bf16.msra.mxu1 %v12353_v18  ;;  %v1060_v17 = vld [vmem:[#allocation2 + $0x1e58] sm:$0xff] }
 0x190   :  { %8187 = vmatprep.subr.bf16.mxu0 %v12272_v19  ;;  %8228 = vmatprep.subr.bf16.mxu1 %v12274_v20  ;;  %v1100_v18 = vld [vmem:[#allocation2 + $0x1f98] sm:$0xff]  ;;  %v13071_v19 = vcombine.low %v1139_v6, %v1179_v7  ;;  %v13073_v20 = vcombine.low %v1140_v8, %v1180_v9  ;;  %v12596_v6 = vcombine.high %v661_v0, %v701_v1  ;;  %v581_v8 = vld [vmem:[#allocation2 + $0xf60] sm:$0xff] }
 0x191   :  { %v12994_v22 = vcombine.high %v1060_v17, %v1100_v18  ;;  %v621_v9 = vld [vmem:[#allocation2 + $0x10a0] sm:$0xff] }
 0x193   :  { %8188 = vmatpush1.bf16.msra.mxu0 %v12271_v25  ;;  %8229 = vmatpush1.bf16.msra.mxu1 %v12273_v26  ;;  %v980_v25 = vld [vmem:[#allocation2 + $0x1bd8] sm:$0xff] }
 0x194   :  { %8189 = vmatprep.subr.bf16.mxu0 %v12192_v27  ;;  %8230 = vmatprep.subr.bf16.mxu1 %v12194_v28  ;;  %v1020_v26 = vld [vmem:[#allocation2 + $0x1d18] sm:$0xff]  ;;  %v12991_v27 = vcombine.low %v1059_v15, %v1099_v16  ;;  %v12993_v28 = vcombine.low %v1060_v17, %v1100_v18  ;;  %v12516_v15 = vcombine.high %v581_v8, %v621_v9  ;;  %v501_v17 = vld [vmem:[#allocation2 + $0xce0] sm:$0xff] }
 0x195   :  { %v12914_v30 = vcombine.high %v980_v25, %v1020_v26  ;;  %v541_v18 = vld [vmem:[#allocation2 + $0xe20] sm:$0xff] }
 0x197   :  { %8190 = vmatpush1.bf16.msra.mxu0 %v12191_v34  ;;  %8231 = vmatpush1.bf16.msra.mxu1 %v12193_v35  ;;  %v900_v34 = vld [vmem:[#allocation2 + $0x1958] sm:$0xff] }
 0x198   :  { %8191 = vmatprep.subr.bf16.mxu0 %v12112_v37  ;;  %8232 = vmatprep.subr.bf16.mxu1 %v12114_v39  ;;  %v940_v35 = vld [vmem:[#allocation2 + $0x1a98] sm:$0xff]  ;;  %v12911_v37 = vcombine.low %v979_v23, %v1019_v24  ;;  %v12913_v39 = vcombine.low %v980_v25, %v1020_v26  ;;  %v12515_v23 = vcombine.low %v581_v8, %v621_v9 }
 0x199   :  { %v12834_v42 = vcombine.high %v900_v34, %v940_v35  ;;  %v12436_v26 = vcombine.high %v501_v17, %v541_v18 }
 0x19b   :  { %8192 = vmatpush1.bf16.msra.mxu0 %v12111_v45  ;;  %8233 = vmatpush1.bf16.msra.mxu1 %v12113_v46  ;;  %v820_v45 = vld [vmem:[#allocation2 + $0x16d8] sm:$0xff] }
 0x19c   :  { %8193 = vmatprep.subr.bf16.mxu0 %v12032_v47  ;;  %8234 = vmatprep.subr.bf16.mxu1 %v12034_v48  ;;  %v860_v46 = vld [vmem:[#allocation2 + $0x1818] sm:$0xff]  ;;  %v12831_v47 = vcombine.low %v899_v31, %v939_v32  ;;  %v12833_v48 = vcombine.low %v900_v34, %v940_v35  ;;  %v422_v32 = vld [vmem:[#allocation2 + $0xa68] sm:$0xff] }
 0x19d   :  { %v12754_v50 = vcombine.high %v820_v45, %v860_v46  ;;  %v462_v34 = vld [vmem:[#allocation2 + $0xba8] sm:$0xff] }
 0x19f   :  { %8194 = vmatpush1.bf16.msra.mxu0 %v12031_v54  ;;  %8235 = vmatpush1.bf16.msra.mxu1 %v12033_v55  ;;  %v740_v54 = vld [vmem:[#allocation2 + $0x1458] sm:$0xff] }
 0x1a0   :  { %8195 = vmatprep.subr.bf16.mxu0 %v13232_v58  ;;  %8236 = vmatprep.subr.bf16.mxu1 %v13234_v60  ;;  %v780_v55 = vld [vmem:[#allocation2 + $0x1598] sm:$0xff]  ;;  %v12751_v58 = vcombine.low %v819_v43, %v859_v44  ;;  %v12753_v60 = vcombine.low %v820_v45, %v860_v46  ;;  %v12358_v44 = vcombine.high %v422_v32, %v462_v34  ;;  %v341_v45 = vld [vmem:[#allocation2 + $0x7e0] sm:$0xff] }
 0x1a1   :  { %v12674_v63 = vcombine.high %v740_v54, %v780_v55  ;;  %v381_v46 = vld [vmem:[#allocation2 + $0x920] sm:$0xff] }
 0x1a3   :  { %8196 = vmatpush2.bf16.msra.mxu0 %v13231_v2  ;;  %8237 = vmatpush2.bf16.msra.mxu1 %v13233_v3  ;;  %v662_v2 = vld [vmem:[#allocation2 + $0x11e8] sm:$0xff] }
 0x1a4   :  { %8197 = vmatprep.subr.bf16.mxu0 %v13152_v4  ;;  %8238 = vmatprep.subr.bf16.mxu1 %v13154_v5  ;;  %v702_v3 = vld [vmem:[#allocation2 + $0x1328] sm:$0xff]  ;;  %v12671_v4 = vcombine.low %v739_v51, %v779_v52  ;;  %v12673_v5 = vcombine.low %v740_v54, %v780_v55  ;;  %v12276_v51 = vcombine.high %v341_v45, %v381_v46  ;;  %v261_v54 = vld [vmem:[#allocation2 + $0x560] sm:$0xff] }
 0x1a5   :  { %v12598_v7 = vcombine.high %v662_v2, %v702_v3  ;;  %v301_v55 = vld [vmem:[#allocation2 + $0x6a0] sm:$0xff] }
 0x1a7   :  { %8198 = vmatpush2.bf16.msra.mxu0 %v13151_v10  ;;  %8239 = vmatpush2.bf16.msra.mxu1 %v13153_v11  ;;  %v582_v10 = vld [vmem:[#allocation2 + $0xf68] sm:$0xff] }
 0x1a8   :  { %8199 = vmatprep.subr.bf16.mxu0 %v13072_v13  ;;  %8240 = vmatprep.subr.bf16.mxu1 %v13074_v14  ;;  %v622_v11 = vld [vmem:[#allocation2 + $0x10a8] sm:$0xff]  ;;  %v12595_v13 = vcombine.low %v661_v0, %v701_v1  ;;  %v12597_v14 = vcombine.low %v662_v2, %v702_v3  ;;  %v12196_v0 = vcombine.high %v261_v54, %v301_v55  ;;  %v181_v2 = vld [vmem:[#allocation2 + $0x2e0] sm:$0xff] }
 0x1a9   :  { %v12518_v16 = vcombine.high %v582_v10, %v622_v11  ;;  %v12517_v25 = vcombine.low %v582_v10, %v622_v11  ;;  %v221_v3 = vld [vmem:[#allocation2 + $0x420] sm:$0xff] }
 0x1aa   :  { %v12116_v8 = vcombine.high %v181_v2, %v221_v3  ;;  %v101_v10 = vld [vmem:[#allocation2 + $0x60] sm:$0xff] }
 0x1ab   :  { %8200 = vmatpush2.bf16.msra.mxu0 %v13071_v19  ;;  %8241 = vmatpush2.bf16.msra.mxu1 %v13073_v20  ;;  %v502_v20 = vld [vmem:[#allocation2 + $0xce8] sm:$0xff]  ;;  %v141_v11 = vld [vmem:[#allocation2 + $0x1a0] sm:$0xff] }
 0x1ac   :  { %8201 = vmatprep.subr.bf16.mxu0 %v12992_v21  ;;  %8242 = vmatprep.subr.bf16.mxu1 %v12994_v22  ;;  %v542_v21 = vld [vmem:[#allocation2 + $0xe28] sm:$0xff] }
 0x1af   :  { %8202 = vmatpush2.bf16.msra.mxu0 %v12991_v27  ;;  %8243 = vmatpush2.bf16.msra.mxu1 %v12993_v28  ;;  %v12438_v28 = vcombine.high %v502_v20, %v542_v21 }
 0x1b0   :  { %8203 = vmatprep.subr.bf16.mxu0 %v12912_v29  ;;  %8244 = vmatprep.subr.bf16.mxu1 %v12914_v30  ;;  %v421_v29 = vld [vmem:[#allocation2 + $0xa60] sm:$0xff] }
 0x1b1   :  { %v461_v30 = vld [vmem:[#allocation2 + $0xba0] sm:$0xff] }
 0x1b3   :  { %8204 = vmatpush2.bf16.msra.mxu0 %v12911_v37  ;;  %8245 = vmatpush2.bf16.msra.mxu1 %v12913_v39  ;;  %v12435_v37 = vcombine.low %v501_v17, %v541_v18  ;;  %v12036_v17 = vcombine.high %v101_v10, %v141_v11 }
 0x1b4   :  { %8205 = vmatprep.subr.bf16.mxu0 %v12832_v40  ;;  %8246 = vmatprep.subr.bf16.mxu1 %v12834_v42  ;;  %v12437_v40 = vcombine.low %v502_v20, %v542_v21  ;;  %v12356_v42 = vcombine.high %v421_v29, %v461_v30  ;;  %v1301_v20 = vld [vmem:[#allocation2 + $0x25e0] sm:$0xff] }
 0x1b5   :  { %v1341_v21 = vld [vmem:[#allocation2 + $0x2720] sm:$0xff] }
 0x1b7   :  { %8206 = vmatpush2.bf16.msra.mxu0 %v12831_v47  ;;  %8247 = vmatpush2.bf16.msra.mxu1 %v12833_v48  ;;  %v342_v47 = vld [vmem:[#allocation2 + $0x7e8] sm:$0xff] }
 0x1b8   :  { %8207 = vmatprep.subr.bf16.mxu0 %v12752_v49  ;;  %8248 = vmatprep.subr.bf16.mxu1 %v12754_v50  ;;  %v382_v48 = vld [vmem:[#allocation2 + $0x928] sm:$0xff]  ;;  %v12355_v49 = vcombine.low %v421_v29, %v461_v30  ;;  %v12357_v50 = vcombine.low %v422_v32, %v462_v34  ;;  %v13236_v29 = vcombine.high %v1301_v20, %v1341_v21  ;;  %v1261_v32 = vld [vmem:[#allocation2 + $0x24a0] sm:$0xff] }
 0x1b9   :  { %v12278_v52 = vcombine.high %v342_v47, %v382_v48  ;;  %v1222_v34 = vld [vmem:[#allocation2 + $0x2368] sm:$0xff] }
 0x1bb   :  { %8208 = vmatpush2.bf16.msra.mxu0 %v12751_v58  ;;  %8249 = vmatpush2.bf16.msra.mxu1 %v12753_v60  ;;  %v262_v58 = vld [vmem:[#allocation2 + $0x568] sm:$0xff] }
 0x1bc   :  { %8209 = vmatprep.subr.bf16.mxu0 %v12672_v61  ;;  %8250 = vmatprep.subr.bf16.mxu1 %v12674_v63  ;;  %v302_v60 = vld [vmem:[#allocation2 + $0x6a8] sm:$0xff]  ;;  %v12275_v61 = vcombine.low %v341_v45, %v381_v46  ;;  %v12277_v63 = vcombine.low %v342_v47, %v382_v48 }
 0x1bd   :  { %v12198_v1 = vcombine.high %v262_v58, %v302_v60  ;;  %v1142_v45 = vld [vmem:[#allocation2 + $0x20e8] sm:$0xff] }
 0x1be   :  { %v1182_v46 = vld [vmem:[#allocation2 + $0x2228] sm:$0xff] }
 0x1bf   :  { %8210 = vmatpush2.bf16.msra.mxu0 %v12671_v4  ;;  %8251 = vmatpush2.bf16.msra.mxu1 %v12673_v5  ;;  %v182_v4 = vld [vmem:[#allocation2 + $0x2e8] sm:$0xff] }
 0x1c0   :  { %8261 = vmatprep.subr.bf16.mxu0 %v12596_v6  ;;  %8302 = vmatprep.subr.bf16.mxu1 %v12598_v7  ;;  %v222_v5 = vld [vmem:[#allocation2 + $0x428] sm:$0xff]  ;;  %v12195_v6 = vcombine.low %v261_v54, %v301_v55  ;;  %v12197_v7 = vcombine.low %v262_v58, %v302_v60  ;;  %v13077_v60 = vcombine.low %v1142_v45, %v1182_v46 }
 0x1c1   :  { %v12118_v9 = vcombine.high %v182_v4, %v222_v5  ;;  %v1062_v54 = vld [vmem:[#allocation2 + $0x1e68] sm:$0xff] }
 0x1c2   :  { %v14317_v19 = vpop.f32.mrf.mxu0  ;;  %8212 = vmatmul.mubr.bf16.vlgmr.msra.gmra.mxu0 %v14279_v12  ;;  %v14320_v22 = vpop.f32.mrf.mxu1  ;;  %8253 = vmatmul.mubr.bf16.vlgmr.msra.gmra.mxu1 %v14279_v12  ;;  %v1102_v55 = vld [vmem:[#allocation2 + $0x1fa8] sm:$0xff] }
 0x1c3   :  { %8262 = vmatpush1.bf16.msra.mxu0 %v12595_v13  ;;  %8303 = vmatpush1.bf16.msra.mxu1 %v12597_v14  ;;  %v102_v13 = vld [vmem:[#allocation2 + $0x68] sm:$0xff] }
 0x1c4   :  { %v14323_v24 = vpop.f32.mrf.mxu0  ;;  %8263 = vmatprep.subr.bf16.mxu0 %v12516_v15  ;;  %v14325_v27 = vpop.f32.mrf.mxu1  ;;  %8304 = vmatprep.subr.bf16.mxu1 %v12518_v16  ;;  %v142_v14 = vld [vmem:[#allocation2 + $0x1a8] sm:$0xff]  ;;  %v12115_v15 = vcombine.low %v181_v2, %v221_v3  ;;  %v12117_v16 = vcombine.low %v182_v4, %v222_v5  ;;  %v12997_v5 = vcombine.low %v1062_v54, %v1102_v55 }
 0x1c5   :  { %8293 = vmatprep.mubr.bf16.mxu0 %v14272_v57  ;;  %8334 = vmatprep.mubr.bf16.mxu1 %v14272_v57  ;;  %v12038_v18 = vcombine.high %v102_v13, %v142_v14  ;;  %v982_v2 = vld [vmem:[#allocation2 + $0x1be8] sm:$0xff] }
 0x1c6   :  { %v7971_v31 = vpop.f32.mrf.mxu0  ;;  %v8012_v35 = vpop.f32.mrf.mxu1  ;;  %v1022_v3 = vld [vmem:[#allocation2 + $0x1d28] sm:$0xff] }
 0x1c7   :  { %8264 = vmatpush1.bf16.msra.mxu0 %v12515_v23  ;;  %8305 = vmatpush1.bf16.msra.mxu1 %v12517_v25  ;;  %v1302_v23 = vld [vmem:[#allocation2 + $0x25e8] sm:$0xff]  ;;  %v1221_v31 = vld [vmem:[#allocation2 + $0x2360] sm:$0xff] }
 0x1c8   :  { %v7972_v39 = vpop.f32.mrf.mxu0  ;;  %8265 = vmatprep.subr.bf16.mxu0 %v12436_v26  ;;  %v8013_v43 = vpop.f32.mrf.mxu1  ;;  %8306 = vmatprep.subr.bf16.mxu1 %v12438_v28  ;;  %v1342_v25 = vld [vmem:[#allocation2 + $0x2728] sm:$0xff]  ;;  %v12035_v26 = vcombine.low %v101_v10, %v141_v11  ;;  %v12037_v28 = vcombine.low %v102_v13, %v142_v14  ;;  %v13155_v47 = vcombine.low %v1221_v31, %v1261_v32 }
 0x1c9   :  { %v13238_v30 = vcombine.high %v1302_v23, %v1342_v25  ;;  %v1262_v35 = vld [vmem:[#allocation2 + $0x24a8] sm:$0xff]  ;;  %v13237_v39 = vcombine.low %v1302_v23, %v1342_v25  ;;  %v1141_v43 = vld [vmem:[#allocation2 + $0x20e0] sm:$0xff]  ;;  %v12917_v14 = vcombine.low %v982_v2, %v1022_v3 }
 0x1ca   :  { %v13157_v48 = vcombine.low %v1222_v34, %v1262_v35  ;;  %v902_v10 = vld [vmem:[#allocation2 + $0x1968] sm:$0xff] }
 0x1cb   :  { %8266 = vmatpush1.bf16.msra.mxu0 %v12435_v37  ;;  %8307 = vmatpush1.bf16.msra.mxu1 %v12437_v40  ;;  %v13235_v37 = vcombine.low %v1301_v20, %v1341_v21  ;;  %v13156_v40 = vcombine.high %v1221_v31, %v1261_v32  ;;  %v942_v11 = vld [vmem:[#allocation2 + $0x1aa8] sm:$0xff] }
 0x1cc   :  { %8267 = vmatprep.subr.bf16.mxu0 %v12356_v42  ;;  %8308 = vmatprep.subr.bf16.mxu1 %v12358_v44  ;;  %v13158_v42 = vcombine.high %v1222_v34, %v1262_v35  ;;  %v1181_v44 = vld [vmem:[#allocation2 + $0x2220] sm:$0xff]  ;;  %v822_v20 = vld [vmem:[#allocation2 + $0x16e8] sm:$0xff]  ;;  %v12837_v25 = vcombine.low %v902_v10, %v942_v11 }
 0x1cd   :  { %v13075_v58 = vcombine.low %v1141_v43, %v1181_v44  ;;  %v862_v21 = vld [vmem:[#allocation2 + $0x1828] sm:$0xff] }
 0x1ce   :  { %v742_v31 = vld [vmem:[#allocation2 + $0x1468] sm:$0xff]  ;;  %v12757_v35 = vcombine.low %v822_v20, %v862_v21 }
 0x1cf   :  { %8268 = vmatpush1.bf16.msra.mxu0 %v12355_v49  ;;  %8309 = vmatpush1.bf16.msra.mxu1 %v12357_v50  ;;  %v13076_v49 = vcombine.high %v1141_v43, %v1181_v44  ;;  %v13078_v50 = vcombine.high %v1142_v45, %v1182_v46  ;;  %v782_v32 = vld [vmem:[#allocation2 + $0x15a8] sm:$0xff]  ;;  %v664_v43 = vld [vmem:[#allocation2 + $0x11f8] sm:$0xff] }
 0x1d0   :  { %8269 = vmatprep.subr.bf16.mxu0 %v12276_v51  ;;  %8310 = vmatprep.subr.bf16.mxu1 %v12278_v52  ;;  %v1061_v51 = vld [vmem:[#allocation2 + $0x1e60] sm:$0xff]  ;;  %v704_v44 = vld [vmem:[#allocation2 + $0x1338] sm:$0xff]  ;;  %v12677_v46 = vcombine.low %v742_v31, %v782_v32 }
 0x1d1   :  { %v1101_v52 = vld [vmem:[#allocation2 + $0x1fa0] sm:$0xff] }
 0x1d2   :  { %v12995_v4 = vcombine.low %v1061_v51, %v1101_v52 }
 0x1d3   :  { %8270 = vmatpush1.bf16.msra.mxu0 %v12275_v61  ;;  %8311 = vmatpush1.bf16.msra.mxu1 %v12277_v63  ;;  %v12996_v61 = vcombine.high %v1061_v51, %v1101_v52  ;;  %v12998_v63 = vcombine.high %v1062_v54, %v1102_v55  ;;  %v584_v51 = vld [vmem:[#allocation2 + $0xf78] sm:$0xff]  ;;  %v12601_v55 = vcombine.low %v664_v43, %v704_v44 }
 0x1d4   :  { %8271 = vmatprep.subr.bf16.mxu0 %v12196_v0  ;;  %8312 = vmatprep.subr.bf16.mxu1 %v12198_v1  ;;  %v981_v0 = vld [vmem:[#allocation2 + $0x1be0] sm:$0xff]  ;;  %v624_v52 = vld [vmem:[#allocation2 + $0x10b8] sm:$0xff] }
 0x1d5   :  { %v1021_v1 = vld [vmem:[#allocation2 + $0x1d20] sm:$0xff] }
 0x1d6   :  { %v12915_v13 = vcombine.low %v981_v0, %v1021_v1 }
 0x1d7   :  { %8272 = vmatpush1.bf16.msra.mxu0 %v12195_v6  ;;  %8313 = vmatpush1.bf16.msra.mxu1 %v12197_v7  ;;  %v12916_v6 = vcombine.high %v981_v0, %v1021_v1  ;;  %v12918_v7 = vcombine.high %v982_v2, %v1022_v3  ;;  %v504_v1 = vld [vmem:[#allocation2 + $0xcf8] sm:$0xff] }
 0x1d8   :  { %8273 = vmatprep.subr.bf16.mxu0 %v12116_v8  ;;  %8314 = vmatprep.subr.bf16.mxu1 %v12118_v9  ;;  %v901_v8 = vld [vmem:[#allocation2 + $0x1960] sm:$0xff]  ;;  %v544_v2 = vld [vmem:[#allocation2 + $0xe38] sm:$0xff] }
 0x1d9   :  { %v941_v9 = vld [vmem:[#allocation2 + $0x1aa0] sm:$0xff] }
 0x1da   :  { %v12835_v23 = vcombine.low %v901_v8, %v941_v9 }
 0x1db   :  { %8274 = vmatpush1.bf16.msra.mxu0 %v12115_v15  ;;  %8315 = vmatpush1.bf16.msra.mxu1 %v12117_v16  ;;  %v12836_v15 = vcombine.high %v901_v8, %v941_v9  ;;  %v12838_v16 = vcombine.high %v902_v10, %v942_v11  ;;  %v12442_v9 = vcombine.high %v504_v1, %v544_v2  ;;  %v423_v10 = vld [vmem:[#allocation2 + $0xa70] sm:$0xff] }
 0x1dc   :  { %8275 = vmatprep.subr.bf16.mxu0 %v12036_v17  ;;  %8316 = vmatprep.subr.bf16.mxu1 %v12038_v18  ;;  %v821_v17 = vld [vmem:[#allocation2 + $0x16e0] sm:$0xff]  ;;  %v463_v11 = vld [vmem:[#allocation2 + $0xbb0] sm:$0xff] }
 0x1dd   :  { %v861_v18 = vld [vmem:[#allocation2 + $0x1820] sm:$0xff] }
 0x1de   :  { %v12755_v34 = vcombine.low %v821_v17, %v861_v18 }
 0x1df   :  { %8276 = vmatpush1.bf16.msra.mxu0 %v12035_v26  ;;  %8317 = vmatpush1.bf16.msra.mxu1 %v12037_v28  ;;  %v12756_v26 = vcombine.high %v821_v17, %v861_v18  ;;  %v12758_v28 = vcombine.high %v822_v20, %v862_v21  ;;  %v12441_v20 = vcombine.low %v504_v1, %v544_v2 }
 0x1e0   :  { %8277 = vmatprep.subr.bf16.mxu0 %v13236_v29  ;;  %8318 = vmatprep.subr.bf16.mxu1 %v13238_v30  ;;  %v741_v29 = vld [vmem:[#allocation2 + $0x1460] sm:$0xff]  ;;  %v12360_v21 = vcombine.high %v423_v10, %v463_v11 }
 0x1e1   :  { %v781_v30 = vld [vmem:[#allocation2 + $0x15a0] sm:$0xff] }
 0x1e2   :  { %v12675_v45 = vcombine.low %v741_v29, %v781_v30 }
 0x1e3   :  { %8278 = vmatpush2.bf16.msra.mxu0 %v13235_v37  ;;  %8319 = vmatpush2.bf16.msra.mxu1 %v13237_v39  ;;  %v12676_v37 = vcombine.high %v741_v29, %v781_v30  ;;  %v12678_v39 = vcombine.high %v742_v31, %v782_v32  ;;  %v344_v29 = vld [vmem:[#allocation2 + $0x7f8] sm:$0xff]  ;;  %v12359_v31 = vcombine.low %v423_v10, %v463_v11 }
 0x1e4   :  { %8279 = vmatprep.subr.bf16.mxu0 %v13156_v40  ;;  %8320 = vmatprep.subr.bf16.mxu1 %v13158_v42  ;;  %v663_v40 = vld [vmem:[#allocation2 + $0x11f0] sm:$0xff]  ;;  %v384_v30 = vld [vmem:[#allocation2 + $0x938] sm:$0xff] }
 0x1e5   :  { %v703_v42 = vld [vmem:[#allocation2 + $0x1330] sm:$0xff]  ;;  %v1304_v10 = vld [vmem:[#allocation2 + $0x25f8] sm:$0xff] }
 0x1e6   :  { %v12599_v54 = vcombine.low %v663_v40, %v703_v42  ;;  %v1344_v11 = vld [vmem:[#allocation2 + $0x2738] sm:$0xff] }
 0x1e7   :  { %8280 = vmatpush2.bf16.msra.mxu0 %v13155_v47  ;;  %8321 = vmatpush2.bf16.msra.mxu1 %v13157_v48  ;;  %v12600_v47 = vcombine.high %v663_v40, %v703_v42  ;;  %v12602_v48 = vcombine.high %v664_v43, %v704_v44  ;;  %v264_v40 = vld [vmem:[#allocation2 + $0x578] sm:$0xff]  ;;  %v12281_v44 = vcombine.low %v344_v29, %v384_v30 }
 0x1e8   :  { %8281 = vmatprep.subr.bf16.mxu0 %v13076_v49  ;;  %8322 = vmatprep.subr.bf16.mxu1 %v13078_v50  ;;  %v583_v49 = vld [vmem:[#allocation2 + $0xf70] sm:$0xff]  ;;  %v304_v42 = vld [vmem:[#allocation2 + $0x6b8] sm:$0xff] }
 0x1e9   :  { %v623_v50 = vld [vmem:[#allocation2 + $0x10b0] sm:$0xff] }
 0x1eb   :  { %8282 = vmatpush2.bf16.msra.mxu0 %v13075_v58  ;;  %8323 = vmatpush2.bf16.msra.mxu1 %v13077_v60  ;;  %v12520_v58 = vcombine.high %v583_v49, %v623_v50  ;;  %v12522_v60 = vcombine.high %v584_v51, %v624_v52 }
 0x1ec   :  { %8283 = vmatprep.subr.bf16.mxu0 %v12996_v61  ;;  %8324 = vmatprep.subr.bf16.mxu1 %v12998_v63  ;;  %v503_v61 = vld [vmem:[#allocation2 + $0xcf0] sm:$0xff] }
 0x1ed   :  { %v543_v63 = vld [vmem:[#allocation2 + $0xe30] sm:$0xff] }
 0x1ee   :  { %v12439_v17 = vcombine.low %v503_v61, %v543_v63 }
 0x1ef   :  { %8284 = vmatpush2.bf16.msra.mxu0 %v12995_v4  ;;  %8325 = vmatpush2.bf16.msra.mxu1 %v12997_v5  ;;  %v12519_v4 = vcombine.low %v583_v49, %v623_v50  ;;  %v184_v49 = vld [vmem:[#allocation2 + $0x2f8] sm:$0xff] }
 0x1f0   :  { %8285 = vmatprep.subr.bf16.mxu0 %v12916_v6  ;;  %8326 = vmatprep.subr.bf16.mxu1 %v12918_v7  ;;  %v12521_v6 = vcombine.low %v584_v51, %v624_v52  ;;  %v12440_v7 = vcombine.high %v503_v61, %v543_v63  ;;  %v224_v50 = vld [vmem:[#allocation2 + $0x438] sm:$0xff]  ;;  %v12201_v52 = vcombine.low %v264_v40, %v304_v42 }
 0x1f1   :  { %v104_v61 = vld [vmem:[#allocation2 + $0x78] sm:$0xff]  ;;  %v12121_v2 = vcombine.low %v184_v49, %v224_v50 }
 0x1f2   :  { %v144_v63 = vld [vmem:[#allocation2 + $0x1b8] sm:$0xff] }
 0x1f3   :  { %8286 = vmatpush2.bf16.msra.mxu0 %v12915_v13  ;;  %8327 = vmatpush2.bf16.msra.mxu1 %v12917_v14  ;;  %v424_v14 = vld [vmem:[#allocation2 + $0xa78] sm:$0xff] }
 0x1f4   :  { %8287 = vmatprep.subr.bf16.mxu0 %v12836_v15  ;;  %8328 = vmatprep.subr.bf16.mxu1 %v12838_v16  ;;  %v464_v15 = vld [vmem:[#allocation2 + $0xbb8] sm:$0xff] }
 0x1f5   :  { %v12361_v32 = vcombine.low %v424_v14, %v464_v15 }
 0x1f7   :  { %8288 = vmatpush2.bf16.msra.mxu0 %v12835_v23  ;;  %8329 = vmatpush2.bf16.msra.mxu1 %v12837_v25  ;;  %v12362_v25 = vcombine.high %v424_v14, %v464_v15  ;;  %v12041_v14 = vcombine.low %v104_v61, %v144_v63 }
 0x1f8   :  { %8289 = vmatprep.subr.bf16.mxu0 %v12756_v26  ;;  %8330 = vmatprep.subr.bf16.mxu1 %v12758_v28  ;;  %v343_v26 = vld [vmem:[#allocation2 + $0x7f0] sm:$0xff] }
 0x1f9   :  { %v383_v28 = vld [vmem:[#allocation2 + $0x930] sm:$0xff] }
 0x1fa   :  { %v12279_v43 = vcombine.low %v343_v26, %v383_v28 }
 0x1fb   :  { %8290 = vmatpush2.bf16.msra.mxu0 %v12755_v34  ;;  %8331 = vmatpush2.bf16.msra.mxu1 %v12757_v35  ;;  %v12280_v34 = vcombine.high %v343_v26, %v383_v28  ;;  %v12282_v35 = vcombine.high %v344_v29, %v384_v30  ;;  %v1143_v29 = vld [vmem:[#allocation2 + $0x20f0] sm:$0xff] }
 0x1fc   :  { %8291 = vmatprep.subr.bf16.mxu0 %v12676_v37  ;;  %8332 = vmatprep.subr.bf16.mxu1 %v12678_v39  ;;  %v263_v37 = vld [vmem:[#allocation2 + $0x570] sm:$0xff] }
 0x1fd   :  { %v303_v39 = vld [vmem:[#allocation2 + $0x6b0] sm:$0xff] }
 0x1fe   :  { %v12199_v51 = vcombine.low %v263_v37, %v303_v39  ;;  %v1183_v30 = vld [vmem:[#allocation2 + $0x2230] sm:$0xff] }
 0x1ff   :  { %8292 = vmatpush2.bf16.msra.mxu0 %v12675_v45  ;;  %8333 = vmatpush2.bf16.msra.mxu1 %v12677_v46  ;;  %v12200_v45 = vcombine.high %v263_v37, %v303_v39  ;;  %v12202_v46 = vcombine.high %v264_v40, %v304_v42  ;;  %v13080_v37 = vcombine.high %v1143_v29, %v1183_v30  ;;  %v1063_v40 = vld [vmem:[#allocation2 + $0x1e70] sm:$0xff] }
 0x200   :  { %8343 = vmatprep.subr.bf16.mxu0 %v12600_v47  ;;  %8384 = vmatprep.subr.bf16.mxu1 %v12602_v48  ;;  %v183_v47 = vld [vmem:[#allocation2 + $0x2f0] sm:$0xff] }
 0x201   :  { %v223_v48 = vld [vmem:[#allocation2 + $0x430] sm:$0xff] }
 0x202   :  { %v14329_v0 = vpop.f32.mrf.mxu0  ;;  %8294 = vmatmul.mubr.bf16.vlgmr.msra.gmra.mxu0 %v14279_v12  ;;  %v14332_v3 = vpop.f32.mrf.mxu1  ;;  %8335 = vmatmul.mubr.bf16.vlgmr.msra.gmra.mxu1 %v14279_v12  ;;  %v12119_v1 = vcombine.low %v183_v47, %v223_v48  ;;  %v1103_v42 = vld [vmem:[#allocation2 + $0x1fb0] sm:$0xff] }
 0x203   :  { %14691 = vst [vmem:[#allocation13_spill] sm:$0xff] %v14329_v0  ;;  %14692 = vst [vmem:[#allocation14_spill] sm:$0xff] %v14332_v3  ;;  %8344 = vmatpush1.bf16.msra.mxu0 %v12599_v54  ;;  %8385 = vmatpush1.bf16.msra.mxu1 %v12601_v55  ;;  %v12120_v54 = vcombine.high %v183_v47, %v223_v48  ;;  %v12122_v55 = vcombine.high %v184_v49, %v224_v50  ;;  %v983_v49 = vld [vmem:[#allocation2 + $0x1bf0] sm:$0xff]  ;;  %v362_v3 = vld [vmem:[#allocation2 + $0x888] sm:$0xff] }
 0x204   :  { %v14335_v5 = vpop.f32.mrf.mxu0  ;;  %8345 = vmatprep.subr.bf16.mxu0 %v12520_v58  ;;  %v14337_v8 = vpop.f32.mrf.mxu1  ;;  %8386 = vmatprep.subr.bf16.mxu1 %v12522_v60  ;;  %v103_v58 = vld [vmem:[#allocation2 + $0x70] sm:$0xff]  ;;  %v13000_v47 = vcombine.high %v1063_v40, %v1103_v42 }
 0x205   :  { %14693 = vst [vmem:[#allocation15_spill] sm:$0xff] %v14335_v5  ;;  %14694 = vst [vmem:[#allocation16_spill] sm:$0xff] %v14337_v8  ;;  %8375 = vmatprep.mubr.bf16.mxu0 %v14272_v57  ;;  %8416 = vmatprep.mubr.bf16.mxu1 %v14272_v57  ;;  %v143_v60 = vld [vmem:[#allocation2 + $0x1b0] sm:$0xff]  ;;  %v360_v8 = vld [vmem:[#allocation2 + $0x878] sm:$0xff] }
 0x206   :  { %v8053_v13 = vpop.f32.mrf.mxu0  ;;  %v8094_v16 = vpop.f32.mrf.mxu1  ;;  %v1023_v50 = vld [vmem:[#allocation2 + $0x1d30] sm:$0xff] }
 0x207   :  { %8346 = vmatpush1.bf16.msra.mxu0 %v12519_v4  ;;  %8387 = vmatpush1.bf16.msra.mxu1 %v12521_v6  ;;  %v12040_v4 = vcombine.high %v103_v58, %v143_v60  ;;  %v12042_v6 = vcombine.high %v104_v61, %v144_v63  ;;  %v12039_v13 = vcombine.low %v103_v58, %v143_v60  ;;  %v903_v61 = vld [vmem:[#allocation2 + $0x1970] sm:$0xff] }
 0x208   :  { %v8054_v18 = vpop.f32.mrf.mxu0  ;;  %8347 = vmatprep.subr.bf16.mxu0 %v12440_v7  ;;  %v8095_v23 = vpop.f32.mrf.mxu1  ;;  %8388 = vmatprep.subr.bf16.mxu1 %v12442_v9  ;;  %v1303_v7 = vld [vmem:[#allocation2 + $0x25f0] sm:$0xff]  ;;  %v13242_v16 = vcombine.high %v1304_v10, %v1344_v11  ;;  %v12920_v58 = vcombine.high %v983_v49, %v1023_v50 }
 0x209   :  { %v1343_v9 = vld [vmem:[#allocation2 + $0x2730] sm:$0xff] }
 0x20a   :  { %v13240_v15 = vcombine.high %v1303_v7, %v1343_v9  ;;  %v1263_v18 = vld [vmem:[#allocation2 + $0x24b0] sm:$0xff]  ;;  %v13239_v23 = vcombine.low %v1303_v7, %v1343_v9 }
 0x20b   :  { %8348 = vmatpush1.bf16.msra.mxu0 %v12439_v17  ;;  %8389 = vmatpush1.bf16.msra.mxu1 %v12441_v20  ;;  %v1223_v17 = vld [vmem:[#allocation2 + $0x2370] sm:$0xff]  ;;  %v1224_v20 = vld [vmem:[#allocation2 + $0x2378] sm:$0xff] }
 0x20c   :  { %8349 = vmatprep.subr.bf16.mxu0 %v12360_v21  ;;  %8390 = vmatprep.subr.bf16.mxu1 %v12362_v25  ;;  %v1264_v21 = vld [vmem:[#allocation2 + $0x24b8] sm:$0xff]  ;;  %v13241_v25 = vcombine.low %v1304_v10, %v1344_v11  ;;  %v13160_v26 = vcombine.high %v1223_v17, %v1263_v18  ;;  %v943_v63 = vld [vmem:[#allocation2 + $0x1ab0] sm:$0xff] }
 0x20d   :  { %v13162_v28 = vcombine.high %v1224_v20, %v1264_v21  ;;  %v12840_v7 = vcombine.high %v903_v61, %v943_v63  ;;  %v823_v10 = vld [vmem:[#allocation2 + $0x16f0] sm:$0xff] }
 0x20e   :  { %v863_v11 = vld [vmem:[#allocation2 + $0x1830] sm:$0xff] }
 0x20f   :  { %8350 = vmatpush1.bf16.msra.mxu0 %v12359_v31  ;;  %8391 = vmatpush1.bf16.msra.mxu1 %v12361_v32  ;;  %v1144_v31 = vld [vmem:[#allocation2 + $0x20f8] sm:$0xff] }
 0x210   :  { %8351 = vmatprep.subr.bf16.mxu0 %v12280_v34  ;;  %8392 = vmatprep.subr.bf16.mxu1 %v12282_v35  ;;  %v1184_v32 = vld [vmem:[#allocation2 + $0x2238] sm:$0xff]  ;;  %v13159_v34 = vcombine.low %v1223_v17, %v1263_v18  ;;  %v13161_v35 = vcombine.low %v1224_v20, %v1264_v21  ;;  %v12760_v17 = vcombine.high %v823_v10, %v863_v11  ;;  %v743_v20 = vld [vmem:[#allocation2 + $0x1470] sm:$0xff] }
 0x211   :  { %v13082_v39 = vcombine.high %v1144_v31, %v1184_v32  ;;  %v783_v21 = vld [vmem:[#allocation2 + $0x15b0] sm:$0xff] }
 0x213   :  { %8352 = vmatpush1.bf16.msra.mxu0 %v12279_v43  ;;  %8393 = vmatpush1.bf16.msra.mxu1 %v12281_v44  ;;  %v1064_v43 = vld [vmem:[#allocation2 + $0x1e78] sm:$0xff] }
 0x214   :  { %8353 = vmatprep.subr.bf16.mxu0 %v12200_v45  ;;  %8394 = vmatprep.subr.bf16.mxu1 %v12202_v46  ;;  %v1104_v44 = vld [vmem:[#allocation2 + $0x1fb8] sm:$0xff]  ;;  %v13079_v45 = vcombine.low %v1143_v29, %v1183_v30  ;;  %v13081_v46 = vcombine.low %v1144_v31, %v1184_v32  ;;  %v12680_v29 = vcombine.high %v743_v20, %v783_v21  ;;  %v665_v31 = vld [vmem:[#allocation2 + $0x1200] sm:$0xff] }
 0x215   :  { %v13002_v48 = vcombine.high %v1064_v43, %v1104_v44  ;;  %v705_v32 = vld [vmem:[#allocation2 + $0x1340] sm:$0xff] }
 0x217   :  { %8354 = vmatpush1.bf16.msra.mxu0 %v12199_v51  ;;  %8395 = vmatpush1.bf16.msra.mxu1 %v12201_v52  ;;  %v984_v51 = vld [vmem:[#allocation2 + $0x1bf8] sm:$0xff] }
 0x218   :  { %8355 = vmatprep.subr.bf16.mxu0 %v12120_v54  ;;  %8396 = vmatprep.subr.bf16.mxu1 %v12122_v55  ;;  %v1024_v52 = vld [vmem:[#allocation2 + $0x1d38] sm:$0xff]  ;;  %v12999_v54 = vcombine.low %v1063_v40, %v1103_v42  ;;  %v13001_v55 = vcombine.low %v1064_v43, %v1104_v44  ;;  %v12604_v40 = vcombine.high %v665_v31, %v705_v32  ;;  %v585_v43 = vld [vmem:[#allocation2 + $0xf80] sm:$0xff] }
 0x219   :  { %v12922_v60 = vcombine.high %v984_v51, %v1024_v52  ;;  %v625_v44 = vld [vmem:[#allocation2 + $0x10c0] sm:$0xff] }
 0x21b   :  { %8356 = vmatpush1.bf16.msra.mxu0 %v12119_v1  ;;  %8397 = vmatpush1.bf16.msra.mxu1 %v12121_v2  ;;  %v904_v1 = vld [vmem:[#allocation2 + $0x1978] sm:$0xff] }
 0x21c   :  { %8357 = vmatprep.subr.bf16.mxu0 %v12040_v4  ;;  %8398 = vmatprep.subr.bf16.mxu1 %v12042_v6  ;;  %v944_v2 = vld [vmem:[#allocation2 + $0x1ab8] sm:$0xff]  ;;  %v12919_v4 = vcombine.low %v983_v49, %v1023_v50  ;;  %v12921_v6 = vcombine.low %v984_v51, %v1024_v52  ;;  %v12524_v49 = vcombine.high %v585_v43, %v625_v44  ;;  %v505_v51 = vld [vmem:[#allocation2 + $0xd00] sm:$0xff] }
 0x21d   :  { %v12842_v9 = vcombine.high %v904_v1, %v944_v2  ;;  %v545_v52 = vld [vmem:[#allocation2 + $0xe40] sm:$0xff] }
 0x21f   :  { %8358 = vmatpush1.bf16.msra.mxu0 %v12039_v13  ;;  %8399 = vmatpush1.bf16.msra.mxu1 %v12041_v14  ;;  %v824_v13 = vld [vmem:[#allocation2 + $0x16f8] sm:$0xff] }
 0x220   :  { %8359 = vmatprep.subr.bf16.mxu0 %v13240_v15  ;;  %8400 = vmatprep.subr.bf16.mxu1 %v13242_v16  ;;  %v864_v14 = vld [vmem:[#allocation2 + $0x1838] sm:$0xff]  ;;  %v12839_v15 = vcombine.low %v903_v61, %v943_v63  ;;  %v12841_v16 = vcombine.low %v904_v1, %v944_v2  ;;  %v12523_v61 = vcombine.low %v585_v43, %v625_v44 }
 0x221   :  { %v12762_v18 = vcombine.high %v824_v13, %v864_v14  ;;  %v12444_v2 = vcombine.high %v505_v51, %v545_v52 }
 0x223   :  { %8360 = vmatpush2.bf16.msra.mxu0 %v13239_v23  ;;  %8401 = vmatpush2.bf16.msra.mxu1 %v13241_v25  ;;  %v744_v23 = vld [vmem:[#allocation2 + $0x1478] sm:$0xff] }
 0x224   :  { %8361 = vmatprep.subr.bf16.mxu0 %v13160_v26  ;;  %8402 = vmatprep.subr.bf16.mxu1 %v13162_v28  ;;  %v784_v25 = vld [vmem:[#allocation2 + $0x15b8] sm:$0xff]  ;;  %v12759_v26 = vcombine.low %v823_v10, %v863_v11  ;;  %v12761_v28 = vcombine.low %v824_v13, %v864_v14  ;;  %v426_v11 = vld [vmem:[#allocation2 + $0xa88] sm:$0xff] }
 0x225   :  { %v12682_v30 = vcombine.high %v744_v23, %v784_v25  ;;  %v466_v13 = vld [vmem:[#allocation2 + $0xbc8] sm:$0xff] }
 0x227   :  { %8362 = vmatpush2.bf16.msra.mxu0 %v13159_v34  ;;  %8403 = vmatpush2.bf16.msra.mxu1 %v13161_v35  ;;  %v666_v34 = vld [vmem:[#allocation2 + $0x1208] sm:$0xff] }
 0x228   :  { %8363 = vmatprep.subr.bf16.mxu0 %v13080_v37  ;;  %8404 = vmatprep.subr.bf16.mxu1 %v13082_v39  ;;  %v706_v35 = vld [vmem:[#allocation2 + $0x1348] sm:$0xff]  ;;  %v12679_v37 = vcombine.low %v743_v20, %v783_v21  ;;  %v12681_v39 = vcombine.low %v744_v23, %v784_v25  ;;  %v12366_v21 = vcombine.high %v426_v11, %v466_v13  ;;  %v345_v23 = vld [vmem:[#allocation2 + $0x800] sm:$0xff] }
 0x229   :  { %v12606_v42 = vcombine.high %v666_v34, %v706_v35  ;;  %v385_v25 = vld [vmem:[#allocation2 + $0x940] sm:$0xff] }
 0x22b   :  { %8364 = vmatpush2.bf16.msra.mxu0 %v13079_v45  ;;  %8405 = vmatpush2.bf16.msra.mxu1 %v13081_v46  ;;  %v586_v45 = vld [vmem:[#allocation2 + $0xf88] sm:$0xff] }
 0x22c   :  { %8365 = vmatprep.subr.bf16.mxu0 %v13000_v47  ;;  %8406 = vmatprep.subr.bf16.mxu1 %v13002_v48  ;;  %v626_v46 = vld [vmem:[#allocation2 + $0x10c8] sm:$0xff]  ;;  %v12603_v47 = vcombine.low %v665_v31, %v705_v32  ;;  %v12605_v48 = vcombine.low %v666_v34, %v706_v35  ;;  %v12284_v31 = vcombine.high %v345_v23, %v385_v25  ;;  %v265_v34 = vld [vmem:[#allocation2 + $0x580] sm:$0xff] }
 0x22d   :  { %v12526_v50 = vcombine.high %v586_v45, %v626_v46  ;;  %v12525_v1 = vcombine.low %v586_v45, %v626_v46  ;;  %v305_v35 = vld [vmem:[#allocation2 + $0x6c0] sm:$0xff] }
 0x22e   :  { %v12204_v43 = vcombine.high %v265_v34, %v305_v35  ;;  %v185_v45 = vld [vmem:[#allocation2 + $0x300] sm:$0xff] }
 0x22f   :  { %8366 = vmatpush2.bf16.msra.mxu0 %v12999_v54  ;;  %8407 = vmatpush2.bf16.msra.mxu1 %v13001_v55  ;;  %v506_v55 = vld [vmem:[#allocation2 + $0xd08] sm:$0xff]  ;;  %v225_v46 = vld [vmem:[#allocation2 + $0x440] sm:$0xff] }
 0x230   :  { %8367 = vmatprep.subr.bf16.mxu0 %v12920_v58  ;;  %8408 = vmatprep.subr.bf16.mxu1 %v12922_v60  ;;  %v546_v58 = vld [vmem:[#allocation2 + $0xe48] sm:$0xff] }
 0x233   :  { %8368 = vmatpush2.bf16.msra.mxu0 %v12919_v4  ;;  %8409 = vmatpush2.bf16.msra.mxu1 %v12921_v6  ;;  %v12446_v6 = vcombine.high %v506_v55, %v546_v58 }
 0x234   :  { %8369 = vmatprep.subr.bf16.mxu0 %v12840_v7  ;;  %8410 = vmatprep.subr.bf16.mxu1 %v12842_v9  ;;  %v425_v7 = vld [vmem:[#allocation2 + $0xa80] sm:$0xff] }
 0x235   :  { %v465_v9 = vld [vmem:[#allocation2 + $0xbc0] sm:$0xff] }
 0x237   :  { %8370 = vmatpush2.bf16.msra.mxu0 %v12839_v15  ;;  %8411 = vmatpush2.bf16.msra.mxu1 %v12841_v16  ;;  %v12443_v15 = vcombine.low %v505_v51, %v545_v52  ;;  %v12124_v51 = vcombine.high %v185_v45, %v225_v46 }
 0x238   :  { %8371 = vmatprep.subr.bf16.mxu0 %v12760_v17  ;;  %8412 = vmatprep.subr.bf16.mxu1 %v12762_v18  ;;  %v12445_v17 = vcombine.low %v506_v55, %v546_v58  ;;  %v12364_v18 = vcombine.high %v425_v7, %v465_v9  ;;  %v105_v55 = vld [vmem:[#allocation2 + $0x80] sm:$0xff] }
 0x239   :  { %v145_v58 = vld [vmem:[#allocation2 + $0x1c0] sm:$0xff] }
 0x23b   :  { %8372 = vmatpush2.bf16.msra.mxu0 %v12759_v26  ;;  %8413 = vmatpush2.bf16.msra.mxu1 %v12761_v28  ;;  %v346_v26 = vld [vmem:[#allocation2 + $0x808] sm:$0xff] }
 0x23c   :  { %8373 = vmatprep.subr.bf16.mxu0 %v12680_v29  ;;  %8414 = vmatprep.subr.bf16.mxu1 %v12682_v30  ;;  %v386_v28 = vld [vmem:[#allocation2 + $0x948] sm:$0xff]  ;;  %v12363_v29 = vcombine.low %v425_v7, %v465_v9  ;;  %v12365_v30 = vcombine.low %v426_v11, %v466_v13  ;;  %v12044_v7 = vcombine.high %v105_v55, %v145_v58  ;;  %v1345_v11 = vld [vmem:[#allocation2 + $0x2740] sm:$0xff] }
 0x23d   :  { %v12286_v32 = vcombine.high %v346_v26, %v386_v28  ;;  %v1306_v13 = vld [vmem:[#allocation2 + $0x2608] sm:$0xff] }
 0x23f   :  { %8374 = vmatpush2.bf16.msra.mxu0 %v12679_v37  ;;  %8415 = vmatpush2.bf16.msra.mxu1 %v12681_v39  ;;  %v266_v37 = vld [vmem:[#allocation2 + $0x588] sm:$0xff] }
 0x240   :  { %8425 = vmatprep.subr.bf16.mxu0 %v12604_v40  ;;  %8466 = vmatprep.subr.bf16.mxu1 %v12606_v42  ;;  %v306_v39 = vld [vmem:[#allocation2 + $0x6c8] sm:$0xff]  ;;  %v12283_v40 = vcombine.low %v345_v23, %v385_v25  ;;  %v12285_v42 = vcombine.low %v346_v26, %v386_v28 }
 0x241   :  { %v12206_v44 = vcombine.high %v266_v37, %v306_v39  ;;  %v1226_v23 = vld [vmem:[#allocation2 + $0x2388] sm:$0xff] }
 0x242   :  { %v14341_v54 = vpop.f32.mrf.mxu0  ;;  %8376 = vmatmul.mubr.bf16.vlgmr.msra.gmra.mxu0 %v14279_v12  ;;  %v14344_v60 = vpop.f32.mrf.mxu1  ;;  %8417 = vmatmul.mubr.bf16.vlgmr.msra.gmra.mxu1 %v14279_v12  ;;  %v1266_v25 = vld [vmem:[#allocation2 + $0x24c8] sm:$0xff] }
 0x243   :  { %14695 = vst [vmem:[#allocation17_spill] sm:$0xff] %v14341_v54  ;;  %14696 = vst [vmem:[#allocation18_spill] sm:$0xff] %v14344_v60  ;;  %8426 = vmatpush1.bf16.msra.mxu0 %v12603_v47  ;;  %8467 = vmatpush1.bf16.msra.mxu1 %v12605_v48  ;;  %v186_v47 = vld [vmem:[#allocation2 + $0x308] sm:$0xff] }
 0x244   :  { %v14347_v63 = vpop.f32.mrf.mxu0  ;;  %8427 = vmatprep.subr.bf16.mxu0 %v12524_v49  ;;  %v14349_v4 = vpop.f32.mrf.mxu1  ;;  %8468 = vmatprep.subr.bf16.mxu1 %v12526_v50  ;;  %v226_v48 = vld [vmem:[#allocation2 + $0x448] sm:$0xff]  ;;  %v12203_v49 = vcombine.low %v265_v34, %v305_v35  ;;  %v12205_v50 = vcombine.low %v266_v37, %v306_v39  ;;  %v13165_v39 = vcombine.low %v1226_v23, %v1266_v25 }
 0x245   :  { %14697 = vst [vmem:[#allocation19_spill] sm:$0xff] %v14347_v63  ;;  %14698 = vst [vmem:[#allocation20_spill] sm:$0xff] %v14349_v4  ;;  %8457 = vmatprep.mubr.bf16.mxu0 %v14272_v57  ;;  %8498 = vmatprep.mubr.bf16.mxu1 %v14272_v57  ;;  %v12126_v52 = vcombine.high %v186_v47, %v226_v48  ;;  %v1146_v34 = vld [vmem:[#allocation2 + $0x2108] sm:$0xff]  ;;  %v356_v4 = vld [vmem:[#allocation2 + $0x858] sm:$0xff] }
 0x246   :  { %v8135_v10 = vpop.f32.mrf.mxu0  ;;  %v8176_v14 = vpop.f32.mrf.mxu1  ;;  %v1186_v35 = vld [vmem:[#allocation2 + $0x2248] sm:$0xff] }
 0x247   :  { %8428 = vmatpush1.bf16.msra.mxu0 %v12523_v61  ;;  %8469 = vmatpush1.bf16.msra.mxu1 %v12525_v1  ;;  %v106_v61 = vld [vmem:[#allocation2 + $0x88] sm:$0xff]  ;;  %v1305_v10 = vld [vmem:[#allocation2 + $0x2600] sm:$0xff] }
 0x248   :  { %v8136_v16 = vpop.f32.mrf.mxu0  ;;  %8429 = vmatprep.subr.bf16.mxu0 %v12444_v2  ;;  %v8177_v20 = vpop.f32.mrf.mxu1  ;;  %8470 = vmatprep.subr.bf16.mxu1 %v12446_v6  ;;  %v146_v1 = vld [vmem:[#allocation2 + $0x1c8] sm:$0xff]  ;;  %v12123_v2 = vcombine.low %v185_v45, %v225_v46  ;;  %v12125_v6 = vcombine.low %v186_v47, %v226_v48  ;;  %v13243_v26 = vcombine.low %v1305_v10, %v1345_v11 }
 0x249   :  { %v12046_v9 = vcombine.high %v106_v61, %v146_v1  ;;  %v1346_v14 = vld [vmem:[#allocation2 + $0x2748] sm:$0xff]  ;;  %v12045_v16 = vcombine.low %v106_v61, %v146_v1  ;;  %v1225_v20 = vld [vmem:[#allocation2 + $0x2380] sm:$0xff]  ;;  %v13085_v48 = vcombine.low %v1146_v34, %v1186_v35 }
 0x24a   :  { %v13245_v28 = vcombine.low %v1306_v13, %v1346_v14  ;;  %v1066_v45 = vld [vmem:[#allocation2 + $0x1e88] sm:$0xff] }
 0x24b   :  { %8430 = vmatpush1.bf16.msra.mxu0 %v12443_v15  ;;  %8471 = vmatpush1.bf16.msra.mxu1 %v12445_v17  ;;  %v12043_v15 = vcombine.low %v105_v55, %v145_v58  ;;  %v13244_v17 = vcombine.high %v1305_v10, %v1345_v11  ;;  %v1106_v46 = vld [vmem:[#allocation2 + $0x1fc8] sm:$0xff] }
 0x24c   :  { %8431 = vmatprep.subr.bf16.mxu0 %v12364_v18  ;;  %8472 = vmatprep.subr.bf16.mxu1 %v12366_v21  ;;  %v13246_v18 = vcombine.high %v1306_v13, %v1346_v14  ;;  %v1265_v21 = vld [vmem:[#allocation2 + $0x24c0] sm:$0xff]  ;;  %v986_v55 = vld [vmem:[#allocation2 + $0x1c08] sm:$0xff]  ;;  %v13005_v1 = vcombine.low %v1066_v45, %v1106_v46 }
 0x24d   :  { %v13163_v37 = vcombine.low %v1225_v20, %v1265_v21  ;;  %v1026_v58 = vld [vmem:[#allocation2 + $0x1d48] sm:$0xff] }
 0x24e   :  { %v906_v10 = vld [vmem:[#allocation2 + $0x1988] sm:$0xff]  ;;  %v12925_v14 = vcombine.low %v986_v55, %v1026_v58 }
 0x24f   :  { %8432 = vmatpush1.bf16.msra.mxu0 %v12363_v29  ;;  %8473 = vmatpush1.bf16.msra.mxu1 %v12365_v30  ;;  %v13164_v29 = vcombine.high %v1225_v20, %v1265_v21  ;;  %v13166_v30 = vcombine.high %v1226_v23, %v1266_v25  ;;  %v946_v11 = vld [vmem:[#allocation2 + $0x1ac8] sm:$0xff] }
 0x250   :  { %8433 = vmatprep.subr.bf16.mxu0 %v12284_v31  ;;  %8474 = vmatprep.subr.bf16.mxu1 %v12286_v32  ;;  %v1145_v31 = vld [vmem:[#allocation2 + $0x2100] sm:$0xff]  ;;  %v826_v20 = vld [vmem:[#allocation2 + $0x1708] sm:$0xff]  ;;  %v12845_v25 = vcombine.low %v906_v10, %v946_v11 }
 0x251   :  { %v1185_v32 = vld [vmem:[#allocation2 + $0x2240] sm:$0xff]  ;;  %v866_v21 = vld [vmem:[#allocation2 + $0x1848] sm:$0xff] }
 0x252   :  { %v13083_v47 = vcombine.low %v1145_v31, %v1185_v32  ;;  %v358_v60 = vld [vmem:[#allocation2 + $0x868] sm:$0xff] }
 0x253   :  { %8434 = vmatpush1.bf16.msra.mxu0 %v12283_v40  ;;  %8475 = vmatpush1.bf16.msra.mxu1 %v12285_v42  ;;  %v13084_v40 = vcombine.high %v1145_v31, %v1185_v32  ;;  %v13086_v42 = vcombine.high %v1146_v34, %v1186_v35  ;;  %v746_v31 = vld [vmem:[#allocation2 + $0x1488] sm:$0xff]  ;;  %v12765_v35 = vcombine.low %v826_v20, %v866_v21 }
 0x254   :  { %8435 = vmatprep.subr.bf16.mxu0 %v12204_v43  ;;  %8476 = vmatprep.subr.bf16.mxu1 %v12206_v44  ;;  %v1065_v43 = vld [vmem:[#allocation2 + $0x1e80] sm:$0xff]  ;;  %v786_v32 = vld [vmem:[#allocation2 + $0x15c8] sm:$0xff] }
 0x255   :  { %v1105_v44 = vld [vmem:[#allocation2 + $0x1fc0] sm:$0xff] }
 0x256   :  { %v13003_v61 = vcombine.low %v1065_v43, %v1105_v44 }
 0x257   :  { %8436 = vmatpush1.bf16.msra.mxu0 %v12203_v49  ;;  %8477 = vmatpush1.bf16.msra.mxu1 %v12205_v50  ;;  %v13004_v49 = vcombine.high %v1065_v43, %v1105_v44  ;;  %v13006_v50 = vcombine.high %v1066_v45, %v1106_v46  ;;  %v668_v43 = vld [vmem:[#allocation2 + $0x1218] sm:$0xff]  ;;  %v12685_v46 = vcombine.low %v746_v31, %v786_v32 }
 0x258   :  { %8437 = vmatprep.subr.bf16.mxu0 %v12124_v51  ;;  %8478 = vmatprep.subr.bf16.mxu1 %v12126_v52  ;;  %v985_v51 = vld [vmem:[#allocation2 + $0x1c00] sm:$0xff]  ;;  %v708_v44 = vld [vmem:[#allocation2 + $0x1358] sm:$0xff] }
 0x259   :  { %v1025_v52 = vld [vmem:[#allocation2 + $0x1d40] sm:$0xff] }
 0x25a   :  { %v12923_v13 = vcombine.low %v985_v51, %v1025_v52 }
 0x25b   :  { %8438 = vmatpush1.bf16.msra.mxu0 %v12123_v2  ;;  %8479 = vmatpush1.bf16.msra.mxu1 %v12125_v6  ;;  %v12924_v2 = vcombine.high %v985_v51, %v1025_v52  ;;  %v12926_v6 = vcombine.high %v986_v55, %v1026_v58  ;;  %v588_v51 = vld [vmem:[#allocation2 + $0xf98] sm:$0xff]  ;;  %v12609_v58 = vcombine.low %v668_v43, %v708_v44 }
 0x25c   :  { %8439 = vmatprep.subr.bf16.mxu0 %v12044_v7  ;;  %8480 = vmatprep.subr.bf16.mxu1 %v12046_v9  ;;  %v905_v7 = vld [vmem:[#allocation2 + $0x1980] sm:$0xff]  ;;  %v628_v52 = vld [vmem:[#allocation2 + $0x10d8] sm:$0xff] }
 0x25d   :  { %v945_v9 = vld [vmem:[#allocation2 + $0x1ac0] sm:$0xff] }
 0x25e   :  { %v12843_v23 = vcombine.low %v905_v7, %v945_v9 }
 0x25f   :  { %8440 = vmatpush1.bf16.msra.mxu0 %v12043_v15  ;;  %8481 = vmatpush1.bf16.msra.mxu1 %v12045_v16  ;;  %v12844_v15 = vcombine.high %v905_v7, %v945_v9  ;;  %v12846_v16 = vcombine.high %v906_v10, %v946_v11  ;;  %v508_v9 = vld [vmem:[#allocation2 + $0xd18] sm:$0xff] }
 0x260   :  { %8441 = vmatprep.subr.bf16.mxu0 %v13244_v17  ;;  %8482 = vmatprep.subr.bf16.mxu1 %v13246_v18  ;;  %v825_v17 = vld [vmem:[#allocation2 + $0x1700] sm:$0xff]  ;;  %v548_v10 = vld [vmem:[#allocation2 + $0xe58] sm:$0xff] }
 0x261   :  { %v865_v18 = vld [vmem:[#allocation2 + $0x1840] sm:$0xff] }
 0x262   :  { %v12763_v34 = vcombine.low %v825_v17, %v865_v18 }
 0x263   :  { %8442 = vmatpush2.bf16.msra.mxu0 %v13243_v26  ;;  %8483 = vmatpush2.bf16.msra.mxu1 %v13245_v28  ;;  %v12764_v26 = vcombine.high %v825_v17, %v865_v18  ;;  %v12766_v28 = vcombine.high %v826_v20, %v866_v21  ;;  %v12450_v18 = vcombine.high %v508_v9, %v548_v10  ;;  %v427_v20 = vld [vmem:[#allocation2 + $0xa90] sm:$0xff] }
 0x264   :  { %8443 = vmatprep.subr.bf16.mxu0 %v13164_v29  ;;  %8484 = vmatprep.subr.bf16.mxu1 %v13166_v30  ;;  %v745_v29 = vld [vmem:[#allocation2 + $0x1480] sm:$0xff]  ;;  %v467_v21 = vld [vmem:[#allocation2 + $0xbd0] sm:$0xff] }
 0x265   :  { %v785_v30 = vld [vmem:[#allocation2 + $0x15c0] sm:$0xff] }
 0x266   :  { %v12683_v45 = vcombine.low %v745_v29, %v785_v30 }
 0x267   :  { %8444 = vmatpush2.bf16.msra.mxu0 %v13163_v37  ;;  %8485 = vmatpush2.bf16.msra.mxu1 %v13165_v39  ;;  %v12684_v37 = vcombine.high %v745_v29, %v785_v30  ;;  %v12686_v39 = vcombine.high %v746_v31, %v786_v32  ;;  %v12449_v31 = vcombine.low %v508_v9, %v548_v10 }
 0x268   :  { %8445 = vmatprep.subr.bf16.mxu0 %v13084_v40  ;;  %8486 = vmatprep.subr.bf16.mxu1 %v13086_v42  ;;  %v667_v40 = vld [vmem:[#allocation2 + $0x1210] sm:$0xff]  ;;  %v12368_v32 = vcombine.high %v427_v20, %v467_v21 }
 0x269   :  { %v707_v42 = vld [vmem:[#allocation2 + $0x1350] sm:$0xff] }
 0x26a   :  { %v12607_v55 = vcombine.low %v667_v40, %v707_v42 }
 0x26b   :  { %8446 = vmatpush2.bf16.msra.mxu0 %v13083_v47  ;;  %8487 = vmatpush2.bf16.msra.mxu1 %v13085_v48  ;;  %v12608_v47 = vcombine.high %v667_v40, %v707_v42  ;;  %v12610_v48 = vcombine.high %v668_v43, %v708_v44  ;;  %v348_v40 = vld [vmem:[#allocation2 + $0x818] sm:$0xff]  ;;  %v12367_v43 = vcombine.low %v427_v20, %v467_v21 }
 0x26c   :  { %8447 = vmatprep.subr.bf16.mxu0 %v13004_v49  ;;  %8488 = vmatprep.subr.bf16.mxu1 %v13006_v50  ;;  %v587_v49 = vld [vmem:[#allocation2 + $0xf90] sm:$0xff]  ;;  %v388_v42 = vld [vmem:[#allocation2 + $0x958] sm:$0xff] }
 0x26d   :  { %v627_v50 = vld [vmem:[#allocation2 + $0x10d0] sm:$0xff]  ;;  %v108_v20 = vld [vmem:[#allocation2 + $0x98] sm:$0xff] }
 0x26e   :  { %v148_v21 = vld [vmem:[#allocation2 + $0x1d8] sm:$0xff] }
 0x26f   :  { %8448 = vmatpush2.bf16.msra.mxu0 %v13003_v61  ;;  %8489 = vmatpush2.bf16.msra.mxu1 %v13005_v1  ;;  %v12528_v61 = vcombine.high %v587_v49, %v627_v50  ;;  %v12530_v1 = vcombine.high %v588_v51, %v628_v52 }
 0x270   :  { %8449 = vmatprep.subr.bf16.mxu0 %v12924_v2  ;;  %8490 = vmatprep.subr.bf16.mxu1 %v12926_v6  ;;  %v507_v2 = vld [vmem:[#allocation2 + $0xd10] sm:$0xff] }
 0x271   :  { %v547_v6 = vld [vmem:[#allocation2 + $0xe50] sm:$0xff] }
 0x272   :  { %v12447_v29 = vcombine.low %v507_v2, %v547_v6 }
 0x273   :  { %8450 = vmatpush2.bf16.msra.mxu0 %v12923_v13  ;;  %8491 = vmatpush2.bf16.msra.mxu1 %v12925_v14  ;;  %v12527_v13 = vcombine.low %v587_v49, %v627_v50  ;;  %v268_v49 = vld [vmem:[#allocation2 + $0x598] sm:$0xff] }
 0x274   :  { %8451 = vmatprep.subr.bf16.mxu0 %v12844_v15  ;;  %8492 = vmatprep.subr.bf16.mxu1 %v12846_v16  ;;  %v12529_v15 = vcombine.low %v588_v51, %v628_v52  ;;  %v12448_v16 = vcombine.high %v507_v2, %v547_v6  ;;  %v308_v50 = vld [vmem:[#allocation2 + $0x6d8] sm:$0xff]  ;;  %v12289_v52 = vcombine.low %v348_v40, %v388_v42 }
 0x275   :  { %v188_v2 = vld [vmem:[#allocation2 + $0x318] sm:$0xff]  ;;  %v12209_v10 = vcombine.low %v268_v49, %v308_v50 }
 0x276   :  { %v228_v6 = vld [vmem:[#allocation2 + $0x458] sm:$0xff] }
 0x277   :  { %8452 = vmatpush2.bf16.msra.mxu0 %v12843_v23  ;;  %8493 = vmatpush2.bf16.msra.mxu1 %v12845_v25  ;;  %v428_v25 = vld [vmem:[#allocation2 + $0xa98] sm:$0xff] }
 0x278   :  { %8453 = vmatprep.subr.bf16.mxu0 %v12764_v26  ;;  %8494 = vmatprep.subr.bf16.mxu1 %v12766_v28  ;;  %v468_v26 = vld [vmem:[#allocation2 + $0xbd8] sm:$0xff] }
 0x279   :  { %v12369_v44 = vcombine.low %v428_v25, %v468_v26 }
 0x27b   :  { %8454 = vmatpush2.bf16.msra.mxu0 %v12763_v34  ;;  %8495 = vmatpush2.bf16.msra.mxu1 %v12765_v35  ;;  %v12370_v35 = vcombine.high %v428_v25, %v468_v26  ;;  %v12129_v25 = vcombine.low %v188_v2, %v228_v6 }
 0x27c   :  { %8455 = vmatprep.subr.bf16.mxu0 %v12684_v37  ;;  %8496 = vmatprep.subr.bf16.mxu1 %v12686_v39  ;;  %v347_v37 = vld [vmem:[#allocation2 + $0x810] sm:$0xff] }
 0x27d   :  { %v387_v39 = vld [vmem:[#allocation2 + $0x950] sm:$0xff] }
 0x27e   :  { %v12287_v51 = vcombine.low %v347_v37, %v387_v39 }
 0x27f   :  { %8456 = vmatpush2.bf16.msra.mxu0 %v12683_v45  ;;  %8497 = vmatpush2.bf16.msra.mxu1 %v12685_v46  ;;  %v12288_v45 = vcombine.high %v347_v37, %v387_v39  ;;  %v12290_v46 = vcombine.high %v348_v40, %v388_v42  ;;  %v1227_v40 = vld [vmem:[#allocation2 + $0x2390] sm:$0xff] }
 0x280   :  { %8507 = vmatprep.subr.bf16.mxu0 %v12608_v47  ;;  %8548 = vmatprep.subr.bf16.mxu1 %v12610_v48  ;;  %v267_v47 = vld [vmem:[#allocation2 + $0x590] sm:$0xff] }
 0x281   :  { %v307_v48 = vld [vmem:[#allocation2 + $0x6d0] sm:$0xff] }
 0x282   :  { %v14353_v7 = vpop.f32.mrf.mxu0  ;;  %8458 = vmatmul.mubr.bf16.vlgmr.msra.gmra.mxu0 %v14279_v12  ;;  %v14356_v11 = vpop.f32.mrf.mxu1  ;;  %8499 = vmatmul.mubr.bf16.vlgmr.msra.gmra.mxu1 %v14279_v12  ;;  %v12207_v9 = vcombine.low %v267_v47, %v307_v48  ;;  %v1267_v42 = vld [vmem:[#allocation2 + $0x24d0] sm:$0xff] }
 0x283   :  { %8508 = vmatpush1.bf16.msra.mxu0 %v12607_v55  ;;  %8549 = vmatpush1.bf16.msra.mxu1 %v12609_v58  ;;  %v12208_v55 = vcombine.high %v267_v47, %v307_v48  ;;  %v12210_v58 = vcombine.high %v268_v49, %v308_v50  ;;  %v13168_v47 = vcombine.high %v1227_v40, %v1267_v42  ;;  %v1147_v49 = vld [vmem:[#allocation2 + $0x2110] sm:$0xff] }
 0x284   :  { %v14359_v14 = vpop.f32.mrf.mxu0  ;;  %8509 = vmatprep.subr.bf16.mxu0 %v12528_v61  ;;  %v14361_v17 = vpop.f32.mrf.mxu1  ;;  %8550 = vmatprep.subr.bf16.mxu1 %v12530_v1  ;;  %v187_v61 = vld [vmem:[#allocation2 + $0x310] sm:$0xff] }
 0x285   :  { %8539 = vmatprep.mubr.bf16.mxu0 %v14272_v57  ;;  %8580 = vmatprep.mubr.bf16.mxu1 %v14272_v57  ;;  %v227_v1 = vld [vmem:[#allocation2 + $0x450] sm:$0xff] }
 0x286   :  { %v8217_v23 = vpop.f32.mrf.mxu0  ;;  %v8258_v28 = vpop.f32.mrf.mxu1  ;;  %v1187_v50 = vld [vmem:[#allocation2 + $0x2250] sm:$0xff] }
 0x287   :  { %8510 = vmatpush1.bf16.msra.mxu0 %v12527_v13  ;;  %8551 = vmatpush1.bf16.msra.mxu1 %v12529_v15  ;;  %v12128_v13 = vcombine.high %v187_v61, %v227_v1  ;;  %v12130_v15 = vcombine.high %v188_v2, %v228_v6  ;;  %v12127_v23 = vcombine.low %v187_v61, %v227_v1  ;;  %v1067_v2 = vld [vmem:[#allocation2 + $0x1e90] sm:$0xff] }
 0x288   :  { %v8218_v30 = vpop.f32.mrf.mxu0  ;;  %8511 = vmatprep.subr.bf16.mxu0 %v12448_v16  ;;  %v8259_v34 = vpop.f32.mrf.mxu1  ;;  %8552 = vmatprep.subr.bf16.mxu1 %v12450_v18  ;;  %v107_v16 = vld [vmem:[#allocation2 + $0x90] sm:$0xff]  ;;  %v12050_v28 = vcombine.high %v108_v20, %v148_v21  ;;  %v13088_v61 = vcombine.high %v1147_v49, %v1187_v50 }
 0x289   :  { %v147_v18 = vld [vmem:[#allocation2 + $0x1d0] sm:$0xff] }
 0x28a   :  { %v12048_v26 = vcombine.high %v107_v16, %v147_v18  ;;  %v1347_v30 = vld [vmem:[#allocation2 + $0x2750] sm:$0xff]  ;;  %v12047_v34 = vcombine.low %v107_v16, %v147_v18 }
 0x28b   :  { %8512 = vmatpush1.bf16.msra.mxu0 %v12447_v29  ;;  %8553 = vmatpush1.bf16.msra.mxu1 %v12449_v31  ;;  %v1307_v29 = vld [vmem:[#allocation2 + $0x2610] sm:$0xff]  ;;  %v1308_v31 = vld [vmem:[#allocation2 + $0x2618] sm:$0xff] }
 0x28c   :  { %8513 = vmatprep.subr.bf16.mxu0 %v12368_v32  ;;  %8554 = vmatprep.subr.bf16.mxu1 %v12370_v35  ;;  %v1348_v32 = vld [vmem:[#allocation2 + $0x2758] sm:$0xff]  ;;  %v12049_v35 = vcombine.low %v108_v20, %v148_v21  ;;  %v13248_v37 = vcombine.high %v1307_v29, %v1347_v30  ;;  %v1107_v6 = vld [vmem:[#allocation2 + $0x1fd0] sm:$0xff] }
 0x28d   :  { %v13250_v39 = vcombine.high %v1308_v31, %v1348_v32  ;;  %v13008_v16 = vcombine.high %v1067_v2, %v1107_v6  ;;  %v987_v20 = vld [vmem:[#allocation2 + $0x1c10] sm:$0xff] }
 0x28e   :  { %v1027_v21 = vld [vmem:[#allocation2 + $0x1d50] sm:$0xff] }
 0x28f   :  { %8514 = vmatpush1.bf16.msra.mxu0 %v12367_v43  ;;  %8555 = vmatpush1.bf16.msra.mxu1 %v12369_v44  ;;  %v1228_v43 = vld [vmem:[#allocation2 + $0x2398] sm:$0xff] }
 0x290   :  { %8515 = vmatprep.subr.bf16.mxu0 %v12288_v45  ;;  %8556 = vmatprep.subr.bf16.mxu1 %v12290_v46  ;;  %v1268_v44 = vld [vmem:[#allocation2 + $0x24d8] sm:$0xff]  ;;  %v13247_v45 = vcombine.low %v1307_v29, %v1347_v30  ;;  %v13249_v46 = vcombine.low %v1308_v31, %v1348_v32  ;;  %v12928_v29 = vcombine.high %v987_v20, %v1027_v21  ;;  %v907_v31 = vld [vmem:[#allocation2 + $0x1990] sm:$0xff] }
 0x291   :  { %v13170_v48 = vcombine.high %v1228_v43, %v1268_v44  ;;  %v947_v32 = vld [vmem:[#allocation2 + $0x1ad0] sm:$0xff] }
 0x293   :  { %8516 = vmatpush1.bf16.msra.mxu0 %v12287_v51  ;;  %8557 = vmatpush1.bf16.msra.mxu1 %v12289_v52  ;;  %v1148_v51 = vld [vmem:[#allocation2 + $0x2118] sm:$0xff] }
 0x294   :  { %8517 = vmatprep.subr.bf16.mxu0 %v12208_v55  ;;  %8558 = vmatprep.subr.bf16.mxu1 %v12210_v58  ;;  %v1188_v52 = vld [vmem:[#allocation2 + $0x2258] sm:$0xff]  ;;  %v13167_v55 = vcombine.low %v1227_v40, %v1267_v42  ;;  %v13169_v58 = vcombine.low %v1228_v43, %v1268_v44  ;;  %v12848_v40 = vcombine.high %v907_v31, %v947_v32  ;;  %v827_v43 = vld [vmem:[#allocation2 + $0x1710] sm:$0xff] }
 0x295   :  { %v13090_v1 = vcombine.high %v1148_v51, %v1188_v52  ;;  %v867_v44 = vld [vmem:[#allocation2 + $0x1850] sm:$0xff] }
 0x297   :  { %8518 = vmatpush1.bf16.msra.mxu0 %v12207_v9  ;;  %8559 = vmatpush1.bf16.msra.mxu1 %v12209_v10  ;;  %v1068_v9 = vld [vmem:[#allocation2 + $0x1e98] sm:$0xff] }
 0x298   :  { %8519 = vmatprep.subr.bf16.mxu0 %v12128_v13  ;;  %8560 = vmatprep.subr.bf16.mxu1 %v12130_v15  ;;  %v1108_v10 = vld [vmem:[#allocation2 + $0x1fd8] sm:$0xff]  ;;  %v13087_v13 = vcombine.low %v1147_v49, %v1187_v50  ;;  %v13089_v15 = vcombine.low %v1148_v51, %v1188_v52  ;;  %v12768_v49 = vcombine.high %v827_v43, %v867_v44  ;;  %v747_v51 = vld [vmem:[#allocation2 + $0x1490] sm:$0xff] }
 0x299   :  { %v13010_v18 = vcombine.high %v1068_v9, %v1108_v10  ;;  %v787_v52 = vld [vmem:[#allocation2 + $0x15d0] sm:$0xff] }
 0x29b   :  { %8520 = vmatpush1.bf16.msra.mxu0 %v12127_v23  ;;  %8561 = vmatpush1.bf16.msra.mxu1 %v12129_v25  ;;  %v988_v23 = vld [vmem:[#allocation2 + $0x1c18] sm:$0xff] }
 0x29c   :  { %8521 = vmatprep.subr.bf16.mxu0 %v12048_v26  ;;  %8562 = vmatprep.subr.bf16.mxu1 %v12050_v28  ;;  %v1028_v25 = vld [vmem:[#allocation2 + $0x1d58] sm:$0xff]  ;;  %v13007_v26 = vcombine.low %v1067_v2, %v1107_v6  ;;  %v13009_v28 = vcombine.low %v1068_v9, %v1108_v10  ;;  %v12688_v2 = vcombine.high %v747_v51, %v787_v52  ;;  %v669_v9 = vld [vmem:[#allocation2 + $0x1220] sm:$0xff] }
 0x29d   :  { %v12930_v30 = vcombine.high %v988_v23, %v1028_v25  ;;  %v709_v10 = vld [vmem:[#allocation2 + $0x1360] sm:$0xff] }
 0x29f   :  { %8522 = vmatpush1.bf16.msra.mxu0 %v12047_v34  ;;  %8563 = vmatpush1.bf16.msra.mxu1 %v12049_v35  ;;  %v908_v34 = vld [vmem:[#allocation2 + $0x1998] sm:$0xff] }
 0x2a0   :  { %8523 = vmatprep.subr.bf16.mxu0 %v13248_v37  ;;  %8564 = vmatprep.subr.bf16.mxu1 %v13250_v39  ;;  %v948_v35 = vld [vmem:[#allocation2 + $0x1ad8] sm:$0xff]  ;;  %v12927_v37 = vcombine.low %v987_v20, %v1027_v21  ;;  %v12929_v39 = vcombine.low %v988_v23, %v1028_v25  ;;  %v12612_v20 = vcombine.high %v669_v9, %v709_v10  ;;  %v589_v23 = vld [vmem:[#allocation2 + $0xfa0] sm:$0xff] }
 0x2a1   :  { %v12850_v42 = vcombine.high %v908_v34, %v948_v35  ;;  %v629_v25 = vld [vmem:[#allocation2 + $0x10e0] sm:$0xff] }
 0x2a3   :  { %8524 = vmatpush2.bf16.msra.mxu0 %v13247_v45  ;;  %8565 = vmatpush2.bf16.msra.mxu1 %v13249_v46  ;;  %v828_v45 = vld [vmem:[#allocation2 + $0x1718] sm:$0xff] }
 0x2a4   :  { %8525 = vmatprep.subr.bf16.mxu0 %v13168_v47  ;;  %8566 = vmatprep.subr.bf16.mxu1 %v13170_v48  ;;  %v868_v46 = vld [vmem:[#allocation2 + $0x1858] sm:$0xff]  ;;  %v12847_v47 = vcombine.low %v907_v31, %v947_v32  ;;  %v12849_v48 = vcombine.low %v908_v34, %v948_v35  ;;  %v12532_v31 = vcombine.high %v589_v23, %v629_v25  ;;  %v509_v34 = vld [vmem:[#allocation2 + $0xd20] sm:$0xff] }
 0x2a5   :  { %v12770_v50 = vcombine.high %v828_v45, %v868_v46  ;;  %v549_v35 = vld [vmem:[#allocation2 + $0xe60] sm:$0xff] }
 0x2a7   :  { %8526 = vmatpush2.bf16.msra.mxu0 %v13167_v55  ;;  %8567 = vmatpush2.bf16.msra.mxu1 %v13169_v58  ;;  %v748_v55 = vld [vmem:[#allocation2 + $0x1498] sm:$0xff] }
 0x2a8   :  { %8527 = vmatprep.subr.bf16.mxu0 %v13088_v61  ;;  %8568 = vmatprep.subr.bf16.mxu1 %v13090_v1  ;;  %v788_v58 = vld [vmem:[#allocation2 + $0x15d8] sm:$0xff]  ;;  %v12767_v61 = vcombine.low %v827_v43, %v867_v44  ;;  %v12769_v1 = vcombine.low %v828_v45, %v868_v46  ;;  %v12531_v43 = vcombine.low %v589_v23, %v629_v25 }
 0x2a9   :  { %v12690_v6 = vcombine.high %v748_v55, %v788_v58  ;;  %v12452_v46 = vcombine.high %v509_v34, %v549_v35 }
 0x2ab   :  { %8528 = vmatpush2.bf16.msra.mxu0 %v13087_v13  ;;  %8569 = vmatpush2.bf16.msra.mxu1 %v13089_v15  ;;  %v670_v13 = vld [vmem:[#allocation2 + $0x1228] sm:$0xff] }
 0x2ac   :  { %8529 = vmatprep.subr.bf16.mxu0 %v13008_v16  ;;  %8570 = vmatprep.subr.bf16.mxu1 %v13010_v18  ;;  %v710_v15 = vld [vmem:[#allocation2 + $0x1368] sm:$0xff]  ;;  %v12687_v16 = vcombine.low %v747_v51, %v787_v52  ;;  %v12689_v18 = vcombine.low %v748_v55, %v788_v58 }
 0x2ad   :  { %v12614_v21 = vcombine.high %v670_v13, %v710_v15  ;;  %v430_v52 = vld [vmem:[#allocation2 + $0xaa8] sm:$0xff] }
 0x2ae   :  { %v470_v55 = vld [vmem:[#allocation2 + $0xbe8] sm:$0xff] }
 0x2af   :  { %8530 = vmatpush2.bf16.msra.mxu0 %v13007_v26  ;;  %8571 = vmatpush2.bf16.msra.mxu1 %v13009_v28  ;;  %v590_v26 = vld [vmem:[#allocation2 + $0xfa8] sm:$0xff] }
 0x2b0   :  { %8531 = vmatprep.subr.bf16.mxu0 %v12928_v29  ;;  %8572 = vmatprep.subr.bf16.mxu1 %v12930_v30  ;;  %v630_v28 = vld [vmem:[#allocation2 + $0x10e8] sm:$0xff]  ;;  %v12611_v29 = vcombine.low %v669_v9, %v709_v10  ;;  %v12613_v30 = vcombine.low %v670_v13, %v710_v15  ;;  %v12374_v10 = vcombine.high %v430_v52, %v470_v55  ;;  %v349_v13 = vld [vmem:[#allocation2 + $0x820] sm:$0xff] }
 0x2b1   :  { %v12534_v32 = vcombine.high %v590_v26, %v630_v28  ;;  %v12533_v45 = vcombine.low %v590_v26, %v630_v28  ;;  %v389_v15 = vld [vmem:[#allocation2 + $0x960] sm:$0xff] }
 0x2b2   :  { %v12292_v23 = vcombine.high %v349_v13, %v389_v15  ;;  %v269_v26 = vld [vmem:[#allocation2 + $0x5a0] sm:$0xff] }
 0x2b3   :  { %8532 = vmatpush2.bf16.msra.mxu0 %v12927_v37  ;;  %8573 = vmatpush2.bf16.msra.mxu1 %v12929_v39  ;;  %v510_v39 = vld [vmem:[#allocation2 + $0xd28] sm:$0xff]  ;;  %v309_v28 = vld [vmem:[#allocation2 + $0x6e0] sm:$0xff] }
 0x2b4   :  { %8533 = vmatprep.subr.bf16.mxu0 %v12848_v40  ;;  %8574 = vmatprep.subr.bf16.mxu1 %v12850_v42  ;;  %v550_v40 = vld [vmem:[#allocation2 + $0xe68] sm:$0xff] }
 0x2b7   :  { %8534 = vmatpush2.bf16.msra.mxu0 %v12847_v47  ;;  %8575 = vmatpush2.bf16.msra.mxu1 %v12849_v48  ;;  %v12454_v48 = vcombine.high %v510_v39, %v550_v40 }
 0x2b8   :  { %8535 = vmatprep.subr.bf16.mxu0 %v12768_v49  ;;  %8576 = vmatprep.subr.bf16.mxu1 %v12770_v50  ;;  %v429_v49 = vld [vmem:[#allocation2 + $0xaa0] sm:$0xff] }
 0x2b9   :  { %v469_v50 = vld [vmem:[#allocation2 + $0xbe0] sm:$0xff] }
 0x2bb   :  { %8536 = vmatpush2.bf16.msra.mxu0 %v12767_v61  ;;  %8577 = vmatpush2.bf16.msra.mxu1 %v12769_v1  ;;  %v12451_v61 = vcombine.low %v509_v34, %v549_v35  ;;  %v12212_v34 = vcombine.high %v269_v26, %v309_v28 }
 0x2bc   :  { %8537 = vmatprep.subr.bf16.mxu0 %v12688_v2  ;;  %8578 = vmatprep.subr.bf16.mxu1 %v12690_v6  ;;  %v12453_v2 = vcombine.low %v510_v39, %v550_v40  ;;  %v12372_v6 = vcombine.high %v429_v49, %v469_v50  ;;  %v189_v39 = vld [vmem:[#allocation2 + $0x320] sm:$0xff] }
 0x2bd   :  { %v229_v40 = vld [vmem:[#allocation2 + $0x460] sm:$0xff] }
 0x2bf   :  { %8538 = vmatpush2.bf16.msra.mxu0 %v12687_v16  ;;  %8579 = vmatpush2.bf16.msra.mxu1 %v12689_v18  ;;  %v350_v16 = vld [vmem:[#allocation2 + $0x828] sm:$0xff] }
 0x2c0   :  { %8589 = vmatprep.subr.bf16.mxu0 %v12612_v20  ;;  %8630 = vmatprep.subr.bf16.mxu1 %v12614_v21  ;;  %v390_v18 = vld [vmem:[#allocation2 + $0x968] sm:$0xff]  ;;  %v12371_v20 = vcombine.low %v429_v49, %v469_v50  ;;  %v12373_v21 = vcombine.low %v430_v52, %v470_v55  ;;  %v12132_v49 = vcombine.high %v189_v39, %v229_v40  ;;  %v149_v52 = vld [vmem:[#allocation2 + $0x1e0] sm:$0xff] }
 0x2c1   :  { %v12294_v25 = vcombine.high %v350_v16, %v390_v18  ;;  %v110_v55 = vld [vmem:[#allocation2 + $0xa8] sm:$0xff] }
 0x2c2   :  { %v14365_v37 = vpop.f32.mrf.mxu0  ;;  %8540 = vmatmul.mubr.bf16.vlgmr.msra.gmra.mxu0 %v14279_v12  ;;  %v14368_v42 = vpop.f32.mrf.mxu1  ;;  %8581 = vmatmul.mubr.bf16.vlgmr.msra.gmra.mxu1 %v14279_v12 }
 0x2c3   :  { %8590 = vmatpush1.bf16.msra.mxu0 %v12611_v29  ;;  %8631 = vmatpush1.bf16.msra.mxu1 %v12613_v30  ;;  %v270_v29 = vld [vmem:[#allocation2 + $0x5a8] sm:$0xff] }
 0x2c4   :  { %v14371_v44 = vpop.f32.mrf.mxu0  ;;  %8591 = vmatprep.subr.bf16.mxu0 %v12532_v31  ;;  %v14373_v47 = vpop.f32.mrf.mxu1  ;;  %8632 = vmatprep.subr.bf16.mxu1 %v12534_v32  ;;  %v310_v30 = vld [vmem:[#allocation2 + $0x6e8] sm:$0xff]  ;;  %v12291_v31 = vcombine.low %v349_v13, %v389_v15  ;;  %v12293_v32 = vcombine.low %v350_v16, %v390_v18 }
 0x2c5   :  { %8621 = vmatprep.mubr.bf16.mxu0 %v14272_v57  ;;  %8662 = vmatprep.mubr.bf16.mxu1 %v14272_v57  ;;  %v12214_v35 = vcombine.high %v270_v29, %v310_v30  ;;  %v1310_v13 = vld [vmem:[#allocation2 + $0x2628] sm:$0xff] }
 0x2c6   :  { %v8299_v51 = vpop.f32.mrf.mxu0  ;;  %v8340_v58 = vpop.f32.mrf.mxu1  ;;  %v1350_v15 = vld [vmem:[#allocation2 + $0x2768] sm:$0xff] }
 0x2c7   :  { %8592 = vmatpush1.bf16.msra.mxu0 %v12531_v43  ;;  %8633 = vmatpush1.bf16.msra.mxu1 %v12533_v45  ;;  %v190_v43 = vld [vmem:[#allocation2 + $0x328] sm:$0xff]  ;;  %v109_v51 = vld [vmem:[#allocation2 + $0xa0] sm:$0xff] }
 0x2c8   :  { %v8300_v1 = vpop.f32.mrf.mxu0  ;;  %8593 = vmatprep.subr.bf16.mxu0 %v12452_v46  ;;  %v8341_v9 = vpop.f32.mrf.mxu1  ;;  %8634 = vmatprep.subr.bf16.mxu1 %v12454_v48  ;;  %v230_v45 = vld [vmem:[#allocation2 + $0x468] sm:$0xff]  ;;  %v12211_v46 = vcombine.low %v269_v26, %v309_v28  ;;  %v12213_v48 = vcombine.low %v270_v29, %v310_v30  ;;  %v12051_v16 = vcombine.low %v109_v51, %v149_v52 }
 0x2c9   :  { %v12134_v50 = vcombine.high %v190_v43, %v230_v45  ;;  %v150_v58 = vld [vmem:[#allocation2 + $0x1e8] sm:$0xff]  ;;  %v12133_v1 = vcombine.low %v190_v43, %v230_v45  ;;  %v1309_v9 = vld [vmem:[#allocation2 + $0x2620] sm:$0xff]  ;;  %v13253_v30 = vcombine.low %v1310_v13, %v1350_v15 }
 0x2ca   :  { %v12053_v18 = vcombine.low %v110_v55, %v150_v58  ;;  %v1230_v26 = vld [vmem:[#allocation2 + $0x23a8] sm:$0xff] }
 0x2cb   :  { %8594 = vmatpush1.bf16.msra.mxu0 %v12451_v61  ;;  %8635 = vmatpush1.bf16.msra.mxu1 %v12453_v2  ;;  %v12131_v61 = vcombine.low %v189_v39, %v229_v40  ;;  %v12052_v2 = vcombine.high %v109_v51, %v149_v52  ;;  %v1270_v28 = vld [vmem:[#allocation2 + $0x24e8] sm:$0xff] }
 0x2cc   :  { %8595 = vmatprep.subr.bf16.mxu0 %v12372_v6  ;;  %8636 = vmatprep.subr.bf16.mxu1 %v12374_v10  ;;  %v12054_v6 = vcombine.high %v110_v55, %v150_v58  ;;  %v1349_v10 = vld [vmem:[#allocation2 + $0x2760] sm:$0xff]  ;;  %v1150_v39 = vld [vmem:[#allocation2 + $0x2128] sm:$0xff]  ;;  %v13173_v45 = vcombine.low %v1230_v26, %v1270_v28 }
 0x2cd   :  { %v13251_v29 = vcombine.low %v1309_v9, %v1349_v10  ;;  %v1190_v40 = vld [vmem:[#allocation2 + $0x2268] sm:$0xff] }
 0x2ce   :  { %v1070_v51 = vld [vmem:[#allocation2 + $0x1ea8] sm:$0xff]  ;;  %v13093_v58 = vcombine.low %v1150_v39, %v1190_v40 }
 0x2cf   :  { %8596 = vmatpush1.bf16.msra.mxu0 %v12371_v20  ;;  %8637 = vmatpush1.bf16.msra.mxu1 %v12373_v21  ;;  %v13252_v20 = vcombine.high %v1309_v9, %v1349_v10  ;;  %v13254_v21 = vcombine.high %v1310_v13, %v1350_v15  ;;  %v1110_v52 = vld [vmem:[#allocation2 + $0x1fe8] sm:$0xff] }
 0x2d0   :  { %8597 = vmatprep.subr.bf16.mxu0 %v12292_v23  ;;  %8638 = vmatprep.subr.bf16.mxu1 %v12294_v25  ;;  %v1229_v23 = vld [vmem:[#allocation2 + $0x23a0] sm:$0xff]  ;;  %v990_v9 = vld [vmem:[#allocation2 + $0x1c28] sm:$0xff]  ;;  %v13013_v15 = vcombine.low %v1070_v51, %v1110_v52 }
 0x2d1   :  { %v1269_v25 = vld [vmem:[#allocation2 + $0x24e0] sm:$0xff]  ;;  %v1030_v10 = vld [vmem:[#allocation2 + $0x1d68] sm:$0xff] }
 0x2d2   :  { %v13171_v43 = vcombine.low %v1229_v23, %v1269_v25 }
 0x2d3   :  { %8598 = vmatpush1.bf16.msra.mxu0 %v12291_v31  ;;  %8639 = vmatpush1.bf16.msra.mxu1 %v12293_v32  ;;  %v13172_v31 = vcombine.high %v1229_v23, %v1269_v25  ;;  %v13174_v32 = vcombine.high %v1230_v26, %v1270_v28  ;;  %v910_v23 = vld [vmem:[#allocation2 + $0x19a8] sm:$0xff]  ;;  %v12933_v28 = vcombine.low %v990_v9, %v1030_v10 }
 0x2d4   :  { %8599 = vmatprep.subr.bf16.mxu0 %v12212_v34  ;;  %8640 = vmatprep.subr.bf16.mxu1 %v12214_v35  ;;  %v1149_v34 = vld [vmem:[#allocation2 + $0x2120] sm:$0xff]  ;;  %v950_v25 = vld [vmem:[#allocation2 + $0x1ae8] sm:$0xff] }
 0x2d5   :  { %v1189_v35 = vld [vmem:[#allocation2 + $0x2260] sm:$0xff] }
 0x2d6   :  { %v13091_v55 = vcombine.low %v1149_v34, %v1189_v35 }
 0x2d7   :  { %8600 = vmatpush1.bf16.msra.mxu0 %v12211_v46  ;;  %8641 = vmatpush1.bf16.msra.mxu1 %v12213_v48  ;;  %v13092_v46 = vcombine.high %v1149_v34, %v1189_v35  ;;  %v13094_v48 = vcombine.high %v1150_v39, %v1190_v40  ;;  %v830_v34 = vld [vmem:[#allocation2 + $0x1728] sm:$0xff]  ;;  %v12853_v40 = vcombine.low %v910_v23, %v950_v25 }
 0x2d8   :  { %8601 = vmatprep.subr.bf16.mxu0 %v12132_v49  ;;  %8642 = vmatprep.subr.bf16.mxu1 %v12134_v50  ;;  %v1069_v49 = vld [vmem:[#allocation2 + $0x1ea0] sm:$0xff]  ;;  %v870_v35 = vld [vmem:[#allocation2 + $0x1868] sm:$0xff] }
 0x2d9   :  { %v1109_v50 = vld [vmem:[#allocation2 + $0x1fe0] sm:$0xff] }
 0x2da   :  { %v13011_v13 = vcombine.low %v1069_v49, %v1109_v50 }
 0x2db   :  { %8602 = vmatpush1.bf16.msra.mxu0 %v12131_v61  ;;  %8643 = vmatpush1.bf16.msra.mxu1 %v12133_v1  ;;  %v13012_v61 = vcombine.high %v1069_v49, %v1109_v50  ;;  %v13014_v1 = vcombine.high %v1070_v51, %v1110_v52  ;;  %v750_v49 = vld [vmem:[#allocation2 + $0x14a8] sm:$0xff]  ;;  %v12773_v52 = vcombine.low %v830_v34, %v870_v35 }
 0x2dc   :  { %8603 = vmatprep.subr.bf16.mxu0 %v12052_v2  ;;  %8644 = vmatprep.subr.bf16.mxu1 %v12054_v6  ;;  %v989_v2 = vld [vmem:[#allocation2 + $0x1c20] sm:$0xff]  ;;  %v790_v50 = vld [vmem:[#allocation2 + $0x15e8] sm:$0xff] }
 0x2dd   :  { %v1029_v6 = vld [vmem:[#allocation2 + $0x1d60] sm:$0xff] }
 0x2de   :  { %v12931_v26 = vcombine.low %v989_v2, %v1029_v6 }
 0x2df   :  { %8604 = vmatpush1.bf16.msra.mxu0 %v12051_v16  ;;  %8645 = vmatpush1.bf16.msra.mxu1 %v12053_v18  ;;  %v12932_v16 = vcombine.high %v989_v2, %v1029_v6  ;;  %v12934_v18 = vcombine.high %v990_v9, %v1030_v10  ;;  %v672_v2 = vld [vmem:[#allocation2 + $0x1238] sm:$0xff]  ;;  %v12693_v10 = vcombine.low %v750_v49, %v790_v50 }
 0x2e0   :  { %8605 = vmatprep.subr.bf16.mxu0 %v13252_v20  ;;  %8646 = vmatprep.subr.bf16.mxu1 %v13254_v21  ;;  %v909_v20 = vld [vmem:[#allocation2 + $0x19a0] sm:$0xff]  ;;  %v712_v6 = vld [vmem:[#allocation2 + $0x1378] sm:$0xff] }
 0x2e1   :  { %v949_v21 = vld [vmem:[#allocation2 + $0x1ae0] sm:$0xff] }
 0x2e2   :  { %v12851_v39 = vcombine.low %v909_v20, %v949_v21 }
 0x2e3   :  { %8606 = vmatpush2.bf16.msra.mxu0 %v13251_v29  ;;  %8647 = vmatpush2.bf16.msra.mxu1 %v13253_v30  ;;  %v12852_v29 = vcombine.high %v909_v20, %v949_v21  ;;  %v12854_v30 = vcombine.high %v910_v23, %v950_v25  ;;  %v592_v20 = vld [vmem:[#allocation2 + $0xfb8] sm:$0xff]  ;;  %v12617_v25 = vcombine.low %v672_v2, %v712_v6 }
 0x2e4   :  { %8607 = vmatprep.subr.bf16.mxu0 %v13172_v31  ;;  %8648 = vmatprep.subr.bf16.mxu1 %v13174_v32  ;;  %v829_v31 = vld [vmem:[#allocation2 + $0x1720] sm:$0xff]  ;;  %v632_v21 = vld [vmem:[#allocation2 + $0x10f8] sm:$0xff] }
 0x2e5   :  { %v869_v32 = vld [vmem:[#allocation2 + $0x1860] sm:$0xff] }
 0x2e6   :  { %v12771_v51 = vcombine.low %v829_v31, %v869_v32 }
 0x2e7   :  { %8608 = vmatpush2.bf16.msra.mxu0 %v13171_v43  ;;  %8649 = vmatpush2.bf16.msra.mxu1 %v13173_v45  ;;  %v12772_v43 = vcombine.high %v829_v31, %v869_v32  ;;  %v12774_v45 = vcombine.high %v830_v34, %v870_v35  ;;  %v512_v32 = vld [vmem:[#allocation2 + $0xd38] sm:$0xff] }
 0x2e8   :  { %8609 = vmatprep.subr.bf16.mxu0 %v13092_v46  ;;  %8650 = vmatprep.subr.bf16.mxu1 %v13094_v48  ;;  %v749_v46 = vld [vmem:[#allocation2 + $0x14a0] sm:$0xff]  ;;  %v552_v34 = vld [vmem:[#allocation2 + $0xe78] sm:$0xff] }
 0x2e9   :  { %v789_v48 = vld [vmem:[#allocation2 + $0x15e0] sm:$0xff] }
 0x2ea   :  { %v12691_v9 = vcombine.low %v749_v46, %v789_v48 }
 0x2eb   :  { %8610 = vmatpush2.bf16.msra.mxu0 %v13091_v55  ;;  %8651 = vmatpush2.bf16.msra.mxu1 %v13093_v58  ;;  %v12692_v55 = vcombine.high %v749_v46, %v789_v48  ;;  %v12694_v58 = vcombine.high %v750_v49, %v790_v50  ;;  %v12458_v48 = vcombine.high %v512_v32, %v552_v34  ;;  %v431_v49 = vld [vmem:[#allocation2 + $0xab0] sm:$0xff] }
 0x2ec   :  { %8611 = vmatprep.subr.bf16.mxu0 %v13012_v61  ;;  %8652 = vmatprep.subr.bf16.mxu1 %v13014_v1  ;;  %v671_v61 = vld [vmem:[#allocation2 + $0x1230] sm:$0xff] }
 0x2ed   :  { %v711_v1 = vld [vmem:[#allocation2 + $0x1370] sm:$0xff] }
 0x2ee   :  { %v12615_v23 = vcombine.low %v671_v61, %v711_v1  ;;  %v471_v50 = vld [vmem:[#allocation2 + $0xbf0] sm:$0xff] }
 0x2ef   :  { %8612 = vmatpush2.bf16.msra.mxu0 %v13011_v13  ;;  %8653 = vmatpush2.bf16.msra.mxu1 %v13013_v15  ;;  %v12616_v13 = vcombine.high %v671_v61, %v711_v1  ;;  %v12618_v15 = vcombine.high %v672_v2, %v712_v6  ;;  %v12457_v2 = vcombine.low %v512_v32, %v552_v34 }
 0x2f0   :  { %8613 = vmatprep.subr.bf16.mxu0 %v12932_v16  ;;  %8654 = vmatprep.subr.bf16.mxu1 %v12934_v18  ;;  %v591_v16 = vld [vmem:[#allocation2 + $0xfb0] sm:$0xff]  ;;  %v12376_v6 = vcombine.high %v431_v49, %v471_v50 }
 0x2f1   :  { %v631_v18 = vld [vmem:[#allocation2 + $0x10f0] sm:$0xff] }
 0x2f3   :  { %8614 = vmatpush2.bf16.msra.mxu0 %v12931_v26  ;;  %8655 = vmatpush2.bf16.msra.mxu1 %v12933_v28  ;;  %v12536_v26 = vcombine.high %v591_v16, %v631_v18  ;;  %v12538_v28 = vcombine.high %v592_v20, %v632_v21 }
 0x2f4   :  { %8615 = vmatprep.subr.bf16.mxu0 %v12852_v29  ;;  %8656 = vmatprep.subr.bf16.mxu1 %v12854_v30  ;;  %v511_v29 = vld [vmem:[#allocation2 + $0xd30] sm:$0xff] }
 0x2f5   :  { %v551_v30 = vld [vmem:[#allocation2 + $0xe70] sm:$0xff] }
 0x2f6   :  { %v12455_v61 = vcombine.low %v511_v29, %v551_v30 }
 0x2f7   :  { %8616 = vmatpush2.bf16.msra.mxu0 %v12851_v39  ;;  %8657 = vmatpush2.bf16.msra.mxu1 %v12853_v40  ;;  %v12535_v39 = vcombine.low %v591_v16, %v631_v18  ;;  %v352_v16 = vld [vmem:[#allocation2 + $0x838] sm:$0xff] }
 0x2f8   :  { %8617 = vmatprep.subr.bf16.mxu0 %v12772_v43  ;;  %8658 = vmatprep.subr.bf16.mxu1 %v12774_v45  ;;  %v12537_v43 = vcombine.low %v592_v20, %v632_v21  ;;  %v12456_v45 = vcombine.high %v511_v29, %v551_v30  ;;  %v392_v18 = vld [vmem:[#allocation2 + $0x978] sm:$0xff]  ;;  %v12375_v20 = vcombine.low %v431_v49, %v471_v50 }
 0x2f9   :  { %v272_v29 = vld [vmem:[#allocation2 + $0x5b8] sm:$0xff]  ;;  %v12297_v34 = vcombine.low %v352_v16, %v392_v18 }
 0x2fa   :  { %v312_v30 = vld [vmem:[#allocation2 + $0x6f8] sm:$0xff] }
 0x2fb   :  { %8618 = vmatpush2.bf16.msra.mxu0 %v12771_v51  ;;  %8659 = vmatpush2.bf16.msra.mxu1 %v12773_v52  ;;  %v432_v52 = vld [vmem:[#allocation2 + $0xab8] sm:$0xff] }
 0x2fc   :  { %8619 = vmatprep.subr.bf16.mxu0 %v12692_v55  ;;  %8660 = vmatprep.subr.bf16.mxu1 %v12694_v58  ;;  %v472_v55 = vld [vmem:[#allocation2 + $0xbf8] sm:$0xff] }
 0x2fd   :  { %v12377_v21 = vcombine.low %v432_v52, %v472_v55  ;;  %v192_v49 = vld [vmem:[#allocation2 + $0x338] sm:$0xff] }
 0x2fe   :  { %v232_v50 = vld [vmem:[#allocation2 + $0x478] sm:$0xff] }
 0x2ff   :  { %8620 = vmatpush2.bf16.msra.mxu0 %v12691_v9  ;;  %8661 = vmatpush2.bf16.msra.mxu1 %v12693_v10  ;;  %v12378_v10 = vcombine.high %v432_v52, %v472_v55  ;;  %v12217_v52 = vcombine.low %v272_v29, %v312_v30 }
 0x300   :  { %8671 = vmatprep.subr.bf16.mxu0 %v12616_v13  ;;  %8712 = vmatprep.subr.bf16.mxu1 %v12618_v15  ;;  %v351_v13 = vld [vmem:[#allocation2 + $0x830] sm:$0xff] }
 0x301   :  { %v391_v15 = vld [vmem:[#allocation2 + $0x970] sm:$0xff] }
 0x302   :  { %v14377_v31 = vpop.f32.mrf.mxu0  ;;  %8622 = vmatmul.mubr.bf16.vlgmr.msra.gmra.mxu0 %v14279_v12  ;;  %v14380_v35 = vpop.f32.mrf.mxu1  ;;  %8663 = vmatmul.mubr.bf16.vlgmr.msra.gmra.mxu1 %v14279_v12  ;;  %v12295_v32 = vcombine.low %v351_v13, %v391_v15 }
 0x303   :  { %8672 = vmatpush1.bf16.msra.mxu0 %v12615_v23  ;;  %8713 = vmatpush1.bf16.msra.mxu1 %v12617_v25  ;;  %v12296_v23 = vcombine.high %v351_v13, %v391_v15  ;;  %v12298_v25 = vcombine.high %v352_v16, %v392_v18  ;;  %v1311_v16 = vld [vmem:[#allocation2 + $0x2630] sm:$0xff] }
 0x304   :  { %v14383_v40 = vpop.f32.mrf.mxu0  ;;  %8673 = vmatprep.subr.bf16.mxu0 %v12536_v26  ;;  %v14385_v46 = vpop.f32.mrf.mxu1  ;;  %8714 = vmatprep.subr.bf16.mxu1 %v12538_v28  ;;  %v271_v26 = vld [vmem:[#allocation2 + $0x5b0] sm:$0xff] }
 0x305   :  { %8703 = vmatprep.mubr.bf16.mxu0 %v14272_v57  ;;  %8744 = vmatprep.mubr.bf16.mxu1 %v14272_v57  ;;  %v311_v28 = vld [vmem:[#allocation2 + $0x6f0] sm:$0xff] }
 0x306   :  { %v8381_v51 = vpop.f32.mrf.mxu0  ;;  %v8422_v58 = vpop.f32.mrf.mxu1  ;;  %v1351_v18 = vld [vmem:[#allocation2 + $0x2770] sm:$0xff] }
 0x307   :  { %8674 = vmatpush1.bf16.msra.mxu0 %v12535_v39  ;;  %8715 = vmatpush1.bf16.msra.mxu1 %v12537_v43  ;;  %v12216_v39 = vcombine.high %v271_v26, %v311_v28  ;;  %v12218_v43 = vcombine.high %v272_v29, %v312_v30  ;;  %v12215_v51 = vcombine.low %v271_v26, %v311_v28  ;;  %v1231_v29 = vld [vmem:[#allocation2 + $0x23b0] sm:$0xff] }
 0x308   :  { %v8382_v1 = vpop.f32.mrf.mxu0  ;;  %8675 = vmatprep.subr.bf16.mxu0 %v12456_v45  ;;  %v8423_v9 = vpop.f32.mrf.mxu1  ;;  %8716 = vmatprep.subr.bf16.mxu1 %v12458_v48  ;;  %v191_v45 = vld [vmem:[#allocation2 + $0x330] sm:$0xff]  ;;  %v12138_v58 = vcombine.high %v192_v49, %v232_v50  ;;  %v13256_v26 = vcombine.high %v1311_v16, %v1351_v18 }
 0x309   :  { %v231_v48 = vld [vmem:[#allocation2 + $0x470] sm:$0xff] }
 0x30a   :  { %v12136_v55 = vcombine.high %v191_v45, %v231_v48  ;;  %v151_v1 = vld [vmem:[#allocation2 + $0x1f0] sm:$0xff]  ;;  %v12135_v9 = vcombine.low %v191_v45, %v231_v48 }
 0x30b   :  { %8676 = vmatpush1.bf16.msra.mxu0 %v12455_v61  ;;  %8717 = vmatpush1.bf16.msra.mxu1 %v12457_v2  ;;  %v111_v61 = vld [vmem:[#allocation2 + $0xb0] sm:$0xff]  ;;  %v112_v2 = vld [vmem:[#allocation2 + $0xb8] sm:$0xff] }
 0x30c   :  { %8677 = vmatprep.subr.bf16.mxu0 %v12376_v6  ;;  %8718 = vmatprep.subr.bf16.mxu1 %v12378_v10  ;;  %v152_v6 = vld [vmem:[#allocation2 + $0x1f8] sm:$0xff]  ;;  %v12137_v10 = vcombine.low %v192_v49, %v232_v50  ;;  %v12056_v13 = vcombine.high %v111_v61, %v151_v1  ;;  %v1271_v30 = vld [vmem:[#allocation2 + $0x24f0] sm:$0xff] }
 0x30d   :  { %v12058_v15 = vcombine.high %v112_v2, %v152_v6  ;;  %v13176_v45 = vcombine.high %v1231_v29, %v1271_v30  ;;  %v1151_v49 = vld [vmem:[#allocation2 + $0x2130] sm:$0xff] }
 0x30e   :  { %v1191_v50 = vld [vmem:[#allocation2 + $0x2270] sm:$0xff] }
 0x30f   :  { %8678 = vmatpush1.bf16.msra.mxu0 %v12375_v20  ;;  %8719 = vmatpush1.bf16.msra.mxu1 %v12377_v21  ;;  %v1312_v20 = vld [vmem:[#allocation2 + $0x2638] sm:$0xff] }
 0x310   :  { %8679 = vmatprep.subr.bf16.mxu0 %v12296_v23  ;;  %8720 = vmatprep.subr.bf16.mxu1 %v12298_v25  ;;  %v1352_v21 = vld [vmem:[#allocation2 + $0x2778] sm:$0xff]  ;;  %v12055_v23 = vcombine.low %v111_v61, %v151_v1  ;;  %v12057_v25 = vcombine.low %v112_v2, %v152_v6  ;;  %v13096_v61 = vcombine.high %v1151_v49, %v1191_v50  ;;  %v1071_v2 = vld [vmem:[#allocation2 + $0x1eb0] sm:$0xff] }
 0x311   :  { %v13258_v28 = vcombine.high %v1312_v20, %v1352_v21  ;;  %v1111_v6 = vld [vmem:[#allocation2 + $0x1ff0] sm:$0xff] }
 0x313   :  { %8680 = vmatpush1.bf16.msra.mxu0 %v12295_v32  ;;  %8721 = vmatpush1.bf16.msra.mxu1 %v12297_v34  ;;  %v1232_v32 = vld [vmem:[#allocation2 + $0x23b8] sm:$0xff] }
 0x314   :  { %8681 = vmatprep.subr.bf16.mxu0 %v12216_v39  ;;  %8722 = vmatprep.subr.bf16.mxu1 %v12218_v43  ;;  %v1272_v34 = vld [vmem:[#allocation2 + $0x24f8] sm:$0xff]  ;;  %v13255_v39 = vcombine.low %v1311_v16, %v1351_v18  ;;  %v13257_v43 = vcombine.low %v1312_v20, %v1352_v21  ;;  %v13016_v16 = vcombine.high %v1071_v2, %v1111_v6  ;;  %v991_v20 = vld [vmem:[#allocation2 + $0x1c30] sm:$0xff] }
 0x315   :  { %v13178_v48 = vcombine.high %v1232_v32, %v1272_v34  ;;  %v1031_v21 = vld [vmem:[#allocation2 + $0x1d70] sm:$0xff] }
 0x317   :  { %8682 = vmatpush1.bf16.msra.mxu0 %v12215_v51  ;;  %8723 = vmatpush1.bf16.msra.mxu1 %v12217_v52  ;;  %v1152_v51 = vld [vmem:[#allocation2 + $0x2138] sm:$0xff] }
 0x318   :  { %8683 = vmatprep.subr.bf16.mxu0 %v12136_v55  ;;  %8724 = vmatprep.subr.bf16.mxu1 %v12138_v58  ;;  %v1192_v52 = vld [vmem:[#allocation2 + $0x2278] sm:$0xff]  ;;  %v13175_v55 = vcombine.low %v1231_v29, %v1271_v30  ;;  %v13177_v58 = vcombine.low %v1232_v32, %v1272_v34  ;;  %v12936_v29 = vcombine.high %v991_v20, %v1031_v21  ;;  %v911_v32 = vld [vmem:[#allocation2 + $0x19b0] sm:$0xff] }
 0x319   :  { %v13098_v1 = vcombine.high %v1152_v51, %v1192_v52  ;;  %v951_v34 = vld [vmem:[#allocation2 + $0x1af0] sm:$0xff] }
 0x31b   :  { %8684 = vmatpush1.bf16.msra.mxu0 %v12135_v9  ;;  %8725 = vmatpush1.bf16.msra.mxu1 %v12137_v10  ;;  %v1072_v9 = vld [vmem:[#allocation2 + $0x1eb8] sm:$0xff] }
 0x31c   :  { %8685 = vmatprep.subr.bf16.mxu0 %v12056_v13  ;;  %8726 = vmatprep.subr.bf16.mxu1 %v12058_v15  ;;  %v1112_v10 = vld [vmem:[#allocation2 + $0x1ff8] sm:$0xff]  ;;  %v13095_v13 = vcombine.low %v1151_v49, %v1191_v50  ;;  %v13097_v15 = vcombine.low %v1152_v51, %v1192_v52  ;;  %v12856_v49 = vcombine.high %v911_v32, %v951_v34  ;;  %v831_v51 = vld [vmem:[#allocation2 + $0x1730] sm:$0xff] }
 0x31d   :  { %v13018_v18 = vcombine.high %v1072_v9, %v1112_v10  ;;  %v871_v52 = vld [vmem:[#allocation2 + $0x1870] sm:$0xff] }
 0x31f   :  { %8686 = vmatpush1.bf16.msra.mxu0 %v12055_v23  ;;  %8727 = vmatpush1.bf16.msra.mxu1 %v12057_v25  ;;  %v992_v23 = vld [vmem:[#allocation2 + $0x1c38] sm:$0xff] }
 0x320   :  { %8687 = vmatprep.subr.bf16.mxu0 %v13256_v26  ;;  %8728 = vmatprep.subr.bf16.mxu1 %v13258_v28  ;;  %v1032_v25 = vld [vmem:[#allocation2 + $0x1d78] sm:$0xff]  ;;  %v13015_v26 = vcombine.low %v1071_v2, %v1111_v6  ;;  %v13017_v28 = vcombine.low %v1072_v9, %v1112_v10  ;;  %v12776_v2 = vcombine.high %v831_v51, %v871_v52  ;;  %v751_v9 = vld [vmem:[#allocation2 + $0x14b0] sm:$0xff] }
 0x321   :  { %v12938_v30 = vcombine.high %v992_v23, %v1032_v25  ;;  %v791_v10 = vld [vmem:[#allocation2 + $0x15f0] sm:$0xff] }
 0x323   :  { %8688 = vmatpush2.bf16.msra.mxu0 %v13255_v39  ;;  %8729 = vmatpush2.bf16.msra.mxu1 %v13257_v43  ;;  %v912_v39 = vld [vmem:[#allocation2 + $0x19b8] sm:$0xff] }
 0x324   :  { %8689 = vmatprep.subr.bf16.mxu0 %v13176_v45  ;;  %8730 = vmatprep.subr.bf16.mxu1 %v13178_v48  ;;  %v952_v43 = vld [vmem:[#allocation2 + $0x1af8] sm:$0xff]  ;;  %v12935_v45 = vcombine.low %v991_v20, %v1031_v21  ;;  %v12937_v48 = vcombine.low %v992_v23, %v1032_v25  ;;  %v12696_v20 = vcombine.high %v751_v9, %v791_v10  ;;  %v673_v23 = vld [vmem:[#allocation2 + $0x1240] sm:$0xff] }
 0x325   :  { %v12858_v50 = vcombine.high %v912_v39, %v952_v43  ;;  %v713_v25 = vld [vmem:[#allocation2 + $0x1380] sm:$0xff] }
 0x327   :  { %8690 = vmatpush2.bf16.msra.mxu0 %v13175_v55  ;;  %8731 = vmatpush2.bf16.msra.mxu1 %v13177_v58  ;;  %v832_v55 = vld [vmem:[#allocation2 + $0x1738] sm:$0xff] }
 0x328   :  { %8691 = vmatprep.subr.bf16.mxu0 %v13096_v61  ;;  %8732 = vmatprep.subr.bf16.mxu1 %v13098_v1  ;;  %v872_v58 = vld [vmem:[#allocation2 + $0x1878] sm:$0xff]  ;;  %v12855_v61 = vcombine.low %v911_v32, %v951_v34  ;;  %v12857_v1 = vcombine.low %v912_v39, %v952_v43  ;;  %v12620_v32 = vcombine.high %v673_v23, %v713_v25  ;;  %v593_v39 = vld [vmem:[#allocation2 + $0xfc0] sm:$0xff] }
 0x329   :  { %v12778_v6 = vcombine.high %v832_v55, %v872_v58  ;;  %v633_v43 = vld [vmem:[#allocation2 + $0x1100] sm:$0xff] }
 0x32b   :  { %8692 = vmatpush2.bf16.msra.mxu0 %v13095_v13  ;;  %8733 = vmatpush2.bf16.msra.mxu1 %v13097_v15  ;;  %v752_v13 = vld [vmem:[#allocation2 + $0x14b8] sm:$0xff] }
 0x32c   :  { %8693 = vmatprep.subr.bf16.mxu0 %v13016_v16  ;;  %8734 = vmatprep.subr.bf16.mxu1 %v13018_v18  ;;  %v792_v15 = vld [vmem:[#allocation2 + $0x15f8] sm:$0xff]  ;;  %v12775_v16 = vcombine.low %v831_v51, %v871_v52  ;;  %v12777_v18 = vcombine.low %v832_v55, %v872_v58  ;;  %v12540_v51 = vcombine.high %v593_v39, %v633_v43  ;;  %v513_v55 = vld [vmem:[#allocation2 + $0xd40] sm:$0xff] }
 0x32d   :  { %v12698_v21 = vcombine.high %v752_v13, %v792_v15  ;;  %v553_v58 = vld [vmem:[#allocation2 + $0xe80] sm:$0xff] }
 0x32f   :  { %8694 = vmatpush2.bf16.msra.mxu0 %v13015_v26  ;;  %8735 = vmatpush2.bf16.msra.mxu1 %v13017_v28  ;;  %v674_v26 = vld [vmem:[#allocation2 + $0x1248] sm:$0xff] }
 0x330   :  { %8695 = vmatprep.subr.bf16.mxu0 %v12936_v29  ;;  %8736 = vmatprep.subr.bf16.mxu1 %v12938_v30  ;;  %v714_v28 = vld [vmem:[#allocation2 + $0x1388] sm:$0xff]  ;;  %v12695_v29 = vcombine.low %v751_v9, %v791_v10  ;;  %v12697_v30 = vcombine.low %v752_v13, %v792_v15  ;;  %v12539_v9 = vcombine.low %v593_v39, %v633_v43 }
 0x331   :  { %v12622_v34 = vcombine.high %v674_v26, %v714_v28  ;;  %v12460_v15 = vcombine.high %v513_v55, %v553_v58 }
 0x333   :  { %8696 = vmatpush2.bf16.msra.mxu0 %v12935_v45  ;;  %8737 = vmatpush2.bf16.msra.mxu1 %v12937_v48  ;;  %v594_v45 = vld [vmem:[#allocation2 + $0xfc8] sm:$0xff] }
 0x334   :  { %8697 = vmatprep.subr.bf16.mxu0 %v12856_v49  ;;  %8738 = vmatprep.subr.bf16.mxu1 %v12858_v50  ;;  %v634_v48 = vld [vmem:[#allocation2 + $0x1108] sm:$0xff]  ;;  %v12619_v49 = vcombine.low %v673_v23, %v713_v25  ;;  %v12621_v50 = vcombine.low %v674_v26, %v714_v28 }
 0x335   :  { %v12542_v52 = vcombine.high %v594_v45, %v634_v48  ;;  %v12541_v13 = vcombine.low %v594_v45, %v634_v48  ;;  %v434_v25 = vld [vmem:[#allocation2 + $0xac8] sm:$0xff]  ;;  %v353_v45 = vld [vmem:[#allocation2 + $0x840] sm:$0xff] }
 0x336   :  { %v474_v26 = vld [vmem:[#allocation2 + $0xc08] sm:$0xff]  ;;  %v393_v48 = vld [vmem:[#allocation2 + $0x980] sm:$0xff] }
 0x337   :  { %8698 = vmatpush2.bf16.msra.mxu0 %v12855_v61  ;;  %8739 = vmatpush2.bf16.msra.mxu1 %v12857_v1  ;;  %v514_v1 = vld [vmem:[#allocation2 + $0xd48] sm:$0xff]  ;;  %v12382_v43 = vcombine.high %v434_v25, %v474_v26 }
 0x338   :  { %8699 = vmatprep.subr.bf16.mxu0 %v12776_v2  ;;  %8740 = vmatprep.subr.bf16.mxu1 %v12778_v6  ;;  %v554_v2 = vld [vmem:[#allocation2 + $0xe88] sm:$0xff] }
 0x33b   :  { %8700 = vmatpush2.bf16.msra.mxu0 %v12775_v16  ;;  %8741 = vmatpush2.bf16.msra.mxu1 %v12777_v18  ;;  %v12462_v18 = vcombine.high %v514_v1, %v554_v2 }
 0x33c   :  { %8701 = vmatprep.subr.bf16.mxu0 %v12696_v20  ;;  %8742 = vmatprep.subr.bf16.mxu1 %v12698_v21  ;;  %v433_v20 = vld [vmem:[#allocation2 + $0xac0] sm:$0xff] }
 0x33d   :  { %v473_v21 = vld [vmem:[#allocation2 + $0xc00] sm:$0xff] }
 0x33f   :  { %8702 = vmatpush2.bf16.msra.mxu0 %v12695_v29  ;;  %8743 = vmatpush2.bf16.msra.mxu1 %v12697_v30  ;;  %v12459_v29 = vcombine.low %v513_v55, %v553_v58  ;;  %v273_v58 = vld [vmem:[#allocation2 + $0x5c0] sm:$0xff] }
 0x340   :  { %8753 = vmatprep.subr.bf16.mxu0 %v12620_v32  ;;  %8794 = vmatprep.subr.bf16.mxu1 %v12622_v34  ;;  %v12461_v32 = vcombine.low %v514_v1, %v554_v2  ;;  %v12380_v34 = vcombine.high %v433_v20, %v473_v21  ;;  %v314_v1 = vld [vmem:[#allocation2 + $0x708] sm:$0xff]  ;;  %v12299_v2 = vcombine.low %v353_v45, %v393_v48 }
 0x342   :  { %v14389_v61 = vpop.f32.mrf.mxu0  ;;  %8704 = vmatmul.mubr.bf16.vlgmr.msra.gmra.mxu0 %v14279_v12  ;;  %v14392_v6 = vpop.f32.mrf.mxu1  ;;  %8745 = vmatmul.mubr.bf16.vlgmr.msra.gmra.mxu1 %v14279_v12 }
 0x343   :  { %14699 = vst [vmem:[#allocation21_spill] sm:$0xff] %v14392_v6  ;;  %8754 = vmatpush1.bf16.msra.mxu0 %v12619_v49  ;;  %8795 = vmatpush1.bf16.msra.mxu1 %v12621_v50  ;;  %v354_v49 = vld [vmem:[#allocation2 + $0x848] sm:$0xff] }
 0x344   :  { %v14395_v10 = vpop.f32.mrf.mxu0  ;;  %8755 = vmatprep.subr.bf16.mxu0 %v12540_v51  ;;  %v14397_v16 = vpop.f32.mrf.mxu1  ;;  %8796 = vmatprep.subr.bf16.mxu1 %v12542_v52  ;;  %v394_v50 = vld [vmem:[#allocation2 + $0x988] sm:$0xff]  ;;  %v12379_v51 = vcombine.low %v433_v20, %v473_v21  ;;  %v12381_v52 = vcombine.low %v434_v25, %v474_v26  ;;  %v233_v20 = vld [vmem:[#allocation2 + $0x480] sm:$0xff] }
 0x345   :  { %14700 = vst [vmem:[#allocation22_spill] sm:$0xff] %v14395_v10  ;;  %14701 = vst [vmem:[#allocation23_spill] sm:$0xff] %v14397_v16  ;;  %8785 = vmatprep.mubr.bf16.mxu0 %v14272_v57  ;;  %8826 = vmatprep.mubr.bf16.mxu1 %v14272_v57  ;;  %v12302_v55 = vcombine.high %v354_v49, %v394_v50  ;;  %v194_v21 = vld [vmem:[#allocation2 + $0x348] sm:$0xff]  ;;  %v400_v16 = vld [vmem:[#allocation2 + $0x9b8] sm:$0xff] }
 0x346   :  { %v8463_v23 = vpop.f32.mrf.mxu0  ;;  %v8504_v28 = vpop.f32.mrf.mxu1  ;;  %v401_v10 = vld [vmem:[#allocation2 + $0x9c0] sm:$0xff]  ;;  %v402_v6 = vld [vmem:[#allocation2 + $0x9c8] sm:$0xff] }
 0x347   :  { %8756 = vmatpush1.bf16.msra.mxu0 %v12539_v9  ;;  %8797 = vmatpush1.bf16.msra.mxu1 %v12541_v13  ;;  %v12300_v23 = vcombine.high %v353_v45, %v393_v48  ;;  %v313_v9 = vld [vmem:[#allocation2 + $0x700] sm:$0xff]  ;;  %v274_v13 = vld [vmem:[#allocation2 + $0x5c8] sm:$0xff] }
 0x348   :  { %v8464_v30 = vpop.f32.mrf.mxu0  ;;  %8757 = vmatprep.subr.bf16.mxu0 %v12460_v15  ;;  %v8505_v39 = vpop.f32.mrf.mxu1  ;;  %8798 = vmatprep.subr.bf16.mxu1 %v12462_v18  ;;  %v12301_v15 = vcombine.low %v354_v49, %v394_v50  ;;  %v12220_v18 = vcombine.high %v273_v58, %v313_v9  ;;  %v12222_v28 = vcombine.high %v274_v13, %v314_v1  ;;  %v114_v45 = vld [vmem:[#allocation2 + $0xc8] sm:$0xff] }
 0x349   :  { %v234_v30 = vld [vmem:[#allocation2 + $0x488] sm:$0xff]  ;;  %v12219_v25 = vcombine.low %v273_v58, %v313_v9  ;;  %v12221_v26 = vcombine.low %v274_v13, %v314_v1  ;;  %v113_v39 = vld [vmem:[#allocation2 + $0xc0] sm:$0xff] }
 0x34a   :  { %v154_v48 = vld [vmem:[#allocation2 + $0x208] sm:$0xff]  ;;  %v12141_v50 = vcombine.low %v194_v21, %v234_v30 }
 0x34b   :  { %8758 = vmatpush1.bf16.msra.mxu0 %v12459_v29  ;;  %8799 = vmatpush1.bf16.msra.mxu1 %v12461_v32  ;;  %v193_v29 = vld [vmem:[#allocation2 + $0x340] sm:$0xff]  ;;  %v1314_v58 = vld [vmem:[#allocation2 + $0x2648] sm:$0xff]  ;;  %v12061_v1 = vcombine.low %v114_v45, %v154_v48 }
 0x34c   :  { %8759 = vmatprep.subr.bf16.mxu0 %v12380_v34  ;;  %8800 = vmatprep.subr.bf16.mxu1 %v12382_v43  ;;  %v12140_v32 = vcombine.high %v193_v29, %v233_v20  ;;  %v12142_v34 = vcombine.high %v194_v21, %v234_v30  ;;  %v153_v43 = vld [vmem:[#allocation2 + $0x200] sm:$0xff]  ;;  %v12139_v49 = vcombine.low %v193_v29, %v233_v20  ;;  %v1354_v9 = vld [vmem:[#allocation2 + $0x2788] sm:$0xff] }
 0x34d   :  { %v12059_v13 = vcombine.low %v113_v39, %v153_v43  ;;  %v1234_v29 = vld [vmem:[#allocation2 + $0x23c8] sm:$0xff]  ;;  %v13261_v30 = vcombine.low %v1314_v58, %v1354_v9 }
 0x34e   :  { %v1274_v20 = vld [vmem:[#allocation2 + $0x2508] sm:$0xff] }
 0x34f   :  { %8760 = vmatpush1.bf16.msra.mxu0 %v12379_v51  ;;  %8801 = vmatpush1.bf16.msra.mxu1 %v12381_v52  ;;  %v12060_v51 = vcombine.high %v113_v39, %v153_v43  ;;  %v12062_v52 = vcombine.high %v114_v45, %v154_v48  ;;  %v1154_v39 = vld [vmem:[#allocation2 + $0x2148] sm:$0xff]  ;;  %v13181_v48 = vcombine.low %v1234_v29, %v1274_v20 }
 0x350   :  { %8761 = vmatprep.subr.bf16.mxu0 %v12300_v23  ;;  %8802 = vmatprep.subr.bf16.mxu1 %v12302_v55  ;;  %v1313_v23 = vld [vmem:[#allocation2 + $0x2640] sm:$0xff]  ;;  %v1194_v43 = vld [vmem:[#allocation2 + $0x2288] sm:$0xff] }
 0x351   :  { %v1353_v55 = vld [vmem:[#allocation2 + $0x2780] sm:$0xff] }
 0x352   :  { %v13259_v21 = vcombine.low %v1313_v23, %v1353_v55 }
 0x353   :  { %8762 = vmatpush1.bf16.msra.mxu0 %v12299_v2  ;;  %8803 = vmatpush1.bf16.msra.mxu1 %v12301_v15  ;;  %v13260_v2 = vcombine.high %v1313_v23, %v1353_v55  ;;  %v13262_v15 = vcombine.high %v1314_v58, %v1354_v9  ;;  %v1074_v23 = vld [vmem:[#allocation2 + $0x1ec8] sm:$0xff]  ;;  %v13101_v9 = vcombine.low %v1154_v39, %v1194_v43 }
 0x354   :  { %8763 = vmatprep.subr.bf16.mxu0 %v12220_v18  ;;  %8804 = vmatprep.subr.bf16.mxu1 %v12222_v28  ;;  %v1233_v18 = vld [vmem:[#allocation2 + $0x23c0] sm:$0xff]  ;;  %v1114_v55 = vld [vmem:[#allocation2 + $0x2008] sm:$0xff] }
 0x355   :  { %v1273_v28 = vld [vmem:[#allocation2 + $0x2500] sm:$0xff] }
 0x356   :  { %v13179_v45 = vcombine.low %v1233_v18, %v1273_v28 }
 0x357   :  { %8764 = vmatpush1.bf16.msra.mxu0 %v12219_v25  ;;  %8805 = vmatpush1.bf16.msra.mxu1 %v12221_v26  ;;  %v13180_v25 = vcombine.high %v1233_v18, %v1273_v28  ;;  %v13182_v26 = vcombine.high %v1234_v29, %v1274_v20  ;;  %v994_v18 = vld [vmem:[#allocation2 + $0x1c48] sm:$0xff]  ;;  %v13021_v20 = vcombine.low %v1074_v23, %v1114_v55 }
 0x358   :  { %8765 = vmatprep.subr.bf16.mxu0 %v12140_v32  ;;  %8806 = vmatprep.subr.bf16.mxu1 %v12142_v34  ;;  %v1153_v32 = vld [vmem:[#allocation2 + $0x2140] sm:$0xff]  ;;  %v1034_v28 = vld [vmem:[#allocation2 + $0x1d88] sm:$0xff] }
 0x359   :  { %v1193_v34 = vld [vmem:[#allocation2 + $0x2280] sm:$0xff] }
 0x35a   :  { %v13099_v58 = vcombine.low %v1153_v32, %v1193_v34 }
 0x35b   :  { %8766 = vmatpush1.bf16.msra.mxu0 %v12139_v49  ;;  %8807 = vmatpush1.bf16.msra.mxu1 %v12141_v50  ;;  %v13100_v49 = vcombine.high %v1153_v32, %v1193_v34  ;;  %v13102_v50 = vcombine.high %v1154_v39, %v1194_v43  ;;  %v914_v32 = vld [vmem:[#allocation2 + $0x19c8] sm:$0xff]  ;;  %v12941_v43 = vcombine.low %v994_v18, %v1034_v28 }
 0x35c   :  { %8767 = vmatprep.subr.bf16.mxu0 %v12060_v51  ;;  %8808 = vmatprep.subr.bf16.mxu1 %v12062_v52  ;;  %v1073_v51 = vld [vmem:[#allocation2 + $0x1ec0] sm:$0xff]  ;;  %v954_v34 = vld [vmem:[#allocation2 + $0x1b08] sm:$0xff] }
 0x35d   :  { %v1113_v52 = vld [vmem:[#allocation2 + $0x2000] sm:$0xff] }
 0x35e   :  { %v13019_v29 = vcombine.low %v1073_v51, %v1113_v52 }
 0x35f   :  { %8768 = vmatpush1.bf16.msra.mxu0 %v12059_v13  ;;  %8809 = vmatpush1.bf16.msra.mxu1 %v12061_v1  ;;  %v13020_v13 = vcombine.high %v1073_v51, %v1113_v52  ;;  %v13022_v1 = vcombine.high %v1074_v23, %v1114_v55  ;;  %v834_v51 = vld [vmem:[#allocation2 + $0x1748] sm:$0xff]  ;;  %v12861_v55 = vcombine.low %v914_v32, %v954_v34 }
 0x360   :  { %8769 = vmatprep.subr.bf16.mxu0 %v13260_v2  ;;  %8810 = vmatprep.subr.bf16.mxu1 %v13262_v15  ;;  %v993_v2 = vld [vmem:[#allocation2 + $0x1c40] sm:$0xff]  ;;  %v874_v52 = vld [vmem:[#allocation2 + $0x1888] sm:$0xff] }
 0x361   :  { %v1033_v15 = vld [vmem:[#allocation2 + $0x1d80] sm:$0xff] }
 0x362   :  { %v12939_v39 = vcombine.low %v993_v2, %v1033_v15 }
 0x363   :  { %8770 = vmatpush2.bf16.msra.mxu0 %v13259_v21  ;;  %8811 = vmatpush2.bf16.msra.mxu1 %v13261_v30  ;;  %v12940_v21 = vcombine.high %v993_v2, %v1033_v15  ;;  %v12942_v30 = vcombine.high %v994_v18, %v1034_v28  ;;  %v754_v2 = vld [vmem:[#allocation2 + $0x14c8] sm:$0xff]  ;;  %v12781_v28 = vcombine.low %v834_v51, %v874_v52 }
 0x364   :  { %8771 = vmatprep.subr.bf16.mxu0 %v13180_v25  ;;  %8812 = vmatprep.subr.bf16.mxu1 %v13182_v26  ;;  %v913_v25 = vld [vmem:[#allocation2 + $0x19c0] sm:$0xff]  ;;  %v794_v15 = vld [vmem:[#allocation2 + $0x1608] sm:$0xff] }
 0x365   :  { %v953_v26 = vld [vmem:[#allocation2 + $0x1b00] sm:$0xff] }
 0x366   :  { %v12859_v23 = vcombine.low %v913_v25, %v953_v26 }
 0x367   :  { %8772 = vmatpush2.bf16.msra.mxu0 %v13179_v45  ;;  %8813 = vmatpush2.bf16.msra.mxu1 %v13181_v48  ;;  %v12860_v45 = vcombine.high %v913_v25, %v953_v26  ;;  %v12862_v48 = vcombine.high %v914_v32, %v954_v34  ;;  %v676_v25 = vld [vmem:[#allocation2 + $0x1258] sm:$0xff]  ;;  %v12701_v34 = vcombine.low %v754_v2, %v794_v15 }
 0x368   :  { %8773 = vmatprep.subr.bf16.mxu0 %v13100_v49  ;;  %8814 = vmatprep.subr.bf16.mxu1 %v13102_v50  ;;  %v833_v49 = vld [vmem:[#allocation2 + $0x1740] sm:$0xff]  ;;  %v716_v26 = vld [vmem:[#allocation2 + $0x1398] sm:$0xff] }
 0x369   :  { %v873_v50 = vld [vmem:[#allocation2 + $0x1880] sm:$0xff] }
 0x36a   :  { %v12779_v18 = vcombine.low %v833_v49, %v873_v50 }
 0x36b   :  { %8774 = vmatpush2.bf16.msra.mxu0 %v13099_v58  ;;  %8815 = vmatpush2.bf16.msra.mxu1 %v13101_v9  ;;  %v12780_v58 = vcombine.high %v833_v49, %v873_v50  ;;  %v12782_v9 = vcombine.high %v834_v51, %v874_v52  ;;  %v596_v49 = vld [vmem:[#allocation2 + $0xfd8] sm:$0xff]  ;;  %v12625_v52 = vcombine.low %v676_v25, %v716_v26 }
 0x36c   :  { %8775 = vmatprep.subr.bf16.mxu0 %v13020_v13  ;;  %8816 = vmatprep.subr.bf16.mxu1 %v13022_v1  ;;  %v753_v13 = vld [vmem:[#allocation2 + $0x14c0] sm:$0xff]  ;;  %v636_v50 = vld [vmem:[#allocation2 + $0x1118] sm:$0xff] }
 0x36d   :  { %v793_v1 = vld [vmem:[#allocation2 + $0x1600] sm:$0xff] }
 0x36e   :  { %v12699_v32 = vcombine.low %v753_v13, %v793_v1 }
 0x36f   :  { %8776 = vmatpush2.bf16.msra.mxu0 %v13019_v29  ;;  %8817 = vmatpush2.bf16.msra.mxu1 %v13021_v20  ;;  %v12700_v29 = vcombine.high %v753_v13, %v793_v1  ;;  %v12702_v20 = vcombine.high %v754_v2, %v794_v15  ;;  %v516_v1 = vld [vmem:[#allocation2 + $0xd58] sm:$0xff] }
 0x370   :  { %8777 = vmatprep.subr.bf16.mxu0 %v12940_v21  ;;  %8818 = vmatprep.subr.bf16.mxu1 %v12942_v30  ;;  %v675_v21 = vld [vmem:[#allocation2 + $0x1250] sm:$0xff]  ;;  %v556_v2 = vld [vmem:[#allocation2 + $0xe98] sm:$0xff] }
 0x371   :  { %v715_v30 = vld [vmem:[#allocation2 + $0x1390] sm:$0xff] }
 0x372   :  { %v12623_v51 = vcombine.low %v675_v21, %v715_v30 }
 0x373   :  { %8778 = vmatpush2.bf16.msra.mxu0 %v12939_v39  ;;  %8819 = vmatpush2.bf16.msra.mxu1 %v12941_v43  ;;  %v12624_v39 = vcombine.high %v675_v21, %v715_v30  ;;  %v12626_v43 = vcombine.high %v676_v25, %v716_v26  ;;  %v12466_v30 = vcombine.high %v516_v1, %v556_v2  ;;  %v435_v25 = vld [vmem:[#allocation2 + $0xad0] sm:$0xff] }
 0x374   :  { %8779 = vmatprep.subr.bf16.mxu0 %v12860_v45  ;;  %8820 = vmatprep.subr.bf16.mxu1 %v12862_v48  ;;  %v595_v45 = vld [vmem:[#allocation2 + $0xfd0] sm:$0xff] }
 0x375   :  { %v635_v48 = vld [vmem:[#allocation2 + $0x1110] sm:$0xff] }
 0x376   :  { %v475_v26 = vld [vmem:[#allocation2 + $0xc10] sm:$0xff] }
 0x377   :  { %8780 = vmatpush2.bf16.msra.mxu0 %v12859_v23  ;;  %8821 = vmatpush2.bf16.msra.mxu1 %v12861_v55  ;;  %v12544_v23 = vcombine.high %v595_v45, %v635_v48  ;;  %v12546_v55 = vcombine.high %v596_v49, %v636_v50 }
 0x378   :  { %8781 = vmatprep.subr.bf16.mxu0 %v12780_v58  ;;  %8822 = vmatprep.subr.bf16.mxu1 %v12782_v9  ;;  %v515_v58 = vld [vmem:[#allocation2 + $0xd50] sm:$0xff] }
 0x379   :  { %v555_v9 = vld [vmem:[#allocation2 + $0xe90] sm:$0xff] }
 0x37b   :  { %8782 = vmatpush2.bf16.msra.mxu0 %v12779_v18  ;;  %8823 = vmatpush2.bf16.msra.mxu1 %v12781_v28  ;;  %v12543_v18 = vcombine.low %v595_v45, %v635_v48  ;;  %v12463_v45 = vcombine.low %v515_v58, %v555_v9 }
 0x37c   :  { %8783 = vmatprep.subr.bf16.mxu0 %v12700_v29  ;;  %8824 = vmatprep.subr.bf16.mxu1 %v12702_v20  ;;  %v12545_v29 = vcombine.low %v596_v49, %v636_v50  ;;  %v12464_v20 = vcombine.high %v515_v58, %v555_v9  ;;  %v12465_v49 = vcombine.low %v516_v1, %v556_v2  ;;  %v275_v9 = vld [vmem:[#allocation2 + $0x5d0] sm:$0xff]  ;;  %v316_v1 = vld [vmem:[#allocation2 + $0x718] sm:$0xff] }
 0x37d   :  { %v12384_v50 = vcombine.high %v435_v25, %v475_v26 }
 0x37f   :  { %8784 = vmatpush2.bf16.msra.mxu0 %v12699_v32  ;;  %8825 = vmatpush2.bf16.msra.mxu1 %v12701_v34  ;;  %v436_v34 = vld [vmem:[#allocation2 + $0xad8] sm:$0xff] }
 0x380   :  { %8835 = vmatprep.subr.bf16.mxu0 %v12624_v39  ;;  %8876 = vmatprep.subr.bf16.mxu1 %v12626_v43  ;;  %v476_v39 = vld [vmem:[#allocation2 + $0xc18] sm:$0xff] }
 0x381   :  { %v12385_v63 = vcombine.low %v436_v34, %v476_v39 }
 0x382   :  { %v14401_v13 = vpop.f32.mrf.mxu0  ;;  %8786 = vmatmul.mubr.bf16.vlgmr.msra.gmra.mxu0 %v14279_v12  ;;  %v14404_v15 = vpop.f32.mrf.mxu1  ;;  %8827 = vmatmul.mubr.bf16.vlgmr.msra.gmra.mxu1 %v14279_v12 }
 0x383   :  { %14702 = vst [vmem:[#allocation24_spill] sm:$0xff] %v14401_v13  ;;  %14703 = vst [vmem:[#allocation25_spill] sm:$0xff] %v14404_v15  ;;  %8836 = vmatpush1.bf16.msra.mxu0 %v12623_v51  ;;  %8877 = vmatpush1.bf16.msra.mxu1 %v12625_v52  ;;  %v12386_v52 = vcombine.high %v436_v34, %v476_v39  ;;  %v398_v15 = vld [vmem:[#allocation2 + $0x9a8] sm:$0xff]  ;;  %v399_v13 = vld [vmem:[#allocation2 + $0x9b0] sm:$0xff] }
 0x384   :  { %v14407_v28 = vpop.f32.mrf.mxu0  ;;  %8837 = vmatprep.subr.bf16.mxu0 %v12544_v23  ;;  %v14409_v21 = vpop.f32.mrf.mxu1  ;;  %8878 = vmatprep.subr.bf16.mxu1 %v12546_v55  ;;  %v355_v23 = vld [vmem:[#allocation2 + $0x850] sm:$0xff] }
 0x385   :  { %14704 = vst [vmem:[#allocation26_spill] sm:$0xff] %v14407_v28  ;;  %14705 = vst [vmem:[#allocation27_spill] sm:$0xff] %v14409_v21  ;;  %8867 = vmatprep.mubr.bf16.mxu0 %v14272_v57  ;;  %8908 = vmatprep.mubr.bf16.mxu1 %v14272_v57  ;;  %v395_v55 = vld [vmem:[#allocation2 + $0x990] sm:$0xff]  ;;  %v396_v21 = vld [vmem:[#allocation2 + $0x998] sm:$0xff] }
 0x386   :  { %v8545_v32 = vpop.f32.mrf.mxu0  ;;  %v8586_v43 = vpop.f32.mrf.mxu1  ;;  %v12306_v58 = vcombine.high %v356_v4, %v396_v21  ;;  %v12303_v2 = vcombine.low %v355_v23, %v395_v55  ;;  %v397_v28 = vld [vmem:[#allocation2 + $0x9a0] sm:$0xff] }
 0x387   :  { %8838 = vmatpush1.bf16.msra.mxu0 %v12543_v18  ;;  %8879 = vmatpush1.bf16.msra.mxu1 %v12545_v29  ;;  %v12383_v32 = vcombine.low %v435_v25, %v475_v26  ;;  %v12304_v43 = vcombine.high %v355_v23, %v395_v55  ;;  %v315_v18 = vld [vmem:[#allocation2 + $0x710] sm:$0xff]  ;;  %v276_v29 = vld [vmem:[#allocation2 + $0x5d8] sm:$0xff] }
 0x388   :  { %v8546_v48 = vpop.f32.mrf.mxu0  ;;  %8839 = vmatprep.subr.bf16.mxu0 %v12464_v20  ;;  %v8587_v51 = vpop.f32.mrf.mxu1  ;;  %8880 = vmatprep.subr.bf16.mxu1 %v12466_v30  ;;  %v12305_v20 = vcombine.low %v356_v4, %v396_v21  ;;  %v12224_v30 = vcombine.high %v275_v9, %v315_v18  ;;  %v235_v25 = vld [vmem:[#allocation2 + $0x490] sm:$0xff]  ;;  %v196_v26 = vld [vmem:[#allocation2 + $0x358] sm:$0xff]  ;;  %v12223_v34 = vcombine.low %v275_v9, %v315_v18 }
 0x389   :  { %v12226_v48 = vcombine.high %v276_v29, %v316_v1  ;;  %v12225_v39 = vcombine.low %v276_v29, %v316_v1  ;;  %v155_v23 = vld [vmem:[#allocation2 + $0x210] sm:$0xff]  ;;  %v156_v55 = vld [vmem:[#allocation2 + $0x218] sm:$0xff] }
 0x38a   :  { %v1355_v9 = vld [vmem:[#allocation2 + $0x2790] sm:$0xff]  ;;  %v1316_v18 = vld [vmem:[#allocation2 + $0x2658] sm:$0xff] }
 0x38b   :  { %8840 = vmatpush1.bf16.msra.mxu0 %v12463_v45  ;;  %8881 = vmatpush1.bf16.msra.mxu1 %v12465_v49  ;;  %v195_v45 = vld [vmem:[#allocation2 + $0x350] sm:$0xff]  ;;  %v236_v49 = vld [vmem:[#allocation2 + $0x498] sm:$0xff] }
 0x38c   :  { %8841 = vmatprep.subr.bf16.mxu0 %v12384_v50  ;;  %8882 = vmatprep.subr.bf16.mxu1 %v12386_v52  ;;  %v12144_v50 = vcombine.high %v195_v45, %v235_v25  ;;  %v12146_v51 = vcombine.high %v196_v26, %v236_v49  ;;  %v115_v52 = vld [vmem:[#allocation2 + $0xd0] sm:$0xff]  ;;  %v12143_v4 = vcombine.low %v195_v45, %v235_v25  ;;  %v1236_v25 = vld [vmem:[#allocation2 + $0x23d8] sm:$0xff] }
 0x38d   :  { %v12145_v21 = vcombine.low %v196_v26, %v236_v49  ;;  %v12063_v29 = vcombine.low %v115_v52, %v155_v23  ;;  %v1275_v45 = vld [vmem:[#allocation2 + $0x2510] sm:$0xff] }
 0x38f   :  { %8842 = vmatpush1.bf16.msra.mxu0 %v12383_v32  ;;  %8883 = vmatpush1.bf16.msra.mxu1 %v12385_v63  ;;  %v116_v63 = vld [vmem:[#allocation2 + $0xd8] sm:$0xff]  ;;  %v12064_v32 = vcombine.high %v115_v52, %v155_v23  ;;  %v1195_v52 = vld [vmem:[#allocation2 + $0x2290] sm:$0xff] }
 0x390   :  { %8843 = vmatprep.subr.bf16.mxu0 %v12304_v43  ;;  %8884 = vmatprep.subr.bf16.mxu1 %v12306_v58  ;;  %v12066_v43 = vcombine.high %v116_v63, %v156_v55  ;;  %v1315_v58 = vld [vmem:[#allocation2 + $0x2650] sm:$0xff]  ;;  %v12065_v1 = vcombine.low %v116_v63, %v156_v55  ;;  %v1156_v23 = vld [vmem:[#allocation2 + $0x2158] sm:$0xff] }
 0x391   :  { %v13263_v26 = vcombine.low %v1315_v58, %v1355_v9 }
 0x393   :  { %8844 = vmatpush1.bf16.msra.mxu0 %v12303_v2  ;;  %8885 = vmatpush1.bf16.msra.mxu1 %v12305_v20  ;;  %v1356_v2 = vld [vmem:[#allocation2 + $0x2798] sm:$0xff]  ;;  %v13264_v20 = vcombine.high %v1315_v58, %v1355_v9  ;;  %v1115_v58 = vld [vmem:[#allocation2 + $0x2010] sm:$0xff] }
 0x394   :  { %8845 = vmatprep.subr.bf16.mxu0 %v12224_v30  ;;  %8886 = vmatprep.subr.bf16.mxu1 %v12226_v48  ;;  %v13266_v30 = vcombine.high %v1316_v18, %v1356_v2  ;;  %v1235_v48 = vld [vmem:[#allocation2 + $0x23d0] sm:$0xff]  ;;  %v13265_v49 = vcombine.low %v1316_v18, %v1356_v2  ;;  %v1076_v9 = vld [vmem:[#allocation2 + $0x1ed8] sm:$0xff] }
 0x395   :  { %v13183_v63 = vcombine.low %v1235_v48, %v1275_v45 }
 0x397   :  { %8846 = vmatpush1.bf16.msra.mxu0 %v12223_v34  ;;  %8887 = vmatpush1.bf16.msra.mxu1 %v12225_v39  ;;  %v1276_v34 = vld [vmem:[#allocation2 + $0x2518] sm:$0xff]  ;;  %v13184_v39 = vcombine.high %v1235_v48, %v1275_v45  ;;  %v1035_v48 = vld [vmem:[#allocation2 + $0x1d90] sm:$0xff] }
 0x398   :  { %8847 = vmatprep.subr.bf16.mxu0 %v12144_v50  ;;  %8888 = vmatprep.subr.bf16.mxu1 %v12146_v51  ;;  %v13186_v50 = vcombine.high %v1236_v25, %v1276_v34  ;;  %v1155_v51 = vld [vmem:[#allocation2 + $0x2150] sm:$0xff]  ;;  %v13185_v55 = vcombine.low %v1236_v25, %v1276_v34  ;;  %v996_v45 = vld [vmem:[#allocation2 + $0x1c58] sm:$0xff] }
 0x399   :  { %v13103_v18 = vcombine.low %v1155_v51, %v1195_v52 }
 0x39b   :  { %8848 = vmatpush1.bf16.msra.mxu0 %v12143_v4  ;;  %8889 = vmatpush1.bf16.msra.mxu1 %v12145_v21  ;;  %v1196_v4 = vld [vmem:[#allocation2 + $0x2298] sm:$0xff]  ;;  %v13104_v21 = vcombine.high %v1155_v51, %v1195_v52  ;;  %v955_v51 = vld [vmem:[#allocation2 + $0x1b10] sm:$0xff] }
 0x39c   :  { %8849 = vmatprep.subr.bf16.mxu0 %v12064_v32  ;;  %8890 = vmatprep.subr.bf16.mxu1 %v12066_v43  ;;  %v13106_v32 = vcombine.high %v1156_v23, %v1196_v4  ;;  %v1075_v43 = vld [vmem:[#allocation2 + $0x1ed0] sm:$0xff]  ;;  %v13105_v2 = vcombine.low %v1156_v23, %v1196_v4  ;;  %v916_v52 = vld [vmem:[#allocation2 + $0x19d8] sm:$0xff] }
 0x39d   :  { %v13023_v25 = vcombine.low %v1075_v43, %v1115_v58 }
 0x39f   :  { %8850 = vmatpush1.bf16.msra.mxu0 %v12063_v29  ;;  %8891 = vmatpush1.bf16.msra.mxu1 %v12065_v1  ;;  %v1116_v29 = vld [vmem:[#allocation2 + $0x2018] sm:$0xff]  ;;  %v13024_v1 = vcombine.high %v1075_v43, %v1115_v58  ;;  %v875_v43 = vld [vmem:[#allocation2 + $0x1890] sm:$0xff] }
 0x3a0   :  { %8851 = vmatprep.subr.bf16.mxu0 %v13264_v20  ;;  %8892 = vmatprep.subr.bf16.mxu1 %v13266_v30  ;;  %v13026_v20 = vcombine.high %v1076_v9, %v1116_v29  ;;  %v995_v30 = vld [vmem:[#allocation2 + $0x1c50] sm:$0xff]  ;;  %v13025_v34 = vcombine.low %v1076_v9, %v1116_v29  ;;  %v836_v58 = vld [vmem:[#allocation2 + $0x1758] sm:$0xff] }
 0x3a1   :  { %v12943_v23 = vcombine.low %v995_v30, %v1035_v48 }
 0x3a3   :  { %8852 = vmatpush2.bf16.msra.mxu0 %v13263_v26  ;;  %8893 = vmatpush2.bf16.msra.mxu1 %v13265_v49  ;;  %v1036_v26 = vld [vmem:[#allocation2 + $0x1d98] sm:$0xff]  ;;  %v12944_v49 = vcombine.high %v995_v30, %v1035_v48  ;;  %v795_v30 = vld [vmem:[#allocation2 + $0x1610] sm:$0xff] }
 0x3a4   :  { %8853 = vmatprep.subr.bf16.mxu0 %v13184_v39  ;;  %8894 = vmatprep.subr.bf16.mxu1 %v13186_v50  ;;  %v12946_v39 = vcombine.high %v996_v45, %v1036_v26  ;;  %v915_v50 = vld [vmem:[#allocation2 + $0x19d0] sm:$0xff]  ;;  %v12945_v4 = vcombine.low %v996_v45, %v1036_v26  ;;  %v756_v48 = vld [vmem:[#allocation2 + $0x14d8] sm:$0xff] }
 0x3a5   :  { %v12863_v9 = vcombine.low %v915_v50, %v955_v51 }
 0x3a7   :  { %8854 = vmatpush2.bf16.msra.mxu0 %v13183_v63  ;;  %8895 = vmatpush2.bf16.msra.mxu1 %v13185_v55  ;;  %v956_v63 = vld [vmem:[#allocation2 + $0x1b18] sm:$0xff]  ;;  %v12864_v55 = vcombine.high %v915_v50, %v955_v51  ;;  %v717_v50 = vld [vmem:[#allocation2 + $0x13a0] sm:$0xff]  ;;  %v678_v51 = vld [vmem:[#allocation2 + $0x1268] sm:$0xff] }
 0x3a8   :  { %8855 = vmatprep.subr.bf16.mxu0 %v13104_v21  ;;  %8896 = vmatprep.subr.bf16.mxu1 %v13106_v32  ;;  %v12866_v21 = vcombine.high %v916_v52, %v956_v63  ;;  %v835_v32 = vld [vmem:[#allocation2 + $0x1750] sm:$0xff]  ;;  %v12865_v29 = vcombine.low %v916_v52, %v956_v63 }
 0x3a9   :  { %v12783_v45 = vcombine.low %v835_v32, %v875_v43 }
 0x3ab   :  { %8856 = vmatpush2.bf16.msra.mxu0 %v13103_v18  ;;  %8897 = vmatpush2.bf16.msra.mxu1 %v13105_v2  ;;  %v876_v18 = vld [vmem:[#allocation2 + $0x1898] sm:$0xff]  ;;  %v12784_v2 = vcombine.high %v835_v32, %v875_v43  ;;  %v637_v32 = vld [vmem:[#allocation2 + $0x1120] sm:$0xff]  ;;  %v598_v43 = vld [vmem:[#allocation2 + $0xfe8] sm:$0xff] }
 0x3ac   :  { %8857 = vmatprep.subr.bf16.mxu0 %v13024_v1  ;;  %8898 = vmatprep.subr.bf16.mxu1 %v13026_v20  ;;  %v12786_v1 = vcombine.high %v836_v58, %v876_v18  ;;  %v755_v20 = vld [vmem:[#allocation2 + $0x14d0] sm:$0xff]  ;;  %v12785_v26 = vcombine.low %v836_v58, %v876_v18 }
 0x3ad   :  { %v12703_v52 = vcombine.low %v755_v20, %v795_v30 }
 0x3af   :  { %8858 = vmatpush2.bf16.msra.mxu0 %v13023_v25  ;;  %8899 = vmatpush2.bf16.msra.mxu1 %v13025_v34  ;;  %v796_v25 = vld [vmem:[#allocation2 + $0x1618] sm:$0xff]  ;;  %v12704_v34 = vcombine.high %v755_v20, %v795_v30  ;;  %v557_v20 = vld [vmem:[#allocation2 + $0xea0] sm:$0xff] }
 0x3b0   :  { %8859 = vmatprep.subr.bf16.mxu0 %v12944_v49  ;;  %8900 = vmatprep.subr.bf16.mxu1 %v12946_v39  ;;  %v12706_v49 = vcombine.high %v756_v48, %v796_v25  ;;  %v677_v39 = vld [vmem:[#allocation2 + $0x1260] sm:$0xff]  ;;  %v12705_v63 = vcombine.low %v756_v48, %v796_v25  ;;  %v518_v48 = vld [vmem:[#allocation2 + $0xd68] sm:$0xff] }
 0x3b1   :  { %v12627_v58 = vcombine.low %v677_v39, %v717_v50  ;;  %v558_v25 = vld [vmem:[#allocation2 + $0xea8] sm:$0xff] }
 0x3b3   :  { %8860 = vmatpush2.bf16.msra.mxu0 %v12943_v23  ;;  %8901 = vmatpush2.bf16.msra.mxu1 %v12945_v4  ;;  %v718_v23 = vld [vmem:[#allocation2 + $0x13a8] sm:$0xff]  ;;  %v12628_v4 = vcombine.high %v677_v39, %v717_v50 }
 0x3b4   :  { %8861 = vmatprep.subr.bf16.mxu0 %v12864_v55  ;;  %8902 = vmatprep.subr.bf16.mxu1 %v12866_v21  ;;  %v12630_v55 = vcombine.high %v678_v51, %v718_v23  ;;  %v597_v21 = vld [vmem:[#allocation2 + $0xfe0] sm:$0xff]  ;;  %v12629_v18 = vcombine.low %v678_v51, %v718_v23  ;;  %v12470_v51 = vcombine.high %v518_v48, %v558_v25 }
 0x3b5   :  { %v437_v23 = vld [vmem:[#allocation2 + $0xae0] sm:$0xff] }
 0x3b7   :  { %8862 = vmatpush2.bf16.msra.mxu0 %v12863_v9  ;;  %8903 = vmatpush2.bf16.msra.mxu1 %v12865_v29  ;;  %v638_v9 = vld [vmem:[#allocation2 + $0x1128] sm:$0xff]  ;;  %v12548_v29 = vcombine.high %v597_v21, %v637_v32 }
 0x3b8   :  { %8863 = vmatprep.subr.bf16.mxu0 %v12784_v2  ;;  %8904 = vmatprep.subr.bf16.mxu1 %v12786_v1  ;;  %v12550_v2 = vcombine.high %v598_v43, %v638_v9  ;;  %v517_v1 = vld [vmem:[#allocation2 + $0xd60] sm:$0xff] }
 0x3b9   :  { %v12468_v39 = vcombine.high %v517_v1, %v557_v20 }
 0x3bb   :  { %8864 = vmatpush2.bf16.msra.mxu0 %v12783_v45  ;;  %8905 = vmatpush2.bf16.msra.mxu1 %v12785_v26  ;;  %v12547_v26 = vcombine.low %v597_v21, %v637_v32  ;;  %v12467_v32 = vcombine.low %v517_v1, %v557_v20  ;;  %v12310_v1 = vcombine.high %v358_v60, %v398_v15  ;;  %v277_v20 = vld [vmem:[#allocation2 + $0x5e0] sm:$0xff] }
 0x3bc   :  { %8865 = vmatprep.subr.bf16.mxu0 %v12704_v34  ;;  %8906 = vmatprep.subr.bf16.mxu1 %v12706_v49  ;;  %v12549_v49 = vcombine.low %v598_v43, %v638_v9  ;;  %v12469_v43 = vcombine.low %v518_v48, %v558_v25  ;;  %v318_v48 = vld [vmem:[#allocation2 + $0x728] sm:$0xff] }
 0x3bf   :  { %8866 = vmatpush2.bf16.msra.mxu0 %v12703_v52  ;;  %8907 = vmatpush2.bf16.msra.mxu1 %v12705_v63  ;;  %v477_v52 = vld [vmem:[#allocation2 + $0xc20] sm:$0xff] }
 0x3c0   :  { %8917 = vmatprep.subr.bf16.mxu0 %v12628_v4  ;;  %8958 = vmatprep.subr.bf16.mxu1 %v12630_v55  ;;  %v438_v4 = vld [vmem:[#allocation2 + $0xae8] sm:$0xff]  ;;  %v12388_v9 = vcombine.high %v437_v23, %v477_v52 }
 0x3c1   :  { %v478_v55 = vld [vmem:[#allocation2 + $0xc28] sm:$0xff] }
 0x3c2   :  { %v14413_v30 = vpop.f32.mrf.mxu0  ;;  %8868 = vmatmul.mubr.bf16.vlgmr.msra.gmra.mxu0 %v14279_v12  ;;  %v14416_v45 = vpop.f32.mrf.mxu1  ;;  %8909 = vmatmul.mubr.bf16.vlgmr.msra.gmra.mxu1 %v14279_v12  ;;  %v12389_v54 = vcombine.low %v438_v4, %v478_v55 }
 0x3c3   :  { %8918 = vmatpush1.bf16.msra.mxu0 %v12627_v58  ;;  %8959 = vmatpush1.bf16.msra.mxu1 %v12629_v18 }
 0x3c4   :  { %v14419_v34 = vpop.f32.mrf.mxu0  ;;  %8919 = vmatprep.subr.bf16.mxu0 %v12548_v29  ;;  %v14421_v50 = vpop.f32.mrf.mxu1  ;;  %8960 = vmatprep.subr.bf16.mxu1 %v12550_v2  ;;  %v12390_v29 = vcombine.high %v438_v4, %v478_v55  ;;  %v357_v2 = vld [vmem:[#allocation2 + $0x860] sm:$0xff] }
 0x3c5   :  { %8949 = vmatprep.mubr.bf16.mxu0 %v14272_v57  ;;  %8990 = vmatprep.mubr.bf16.mxu1 %v14272_v57  ;;  %v12307_v25 = vcombine.low %v357_v2, %v397_v28 }
 0x3c6   :  { %v8627_v63 = vpop.f32.mrf.mxu0  ;;  %v8668_v21 = vpop.f32.mrf.mxu1 }
 0x3c7   :  { %8920 = vmatpush1.bf16.msra.mxu0 %v12547_v26  ;;  %8961 = vmatpush1.bf16.msra.mxu1 %v12549_v49  ;;  %v12387_v63 = vcombine.low %v437_v23, %v477_v52  ;;  %v12308_v21 = vcombine.high %v357_v2, %v397_v28  ;;  %v317_v26 = vld [vmem:[#allocation2 + $0x720] sm:$0xff]  ;;  %v278_v49 = vld [vmem:[#allocation2 + $0x5e8] sm:$0xff] }
 0x3c8   :  { %v8628_v58 = vpop.f32.mrf.mxu0  ;;  %8921 = vmatprep.subr.bf16.mxu0 %v12468_v39  ;;  %v8669_v18 = vpop.f32.mrf.mxu1  ;;  %8962 = vmatprep.subr.bf16.mxu1 %v12470_v51  ;;  %v12309_v39 = vcombine.low %v358_v60, %v398_v15  ;;  %v12228_v51 = vcombine.high %v277_v20, %v317_v26  ;;  %v237_v23 = vld [vmem:[#allocation2 + $0x4a0] sm:$0xff]  ;;  %v198_v52 = vld [vmem:[#allocation2 + $0x368] sm:$0xff]  ;;  %v12227_v4 = vcombine.low %v277_v20, %v317_v26 }
 0x3c9   :  { %v12230_v58 = vcombine.high %v278_v49, %v318_v48  ;;  %v12229_v55 = vcombine.low %v278_v49, %v318_v48  ;;  %v157_v28 = vld [vmem:[#allocation2 + $0x220] sm:$0xff]  ;;  %v158_v2 = vld [vmem:[#allocation2 + $0x228] sm:$0xff] }
 0x3ca   :  { %v1357_v20 = vld [vmem:[#allocation2 + $0x27a0] sm:$0xff]  ;;  %v1318_v26 = vld [vmem:[#allocation2 + $0x2668] sm:$0xff] }
 0x3cb   :  { %8922 = vmatpush1.bf16.msra.mxu0 %v12467_v32  ;;  %8963 = vmatpush1.bf16.msra.mxu1 %v12469_v43  ;;  %v197_v32 = vld [vmem:[#allocation2 + $0x360] sm:$0xff]  ;;  %v238_v43 = vld [vmem:[#allocation2 + $0x4a8] sm:$0xff] }
 0x3cc   :  { %8923 = vmatprep.subr.bf16.mxu0 %v12388_v9  ;;  %8964 = vmatprep.subr.bf16.mxu1 %v12390_v29  ;;  %v12148_v9 = vcombine.high %v197_v32, %v237_v23  ;;  %v12150_v18 = vcombine.high %v198_v52, %v238_v43  ;;  %v117_v29 = vld [vmem:[#allocation2 + $0xe0] sm:$0xff]  ;;  %v12147_v60 = vcombine.low %v197_v32, %v237_v23  ;;  %v1238_v23 = vld [vmem:[#allocation2 + $0x23e8] sm:$0xff] }
 0x3cd   :  { %v12149_v15 = vcombine.low %v198_v52, %v238_v43  ;;  %v12067_v49 = vcombine.low %v117_v29, %v157_v28  ;;  %v1277_v32 = vld [vmem:[#allocation2 + $0x2520] sm:$0xff] }
 0x3cf   :  { %8924 = vmatpush1.bf16.msra.mxu0 %v12387_v63  ;;  %8965 = vmatpush1.bf16.msra.mxu1 %v12389_v54  ;;  %v118_v54 = vld [vmem:[#allocation2 + $0xe8] sm:$0xff]  ;;  %v12068_v63 = vcombine.high %v117_v29, %v157_v28  ;;  %v1197_v29 = vld [vmem:[#allocation2 + $0x22a0] sm:$0xff] }
 0x3d0   :  { %8925 = vmatprep.subr.bf16.mxu0 %v12308_v21  ;;  %8966 = vmatprep.subr.bf16.mxu1 %v12310_v1  ;;  %v12070_v21 = vcombine.high %v118_v54, %v158_v2  ;;  %v1317_v1 = vld [vmem:[#allocation2 + $0x2660] sm:$0xff]  ;;  %v12069_v48 = vcombine.low %v118_v54, %v158_v2  ;;  %v1158_v28 = vld [vmem:[#allocation2 + $0x2168] sm:$0xff] }
 0x3d1   :  { %v13267_v52 = vcombine.low %v1317_v1, %v1357_v20 }
 0x3d3   :  { %8926 = vmatpush1.bf16.msra.mxu0 %v12307_v25  ;;  %8967 = vmatpush1.bf16.msra.mxu1 %v12309_v39  ;;  %v1358_v25 = vld [vmem:[#allocation2 + $0x27a8] sm:$0xff]  ;;  %v13268_v39 = vcombine.high %v1317_v1, %v1357_v20  ;;  %v1117_v1 = vld [vmem:[#allocation2 + $0x2020] sm:$0xff] }
 0x3d4   :  { %8927 = vmatprep.subr.bf16.mxu0 %v12228_v51  ;;  %8968 = vmatprep.subr.bf16.mxu1 %v12230_v58  ;;  %v13270_v51 = vcombine.high %v1318_v26, %v1358_v25  ;;  %v1237_v58 = vld [vmem:[#allocation2 + $0x23e0] sm:$0xff]  ;;  %v13269_v43 = vcombine.low %v1318_v26, %v1358_v25  ;;  %v1078_v20 = vld [vmem:[#allocation2 + $0x1ee8] sm:$0xff] }
 0x3d5   :  { %v13187_v54 = vcombine.low %v1237_v58, %v1277_v32 }
 0x3d7   :  { %8928 = vmatpush1.bf16.msra.mxu0 %v12227_v4  ;;  %8969 = vmatpush1.bf16.msra.mxu1 %v12229_v55  ;;  %v1278_v4 = vld [vmem:[#allocation2 + $0x2528] sm:$0xff]  ;;  %v13188_v55 = vcombine.high %v1237_v58, %v1277_v32  ;;  %v1037_v58 = vld [vmem:[#allocation2 + $0x1da0] sm:$0xff] }
 0x3d8   :  { %8929 = vmatprep.subr.bf16.mxu0 %v12148_v9  ;;  %8970 = vmatprep.subr.bf16.mxu1 %v12150_v18  ;;  %v13190_v9 = vcombine.high %v1238_v23, %v1278_v4  ;;  %v1157_v18 = vld [vmem:[#allocation2 + $0x2160] sm:$0xff]  ;;  %v13189_v2 = vcombine.low %v1238_v23, %v1278_v4  ;;  %v998_v32 = vld [vmem:[#allocation2 + $0x1c68] sm:$0xff] }
 0x3d9   :  { %v13107_v26 = vcombine.low %v1157_v18, %v1197_v29 }
 0x3db   :  { %8930 = vmatpush1.bf16.msra.mxu0 %v12147_v60  ;;  %8971 = vmatpush1.bf16.msra.mxu1 %v12149_v15  ;;  %v1198_v60 = vld [vmem:[#allocation2 + $0x22a8] sm:$0xff]  ;;  %v13108_v15 = vcombine.high %v1157_v18, %v1197_v29  ;;  %v957_v18 = vld [vmem:[#allocation2 + $0x1b20] sm:$0xff] }
 0x3dc   :  { %8931 = vmatprep.subr.bf16.mxu0 %v12068_v63  ;;  %8972 = vmatprep.subr.bf16.mxu1 %v12070_v21  ;;  %v13110_v63 = vcombine.high %v1158_v28, %v1198_v60  ;;  %v1077_v21 = vld [vmem:[#allocation2 + $0x1ee0] sm:$0xff]  ;;  %v13109_v25 = vcombine.low %v1158_v28, %v1198_v60  ;;  %v918_v29 = vld [vmem:[#allocation2 + $0x19e8] sm:$0xff] }
 0x3dd   :  { %v13027_v23 = vcombine.low %v1077_v21, %v1117_v1 }
 0x3df   :  { %8932 = vmatpush1.bf16.msra.mxu0 %v12067_v49  ;;  %8973 = vmatpush1.bf16.msra.mxu1 %v12069_v48  ;;  %v1118_v49 = vld [vmem:[#allocation2 + $0x2028] sm:$0xff]  ;;  %v13028_v48 = vcombine.high %v1077_v21, %v1117_v1  ;;  %v877_v21 = vld [vmem:[#allocation2 + $0x18a0] sm:$0xff] }
 0x3e0   :  { %8933 = vmatprep.subr.bf16.mxu0 %v13268_v39  ;;  %8974 = vmatprep.subr.bf16.mxu1 %v13270_v51  ;;  %v13030_v39 = vcombine.high %v1078_v20, %v1118_v49  ;;  %v997_v51 = vld [vmem:[#allocation2 + $0x1c60] sm:$0xff]  ;;  %v13029_v4 = vcombine.low %v1078_v20, %v1118_v49  ;;  %v838_v1 = vld [vmem:[#allocation2 + $0x1768] sm:$0xff] }
 0x3e1   :  { %v12947_v28 = vcombine.low %v997_v51, %v1037_v58 }
 0x3e3   :  { %8934 = vmatpush2.bf16.msra.mxu0 %v13267_v52  ;;  %8975 = vmatpush2.bf16.msra.mxu1 %v13269_v43  ;;  %v1038_v52 = vld [vmem:[#allocation2 + $0x1da8] sm:$0xff]  ;;  %v12948_v43 = vcombine.high %v997_v51, %v1037_v58  ;;  %v797_v51 = vld [vmem:[#allocation2 + $0x1620] sm:$0xff] }
 0x3e4   :  { %8935 = vmatprep.subr.bf16.mxu0 %v13188_v55  ;;  %8976 = vmatprep.subr.bf16.mxu1 %v13190_v9  ;;  %v12950_v55 = vcombine.high %v998_v32, %v1038_v52  ;;  %v917_v9 = vld [vmem:[#allocation2 + $0x19e0] sm:$0xff]  ;;  %v12949_v60 = vcombine.low %v998_v32, %v1038_v52  ;;  %v758_v58 = vld [vmem:[#allocation2 + $0x14e8] sm:$0xff] }
 0x3e5   :  { %v12867_v20 = vcombine.low %v917_v9, %v957_v18 }
 0x3e7   :  { %8936 = vmatpush2.bf16.msra.mxu0 %v13187_v54  ;;  %8977 = vmatpush2.bf16.msra.mxu1 %v13189_v2  ;;  %v958_v54 = vld [vmem:[#allocation2 + $0x1b28] sm:$0xff]  ;;  %v12868_v2 = vcombine.high %v917_v9, %v957_v18  ;;  %v719_v9 = vld [vmem:[#allocation2 + $0x13b0] sm:$0xff]  ;;  %v680_v18 = vld [vmem:[#allocation2 + $0x1278] sm:$0xff] }
 0x3e8   :  { %8937 = vmatprep.subr.bf16.mxu0 %v13108_v15  ;;  %8978 = vmatprep.subr.bf16.mxu1 %v13110_v63  ;;  %v12870_v15 = vcombine.high %v918_v29, %v958_v54  ;;  %v837_v63 = vld [vmem:[#allocation2 + $0x1760] sm:$0xff]  ;;  %v12869_v49 = vcombine.low %v918_v29, %v958_v54 }
 0x3e9   :  { %v12787_v32 = vcombine.low %v837_v63, %v877_v21 }
 0x3eb   :  { %8938 = vmatpush2.bf16.msra.mxu0 %v13107_v26  ;;  %8979 = vmatpush2.bf16.msra.mxu1 %v13109_v25  ;;  %v878_v26 = vld [vmem:[#allocation2 + $0x18a8] sm:$0xff]  ;;  %v12788_v25 = vcombine.high %v837_v63, %v877_v21  ;;  %v639_v63 = vld [vmem:[#allocation2 + $0x1130] sm:$0xff]  ;;  %v600_v21 = vld [vmem:[#allocation2 + $0xff8] sm:$0xff] }
 0x3ec   :  { %8939 = vmatprep.subr.bf16.mxu0 %v13028_v48  ;;  %8980 = vmatprep.subr.bf16.mxu1 %v13030_v39  ;;  %v12790_v48 = vcombine.high %v838_v1, %v878_v26  ;;  %v757_v39 = vld [vmem:[#allocation2 + $0x14e0] sm:$0xff]  ;;  %v12789_v52 = vcombine.low %v838_v1, %v878_v26 }
 0x3ed   :  { %v12707_v29 = vcombine.low %v757_v39, %v797_v51 }
 0x3ef   :  { %8940 = vmatpush2.bf16.msra.mxu0 %v13027_v23  ;;  %8981 = vmatpush2.bf16.msra.mxu1 %v13029_v4  ;;  %v798_v23 = vld [vmem:[#allocation2 + $0x1628] sm:$0xff]  ;;  %v12708_v4 = vcombine.high %v757_v39, %v797_v51  ;;  %v559_v39 = vld [vmem:[#allocation2 + $0xeb0] sm:$0xff] }
 0x3f0   :  { %8941 = vmatprep.subr.bf16.mxu0 %v12948_v43  ;;  %8982 = vmatprep.subr.bf16.mxu1 %v12950_v55  ;;  %v12710_v43 = vcombine.high %v758_v58, %v798_v23  ;;  %v679_v55 = vld [vmem:[#allocation2 + $0x1270] sm:$0xff]  ;;  %v12709_v54 = vcombine.low %v758_v58, %v798_v23  ;;  %v520_v58 = vld [vmem:[#allocation2 + $0xd78] sm:$0xff] }
 0x3f1   :  { %v12631_v1 = vcombine.low %v679_v55, %v719_v9  ;;  %v560_v23 = vld [vmem:[#allocation2 + $0xeb8] sm:$0xff] }
 0x3f3   :  { %8942 = vmatpush2.bf16.msra.mxu0 %v12947_v28  ;;  %8983 = vmatpush2.bf16.msra.mxu1 %v12949_v60  ;;  %v720_v28 = vld [vmem:[#allocation2 + $0x13b8] sm:$0xff]  ;;  %v12632_v60 = vcombine.high %v679_v55, %v719_v9 }
 0x3f4   :  { %8943 = vmatprep.subr.bf16.mxu0 %v12868_v2  ;;  %8984 = vmatprep.subr.bf16.mxu1 %v12870_v15  ;;  %v12634_v2 = vcombine.high %v680_v18, %v720_v28  ;;  %v599_v15 = vld [vmem:[#allocation2 + $0xff0] sm:$0xff]  ;;  %v12633_v26 = vcombine.low %v680_v18, %v720_v28  ;;  %v12474_v18 = vcombine.high %v520_v58, %v560_v23 }
 0x3f5   :  { %v439_v28 = vld [vmem:[#allocation2 + $0xaf0] sm:$0xff] }
 0x3f7   :  { %8944 = vmatpush2.bf16.msra.mxu0 %v12867_v20  ;;  %8985 = vmatpush2.bf16.msra.mxu1 %v12869_v49  ;;  %v640_v20 = vld [vmem:[#allocation2 + $0x1138] sm:$0xff]  ;;  %v12552_v49 = vcombine.high %v599_v15, %v639_v63 }
 0x3f8   :  { %8945 = vmatprep.subr.bf16.mxu0 %v12788_v25  ;;  %8986 = vmatprep.subr.bf16.mxu1 %v12790_v48  ;;  %v12554_v25 = vcombine.high %v600_v21, %v640_v20  ;;  %v519_v48 = vld [vmem:[#allocation2 + $0xd70] sm:$0xff] }
 0x3f9   :  { %v12472_v55 = vcombine.high %v519_v48, %v559_v39 }
 0x3fb   :  { %8946 = vmatpush2.bf16.msra.mxu0 %v12787_v32  ;;  %8987 = vmatpush2.bf16.msra.mxu1 %v12789_v52  ;;  %v12551_v52 = vcombine.low %v599_v15, %v639_v63  ;;  %v12471_v63 = vcombine.low %v519_v48, %v559_v39  ;;  %v12314_v48 = vcombine.high %v360_v8, %v400_v16  ;;  %v279_v39 = vld [vmem:[#allocation2 + $0x5f0] sm:$0xff] }
 0x3fc   :  { %8947 = vmatprep.subr.bf16.mxu0 %v12708_v4  ;;  %8988 = vmatprep.subr.bf16.mxu1 %v12710_v43  ;;  %v12553_v43 = vcombine.low %v600_v21, %v640_v20  ;;  %v12473_v21 = vcombine.low %v520_v58, %v560_v23  ;;  %v320_v58 = vld [vmem:[#allocation2 + $0x738] sm:$0xff] }
 0x3ff   :  { %8948 = vmatpush2.bf16.msra.mxu0 %v12707_v29  ;;  %8989 = vmatpush2.bf16.msra.mxu1 %v12709_v54  ;;  %v479_v29 = vld [vmem:[#allocation2 + $0xc30] sm:$0xff] }
 0x400   :  { %8999 = vmatprep.subr.bf16.mxu0 %v12632_v60  ;;  %9040 = vmatprep.subr.bf16.mxu1 %v12634_v2  ;;  %v440_v60 = vld [vmem:[#allocation2 + $0xaf8] sm:$0xff]  ;;  %v12392_v20 = vcombine.high %v439_v28, %v479_v29 }
 0x401   :  { %v480_v2 = vld [vmem:[#allocation2 + $0xc38] sm:$0xff] }
 0x402   :  { %v14425_v51 = vpop.f32.mrf.mxu0  ;;  %8950 = vmatmul.mubr.bf16.vlgmr.msra.gmra.mxu0 %v14279_v12  ;;  %v14428_v32 = vpop.f32.mrf.mxu1  ;;  %8991 = vmatmul.mubr.bf16.vlgmr.msra.gmra.mxu1 %v14279_v12  ;;  %v12393_v5 = vcombine.low %v440_v60, %v480_v2 }
 0x403   :  { %9000 = vmatpush1.bf16.msra.mxu0 %v12631_v1  ;;  %9041 = vmatpush1.bf16.msra.mxu1 %v12633_v26 }
 0x404   :  { %v14431_v4 = vpop.f32.mrf.mxu0  ;;  %9001 = vmatprep.subr.bf16.mxu0 %v12552_v49  ;;  %v14433_v9 = vpop.f32.mrf.mxu1  ;;  %9042 = vmatprep.subr.bf16.mxu1 %v12554_v25  ;;  %v12394_v49 = vcombine.high %v440_v60, %v480_v2  ;;  %v359_v25 = vld [vmem:[#allocation2 + $0x870] sm:$0xff] }
 0x405   :  { %9031 = vmatprep.mubr.bf16.mxu0 %v14272_v57  ;;  %9072 = vmatprep.mubr.bf16.mxu1 %v14272_v57  ;;  %v12311_v23 = vcombine.low %v359_v25, %v399_v13 }
 0x406   :  { %v8709_v54 = vpop.f32.mrf.mxu0  ;;  %v8750_v15 = vpop.f32.mrf.mxu1 }
 0x407   :  { %9002 = vmatpush1.bf16.msra.mxu0 %v12551_v52  ;;  %9043 = vmatpush1.bf16.msra.mxu1 %v12553_v43  ;;  %v12391_v54 = vcombine.low %v439_v28, %v479_v29  ;;  %v12312_v15 = vcombine.high %v359_v25, %v399_v13  ;;  %v319_v52 = vld [vmem:[#allocation2 + $0x730] sm:$0xff]  ;;  %v280_v43 = vld [vmem:[#allocation2 + $0x5f8] sm:$0xff] }
 0x408   :  { %v8710_v1 = vpop.f32.mrf.mxu0  ;;  %9003 = vmatprep.subr.bf16.mxu0 %v12472_v55  ;;  %v8751_v26 = vpop.f32.mrf.mxu1  ;;  %9044 = vmatprep.subr.bf16.mxu1 %v12474_v18  ;;  %v12313_v55 = vcombine.low %v360_v8, %v400_v16  ;;  %v12232_v18 = vcombine.high %v279_v39, %v319_v52  ;;  %v239_v28 = vld [vmem:[#allocation2 + $0x4b0] sm:$0xff]  ;;  %v200_v29 = vld [vmem:[#allocation2 + $0x378] sm:$0xff]  ;;  %v12231_v60 = vcombine.low %v279_v39, %v319_v52 }
 0x409   :  { %v12234_v1 = vcombine.high %v280_v43, %v320_v58  ;;  %v12233_v2 = vcombine.low %v280_v43, %v320_v58  ;;  %v159_v13 = vld [vmem:[#allocation2 + $0x230] sm:$0xff]  ;;  %v160_v25 = vld [vmem:[#allocation2 + $0x238] sm:$0xff] }
 0x40a   :  { %v1359_v39 = vld [vmem:[#allocation2 + $0x27b0] sm:$0xff]  ;;  %v1320_v52 = vld [vmem:[#allocation2 + $0x2678] sm:$0xff] }
 0x40b   :  { %9004 = vmatpush1.bf16.msra.mxu0 %v12471_v63  ;;  %9045 = vmatpush1.bf16.msra.mxu1 %v12473_v21  ;;  %v199_v63 = vld [vmem:[#allocation2 + $0x370] sm:$0xff]  ;;  %v240_v21 = vld [vmem:[#allocation2 + $0x4b8] sm:$0xff] }
 0x40c   :  { %9005 = vmatprep.subr.bf16.mxu0 %v12392_v20  ;;  %9046 = vmatprep.subr.bf16.mxu1 %v12394_v49  ;;  %v12152_v20 = vcombine.high %v199_v63, %v239_v28  ;;  %v12154_v26 = vcombine.high %v200_v29, %v240_v21  ;;  %v119_v49 = vld [vmem:[#allocation2 + $0xf0] sm:$0xff]  ;;  %v12151_v8 = vcombine.low %v199_v63, %v239_v28  ;;  %v1240_v28 = vld [vmem:[#allocation2 + $0x23f8] sm:$0xff] }
 0x40d   :  { %v12153_v16 = vcombine.low %v200_v29, %v240_v21  ;;  %v12071_v43 = vcombine.low %v119_v49, %v159_v13  ;;  %v1279_v63 = vld [vmem:[#allocation2 + $0x2530] sm:$0xff] }
 0x40f   :  { %9006 = vmatpush1.bf16.msra.mxu0 %v12391_v54  ;;  %9047 = vmatpush1.bf16.msra.mxu1 %v12393_v5  ;;  %v120_v5 = vld [vmem:[#allocation2 + $0xf8] sm:$0xff]  ;;  %v12072_v54 = vcombine.high %v119_v49, %v159_v13  ;;  %v1199_v49 = vld [vmem:[#allocation2 + $0x22b0] sm:$0xff] }
 0x410   :  { %9007 = vmatprep.subr.bf16.mxu0 %v12312_v15  ;;  %9048 = vmatprep.subr.bf16.mxu1 %v12314_v48  ;;  %v12074_v15 = vcombine.high %v120_v5, %v160_v25  ;;  %v1319_v48 = vld [vmem:[#allocation2 + $0x2670] sm:$0xff]  ;;  %v12073_v58 = vcombine.low %v120_v5, %v160_v25  ;;  %v1160_v13 = vld [vmem:[#allocation2 + $0x2178] sm:$0xff] }
 0x411   :  { %v13271_v29 = vcombine.low %v1319_v48, %v1359_v39 }
 0x413   :  { %9008 = vmatpush1.bf16.msra.mxu0 %v12311_v23  ;;  %9049 = vmatpush1.bf16.msra.mxu1 %v12313_v55  ;;  %v1360_v23 = vld [vmem:[#allocation2 + $0x27b8] sm:$0xff]  ;;  %v13272_v55 = vcombine.high %v1319_v48, %v1359_v39  ;;  %v1119_v48 = vld [vmem:[#allocation2 + $0x2030] sm:$0xff] }
 0x414   :  { %9009 = vmatprep.subr.bf16.mxu0 %v12232_v18  ;;  %9050 = vmatprep.subr.bf16.mxu1 %v12234_v1  ;;  %v13274_v18 = vcombine.high %v1320_v52, %v1360_v23  ;;  %v1239_v1 = vld [vmem:[#allocation2 + $0x23f0] sm:$0xff]  ;;  %v13273_v21 = vcombine.low %v1320_v52, %v1360_v23  ;;  %v1080_v39 = vld [vmem:[#allocation2 + $0x1ef8] sm:$0xff] }
 0x415   :  { %v13191_v5 = vcombine.low %v1239_v1, %v1279_v63 }
 0x417   :  { %9010 = vmatpush1.bf16.msra.mxu0 %v12231_v60  ;;  %9051 = vmatpush1.bf16.msra.mxu1 %v12233_v2  ;;  %v1280_v60 = vld [vmem:[#allocation2 + $0x2538] sm:$0xff]  ;;  %v13192_v2 = vcombine.high %v1239_v1, %v1279_v63  ;;  %v1039_v1 = vld [vmem:[#allocation2 + $0x1db0] sm:$0xff] }
 0x418   :  { %9011 = vmatprep.subr.bf16.mxu0 %v12152_v20  ;;  %9052 = vmatprep.subr.bf16.mxu1 %v12154_v26  ;;  %v13194_v20 = vcombine.high %v1240_v28, %v1280_v60  ;;  %v1159_v26 = vld [vmem:[#allocation2 + $0x2170] sm:$0xff]  ;;  %v13193_v25 = vcombine.low %v1240_v28, %v1280_v60  ;;  %v1000_v63 = vld [vmem:[#allocation2 + $0x1c78] sm:$0xff] }
 0x419   :  { %v13111_v52 = vcombine.low %v1159_v26, %v1199_v49 }
 0x41b   :  { %9012 = vmatpush1.bf16.msra.mxu0 %v12151_v8  ;;  %9053 = vmatpush1.bf16.msra.mxu1 %v12153_v16  ;;  %v1200_v8 = vld [vmem:[#allocation2 + $0x22b8] sm:$0xff]  ;;  %v13112_v16 = vcombine.high %v1159_v26, %v1199_v49  ;;  %v959_v26 = vld [vmem:[#allocation2 + $0x1b30] sm:$0xff] }
 0x41c   :  { %9013 = vmatprep.subr.bf16.mxu0 %v12072_v54  ;;  %9054 = vmatprep.subr.bf16.mxu1 %v12074_v15  ;;  %v13114_v54 = vcombine.high %v1160_v13, %v1200_v8  ;;  %v1079_v15 = vld [vmem:[#allocation2 + $0x1ef0] sm:$0xff]  ;;  %v13113_v23 = vcombine.low %v1160_v13, %v1200_v8  ;;  %v920_v49 = vld [vmem:[#allocation2 + $0x19f8] sm:$0xff] }
 0x41d   :  { %v13031_v28 = vcombine.low %v1079_v15, %v1119_v48 }
 0x41f   :  { %9014 = vmatpush1.bf16.msra.mxu0 %v12071_v43  ;;  %9055 = vmatpush1.bf16.msra.mxu1 %v12073_v58  ;;  %v1120_v43 = vld [vmem:[#allocation2 + $0x2038] sm:$0xff]  ;;  %v13032_v58 = vcombine.high %v1079_v15, %v1119_v48  ;;  %v879_v15 = vld [vmem:[#allocation2 + $0x18b0] sm:$0xff] }
 0x420   :  { %9015 = vmatprep.subr.bf16.mxu0 %v13272_v55  ;;  %9056 = vmatprep.subr.bf16.mxu1 %v13274_v18  ;;  %v13034_v55 = vcombine.high %v1080_v39, %v1120_v43  ;;  %v999_v18 = vld [vmem:[#allocation2 + $0x1c70] sm:$0xff]  ;;  %v13033_v60 = vcombine.low %v1080_v39, %v1120_v43  ;;  %v840_v48 = vld [vmem:[#allocation2 + $0x1778] sm:$0xff] }
 0x421   :  { %v12951_v13 = vcombine.low %v999_v18, %v1039_v1 }
 0x423   :  { %9016 = vmatpush2.bf16.msra.mxu0 %v13271_v29  ;;  %9057 = vmatpush2.bf16.msra.mxu1 %v13273_v21  ;;  %v1040_v29 = vld [vmem:[#allocation2 + $0x1db8] sm:$0xff]  ;;  %v12952_v21 = vcombine.high %v999_v18, %v1039_v1  ;;  %v799_v18 = vld [vmem:[#allocation2 + $0x1630] sm:$0xff] }
 0x424   :  { %9017 = vmatprep.subr.bf16.mxu0 %v13192_v2  ;;  %9058 = vmatprep.subr.bf16.mxu1 %v13194_v20  ;;  %v12954_v2 = vcombine.high %v1000_v63, %v1040_v29  ;;  %v919_v20 = vld [vmem:[#allocation2 + $0x19f0] sm:$0xff]  ;;  %v12953_v8 = vcombine.low %v1000_v63, %v1040_v29  ;;  %v760_v1 = vld [vmem:[#allocation2 + $0x14f8] sm:$0xff] }
 0x425   :  { %v12871_v39 = vcombine.low %v919_v20, %v959_v26 }
 0x427   :  { %9018 = vmatpush2.bf16.msra.mxu0 %v13191_v5  ;;  %9059 = vmatpush2.bf16.msra.mxu1 %v13193_v25  ;;  %v960_v5 = vld [vmem:[#allocation2 + $0x1b38] sm:$0xff]  ;;  %v12872_v25 = vcombine.high %v919_v20, %v959_v26  ;;  %v721_v20 = vld [vmem:[#allocation2 + $0x13c0] sm:$0xff]  ;;  %v682_v26 = vld [vmem:[#allocation2 + $0x1288] sm:$0xff] }
 0x428   :  { %9019 = vmatprep.subr.bf16.mxu0 %v13112_v16  ;;  %9060 = vmatprep.subr.bf16.mxu1 %v13114_v54  ;;  %v12874_v16 = vcombine.high %v920_v49, %v960_v5  ;;  %v839_v54 = vld [vmem:[#allocation2 + $0x1770] sm:$0xff]  ;;  %v12873_v43 = vcombine.low %v920_v49, %v960_v5 }
 0x429   :  { %v12791_v63 = vcombine.low %v839_v54, %v879_v15 }
 0x42b   :  { %9020 = vmatpush2.bf16.msra.mxu0 %v13111_v52  ;;  %9061 = vmatpush2.bf16.msra.mxu1 %v13113_v23  ;;  %v880_v52 = vld [vmem:[#allocation2 + $0x18b8] sm:$0xff]  ;;  %v12792_v23 = vcombine.high %v839_v54, %v879_v15  ;;  %v641_v54 = vld [vmem:[#allocation2 + $0x1140] sm:$0xff]  ;;  %v602_v15 = vld [vmem:[#allocation2 + $0x1008] sm:$0xff] }
 0x42c   :  { %9021 = vmatprep.subr.bf16.mxu0 %v13032_v58  ;;  %9062 = vmatprep.subr.bf16.mxu1 %v13034_v55  ;;  %v12794_v58 = vcombine.high %v840_v48, %v880_v52  ;;  %v759_v55 = vld [vmem:[#allocation2 + $0x14f0] sm:$0xff]  ;;  %v12793_v29 = vcombine.low %v840_v48, %v880_v52 }
 0x42d   :  { %v12711_v49 = vcombine.low %v759_v55, %v799_v18 }
 0x42f   :  { %9022 = vmatpush2.bf16.msra.mxu0 %v13031_v28  ;;  %9063 = vmatpush2.bf16.msra.mxu1 %v13033_v60  ;;  %v800_v28 = vld [vmem:[#allocation2 + $0x1638] sm:$0xff]  ;;  %v12712_v60 = vcombine.high %v759_v55, %v799_v18  ;;  %v561_v55 = vld [vmem:[#allocation2 + $0xec0] sm:$0xff] }
 0x430   :  { %9023 = vmatprep.subr.bf16.mxu0 %v12952_v21  ;;  %9064 = vmatprep.subr.bf16.mxu1 %v12954_v2  ;;  %v12714_v21 = vcombine.high %v760_v1, %v800_v28  ;;  %v681_v2 = vld [vmem:[#allocation2 + $0x1280] sm:$0xff]  ;;  %v12713_v5 = vcombine.low %v760_v1, %v800_v28  ;;  %v522_v1 = vld [vmem:[#allocation2 + $0xd88] sm:$0xff] }
 0x431   :  { %v12635_v48 = vcombine.low %v681_v2, %v721_v20  ;;  %v562_v28 = vld [vmem:[#allocation2 + $0xec8] sm:$0xff] }
 0x433   :  { %9024 = vmatpush2.bf16.msra.mxu0 %v12951_v13  ;;  %9065 = vmatpush2.bf16.msra.mxu1 %v12953_v8  ;;  %v722_v13 = vld [vmem:[#allocation2 + $0x13c8] sm:$0xff]  ;;  %v12636_v8 = vcombine.high %v681_v2, %v721_v20 }
 0x434   :  { %9025 = vmatprep.subr.bf16.mxu0 %v12872_v25  ;;  %9066 = vmatprep.subr.bf16.mxu1 %v12874_v16  ;;  %v12638_v25 = vcombine.high %v682_v26, %v722_v13  ;;  %v601_v16 = vld [vmem:[#allocation2 + $0x1000] sm:$0xff]  ;;  %v12637_v52 = vcombine.low %v682_v26, %v722_v13  ;;  %v12478_v26 = vcombine.high %v522_v1, %v562_v28 }
 0x435   :  { %v441_v13 = vld [vmem:[#allocation2 + $0xb00] sm:$0xff] }
 0x437   :  { %9026 = vmatpush2.bf16.msra.mxu0 %v12871_v39  ;;  %9067 = vmatpush2.bf16.msra.mxu1 %v12873_v43  ;;  %v642_v39 = vld [vmem:[#allocation2 + $0x1148] sm:$0xff]  ;;  %v12556_v43 = vcombine.high %v601_v16, %v641_v54 }
 0x438   :  { %9027 = vmatprep.subr.bf16.mxu0 %v12792_v23  ;;  %9068 = vmatprep.subr.bf16.mxu1 %v12794_v58  ;;  %v12558_v23 = vcombine.high %v602_v15, %v642_v39  ;;  %v521_v58 = vld [vmem:[#allocation2 + $0xd80] sm:$0xff] }
 0x439   :  { %v12476_v2 = vcombine.high %v521_v58, %v561_v55 }
 0x43b   :  { %9028 = vmatpush2.bf16.msra.mxu0 %v12791_v63  ;;  %9069 = vmatpush2.bf16.msra.mxu1 %v12793_v29  ;;  %v12555_v29 = vcombine.low %v601_v16, %v641_v54  ;;  %v12475_v54 = vcombine.low %v521_v58, %v561_v55  ;;  %v12318_v58 = vcombine.high %v362_v3, %v402_v6  ;;  %v281_v55 = vld [vmem:[#allocation2 + $0x600] sm:$0xff] }
 0x43c   :  { %9029 = vmatprep.subr.bf16.mxu0 %v12712_v60  ;;  %9070 = vmatprep.subr.bf16.mxu1 %v12714_v21  ;;  %v12557_v21 = vcombine.low %v602_v15, %v642_v39  ;;  %v12477_v15 = vcombine.low %v522_v1, %v562_v28  ;;  %v322_v1 = vld [vmem:[#allocation2 + $0x748] sm:$0xff] }
 0x43f   :  { %9030 = vmatpush2.bf16.msra.mxu0 %v12711_v49  ;;  %9071 = vmatpush2.bf16.msra.mxu1 %v12713_v5  ;;  %v481_v49 = vld [vmem:[#allocation2 + $0xc40] sm:$0xff] }
 0x440   :  { %9081 = vmatprep.subr.bf16.mxu0 %v12636_v8  ;;  %9122 = vmatprep.subr.bf16.mxu1 %v12638_v25  ;;  %v442_v8 = vld [vmem:[#allocation2 + $0xb08] sm:$0xff]  ;;  %v12396_v39 = vcombine.high %v441_v13, %v481_v49 }
 0x441   :  { %v482_v25 = vld [vmem:[#allocation2 + $0xc48] sm:$0xff] }
 0x442   :  { %v14437_v18 = vpop.f32.mrf.mxu0  ;;  %9032 = vmatmul.mubr.bf16.vlgmr.msra.gmra.mxu0 %v14279_v12  ;;  %v14440_v63 = vpop.f32.mrf.mxu1  ;;  %9073 = vmatmul.mubr.bf16.vlgmr.msra.gmra.mxu1 %v14279_v12  ;;  %v12397_v0 = vcombine.low %v442_v8, %v482_v25 }
 0x443   :  { %9082 = vmatpush1.bf16.msra.mxu0 %v12635_v48  ;;  %9123 = vmatpush1.bf16.msra.mxu1 %v12637_v52 }
 0x444   :  { %v14443_v60 = vpop.f32.mrf.mxu0  ;;  %9083 = vmatprep.subr.bf16.mxu0 %v12556_v43  ;;  %v14445_v20 = vpop.f32.mrf.mxu1  ;;  %9124 = vmatprep.subr.bf16.mxu1 %v12558_v23  ;;  %v12398_v43 = vcombine.high %v442_v8, %v482_v25  ;;  %v361_v23 = vld [vmem:[#allocation2 + $0x880] sm:$0xff] }
 0x445   :  { %9113 = vmatprep.mubr.bf16.mxu0 %v14272_v57  ;;  %9154 = vmatprep.mubr.bf16.mxu1 %v14272_v57  ;;  %v12315_v28 = vcombine.low %v361_v23, %v401_v10 }
 0x446   :  { %v8791_v5 = vpop.f32.mrf.mxu0  ;;  %v8832_v16 = vpop.f32.mrf.mxu1 }
 0x447   :  { %9084 = vmatpush1.bf16.msra.mxu0 %v12555_v29  ;;  %9125 = vmatpush1.bf16.msra.mxu1 %v12557_v21  ;;  %v12395_v5 = vcombine.low %v441_v13, %v481_v49  ;;  %v12316_v16 = vcombine.high %v361_v23, %v401_v10  ;;  %v321_v29 = vld [vmem:[#allocation2 + $0x740] sm:$0xff]  ;;  %v282_v21 = vld [vmem:[#allocation2 + $0x608] sm:$0xff] }
 0x448   :  { %v8792_v48 = vpop.f32.mrf.mxu0  ;;  %9085 = vmatprep.subr.bf16.mxu0 %v12476_v2  ;;  %v8833_v52 = vpop.f32.mrf.mxu1  ;;  %9126 = vmatprep.subr.bf16.mxu1 %v12478_v26  ;;  %v12317_v2 = vcombine.low %v362_v3, %v402_v6  ;;  %v12236_v26 = vcombine.high %v281_v55, %v321_v29  ;;  %v241_v13 = vld [vmem:[#allocation2 + $0x4c0] sm:$0xff]  ;;  %v202_v49 = vld [vmem:[#allocation2 + $0x388] sm:$0xff]  ;;  %v12235_v8 = vcombine.low %v281_v55, %v321_v29 }
 0x449   :  { %v12238_v48 = vcombine.high %v282_v21, %v322_v1  ;;  %v12237_v25 = vcombine.low %v282_v21, %v322_v1  ;;  %v161_v10 = vld [vmem:[#allocation2 + $0x240] sm:$0xff]  ;;  %v162_v23 = vld [vmem:[#allocation2 + $0x248] sm:$0xff] }
 0x44a   :  { %v1361_v55 = vld [vmem:[#allocation2 + $0x27c0] sm:$0xff]  ;;  %v1322_v29 = vld [vmem:[#allocation2 + $0x2688] sm:$0xff] }
 0x44b   :  { %9086 = vmatpush1.bf16.msra.mxu0 %v12475_v54  ;;  %9127 = vmatpush1.bf16.msra.mxu1 %v12477_v15  ;;  %v201_v54 = vld [vmem:[#allocation2 + $0x380] sm:$0xff]  ;;  %v242_v15 = vld [vmem:[#allocation2 + $0x4c8] sm:$0xff] }
 0x44c   :  { %9087 = vmatprep.subr.bf16.mxu0 %v12396_v39  ;;  %9128 = vmatprep.subr.bf16.mxu1 %v12398_v43  ;;  %v12156_v39 = vcombine.high %v201_v54, %v241_v13  ;;  %v12158_v52 = vcombine.high %v202_v49, %v242_v15  ;;  %v121_v43 = vld [vmem:[#allocation2 + $0x100] sm:$0xff]  ;;  %v12155_v3 = vcombine.low %v201_v54, %v241_v13  ;;  %v1242_v13 = vld [vmem:[#allocation2 + $0x2408] sm:$0xff] }
 0x44d   :  { %v12157_v6 = vcombine.low %v202_v49, %v242_v15  ;;  %v12075_v21 = vcombine.low %v121_v43, %v161_v10  ;;  %v1281_v54 = vld [vmem:[#allocation2 + $0x2540] sm:$0xff] }
 0x44f   :  { %9088 = vmatpush1.bf16.msra.mxu0 %v12395_v5  ;;  %9129 = vmatpush1.bf16.msra.mxu1 %v12397_v0  ;;  %v122_v0 = vld [vmem:[#allocation2 + $0x108] sm:$0xff]  ;;  %v12076_v5 = vcombine.high %v121_v43, %v161_v10  ;;  %v1201_v43 = vld [vmem:[#allocation2 + $0x22c0] sm:$0xff] }
 0x450   :  { %9089 = vmatprep.subr.bf16.mxu0 %v12316_v16  ;;  %9130 = vmatprep.subr.bf16.mxu1 %v12318_v58  ;;  %v12078_v16 = vcombine.high %v122_v0, %v162_v23  ;;  %v1321_v58 = vld [vmem:[#allocation2 + $0x2680] sm:$0xff]  ;;  %v12077_v1 = vcombine.low %v122_v0, %v162_v23  ;;  %v1162_v10 = vld [vmem:[#allocation2 + $0x2188] sm:$0xff] }
 0x451   :  { %v13275_v49 = vcombine.low %v1321_v58, %v1361_v55 }
 0x453   :  { %9090 = vmatpush1.bf16.msra.mxu0 %v12315_v28  ;;  %9131 = vmatpush1.bf16.msra.mxu1 %v12317_v2  ;;  %v1362_v28 = vld [vmem:[#allocation2 + $0x27c8] sm:$0xff]  ;;  %v13276_v2 = vcombine.high %v1321_v58, %v1361_v55  ;;  %v1121_v58 = vld [vmem:[#allocation2 + $0x2040] sm:$0xff] }
 0x454   :  { %9091 = vmatprep.subr.bf16.mxu0 %v12236_v26  ;;  %9132 = vmatprep.subr.bf16.mxu1 %v12238_v48  ;;  %v13278_v26 = vcombine.high %v1322_v29, %v1362_v28  ;;  %v1241_v48 = vld [vmem:[#allocation2 + $0x2400] sm:$0xff]  ;;  %v13277_v15 = vcombine.low %v1322_v29, %v1362_v28  ;;  %v1082_v55 = vld [vmem:[#allocation2 + $0x1f08] sm:$0xff] }
 0x455   :  { %v13195_v0 = vcombine.low %v1241_v48, %v1281_v54 }
 0x457   :  { %9092 = vmatpush1.bf16.msra.mxu0 %v12235_v8  ;;  %9133 = vmatpush1.bf16.msra.mxu1 %v12237_v25  ;;  %v1282_v8 = vld [vmem:[#allocation2 + $0x2548] sm:$0xff]  ;;  %v13196_v25 = vcombine.high %v1241_v48, %v1281_v54  ;;  %v1041_v48 = vld [vmem:[#allocation2 + $0x1dc0] sm:$0xff] }
 0x458   :  { %9093 = vmatprep.subr.bf16.mxu0 %v12156_v39  ;;  %9134 = vmatprep.subr.bf16.mxu1 %v12158_v52  ;;  %v13198_v39 = vcombine.high %v1242_v13, %v1282_v8  ;;  %v1161_v52 = vld [vmem:[#allocation2 + $0x2180] sm:$0xff]  ;;  %v13197_v23 = vcombine.low %v1242_v13, %v1282_v8  ;;  %v1002_v54 = vld [vmem:[#allocation2 + $0x1c88] sm:$0xff] }
 0x459   :  { %v13115_v29 = vcombine.low %v1161_v52, %v1201_v43 }
 0x45b   :  { %9094 = vmatpush1.bf16.msra.mxu0 %v12155_v3  ;;  %9135 = vmatpush1.bf16.msra.mxu1 %v12157_v6  ;;  %v1202_v3 = vld [vmem:[#allocation2 + $0x22c8] sm:$0xff]  ;;  %v13116_v6 = vcombine.high %v1161_v52, %v1201_v43  ;;  %v961_v52 = vld [vmem:[#allocation2 + $0x1b40] sm:$0xff] }
 0x45c   :  { %9095 = vmatprep.subr.bf16.mxu0 %v12076_v5  ;;  %9136 = vmatprep.subr.bf16.mxu1 %v12078_v16  ;;  %v13118_v5 = vcombine.high %v1162_v10, %v1202_v3  ;;  %v1081_v16 = vld [vmem:[#allocation2 + $0x1f00] sm:$0xff]  ;;  %v13117_v28 = vcombine.low %v1162_v10, %v1202_v3  ;;  %v922_v43 = vld [vmem:[#allocation2 + $0x1a08] sm:$0xff] }
 0x45d   :  { %v13035_v13 = vcombine.low %v1081_v16, %v1121_v58 }
 0x45f   :  { %9096 = vmatpush1.bf16.msra.mxu0 %v12075_v21  ;;  %9137 = vmatpush1.bf16.msra.mxu1 %v12077_v1  ;;  %v1122_v21 = vld [vmem:[#allocation2 + $0x2048] sm:$0xff]  ;;  %v13036_v1 = vcombine.high %v1081_v16, %v1121_v58  ;;  %v881_v16 = vld [vmem:[#allocation2 + $0x18c0] sm:$0xff] }
 0x460   :  { %9097 = vmatprep.subr.bf16.mxu0 %v13276_v2  ;;  %9138 = vmatprep.subr.bf16.mxu1 %v13278_v26  ;;  %v13038_v2 = vcombine.high %v1082_v55, %v1122_v21  ;;  %v1001_v26 = vld [vmem:[#allocation2 + $0x1c80] sm:$0xff]  ;;  %v13037_v8 = vcombine.low %v1082_v55, %v1122_v21  ;;  %v842_v58 = vld [vmem:[#allocation2 + $0x1788] sm:$0xff] }
 0x461   :  { %v12955_v10 = vcombine.low %v1001_v26, %v1041_v48 }
 0x463   :  { %9098 = vmatpush2.bf16.msra.mxu0 %v13275_v49  ;;  %9139 = vmatpush2.bf16.msra.mxu1 %v13277_v15  ;;  %v1042_v49 = vld [vmem:[#allocation2 + $0x1dc8] sm:$0xff]  ;;  %v12956_v15 = vcombine.high %v1001_v26, %v1041_v48  ;;  %v801_v26 = vld [vmem:[#allocation2 + $0x1640] sm:$0xff] }
 0x464   :  { %9099 = vmatprep.subr.bf16.mxu0 %v13196_v25  ;;  %9140 = vmatprep.subr.bf16.mxu1 %v13198_v39  ;;  %v12958_v25 = vcombine.high %v1002_v54, %v1042_v49  ;;  %v921_v39 = vld [vmem:[#allocation2 + $0x1a00] sm:$0xff]  ;;  %v12957_v3 = vcombine.low %v1002_v54, %v1042_v49  ;;  %v762_v48 = vld [vmem:[#allocation2 + $0x1508] sm:$0xff] }
 0x465   :  { %v12875_v55 = vcombine.low %v921_v39, %v961_v52 }
 0x467   :  { %9100 = vmatpush2.bf16.msra.mxu0 %v13195_v0  ;;  %9141 = vmatpush2.bf16.msra.mxu1 %v13197_v23  ;;  %v962_v0 = vld [vmem:[#allocation2 + $0x1b48] sm:$0xff]  ;;  %v12876_v23 = vcombine.high %v921_v39, %v961_v52  ;;  %v723_v39 = vld [vmem:[#allocation2 + $0x13d0] sm:$0xff]  ;;  %v684_v52 = vld [vmem:[#allocation2 + $0x1298] sm:$0xff] }
 0x468   :  { %9101 = vmatprep.subr.bf16.mxu0 %v13116_v6  ;;  %9142 = vmatprep.subr.bf16.mxu1 %v13118_v5  ;;  %v12878_v6 = vcombine.high %v922_v43, %v962_v0  ;;  %v841_v5 = vld [vmem:[#allocation2 + $0x1780] sm:$0xff]  ;;  %v12877_v21 = vcombine.low %v922_v43, %v962_v0 }
 0x469   :  { %v12795_v54 = vcombine.low %v841_v5, %v881_v16 }
 0x46b   :  { %9102 = vmatpush2.bf16.msra.mxu0 %v13115_v29  ;;  %9143 = vmatpush2.bf16.msra.mxu1 %v13117_v28  ;;  %v882_v29 = vld [vmem:[#allocation2 + $0x18c8] sm:$0xff]  ;;  %v12796_v28 = vcombine.high %v841_v5, %v881_v16  ;;  %v643_v5 = vld [vmem:[#allocation2 + $0x1150] sm:$0xff]  ;;  %v604_v16 = vld [vmem:[#allocation2 + $0x1018] sm:$0xff] }
 0x46c   :  { %9103 = vmatprep.subr.bf16.mxu0 %v13036_v1  ;;  %9144 = vmatprep.subr.bf16.mxu1 %v13038_v2  ;;  %v12798_v1 = vcombine.high %v842_v58, %v882_v29  ;;  %v761_v2 = vld [vmem:[#allocation2 + $0x1500] sm:$0xff]  ;;  %v12797_v49 = vcombine.low %v842_v58, %v882_v29 }
 0x46d   :  { %v12715_v43 = vcombine.low %v761_v2, %v801_v26 }
 0x46f   :  { %9104 = vmatpush2.bf16.msra.mxu0 %v13035_v13  ;;  %9145 = vmatpush2.bf16.msra.mxu1 %v13037_v8  ;;  %v802_v13 = vld [vmem:[#allocation2 + $0x1648] sm:$0xff]  ;;  %v12716_v8 = vcombine.high %v761_v2, %v801_v26  ;;  %v563_v2 = vld [vmem:[#allocation2 + $0xed0] sm:$0xff] }
 0x470   :  { %9105 = vmatprep.subr.bf16.mxu0 %v12956_v15  ;;  %9146 = vmatprep.subr.bf16.mxu1 %v12958_v25  ;;  %v12718_v15 = vcombine.high %v762_v48, %v802_v13  ;;  %v683_v25 = vld [vmem:[#allocation2 + $0x1290] sm:$0xff]  ;;  %v12717_v0 = vcombine.low %v762_v48, %v802_v13  ;;  %v524_v48 = vld [vmem:[#allocation2 + $0xd98] sm:$0xff] }
 0x471   :  { %v12639_v58 = vcombine.low %v683_v25, %v723_v39  ;;  %v564_v13 = vld [vmem:[#allocation2 + $0xed8] sm:$0xff] }
 0x473   :  { %9106 = vmatpush2.bf16.msra.mxu0 %v12955_v10  ;;  %9147 = vmatpush2.bf16.msra.mxu1 %v12957_v3  ;;  %v724_v10 = vld [vmem:[#allocation2 + $0x13d8] sm:$0xff]  ;;  %v12640_v3 = vcombine.high %v683_v25, %v723_v39 }
 0x474   :  { %9107 = vmatprep.subr.bf16.mxu0 %v12876_v23  ;;  %9148 = vmatprep.subr.bf16.mxu1 %v12878_v6  ;;  %v12642_v23 = vcombine.high %v684_v52, %v724_v10  ;;  %v603_v6 = vld [vmem:[#allocation2 + $0x1010] sm:$0xff]  ;;  %v12641_v29 = vcombine.low %v684_v52, %v724_v10  ;;  %v12482_v52 = vcombine.high %v524_v48, %v564_v13 }
 0x475   :  { %v443_v10 = vld [vmem:[#allocation2 + $0xb10] sm:$0xff] }
 0x477   :  { %9108 = vmatpush2.bf16.msra.mxu0 %v12875_v55  ;;  %9149 = vmatpush2.bf16.msra.mxu1 %v12877_v21  ;;  %v644_v55 = vld [vmem:[#allocation2 + $0x1158] sm:$0xff]  ;;  %v12560_v21 = vcombine.high %v603_v6, %v643_v5 }
 0x478   :  { %9109 = vmatprep.subr.bf16.mxu0 %v12796_v28  ;;  %9150 = vmatprep.subr.bf16.mxu1 %v12798_v1  ;;  %v12562_v28 = vcombine.high %v604_v16, %v644_v55  ;;  %v523_v1 = vld [vmem:[#allocation2 + $0xd90] sm:$0xff] }
 0x479   :  { %v12480_v25 = vcombine.high %v523_v1, %v563_v2 }
 0x47b   :  { %9110 = vmatpush2.bf16.msra.mxu0 %v12795_v54  ;;  %9151 = vmatpush2.bf16.msra.mxu1 %v12797_v49  ;;  %v12559_v49 = vcombine.low %v603_v6, %v643_v5  ;;  %v12479_v5 = vcombine.low %v523_v1, %v563_v2  ;;  %v283_v2 = vld [vmem:[#allocation2 + $0x610] sm:$0xff] }
 0x47c   :  { %9111 = vmatprep.subr.bf16.mxu0 %v12716_v8  ;;  %9152 = vmatprep.subr.bf16.mxu1 %v12718_v15  ;;  %v12561_v15 = vcombine.low %v604_v16, %v644_v55  ;;  %v12481_v16 = vcombine.low %v524_v48, %v564_v13  ;;  %v324_v48 = vld [vmem:[#allocation2 + $0x758] sm:$0xff] }
 0x47f   :  { %9112 = vmatpush2.bf16.msra.mxu0 %v12715_v43  ;;  %9153 = vmatpush2.bf16.msra.mxu1 %v12717_v0  ;;  %v483_v43 = vld [vmem:[#allocation2 + $0xc50] sm:$0xff] }
 0x480   :  { %9163 = vmatprep.subr.bf16.mxu0 %v12640_v3  ;;  %9204 = vmatprep.subr.bf16.mxu1 %v12642_v23  ;;  %v444_v3 = vld [vmem:[#allocation2 + $0xb18] sm:$0xff]  ;;  %v12400_v55 = vcombine.high %v443_v10, %v483_v43 }
 0x481   :  { %v484_v23 = vld [vmem:[#allocation2 + $0xc58] sm:$0xff] }
 0x482   :  { %v14449_v26 = vpop.f32.mrf.mxu0  ;;  %9114 = vmatmul.mubr.bf16.vlgmr.msra.gmra.mxu0 %v14279_v12  ;;  %v14452_v54 = vpop.f32.mrf.mxu1  ;;  %9155 = vmatmul.mubr.bf16.vlgmr.msra.gmra.mxu1 %v14279_v12 }
 0x483   :  { %14706 = vst [vmem:[#allocation28_spill] sm:$0xff] %v14449_v26  ;;  %14707 = vst [vmem:[#allocation29_spill] sm:$0xff] %v14452_v54  ;;  %9164 = vmatpush1.bf16.msra.mxu0 %v12639_v58  ;;  %9205 = vmatpush1.bf16.msra.mxu1 %v12641_v29  ;;  %v404_v54 = vld [vmem:[#allocation2 + $0x9d8] sm:$0xff]  ;;  %v12401_v26 = vcombine.low %v444_v3, %v484_v23 }
 0x484   :  { %v14455_v8 = vpop.f32.mrf.mxu0  ;;  %9165 = vmatprep.subr.bf16.mxu0 %v12560_v21  ;;  %v14457_v39 = vpop.f32.mrf.mxu1  ;;  %9206 = vmatprep.subr.bf16.mxu1 %v12562_v28  ;;  %v12402_v21 = vcombine.high %v444_v3, %v484_v23  ;;  %v363_v28 = vld [vmem:[#allocation2 + $0x890] sm:$0xff] }
 0x485   :  { %14708 = vst [vmem:[#allocation30_spill] sm:$0xff] %v14455_v8  ;;  %14709 = vst [vmem:[#allocation31_spill] sm:$0xff] %v14457_v39  ;;  %9195 = vmatprep.mubr.bf16.mxu0 %v14272_v57  ;;  %9236 = vmatprep.mubr.bf16.mxu1 %v14272_v57  ;;  %v403_v39 = vld [vmem:[#allocation2 + $0x9d0] sm:$0xff]  ;;  %v364_v8 = vld [vmem:[#allocation2 + $0x898] sm:$0xff] }
 0x486   :  { %v8873_v0 = vpop.f32.mrf.mxu0  ;;  %v8914_v6 = vpop.f32.mrf.mxu1  ;;  %v12322_v1 = vcombine.high %v364_v8, %v404_v54  ;;  %v12319_v13 = vcombine.low %v363_v28, %v403_v39 }
 0x487   :  { %9166 = vmatpush1.bf16.msra.mxu0 %v12559_v49  ;;  %9207 = vmatpush1.bf16.msra.mxu1 %v12561_v15  ;;  %v12399_v0 = vcombine.low %v443_v10, %v483_v43  ;;  %v12320_v6 = vcombine.high %v363_v28, %v403_v39  ;;  %v323_v49 = vld [vmem:[#allocation2 + $0x750] sm:$0xff]  ;;  %v284_v15 = vld [vmem:[#allocation2 + $0x618] sm:$0xff] }
 0x488   :  { %v8874_v58 = vpop.f32.mrf.mxu0  ;;  %9167 = vmatprep.subr.bf16.mxu0 %v12480_v25  ;;  %v8915_v29 = vpop.f32.mrf.mxu1  ;;  %9208 = vmatprep.subr.bf16.mxu1 %v12482_v52  ;;  %v12321_v25 = vcombine.low %v364_v8, %v404_v54  ;;  %v12240_v52 = vcombine.high %v283_v2, %v323_v49  ;;  %v243_v10 = vld [vmem:[#allocation2 + $0x4d0] sm:$0xff]  ;;  %v204_v43 = vld [vmem:[#allocation2 + $0x398] sm:$0xff]  ;;  %v12239_v3 = vcombine.low %v283_v2, %v323_v49 }
 0x489   :  { %v12242_v58 = vcombine.high %v284_v15, %v324_v48  ;;  %v12241_v23 = vcombine.low %v284_v15, %v324_v48  ;;  %v163_v39 = vld [vmem:[#allocation2 + $0x250] sm:$0xff]  ;;  %v164_v28 = vld [vmem:[#allocation2 + $0x258] sm:$0xff] }
 0x48a   :  { %v1363_v2 = vld [vmem:[#allocation2 + $0x27d0] sm:$0xff]  ;;  %v1324_v49 = vld [vmem:[#allocation2 + $0x2698] sm:$0xff] }
 0x48b   :  { %9168 = vmatpush1.bf16.msra.mxu0 %v12479_v5  ;;  %9209 = vmatpush1.bf16.msra.mxu1 %v12481_v16  ;;  %v203_v5 = vld [vmem:[#allocation2 + $0x390] sm:$0xff]  ;;  %v244_v16 = vld [vmem:[#allocation2 + $0x4d8] sm:$0xff] }
 0x48c   :  { %9169 = vmatprep.subr.bf16.mxu0 %v12400_v55  ;;  %9210 = vmatprep.subr.bf16.mxu1 %v12402_v21  ;;  %v12160_v55 = vcombine.high %v203_v5, %v243_v10  ;;  %v12162_v29 = vcombine.high %v204_v43, %v244_v16  ;;  %v123_v21 = vld [vmem:[#allocation2 + $0x110] sm:$0xff]  ;;  %v12159_v54 = vcombine.low %v203_v5, %v243_v10  ;;  %v1244_v10 = vld [vmem:[#allocation2 + $0x2418] sm:$0xff] }
 0x48d   :  { %v12161_v8 = vcombine.low %v204_v43, %v244_v16  ;;  %v12079_v15 = vcombine.low %v123_v21, %v163_v39  ;;  %v1283_v5 = vld [vmem:[#allocation2 + $0x2550] sm:$0xff] }
 0x48f   :  { %9170 = vmatpush1.bf16.msra.mxu0 %v12399_v0  ;;  %9211 = vmatpush1.bf16.msra.mxu1 %v12401_v26  ;;  %v124_v26 = vld [vmem:[#allocation2 + $0x118] sm:$0xff]  ;;  %v12080_v0 = vcombine.high %v123_v21, %v163_v39  ;;  %v1203_v21 = vld [vmem:[#allocation2 + $0x22d0] sm:$0xff] }
 0x490   :  { %9171 = vmatprep.subr.bf16.mxu0 %v12320_v6  ;;  %9212 = vmatprep.subr.bf16.mxu1 %v12322_v1  ;;  %v12082_v6 = vcombine.high %v124_v26, %v164_v28  ;;  %v1323_v1 = vld [vmem:[#allocation2 + $0x2690] sm:$0xff]  ;;  %v12081_v48 = vcombine.low %v124_v26, %v164_v28  ;;  %v1164_v39 = vld [vmem:[#allocation2 + $0x2198] sm:$0xff] }
 0x491   :  { %v13279_v43 = vcombine.low %v1323_v1, %v1363_v2 }
 0x493   :  { %9172 = vmatpush1.bf16.msra.mxu0 %v12319_v13  ;;  %9213 = vmatpush1.bf16.msra.mxu1 %v12321_v25  ;;  %v1364_v13 = vld [vmem:[#allocation2 + $0x27d8] sm:$0xff]  ;;  %v13280_v25 = vcombine.high %v1323_v1, %v1363_v2  ;;  %v1123_v1 = vld [vmem:[#allocation2 + $0x2050] sm:$0xff] }
 0x494   :  { %9173 = vmatprep.subr.bf16.mxu0 %v12240_v52  ;;  %9214 = vmatprep.subr.bf16.mxu1 %v12242_v58  ;;  %v13282_v52 = vcombine.high %v1324_v49, %v1364_v13  ;;  %v1243_v58 = vld [vmem:[#allocation2 + $0x2410] sm:$0xff]  ;;  %v13281_v16 = vcombine.low %v1324_v49, %v1364_v13  ;;  %v1084_v2 = vld [vmem:[#allocation2 + $0x1f18] sm:$0xff] }
 0x495   :  { %v13199_v26 = vcombine.low %v1243_v58, %v1283_v5 }
 0x497   :  { %9174 = vmatpush1.bf16.msra.mxu0 %v12239_v3  ;;  %9215 = vmatpush1.bf16.msra.mxu1 %v12241_v23  ;;  %v1284_v3 = vld [vmem:[#allocation2 + $0x2558] sm:$0xff]  ;;  %v13200_v23 = vcombine.high %v1243_v58, %v1283_v5  ;;  %v1043_v58 = vld [vmem:[#allocation2 + $0x1dd0] sm:$0xff] }
 0x498   :  { %9175 = vmatprep.subr.bf16.mxu0 %v12160_v55  ;;  %9216 = vmatprep.subr.bf16.mxu1 %v12162_v29  ;;  %v13202_v55 = vcombine.high %v1244_v10, %v1284_v3  ;;  %v1163_v29 = vld [vmem:[#allocation2 + $0x2190] sm:$0xff]  ;;  %v13201_v28 = vcombine.low %v1244_v10, %v1284_v3  ;;  %v1004_v5 = vld [vmem:[#allocation2 + $0x1c98] sm:$0xff] }
 0x499   :  { %v13119_v49 = vcombine.low %v1163_v29, %v1203_v21 }
 0x49b   :  { %9176 = vmatpush1.bf16.msra.mxu0 %v12159_v54  ;;  %9217 = vmatpush1.bf16.msra.mxu1 %v12161_v8  ;;  %v1204_v54 = vld [vmem:[#allocation2 + $0x22d8] sm:$0xff]  ;;  %v13120_v8 = vcombine.high %v1163_v29, %v1203_v21  ;;  %v963_v29 = vld [vmem:[#allocation2 + $0x1b50] sm:$0xff] }
 0x49c   :  { %9177 = vmatprep.subr.bf16.mxu0 %v12080_v0  ;;  %9218 = vmatprep.subr.bf16.mxu1 %v12082_v6  ;;  %v13122_v0 = vcombine.high %v1164_v39, %v1204_v54  ;;  %v1083_v6 = vld [vmem:[#allocation2 + $0x1f10] sm:$0xff]  ;;  %v13121_v13 = vcombine.low %v1164_v39, %v1204_v54  ;;  %v924_v21 = vld [vmem:[#allocation2 + $0x1a18] sm:$0xff] }
 0x49d   :  { %v13039_v10 = vcombine.low %v1083_v6, %v1123_v1 }
 0x49f   :  { %9178 = vmatpush1.bf16.msra.mxu0 %v12079_v15  ;;  %9219 = vmatpush1.bf16.msra.mxu1 %v12081_v48  ;;  %v1124_v15 = vld [vmem:[#allocation2 + $0x2058] sm:$0xff]  ;;  %v13040_v48 = vcombine.high %v1083_v6, %v1123_v1  ;;  %v883_v6 = vld [vmem:[#allocation2 + $0x18d0] sm:$0xff] }
 0x4a0   :  { %9179 = vmatprep.subr.bf16.mxu0 %v13280_v25  ;;  %9220 = vmatprep.subr.bf16.mxu1 %v13282_v52  ;;  %v13042_v25 = vcombine.high %v1084_v2, %v1124_v15  ;;  %v1003_v52 = vld [vmem:[#allocation2 + $0x1c90] sm:$0xff]  ;;  %v13041_v3 = vcombine.low %v1084_v2, %v1124_v15  ;;  %v844_v1 = vld [vmem:[#allocation2 + $0x1798] sm:$0xff] }
 0x4a1   :  { %v12959_v39 = vcombine.low %v1003_v52, %v1043_v58 }
 0x4a3   :  { %9180 = vmatpush2.bf16.msra.mxu0 %v13279_v43  ;;  %9221 = vmatpush2.bf16.msra.mxu1 %v13281_v16  ;;  %v1044_v43 = vld [vmem:[#allocation2 + $0x1dd8] sm:$0xff]  ;;  %v12960_v16 = vcombine.high %v1003_v52, %v1043_v58  ;;  %v803_v52 = vld [vmem:[#allocation2 + $0x1650] sm:$0xff] }
 0x4a4   :  { %9181 = vmatprep.subr.bf16.mxu0 %v13200_v23  ;;  %9222 = vmatprep.subr.bf16.mxu1 %v13202_v55  ;;  %v12962_v23 = vcombine.high %v1004_v5, %v1044_v43  ;;  %v923_v55 = vld [vmem:[#allocation2 + $0x1a10] sm:$0xff]  ;;  %v12961_v54 = vcombine.low %v1004_v5, %v1044_v43  ;;  %v764_v58 = vld [vmem:[#allocation2 + $0x1518] sm:$0xff] }
 0x4a5   :  { %v12879_v2 = vcombine.low %v923_v55, %v963_v29 }
 0x4a7   :  { %9182 = vmatpush2.bf16.msra.mxu0 %v13199_v26  ;;  %9223 = vmatpush2.bf16.msra.mxu1 %v13201_v28  ;;  %v964_v26 = vld [vmem:[#allocation2 + $0x1b58] sm:$0xff]  ;;  %v12880_v28 = vcombine.high %v923_v55, %v963_v29  ;;  %v725_v55 = vld [vmem:[#allocation2 + $0x13e0] sm:$0xff]  ;;  %v686_v29 = vld [vmem:[#allocation2 + $0x12a8] sm:$0xff] }
 0x4a8   :  { %9183 = vmatprep.subr.bf16.mxu0 %v13120_v8  ;;  %9224 = vmatprep.subr.bf16.mxu1 %v13122_v0  ;;  %v12882_v8 = vcombine.high %v924_v21, %v964_v26  ;;  %v843_v0 = vld [vmem:[#allocation2 + $0x1790] sm:$0xff]  ;;  %v12881_v15 = vcombine.low %v924_v21, %v964_v26 }
 0x4a9   :  { %v12799_v5 = vcombine.low %v843_v0, %v883_v6 }
 0x4ab   :  { %9184 = vmatpush2.bf16.msra.mxu0 %v13119_v49  ;;  %9225 = vmatpush2.bf16.msra.mxu1 %v13121_v13  ;;  %v884_v49 = vld [vmem:[#allocation2 + $0x18d8] sm:$0xff]  ;;  %v12800_v13 = vcombine.high %v843_v0, %v883_v6  ;;  %v645_v0 = vld [vmem:[#allocation2 + $0x1160] sm:$0xff]  ;;  %v606_v6 = vld [vmem:[#allocation2 + $0x1028] sm:$0xff] }
 0x4ac   :  { %9185 = vmatprep.subr.bf16.mxu0 %v13040_v48  ;;  %9226 = vmatprep.subr.bf16.mxu1 %v13042_v25  ;;  %v12802_v48 = vcombine.high %v844_v1, %v884_v49  ;;  %v763_v25 = vld [vmem:[#allocation2 + $0x1510] sm:$0xff]  ;;  %v12801_v43 = vcombine.low %v844_v1, %v884_v49 }
 0x4ad   :  { %v12719_v21 = vcombine.low %v763_v25, %v803_v52 }
 0x4af   :  { %9186 = vmatpush2.bf16.msra.mxu0 %v13039_v10  ;;  %9227 = vmatpush2.bf16.msra.mxu1 %v13041_v3  ;;  %v804_v10 = vld [vmem:[#allocation2 + $0x1658] sm:$0xff]  ;;  %v12720_v3 = vcombine.high %v763_v25, %v803_v52  ;;  %v565_v25 = vld [vmem:[#allocation2 + $0xee0] sm:$0xff] }
 0x4b0   :  { %9187 = vmatprep.subr.bf16.mxu0 %v12960_v16  ;;  %9228 = vmatprep.subr.bf16.mxu1 %v12962_v23  ;;  %v12722_v16 = vcombine.high %v764_v58, %v804_v10  ;;  %v685_v23 = vld [vmem:[#allocation2 + $0x12a0] sm:$0xff]  ;;  %v12721_v26 = vcombine.low %v764_v58, %v804_v10  ;;  %v526_v58 = vld [vmem:[#allocation2 + $0xda8] sm:$0xff] }
 0x4b1   :  { %v12643_v1 = vcombine.low %v685_v23, %v725_v55  ;;  %v566_v10 = vld [vmem:[#allocation2 + $0xee8] sm:$0xff] }
 0x4b3   :  { %9188 = vmatpush2.bf16.msra.mxu0 %v12959_v39  ;;  %9229 = vmatpush2.bf16.msra.mxu1 %v12961_v54  ;;  %v726_v39 = vld [vmem:[#allocation2 + $0x13e8] sm:$0xff]  ;;  %v12644_v54 = vcombine.high %v685_v23, %v725_v55 }
 0x4b4   :  { %9189 = vmatprep.subr.bf16.mxu0 %v12880_v28  ;;  %9230 = vmatprep.subr.bf16.mxu1 %v12882_v8  ;;  %v12646_v28 = vcombine.high %v686_v29, %v726_v39  ;;  %v605_v8 = vld [vmem:[#allocation2 + $0x1020] sm:$0xff]  ;;  %v12645_v49 = vcombine.low %v686_v29, %v726_v39  ;;  %v12486_v29 = vcombine.high %v526_v58, %v566_v10 }
 0x4b5   :  { %v445_v39 = vld [vmem:[#allocation2 + $0xb20] sm:$0xff] }
 0x4b7   :  { %9190 = vmatpush2.bf16.msra.mxu0 %v12879_v2  ;;  %9231 = vmatpush2.bf16.msra.mxu1 %v12881_v15  ;;  %v646_v2 = vld [vmem:[#allocation2 + $0x1168] sm:$0xff]  ;;  %v12564_v15 = vcombine.high %v605_v8, %v645_v0 }
 0x4b8   :  { %9191 = vmatprep.subr.bf16.mxu0 %v12800_v13  ;;  %9232 = vmatprep.subr.bf16.mxu1 %v12802_v48  ;;  %v12566_v13 = vcombine.high %v606_v6, %v646_v2  ;;  %v525_v48 = vld [vmem:[#allocation2 + $0xda0] sm:$0xff] }
 0x4b9   :  { %v12484_v23 = vcombine.high %v525_v48, %v565_v25 }
 0x4bb   :  { %9192 = vmatpush2.bf16.msra.mxu0 %v12799_v5  ;;  %9233 = vmatpush2.bf16.msra.mxu1 %v12801_v43  ;;  %v12563_v43 = vcombine.low %v605_v8, %v645_v0  ;;  %v12483_v0 = vcombine.low %v525_v48, %v565_v25  ;;  %v285_v25 = vld [vmem:[#allocation2 + $0x620] sm:$0xff] }
 0x4bc   :  { %9193 = vmatprep.subr.bf16.mxu0 %v12720_v3  ;;  %9234 = vmatprep.subr.bf16.mxu1 %v12722_v16  ;;  %v12565_v16 = vcombine.low %v606_v6, %v646_v2  ;;  %v12485_v6 = vcombine.low %v526_v58, %v566_v10  ;;  %v326_v58 = vld [vmem:[#allocation2 + $0x768] sm:$0xff] }
 0x4bf   :  { %9194 = vmatpush2.bf16.msra.mxu0 %v12719_v21  ;;  %9235 = vmatpush2.bf16.msra.mxu1 %v12721_v26  ;;  %v485_v21 = vld [vmem:[#allocation2 + $0xc60] sm:$0xff] }
 0x4c0   :  { %9245 = vmatprep.subr.bf16.mxu0 %v12644_v54  ;;  %9286 = vmatprep.subr.bf16.mxu1 %v12646_v28  ;;  %v446_v54 = vld [vmem:[#allocation2 + $0xb28] sm:$0xff]  ;;  %v12404_v2 = vcombine.high %v445_v39, %v485_v21 }
 0x4c1   :  { %v486_v28 = vld [vmem:[#allocation2 + $0xc68] sm:$0xff] }
 0x4c2   :  { %v14461_v52 = vpop.f32.mrf.mxu0  ;;  %9196 = vmatmul.mubr.bf16.vlgmr.msra.gmra.mxu0 %v14279_v12  ;;  %v14464_v5 = vpop.f32.mrf.mxu1  ;;  %9237 = vmatmul.mubr.bf16.vlgmr.msra.gmra.mxu1 %v14279_v12 }
 0x4c3   :  { %14710 = vst [vmem:[#allocation32_spill] sm:$0xff] %v14461_v52  ;;  %14711 = vst [vmem:[#allocation33_spill] sm:$0xff] %v14464_v5  ;;  %9246 = vmatpush1.bf16.msra.mxu0 %v12643_v1  ;;  %9287 = vmatpush1.bf16.msra.mxu1 %v12645_v49  ;;  %v406_v5 = vld [vmem:[#allocation2 + $0x9e8] sm:$0xff]  ;;  %v12405_v52 = vcombine.low %v446_v54, %v486_v28 }
 0x4c4   :  { %v14467_v3 = vpop.f32.mrf.mxu0  ;;  %9247 = vmatprep.subr.bf16.mxu0 %v12564_v15  ;;  %v14469_v55 = vpop.f32.mrf.mxu1  ;;  %9288 = vmatprep.subr.bf16.mxu1 %v12566_v13  ;;  %v12406_v15 = vcombine.high %v446_v54, %v486_v28  ;;  %v365_v13 = vld [vmem:[#allocation2 + $0x8a0] sm:$0xff] }
 0x4c5   :  { %14712 = vst [vmem:[#allocation34_spill] sm:$0xff] %v14467_v3  ;;  %14713 = vst [vmem:[#allocation35_spill] sm:$0xff] %v14469_v55  ;;  %9277 = vmatprep.mubr.bf16.mxu0 %v14272_v57  ;;  %9318 = vmatprep.mubr.bf16.mxu1 %v14272_v57  ;;  %v405_v55 = vld [vmem:[#allocation2 + $0x9e0] sm:$0xff]  ;;  %v366_v3 = vld [vmem:[#allocation2 + $0x8a8] sm:$0xff] }
 0x4c6   :  { %v8955_v26 = vpop.f32.mrf.mxu0  ;;  %v8996_v8 = vpop.f32.mrf.mxu1  ;;  %v12326_v48 = vcombine.high %v366_v3, %v406_v5  ;;  %v12323_v10 = vcombine.low %v365_v13, %v405_v55 }
 0x4c7   :  { %9248 = vmatpush1.bf16.msra.mxu0 %v12563_v43  ;;  %9289 = vmatpush1.bf16.msra.mxu1 %v12565_v16  ;;  %v12403_v26 = vcombine.low %v445_v39, %v485_v21  ;;  %v12324_v8 = vcombine.high %v365_v13, %v405_v55  ;;  %v325_v43 = vld [vmem:[#allocation2 + $0x760] sm:$0xff]  ;;  %v286_v16 = vld [vmem:[#allocation2 + $0x628] sm:$0xff] }
 0x4c8   :  { %v8956_v1 = vpop.f32.mrf.mxu0  ;;  %9249 = vmatprep.subr.bf16.mxu0 %v12484_v23  ;;  %v8997_v49 = vpop.f32.mrf.mxu1  ;;  %9290 = vmatprep.subr.bf16.mxu1 %v12486_v29  ;;  %v12325_v23 = vcombine.low %v366_v3, %v406_v5  ;;  %v12244_v29 = vcombine.high %v285_v25, %v325_v43  ;;  %v245_v39 = vld [vmem:[#allocation2 + $0x4e0] sm:$0xff]  ;;  %v206_v21 = vld [vmem:[#allocation2 + $0x3a8] sm:$0xff]  ;;  %v12243_v54 = vcombine.low %v285_v25, %v325_v43 }
 0x4c9   :  { %v12246_v1 = vcombine.high %v286_v16, %v326_v58  ;;  %v12245_v28 = vcombine.low %v286_v16, %v326_v58  ;;  %v165_v55 = vld [vmem:[#allocation2 + $0x260] sm:$0xff]  ;;  %v166_v13 = vld [vmem:[#allocation2 + $0x268] sm:$0xff] }
 0x4ca   :  { %v1365_v25 = vld [vmem:[#allocation2 + $0x27e0] sm:$0xff]  ;;  %v1326_v43 = vld [vmem:[#allocation2 + $0x26a8] sm:$0xff] }
 0x4cb   :  { %9250 = vmatpush1.bf16.msra.mxu0 %v12483_v0  ;;  %9291 = vmatpush1.bf16.msra.mxu1 %v12485_v6  ;;  %v205_v0 = vld [vmem:[#allocation2 + $0x3a0] sm:$0xff]  ;;  %v246_v6 = vld [vmem:[#allocation2 + $0x4e8] sm:$0xff] }
 0x4cc   :  { %9251 = vmatprep.subr.bf16.mxu0 %v12404_v2  ;;  %9292 = vmatprep.subr.bf16.mxu1 %v12406_v15  ;;  %v12164_v2 = vcombine.high %v205_v0, %v245_v39  ;;  %v12166_v49 = vcombine.high %v206_v21, %v246_v6  ;;  %v125_v15 = vld [vmem:[#allocation2 + $0x120] sm:$0xff]  ;;  %v12163_v5 = vcombine.low %v205_v0, %v245_v39  ;;  %v1246_v39 = vld [vmem:[#allocation2 + $0x2428] sm:$0xff] }
 0x4cd   :  { %v12165_v3 = vcombine.low %v206_v21, %v246_v6  ;;  %v12083_v16 = vcombine.low %v125_v15, %v165_v55  ;;  %v1285_v0 = vld [vmem:[#allocation2 + $0x2560] sm:$0xff] }
 0x4cf   :  { %9252 = vmatpush1.bf16.msra.mxu0 %v12403_v26  ;;  %9293 = vmatpush1.bf16.msra.mxu1 %v12405_v52  ;;  %v126_v52 = vld [vmem:[#allocation2 + $0x128] sm:$0xff]  ;;  %v12084_v26 = vcombine.high %v125_v15, %v165_v55  ;;  %v1205_v15 = vld [vmem:[#allocation2 + $0x22e0] sm:$0xff] }
 0x4d0   :  { %9253 = vmatprep.subr.bf16.mxu0 %v12324_v8  ;;  %9294 = vmatprep.subr.bf16.mxu1 %v12326_v48  ;;  %v12086_v8 = vcombine.high %v126_v52, %v166_v13  ;;  %v1325_v48 = vld [vmem:[#allocation2 + $0x26a0] sm:$0xff]  ;;  %v12085_v58 = vcombine.low %v126_v52, %v166_v13  ;;  %v1166_v55 = vld [vmem:[#allocation2 + $0x21a8] sm:$0xff] }
 0x4d1   :  { %v13283_v21 = vcombine.low %v1325_v48, %v1365_v25 }
 0x4d3   :  { %9254 = vmatpush1.bf16.msra.mxu0 %v12323_v10  ;;  %9295 = vmatpush1.bf16.msra.mxu1 %v12325_v23  ;;  %v1366_v10 = vld [vmem:[#allocation2 + $0x27e8] sm:$0xff]  ;;  %v13284_v23 = vcombine.high %v1325_v48, %v1365_v25  ;;  %v1125_v48 = vld [vmem:[#allocation2 + $0x2060] sm:$0xff] }
 0x4d4   :  { %9255 = vmatprep.subr.bf16.mxu0 %v12244_v29  ;;  %9296 = vmatprep.subr.bf16.mxu1 %v12246_v1  ;;  %v13286_v29 = vcombine.high %v1326_v43, %v1366_v10  ;;  %v1245_v1 = vld [vmem:[#allocation2 + $0x2420] sm:$0xff]  ;;  %v13285_v6 = vcombine.low %v1326_v43, %v1366_v10  ;;  %v1086_v25 = vld [vmem:[#allocation2 + $0x1f28] sm:$0xff] }
 0x4d5   :  { %v13203_v52 = vcombine.low %v1245_v1, %v1285_v0 }
 0x4d7   :  { %9256 = vmatpush1.bf16.msra.mxu0 %v12243_v54  ;;  %9297 = vmatpush1.bf16.msra.mxu1 %v12245_v28  ;;  %v1286_v54 = vld [vmem:[#allocation2 + $0x2568] sm:$0xff]  ;;  %v13204_v28 = vcombine.high %v1245_v1, %v1285_v0  ;;  %v1045_v1 = vld [vmem:[#allocation2 + $0x1de0] sm:$0xff] }
 0x4d8   :  { %9257 = vmatprep.subr.bf16.mxu0 %v12164_v2  ;;  %9298 = vmatprep.subr.bf16.mxu1 %v12166_v49  ;;  %v13206_v2 = vcombine.high %v1246_v39, %v1286_v54  ;;  %v1165_v49 = vld [vmem:[#allocation2 + $0x21a0] sm:$0xff]  ;;  %v13205_v13 = vcombine.low %v1246_v39, %v1286_v54  ;;  %v1006_v0 = vld [vmem:[#allocation2 + $0x1ca8] sm:$0xff] }
 0x4d9   :  { %v13123_v43 = vcombine.low %v1165_v49, %v1205_v15 }
 0x4db   :  { %9258 = vmatpush1.bf16.msra.mxu0 %v12163_v5  ;;  %9299 = vmatpush1.bf16.msra.mxu1 %v12165_v3  ;;  %v1206_v5 = vld [vmem:[#allocation2 + $0x22e8] sm:$0xff]  ;;  %v13124_v3 = vcombine.high %v1165_v49, %v1205_v15  ;;  %v965_v49 = vld [vmem:[#allocation2 + $0x1b60] sm:$0xff] }
 0x4dc   :  { %9259 = vmatprep.subr.bf16.mxu0 %v12084_v26  ;;  %9300 = vmatprep.subr.bf16.mxu1 %v12086_v8  ;;  %v13126_v26 = vcombine.high %v1166_v55, %v1206_v5  ;;  %v1085_v8 = vld [vmem:[#allocation2 + $0x1f20] sm:$0xff]  ;;  %v13125_v10 = vcombine.low %v1166_v55, %v1206_v5  ;;  %v926_v15 = vld [vmem:[#allocation2 + $0x1a28] sm:$0xff] }
 0x4dd   :  { %v13043_v39 = vcombine.low %v1085_v8, %v1125_v48 }
 0x4df   :  { %9260 = vmatpush1.bf16.msra.mxu0 %v12083_v16  ;;  %9301 = vmatpush1.bf16.msra.mxu1 %v12085_v58  ;;  %v1126_v16 = vld [vmem:[#allocation2 + $0x2068] sm:$0xff]  ;;  %v13044_v58 = vcombine.high %v1085_v8, %v1125_v48  ;;  %v885_v8 = vld [vmem:[#allocation2 + $0x18e0] sm:$0xff] }
 0x4e0   :  { %9261 = vmatprep.subr.bf16.mxu0 %v13284_v23  ;;  %9302 = vmatprep.subr.bf16.mxu1 %v13286_v29  ;;  %v13046_v23 = vcombine.high %v1086_v25, %v1126_v16  ;;  %v1005_v29 = vld [vmem:[#allocation2 + $0x1ca0] sm:$0xff]  ;;  %v13045_v54 = vcombine.low %v1086_v25, %v1126_v16  ;;  %v846_v48 = vld [vmem:[#allocation2 + $0x17a8] sm:$0xff] }
 0x4e1   :  { %v12963_v55 = vcombine.low %v1005_v29, %v1045_v1 }
 0x4e3   :  { %9262 = vmatpush2.bf16.msra.mxu0 %v13283_v21  ;;  %9303 = vmatpush2.bf16.msra.mxu1 %v13285_v6  ;;  %v1046_v21 = vld [vmem:[#allocation2 + $0x1de8] sm:$0xff]  ;;  %v12964_v6 = vcombine.high %v1005_v29, %v1045_v1  ;;  %v805_v29 = vld [vmem:[#allocation2 + $0x1660] sm:$0xff] }
 0x4e4   :  { %9263 = vmatprep.subr.bf16.mxu0 %v13204_v28  ;;  %9304 = vmatprep.subr.bf16.mxu1 %v13206_v2  ;;  %v12966_v28 = vcombine.high %v1006_v0, %v1046_v21  ;;  %v925_v2 = vld [vmem:[#allocation2 + $0x1a20] sm:$0xff]  ;;  %v12965_v5 = vcombine.low %v1006_v0, %v1046_v21  ;;  %v766_v1 = vld [vmem:[#allocation2 + $0x1528] sm:$0xff] }
 0x4e5   :  { %v12883_v25 = vcombine.low %v925_v2, %v965_v49 }
 0x4e7   :  { %9264 = vmatpush2.bf16.msra.mxu0 %v13203_v52  ;;  %9305 = vmatpush2.bf16.msra.mxu1 %v13205_v13  ;;  %v966_v52 = vld [vmem:[#allocation2 + $0x1b68] sm:$0xff]  ;;  %v12884_v13 = vcombine.high %v925_v2, %v965_v49  ;;  %v727_v2 = vld [vmem:[#allocation2 + $0x13f0] sm:$0xff]  ;;  %v688_v49 = vld [vmem:[#allocation2 + $0x12b8] sm:$0xff] }
 0x4e8   :  { %9265 = vmatprep.subr.bf16.mxu0 %v13124_v3  ;;  %9306 = vmatprep.subr.bf16.mxu1 %v13126_v26  ;;  %v12886_v3 = vcombine.high %v926_v15, %v966_v52  ;;  %v845_v26 = vld [vmem:[#allocation2 + $0x17a0] sm:$0xff]  ;;  %v12885_v16 = vcombine.low %v926_v15, %v966_v52 }
 0x4e9   :  { %v12803_v0 = vcombine.low %v845_v26, %v885_v8 }
 0x4eb   :  { %9266 = vmatpush2.bf16.msra.mxu0 %v13123_v43  ;;  %9307 = vmatpush2.bf16.msra.mxu1 %v13125_v10  ;;  %v886_v43 = vld [vmem:[#allocation2 + $0x18e8] sm:$0xff]  ;;  %v12804_v10 = vcombine.high %v845_v26, %v885_v8  ;;  %v647_v26 = vld [vmem:[#allocation2 + $0x1170] sm:$0xff]  ;;  %v608_v8 = vld [vmem:[#allocation2 + $0x1038] sm:$0xff] }
 0x4ec   :  { %9267 = vmatprep.subr.bf16.mxu0 %v13044_v58  ;;  %9308 = vmatprep.subr.bf16.mxu1 %v13046_v23  ;;  %v12806_v58 = vcombine.high %v846_v48, %v886_v43  ;;  %v765_v23 = vld [vmem:[#allocation2 + $0x1520] sm:$0xff]  ;;  %v12805_v21 = vcombine.low %v846_v48, %v886_v43 }
 0x4ed   :  { %v12723_v15 = vcombine.low %v765_v23, %v805_v29 }
 0x4ef   :  { %9268 = vmatpush2.bf16.msra.mxu0 %v13043_v39  ;;  %9309 = vmatpush2.bf16.msra.mxu1 %v13045_v54  ;;  %v806_v39 = vld [vmem:[#allocation2 + $0x1668] sm:$0xff]  ;;  %v12724_v54 = vcombine.high %v765_v23, %v805_v29  ;;  %v567_v23 = vld [vmem:[#allocation2 + $0xef0] sm:$0xff]  ;;  %v9409_v29 = vmax.f32 %v14293_v33, %v14353_v7 }
 0x4f0   :  { %9269 = vmatprep.subr.bf16.mxu0 %v12964_v6  ;;  %9310 = vmatprep.subr.bf16.mxu1 %v12966_v28  ;;  %v12726_v6 = vcombine.high %v766_v1, %v806_v39  ;;  %v687_v28 = vld [vmem:[#allocation2 + $0x12b0] sm:$0xff]  ;;  %v12725_v52 = vcombine.low %v766_v1, %v806_v39  ;;  %v528_v39 = vld [vmem:[#allocation2 + $0xdb8] sm:$0xff] }
 0x4f1   :  { %v12647_v48 = vcombine.low %v687_v28, %v727_v2 }
 0x4f3   :  { %9270 = vmatpush2.bf16.msra.mxu0 %v12963_v55  ;;  %9311 = vmatpush2.bf16.msra.mxu1 %v12965_v5  ;;  %v728_v55 = vld [vmem:[#allocation2 + $0x13f8] sm:$0xff]  ;;  %v12648_v5 = vcombine.high %v687_v28, %v727_v2 }
 0x4f4   :  { %9271 = vmatprep.subr.bf16.mxu0 %v12884_v13  ;;  %9312 = vmatprep.subr.bf16.mxu1 %v12886_v3  ;;  %v12650_v13 = vcombine.high %v688_v49, %v728_v55  ;;  %v607_v3 = vld [vmem:[#allocation2 + $0x1030] sm:$0xff]  ;;  %v12649_v43 = vcombine.low %v688_v49, %v728_v55 }
 0x4f5   :  { %v12567_v28 = vcombine.low %v607_v3, %v647_v26 }
 0x4f7   :  { %9272 = vmatpush2.bf16.msra.mxu0 %v12883_v25  ;;  %9313 = vmatpush2.bf16.msra.mxu1 %v12885_v16  ;;  %v648_v25 = vld [vmem:[#allocation2 + $0x1178] sm:$0xff]  ;;  %v12568_v16 = vcombine.high %v607_v3, %v647_v26 }
 0x4f8   :  { %9273 = vmatprep.subr.bf16.mxu0 %v12804_v10  ;;  %9314 = vmatprep.subr.bf16.mxu1 %v12806_v58  ;;  %v12570_v10 = vcombine.high %v608_v8, %v648_v25  ;;  %v527_v58 = vld [vmem:[#allocation2 + $0xdb0] sm:$0xff]  ;;  %v12569_v33 = vcombine.low %v608_v8, %v648_v25 }
 0x4f9   :  { %v12488_v7 = vcombine.high %v527_v58, %v567_v23  ;;  %v12487_v26 = vcombine.low %v527_v58, %v567_v23  ;;  %v287_v23 = vld [vmem:[#allocation2 + $0x630] sm:$0xff] }
 0x4fb   :  { %9274 = vmatpush2.bf16.msra.mxu0 %v12803_v0  ;;  %9315 = vmatpush2.bf16.msra.mxu1 %v12805_v21  ;;  %v568_v0 = vld [vmem:[#allocation2 + $0xef8] sm:$0xff]  ;;  %v9411_v21 = vmax.f32 %v14296_v36, %v14356_v11  ;;  %v447_v11 = vld [vmem:[#allocation2 + $0xb30] sm:$0xff] }
 0x4fc   :  { %9275 = vmatprep.subr.bf16.mxu0 %v12724_v54  ;;  %9316 = vmatprep.subr.bf16.mxu1 %v12726_v6  ;;  %v12490_v36 = vcombine.high %v528_v39, %v568_v0  ;;  %v12489_v25 = vcombine.low %v528_v39, %v568_v0  ;;  %v328_v39 = vld [vmem:[#allocation2 + $0x778] sm:$0xff] }
 0x4ff   :  { %9276 = vmatpush2.bf16.msra.mxu0 %v12723_v15  ;;  %9317 = vmatpush2.bf16.msra.mxu1 %v12725_v52 }
 0x500   :  { %9327 = vmatprep.subr.bf16.mxu0 %v12648_v5  ;;  %9368 = vmatprep.subr.bf16.mxu1 %v12650_v13  ;;  %v488_v13 = vld [vmem:[#allocation2 + $0xc78] sm:$0xff] }
 0x502   :  { %v9033_v1 = vpop.f32.mrf.mxu0  ;;  %9278 = vmatmul.mubr.bf16.vlgmr.msra.gmra.mxu0 %v14279_v12  ;;  %v9074_v6 = vpop.f32.mrf.mxu1  ;;  %9319 = vmatmul.mubr.bf16.vlgmr.msra.gmra.mxu1 %v14279_v12 }
 0x503   :  { %v9429_v54 = vmax.f32 %v14413_v30, %v9033_v1  ;;  %9328 = vmatpush1.bf16.msra.mxu0 %v12647_v48  ;;  %v9431_v2 = vmax.f32 %v14416_v45, %v9074_v6  ;;  %9369 = vmatpush1.bf16.msra.mxu1 %v12649_v43  ;;  %v487_v30 = vld [vmem:[#allocation2 + $0xc70] sm:$0xff]  ;;  %v448_v45 = vld [vmem:[#allocation2 + $0xb38] sm:$0xff] }
 0x504   :  { %v14481_v49 = vpop.f32.mrf.mxu0  ;;  %9329 = vmatprep.subr.bf16.mxu0 %v12568_v16  ;;  %v14485_v15 = vpop.f32.mrf.mxu1  ;;  %9370 = vmatprep.subr.bf16.mxu1 %v12570_v10  ;;  %v12408_v48 = vcombine.high %v447_v11, %v487_v30  ;;  %v12410_v16 = vcombine.high %v448_v45, %v488_v13  ;;  %v367_v10 = vld [vmem:[#allocation2 + $0x8b0] sm:$0xff]  ;;  %v368_v1 = vld [vmem:[#allocation2 + $0x8b8] sm:$0xff] }
 0x505   :  { %v14483_v55 = vmax.f32 %v9409_v29, %v9429_v54  ;;  %9359 = vmatprep.mubr.bf16.mxu0 %v14272_v57  ;;  %v14488_v52 = vmax.f32 %v9411_v21, %v9431_v2  ;;  %9400 = vmatprep.mubr.bf16.mxu1 %v14272_v57  ;;  %v407_v29 = vld [vmem:[#allocation2 + $0x9f0] sm:$0xff]  ;;  %v408_v21 = vld [vmem:[#allocation2 + $0x9f8] sm:$0xff]  ;;  %v12407_v54 = vcombine.low %v447_v11, %v487_v30 }
 0x506   :  { %v9037_v5 = vpop.f32.mrf.mxu0  ;;  %v9078_v3 = vpop.f32.mrf.mxu1  ;;  %v12409_v57 = vcombine.low %v448_v45, %v488_v13  ;;  %v12328_v6 = vcombine.high %v367_v10, %v407_v29  ;;  %v12330_v58 = vcombine.high %v368_v1, %v408_v21  ;;  %v288_v2 = vld [vmem:[#allocation2 + $0x638] sm:$0xff]  ;;  %v12327_v0 = vcombine.low %v367_v10, %v407_v29  ;;  %v247_v11 = vld [vmem:[#allocation2 + $0x4f0] sm:$0xff] }
 0x507   :  { %9330 = vmatpush1.bf16.msra.mxu0 %v12567_v28  ;;  %9371 = vmatpush1.bf16.msra.mxu1 %v12569_v33  ;;  %v327_v28 = vld [vmem:[#allocation2 + $0x770] sm:$0xff]  ;;  %v12329_v33 = vcombine.low %v368_v1, %v408_v21  ;;  %v208_v30 = vld [vmem:[#allocation2 + $0x3b8] sm:$0xff]  ;;  %v12249_v13 = vcombine.low %v288_v2, %v328_v39 }
 0x508   :  { %v9038_v8 = vpop.f32.mrf.mxu0  ;;  %9331 = vmatprep.subr.bf16.mxu0 %v12488_v7  ;;  %v9079_v43 = vpop.f32.mrf.mxu1  ;;  %9372 = vmatprep.subr.bf16.mxu1 %v12490_v36  ;;  %v12248_v7 = vcombine.high %v287_v23, %v327_v28  ;;  %v12250_v36 = vcombine.high %v288_v2, %v328_v39  ;;  %v207_v5 = vld [vmem:[#allocation2 + $0x3b0] sm:$0xff]  ;;  %v248_v3 = vld [vmem:[#allocation2 + $0x4f8] sm:$0xff]  ;;  %v12247_v45 = vcombine.low %v287_v23, %v327_v28 }
 0x509   :  { %v12170_v8 = vcombine.high %v208_v30, %v248_v3  ;;  %v128_v43 = vld [vmem:[#allocation2 + $0x138] sm:$0xff]  ;;  %v12167_v10 = vcombine.low %v207_v5, %v247_v11  ;;  %v12169_v29 = vcombine.low %v208_v30, %v248_v3 }
 0x50b   :  { %9332 = vmatpush1.bf16.msra.mxu0 %v12487_v26  ;;  %9373 = vmatpush1.bf16.msra.mxu1 %v12489_v25  ;;  %v12168_v26 = vcombine.high %v207_v5, %v247_v11  ;;  %v127_v25 = vld [vmem:[#allocation2 + $0x130] sm:$0xff] }
 0x50c   :  { %9333 = vmatprep.subr.bf16.mxu0 %v12408_v48  ;;  %9374 = vmatprep.subr.bf16.mxu1 %v12410_v16  ;;  %v167_v48 = vld [vmem:[#allocation2 + $0x270] sm:$0xff]  ;;  %v168_v16 = vld [vmem:[#allocation2 + $0x278] sm:$0xff] }
 0x50d   :  { %v12088_v1 = vcombine.high %v127_v25, %v167_v48  ;;  %v12090_v21 = vcombine.high %v128_v43, %v168_v16  ;;  %v12087_v23 = vcombine.low %v127_v25, %v167_v48  ;;  %v12089_v28 = vcombine.low %v128_v43, %v168_v16 }
 0x50f   :  { %9334 = vmatpush1.bf16.msra.mxu0 %v12407_v54  ;;  %9375 = vmatpush1.bf16.msra.mxu1 %v12409_v57  ;;  %v1327_v54 = vld [vmem:[#allocation2 + $0x26b0] sm:$0xff] }
 0x510   :  { %9335 = vmatprep.subr.bf16.mxu0 %v12328_v6  ;;  %9376 = vmatprep.subr.bf16.mxu1 %v12330_v58  ;;  %v1367_v57 = vld [vmem:[#allocation2 + $0x27f0] sm:$0xff]  ;;  %v1328_v6 = vld [vmem:[#allocation2 + $0x26b8] sm:$0xff] }
 0x511   :  { %v1368_v58 = vld [vmem:[#allocation2 + $0x27f8] sm:$0xff]  ;;  %v13288_v2 = vcombine.high %v1327_v54, %v1367_v57  ;;  %v13287_v5 = vcombine.low %v1327_v54, %v1367_v57 }
 0x512   :  { %v13290_v39 = vcombine.high %v1328_v6, %v1368_v58  ;;  %v13289_v11 = vcombine.low %v1328_v6, %v1368_v58 }
 0x513   :  { %9336 = vmatpush1.bf16.msra.mxu0 %v12327_v0  ;;  %9377 = vmatpush1.bf16.msra.mxu1 %v12329_v33  ;;  %v1247_v0 = vld [vmem:[#allocation2 + $0x2430] sm:$0xff] }
 0x514   :  { %9337 = vmatprep.subr.bf16.mxu0 %v12248_v7  ;;  %9378 = vmatprep.subr.bf16.mxu1 %v12250_v36  ;;  %v1287_v33 = vld [vmem:[#allocation2 + $0x2570] sm:$0xff]  ;;  %v1248_v7 = vld [vmem:[#allocation2 + $0x2438] sm:$0xff] }
 0x515   :  { %v1288_v36 = vld [vmem:[#allocation2 + $0x2578] sm:$0xff]  ;;  %v13208_v30 = vcombine.high %v1247_v0, %v1287_v33  ;;  %v13207_v25 = vcombine.low %v1247_v0, %v1287_v33  ;;  %v9475_v33 = vlaneseq }
 0x516   :  { %v13210_v3 = vcombine.high %v1248_v7, %v1288_v36  ;;  %v13209_v48 = vcombine.low %v1248_v7, %v1288_v36 }
 0x517   :  { %9338 = vmatpush1.bf16.msra.mxu0 %v12247_v45  ;;  %9379 = vmatpush1.bf16.msra.mxu1 %v12249_v13  ;;  %v1167_v45 = vld [vmem:[#allocation2 + $0x21b0] sm:$0xff] }
 0x518   :  { %9339 = vmatprep.subr.bf16.mxu0 %v12168_v26  ;;  %9380 = vmatprep.subr.bf16.mxu1 %v12170_v8  ;;  %v1207_v13 = vld [vmem:[#allocation2 + $0x22f0] sm:$0xff]  ;;  %v1168_v26 = vld [vmem:[#allocation2 + $0x21b8] sm:$0xff] }
 0x519   :  { %v1208_v8 = vld [vmem:[#allocation2 + $0x22f8] sm:$0xff]  ;;  %v13128_v43 = vcombine.high %v1167_v45, %v1207_v13  ;;  %v13127_v54 = vcombine.low %v1167_v45, %v1207_v13 }
 0x51a   :  { %v13130_v16 = vcombine.high %v1168_v26, %v1208_v8  ;;  %v13129_v57 = vcombine.low %v1168_v26, %v1208_v8  ;;  %v968_v45 = vld [vmem:[#allocation2 + $0x1b78] sm:$0xff]  ;;  %v14491_v26 = vshrl.u32 %v9475_v33, 7 }
 0x51b   :  { %9340 = vmatpush1.bf16.msra.mxu0 %v12167_v10  ;;  %9381 = vmatpush1.bf16.msra.mxu1 %v12169_v29  ;;  %v1087_v10 = vld [vmem:[#allocation2 + $0x1f30] sm:$0xff]  ;;  %v768_v33 = vld [vmem:[#allocation2 + $0x1538] sm:$0xff] }
 0x51c   :  { %9341 = vmatprep.subr.bf16.mxu0 %v12088_v1  ;;  %9382 = vmatprep.subr.bf16.mxu1 %v12090_v21  ;;  %v1127_v29 = vld [vmem:[#allocation2 + $0x2070] sm:$0xff]  ;;  %v1088_v1 = vld [vmem:[#allocation2 + $0x1f38] sm:$0xff] }
 0x51d   :  { %v1128_v21 = vld [vmem:[#allocation2 + $0x2078] sm:$0xff]  ;;  %v13048_v6 = vcombine.high %v1087_v10, %v1127_v29  ;;  %v13047_v0 = vcombine.low %v1087_v10, %v1127_v29  ;;  %v9430_v10 = vmax.f32 %v14419_v34, %v14481_v49  ;;  %v14496_v29 = vsub.s32 1, %v14491_v26 }
 0x51e   :  { %v13050_v58 = vcombine.high %v1088_v1, %v1128_v21  ;;  %v13049_v7 = vcombine.low %v1088_v1, %v1128_v21  ;;  %v848_v1 = vld [vmem:[#allocation2 + $0x17b8] sm:$0xff]  ;;  %v9412_v49 = vmax.f32 %v14301_v41, %v14361_v17 }
 0x51f   :  { %9342 = vmatpush1.bf16.msra.mxu0 %v12087_v23  ;;  %9383 = vmatpush1.bf16.msra.mxu1 %v12089_v28  ;;  %v1007_v23 = vld [vmem:[#allocation2 + $0x1cb0] sm:$0xff]  ;;  %v888_v21 = vld [vmem:[#allocation2 + $0x18f8] sm:$0xff] }
 0x520   :  { %9343 = vmatprep.subr.bf16.mxu0 %v13288_v2  ;;  %9384 = vmatprep.subr.bf16.mxu1 %v13290_v39  ;;  %v1047_v28 = vld [vmem:[#allocation2 + $0x1df0] sm:$0xff]  ;;  %v1008_v2 = vld [vmem:[#allocation2 + $0x1cb8] sm:$0xff]  ;;  %v12809_v41 = vcombine.low %v848_v1, %v888_v21 }
 0x521   :  { %v1048_v39 = vld [vmem:[#allocation2 + $0x1df8] sm:$0xff]  ;;  %v12968_v36 = vcombine.high %v1007_v23, %v1047_v28  ;;  %v12967_v13 = vcombine.low %v1007_v23, %v1047_v28  ;;  %v14507_v28 = vld [vmem:[#allocation4] sm:$0xff] }
 0x522   :  { %v12969_v8 = vcombine.low %v1008_v2, %v1048_v39 }
 0x523   :  { %9344 = vmatpush2.bf16.msra.mxu0 %v13287_v5  ;;  %9385 = vmatpush2.bf16.msra.mxu1 %v13289_v11  ;;  %v12970_v5 = vcombine.high %v1008_v2, %v1048_v39  ;;  %v927_v11 = vld [vmem:[#allocation2 + $0x1a30] sm:$0xff]  ;;  %v12810_v2 = vcombine.high %v848_v1, %v888_v21 }
 0x524   :  { %9345 = vmatprep.subr.bf16.mxu0 %v13208_v30  ;;  %9386 = vmatprep.subr.bf16.mxu1 %v13210_v3  ;;  %v967_v30 = vld [vmem:[#allocation2 + $0x1b70] sm:$0xff]  ;;  %v928_v3 = vld [vmem:[#allocation2 + $0x1a38] sm:$0xff] }
 0x525   :  { %v12889_v23 = vcombine.low %v928_v3, %v968_v45 }
 0x527   :  { %9346 = vmatpush2.bf16.msra.mxu0 %v13207_v25  ;;  %9387 = vmatpush2.bf16.msra.mxu1 %v13209_v48  ;;  %v12888_v25 = vcombine.high %v927_v11, %v967_v30  ;;  %v12890_v48 = vcombine.high %v928_v3, %v968_v45 }
 0x528   :  { %9347 = vmatprep.subr.bf16.mxu0 %v13128_v43  ;;  %9388 = vmatprep.subr.bf16.mxu1 %v13130_v16  ;;  %v847_v43 = vld [vmem:[#allocation2 + $0x17b0] sm:$0xff] }
 0x529   :  { %v887_v16 = vld [vmem:[#allocation2 + $0x18f0] sm:$0xff] }
 0x52a   :  { %v12808_v34 = vcombine.high %v847_v43, %v887_v16 }
 0x52b   :  { %9348 = vmatpush2.bf16.msra.mxu0 %v13127_v54  ;;  %9389 = vmatpush2.bf16.msra.mxu1 %v13129_v57  ;;  %v9432_v54 = vmax.f32 %v14421_v50, %v14485_v15  ;;  %v14501_v57 = vsub.s32 3, %v14491_v26  ;;  %v767_v50 = vld [vmem:[#allocation2 + $0x1530] sm:$0xff] }
 0x52c   :  { %9349 = vmatprep.subr.bf16.mxu0 %v13048_v6  ;;  %9390 = vmatprep.subr.bf16.mxu1 %v13050_v58  ;;  %v12887_v6 = vcombine.low %v927_v11, %v967_v30  ;;  %v9410_v58 = vmax.f32 %v14299_v38, %v14359_v14  ;;  %v807_v15 = vld [vmem:[#allocation2 + $0x1670] sm:$0xff] }
 0x52d   :  { %v9452_v38 = vmax.f32 %v9412_v49, %v9432_v54  ;;  %v9490_v14 = vrot.slane %v14507_v28, %v14501_v57  ;;  %v12728_v17 = vcombine.high %v767_v50, %v807_v15  ;;  %v12727_v3 = vcombine.low %v767_v50, %v807_v15  ;;  %v13631_v54 = vld [vmem:[#allocation6 + $0x164] ss:$8 sps:$4 sm:$0xff]   ;;  %v13626_v49 = vld [vmem:[#allocation6 + $0x60] ss:$8 sps:$4 sm:$0xff]  }
 0x52e   :  { %v9450_v39 = vmax.f32 %v9410_v58, %v9430_v10  ;;  %v13628_v10 = vld [vmem:[#allocation6 + $0x64] ss:$8 sps:$4 sm:$0xff]  }
 0x52f   :  { %9350 = vmatpush2.bf16.msra.mxu0 %v13047_v0  ;;  %9391 = vmatpush2.bf16.msra.mxu1 %v13049_v7  ;;  %v9482_v0 = vrot.slane %v14507_v28, %v14496_v29  ;;  %v808_v7 = vld [vmem:[#allocation2 + $0x1678] sm:$0xff]  ;;  %v9578_v30 = vadd.f32 %v9490_v14, %v9452_v38 }
 0x530   :  { %9351 = vmatprep.subr.bf16.mxu0 %v12968_v36  ;;  %9392 = vmatprep.subr.bf16.mxu1 %v12970_v5  ;;  %v12807_v36 = vcombine.low %v847_v43, %v887_v16  ;;  %v12730_v5 = vcombine.high %v768_v33, %v808_v7  ;;  %v12729_v45 = vcombine.low %v768_v33, %v808_v7  ;;  %v13623_v16 = vld [vmem:[#allocation6 + $0x170] ss:$8 sps:$4 sm:$0xff]   ;;  %v13640_v38 = vld [vmem:[#allocation6 + $0x44] ss:$8 sps:$4 sm:$0xff]  }
 0x531   :  { %v9576_v11 = vadd.f32 %v9482_v0, %v9450_v39  ;;  %v9598_v43 = vmax.f32 %v9578_v30, 0.0  ;;  %v13629_v39 = vld [vmem:[#allocation6 + $0x160] ss:$8 sps:$4 sm:$0xff]   ;;  %v13634_v0 = vld [vmem:[#allocation6 + $0x54] ss:$8 sps:$4 sm:$0xff]  }
 0x532   :  { %v13635_v7 = vld [vmem:[#allocation6 + $0x150] ss:$8 sps:$4 sm:$0xff]  }
 0x533   :  { %9352 = vmatpush2.bf16.msra.mxu0 %v12967_v13  ;;  %9393 = vmatpush2.bf16.msra.mxu1 %v12969_v8  ;;  %v13622_v13 = vld [vmem:[#allocation6 + $0x74] ss:$8 sps:$4 sm:$0xff]   ;;  %v13644_v30 = vld [vmem:[#allocation6 + $0x30] ss:$8 sps:$4 sm:$0xff]  }
 0x534   :  { %9353 = vmatprep.subr.bf16.mxu0 %v12888_v25  ;;  %9394 = vmatprep.subr.bf16.mxu1 %v12890_v48  ;;  %v13625_v8 = vld [vmem:[#allocation6 + $0x174] ss:$8 sps:$4 sm:$0xff]   ;;  %v9596_v25 = vmax.f32 %v9576_v11, 0.0  ;;  %v13620_v48 = vld [vmem:[#allocation6 + $0x70] ss:$8 sps:$4 sm:$0xff]  }
 0x535   :  { %v13649_v11 = vld [vmem:[#allocation6 + $0x134] ss:$8 sps:$4 sm:$0xff]  }
 0x536   :  { %v9616_v21 = vpack.c.bf16 %v9596_v25, %v9596_v25  ;;  %v13653_v25 = vld [vmem:[#allocation6 + $0x120] ss:$8 sps:$4 sm:$0xff]  }
 0x537   :  { %9354 = vmatpush2.bf16.msra.mxu0 %v12887_v6  ;;  %9395 = vmatpush2.bf16.msra.mxu1 %v12889_v23  ;;  %v9413_v6 = vmax.f32 %v14305_v53, %v14365_v37 }
 0x538   :  { %9355 = vmatprep.subr.bf16.mxu0 %v12808_v34  ;;  %9396 = vmatprep.subr.bf16.mxu1 %v12810_v2  ;;  %v9618_v34 = vpack.c.bf16 %v9598_v43, %v9598_v43  ;;  %v9415_v2 = vmax.f32 %v14308_v56, %v14368_v42  ;;  %v13632_v42 = vld [vmem:[#allocation6 + $0x50] ss:$8 sps:$4 sm:$0xff]   ;;  %v13661_v43 = vld [vmem:[#allocation6 + $0x114] ss:$8 sps:$4 sm:$0xff]  }
 0x53b   :  { %9356 = vmatpush2.bf16.msra.mxu0 %v12807_v36  ;;  %9397 = vmatpush2.bf16.msra.mxu1 %v12809_v41  ;;  %v13643_v36 = vld [vmem:[#allocation6 + $0x144] ss:$8 sps:$4 sm:$0xff]   ;;  %v13638_v41 = vld [vmem:[#allocation6 + $0x40] ss:$8 sps:$4 sm:$0xff]  }
 0x53c   :  { %9357 = vmatprep.subr.bf16.mxu0 %v12728_v17  ;;  %9398 = vmatprep.subr.bf16.mxu1 %v12730_v5  ;;  %v13641_v17 = vld [vmem:[#allocation6 + $0x140] ss:$8 sps:$4 sm:$0xff]   ;;  %v13646_v5 = vld [vmem:[#allocation6 + $0x34] ss:$8 sps:$4 sm:$0xff]  }
 0x53f   :  { %9358 = vmatpush2.bf16.msra.mxu0 %v12727_v3  ;;  %9399 = vmatpush2.bf16.msra.mxu1 %v12729_v45  ;;  %v13647_v3 = vld [vmem:[#allocation6 + $0x130] ss:$8 sps:$4 sm:$0xff]   ;;  %v13652_v45 = vld [vmem:[#allocation6 + $0x24] ss:$8 sps:$4 sm:$0xff]  }
 0x540   :  { %11567 = vmatprep.subr.bf16.mxu0 %v13622_v13  ;;  %11608 = vmatprep.subr.bf16.mxu1 %v13625_v8  ;;  %v13655_v13 = vld [vmem:[#allocation6 + $0x124] ss:$8 sps:$4 sm:$0xff]   ;;  %v13650_v8 = vld [vmem:[#allocation6 + $0x20] ss:$8 sps:$4 sm:$0xff]  }
 0x542   :  { %v9115_v1 = vpop.f32.mrf.mxu0  ;;  %9360 = vmatmul.mubr.bf16.vlgmr.msra.gmra.mxu0 %v14279_v12  ;;  %v9156_v23 = vpop.f32.mrf.mxu1  ;;  %9401 = vmatmul.mubr.bf16.vlgmr.msra.gmra.mxu1 %v14279_v12  ;;  %v13637_v12 = vld [vmem:[#allocation6 + $0x154] ss:$8 sps:$4 sm:$0xff]  }
 0x543   :  { %v9433_v58 = vmax.f32 %v14425_v51, %v9115_v1  ;;  %11568 = vmatpush1.bf16.msra.mxu0 %v13620_v48  ;;  %v9435_v50 = vmax.f32 %v14428_v32, %v9156_v23  ;;  %11599 = vmatprep.mubr.bf16.mxu0 %v9616_v21  ;;  %v13658_v48 = vld [vmem:[#allocation6 + $0x14] ss:$8 sps:$4 sm:$0xff]   ;;  %v13664_v1 = vld [vmem:[#allocation6 + $0x4] ss:$8 sps:$4 sm:$0xff]  }
 0x544   :  { %11609 = vmatpush1.bf16.msra.mxu1 %v13623_v16  ;;  %v14521_v15 = vpop.f32.mrf.mxu0  ;;  %11640 = vmatprep.mubr.bf16.mxu1 %v9618_v34  ;;  %v14525_v37 = vpop.f32.mrf.mxu1  ;;  %v13656_v16 = vld [vmem:[#allocation6 + $0x10] ss:$8 sps:$4 sm:$0xff]   ;;  %v13667_v21 = vld [vmem:[#allocation6 + $0x104] ss:$8 sps:$4 sm:$0xff]   ;;  %v13673_v23 = vld [vmem:[#allocation6 + $0x1f4] ss:$8 sps:$4 sm:$0xff]  }
 0x545   :  { %v14523_v53 = vmax.f32 %v9413_v6, %v9433_v58  ;;  %11569 = vmatprep.subr.bf16.mxu0 %v13628_v10  ;;  %v14527_v51 = vmax.f32 %v9415_v2, %v9435_v50  ;;  %11610 = vmatprep.subr.bf16.mxu1 %v13631_v54  ;;  %v13659_v10 = vld [vmem:[#allocation6 + $0x110] ss:$8 sps:$4 sm:$0xff]   ;;  %v13662_v54 = vld [vmem:[#allocation6] ss:$8 sps:$4 sm:$0xff]   ;;  %v13670_v58 = vld [vmem:[#allocation6 + $0xf4] ss:$8 sps:$4 sm:$0xff]  }
 0x546   :  { %v9119_v33 = vpop.f32.mrf.mxu0  ;;  %v9160_v56 = vpop.f32.mrf.mxu1  ;;  %v13665_v6 = vld [vmem:[#allocation6 + $0x100] ss:$8 sps:$4 sm:$0xff]   ;;  %v13668_v34 = vld [vmem:[#allocation6 + $0xf0] ss:$8 sps:$4 sm:$0xff]   ;;  %v13676_v2 = vld [vmem:[#allocation6 + $0xe4] ss:$8 sps:$4 sm:$0xff]  }
 0x547   :  { %11570 = vmatpush1.bf16.msra.mxu0 %v13626_v49  ;;  %v13671_v49 = vld [vmem:[#allocation6 + $0x1f0] ss:$8 sps:$4 sm:$0xff]   ;;  %v13679_v50 = vld [vmem:[#allocation6 + $0x1e4] ss:$8 sps:$4 sm:$0xff]   ;;  %v13685_v33 = vld [vmem:[#allocation6 + $0x1d4] ss:$8 sps:$4 sm:$0xff]  }
 0x548   :  { %11611 = vmatpush1.bf16.msra.mxu1 %v13629_v39  ;;  %v9120_v32 = vpop.f32.mrf.mxu0  ;;  %11571 = vmatprep.subr.bf16.mxu0 %v13634_v0  ;;  %v9161_v14 = vpop.f32.mrf.mxu1  ;;  %v13674_v39 = vld [vmem:[#allocation6 + $0xe0] ss:$8 sps:$4 sm:$0xff]   ;;  %v13680_v56 = vld [vmem:[#allocation6 + $0xd0] ss:$8 sps:$4 sm:$0xff]  }
 0x549   :  { %11612 = vmatprep.subr.bf16.mxu1 %v13637_v12  ;;  %v13677_v0 = vld [vmem:[#allocation6 + $0x1e0] ss:$8 sps:$4 sm:$0xff]   ;;  %v13682_v12 = vld [vmem:[#allocation6 + $0xd4] ss:$8 sps:$4 sm:$0xff]   ;;  %v13688_v32 = vld [vmem:[#allocation6 + $0xc4] ss:$8 sps:$4 sm:$0xff]  }
 0x54a   :  { %v13689_v14 = vld [vmem:[#allocation6 + $0x1c0] ss:$8 sps:$4 sm:$0xff]  }
 0x54b   :  { %11572 = vmatpush1.bf16.msra.mxu0 %v13632_v42  ;;  %v13683_v42 = vld [vmem:[#allocation6 + $0x1d0] ss:$8 sps:$4 sm:$0xff]  }
 0x54c   :  { %11613 = vmatpush1.bf16.msra.mxu1 %v13635_v7  ;;  %11573 = vmatprep.subr.bf16.mxu0 %v13640_v38  ;;  %v13691_v7 = vld [vmem:[#allocation6 + $0x1c4] ss:$8 sps:$4 sm:$0xff]   ;;  %v13686_v38 = vld [vmem:[#allocation6 + $0xc0] ss:$8 sps:$4 sm:$0xff]  }
 0x54d   :  { %11614 = vmatprep.subr.bf16.mxu1 %v13643_v36  ;;  %v13694_v36 = vld [vmem:[#allocation6 + $0xb4] ss:$8 sps:$4 sm:$0xff]  }
 0x54f   :  { %11574 = vmatpush1.bf16.msra.mxu0 %v13638_v41  ;;  %v13697_v41 = vld [vmem:[#allocation6 + $0x1b4] ss:$8 sps:$4 sm:$0xff]  }
 0x550   :  { %11615 = vmatpush1.bf16.msra.mxu1 %v13641_v17  ;;  %11575 = vmatprep.subr.bf16.mxu0 %v13646_v5  ;;  %v13692_v17 = vld [vmem:[#allocation6 + $0xb0] ss:$8 sps:$4 sm:$0xff]   ;;  %v14530_v5 = vsub.s32 0, %v14491_v26 }
 0x551   :  { %11616 = vmatprep.subr.bf16.mxu1 %v13649_v11  ;;  %v13695_v11 = vld [vmem:[#allocation6 + $0x1b0] ss:$8 sps:$4 sm:$0xff]  }
 0x553   :  { %11576 = vmatpush1.bf16.msra.mxu0 %v13644_v30  ;;  %v13700_v30 = vld [vmem:[#allocation6 + $0xa4] ss:$8 sps:$4 sm:$0xff]  }
 0x554   :  { %11617 = vmatpush1.bf16.msra.mxu1 %v13647_v3  ;;  %11577 = vmatprep.subr.bf16.mxu0 %v13652_v45  ;;  %v14533_v3 = vsub.s32 2, %v14491_v26  ;;  %v13703_v45 = vld [vmem:[#allocation6 + $0x1a4] ss:$8 sps:$4 sm:$0xff]  }
 0x555   :  { %11618 = vmatprep.subr.bf16.mxu1 %v13655_v13  ;;  %v9434_v13 = vmax.f32 %v14431_v4, %v14521_v15  ;;  %v9416_v4 = vmax.f32 %v14313_v62, %v14373_v47  ;;  %v13709_v15 = vld [vmem:[#allocation6 + $0x194] ss:$8 sps:$4 sm:$0xff]   ;;  %v13707_v62 = vld [vmem:[#allocation6 + $0x190] ss:$8 sps:$4 sm:$0xff]   ;;  %v13712_v47 = vld [vmem:[#allocation6 + $0x84] ss:$8 sps:$4 sm:$0xff]  }
 0x557   :  { %11578 = vmatpush1.bf16.msra.mxu0 %v13650_v8  ;;  %v9497_v8 = vsub.s32 5, %v14491_v26 }
 0x558   :  { %11619 = vmatpush1.bf16.msra.mxu1 %v13653_v25  ;;  %11579 = vmatprep.subr.bf16.mxu0 %v13658_v48  ;;  %v9436_v25 = vmax.f32 %v14433_v9, %v14525_v37  ;;  %v9505_v48 = vsub.s32 7, %v14491_v26  ;;  %v9486_v9 = vrot.slane %v14507_v28, %v14533_v3 }
 0x559   :  { %11620 = vmatprep.subr.bf16.mxu1 %v13661_v43  ;;  %v13698_v43 = vld [vmem:[#allocation6 + $0xa0] ss:$8 sps:$4 sm:$0xff]  }
 0x55b   :  { %11580 = vmatpush1.bf16.msra.mxu0 %v13656_v16  ;;  %v9414_v16 = vmax.f32 %v14311_v59, %v14371_v44  ;;  %v9498_v59 = vrot.slane %v14507_v28, %v9497_v8  ;;  %v9456_v44 = vmax.f32 %v9416_v4, %v9436_v25  ;;  %v13722_v25 = vld [vmem:[#allocation6 + $0x260] ss:$8 sps:$4 sm:$0xff]  }
 0x55c   :  { %11621 = vmatpush1.bf16.msra.mxu1 %v13659_v10  ;;  %11581 = vmatprep.subr.bf16.mxu0 %v13664_v1  ;;  %v9478_v10 = vrot.slane %v14507_v28, %v14530_v5  ;;  %v13701_v1 = vld [vmem:[#allocation6 + $0x1a0] ss:$8 sps:$4 sm:$0xff]  }
 0x55d   :  { %11622 = vmatprep.subr.bf16.mxu1 %v13667_v21  ;;  %v13706_v21 = vld [vmem:[#allocation6 + $0x94] ss:$8 sps:$4 sm:$0xff]   ;;  %v9454_v37 = vmax.f32 %v9414_v16, %v9434_v13 }
 0x55f   :  { %11582 = vmatpush1.bf16.msra.mxu0 %v13662_v54  ;;  %v9506_v54 = vrot.slane %v14507_v28, %v9505_v48 }
 0x560   :  { %11623 = vmatpush1.bf16.msra.mxu1 %v13665_v6  ;;  %11583 = vmatprep.subr.bf16.mxu0 %v13670_v58  ;;  %v13704_v6 = vld [vmem:[#allocation6 + $0x90] ss:$8 sps:$4 sm:$0xff]   ;;  %v9575_v58 = vadd.f32 %v9478_v10, %v14483_v55  ;;  %v13721_v55 = vld [vmem:[#allocation6 + $0x374] ss:$8 sps:$4 sm:$0xff]  }
 0x561   :  { %11624 = vmatprep.subr.bf16.mxu1 %v13673_v23  ;;  %v9577_v23 = vadd.f32 %v9486_v9, %v14488_v52  ;;  %v13719_v52 = vld [vmem:[#allocation6 + $0x370] ss:$8 sps:$4 sm:$0xff]  }
 0x563   :  { %11584 = vmatpush2.bf16.msra.mxu0 %v13668_v34  ;;  %v13715_v34 = vld [vmem:[#allocation6 + $0x184] ss:$8 sps:$4 sm:$0xff]  }
 0x564   :  { %11625 = vmatpush2.bf16.msra.mxu1 %v13671_v49  ;;  %11585 = vmatprep.subr.bf16.mxu0 %v13676_v2  ;;  %v9580_v49 = vadd.f32 %v9498_v59, %v9454_v37  ;;  %v9582_v2 = vadd.f32 %v9506_v54, %v9456_v44  ;;  %v13736_v37 = vld [vmem:[#allocation6 + $0x244] ss:$8 sps:$4 sm:$0xff]   ;;  %v13734_v54 = vld [vmem:[#allocation6 + $0x240] ss:$8 sps:$4 sm:$0xff]  }
 0x565   :  { %11626 = vmatprep.subr.bf16.mxu1 %v13679_v50  ;;  %v13710_v50 = vld [vmem:[#allocation6 + $0x80] ss:$8 sps:$4 sm:$0xff]   ;;  %v13739_v44 = vld [vmem:[#allocation6 + $0x344] ss:$8 sps:$4 sm:$0xff]  }
 0x567   :  { %11586 = vmatpush2.bf16.msra.mxu0 %v13674_v39  ;;  %v9595_v39 = vmax.f32 %v9575_v58, 0.0  ;;  %v13742_v58 = vld [vmem:[#allocation6 + $0x234] ss:$8 sps:$4 sm:$0xff]  }
 0x568   :  { %11627 = vmatpush2.bf16.msra.mxu1 %v13677_v0  ;;  %11587 = vmatprep.subr.bf16.mxu0 %v13682_v12  ;;  %v13713_v0 = vld [vmem:[#allocation6 + $0x180] ss:$8 sps:$4 sm:$0xff]   ;;  %v13718_v12 = vld [vmem:[#allocation6 + $0x274] ss:$8 sps:$4 sm:$0xff]  }
 0x569   :  { %11628 = vmatprep.subr.bf16.mxu1 %v13685_v33  ;;  %v9597_v33 = vmax.f32 %v9577_v23, 0.0  ;;  %v13743_v23 = vld [vmem:[#allocation6 + $0x330] ss:$8 sps:$4 sm:$0xff]  }
 0x56b   :  { %11588 = vmatpush2.bf16.msra.mxu0 %v13680_v56  ;;  %v9600_v56 = vmax.f32 %v9580_v49, 0.0  ;;  %v13751_v49 = vld [vmem:[#allocation6 + $0x324] ss:$8 sps:$4 sm:$0xff]  }
 0x56c   :  { %11629 = vmatpush2.bf16.msra.mxu1 %v13683_v42  ;;  %11589 = vmatprep.subr.bf16.mxu0 %v13688_v32  ;;  %v13716_v42 = vld [vmem:[#allocation6 + $0x270] ss:$8 sps:$4 sm:$0xff]   ;;  %v9602_v32 = vmax.f32 %v9582_v2, 0.0  ;;  %v13746_v2 = vld [vmem:[#allocation6 + $0x220] ss:$8 sps:$4 sm:$0xff]  }
 0x56d   :  { %11630 = vmatprep.subr.bf16.mxu1 %v13691_v7  ;;  %v9615_v7 = vpack.c.bf16 %v9595_v39, %v9595_v39  ;;  %v13754_v39 = vld [vmem:[#allocation6 + $0x214] ss:$8 sps:$4 sm:$0xff]  }
 0x56e   :  { %v9622_v13 = vpack.c.bf16 %v9602_v32, %v9602_v32  ;;  %v13761_v32 = vld [vmem:[#allocation6 + $0x300] ss:$8 sps:$4 sm:$0xff]  }
 0x56f   :  { %11590 = vmatpush2.bf16.msra.mxu0 %v13686_v38  ;;  %v9617_v38 = vpack.c.bf16 %v9597_v33, %v9597_v33  ;;  %v13755_v33 = vld [vmem:[#allocation6 + $0x310] ss:$8 sps:$4 sm:$0xff]  }
 0x570   :  { %11631 = vmatpush2.bf16.msra.mxu1 %v13689_v14  ;;  %11591 = vmatprep.subr.bf16.mxu0 %v13694_v36  ;;  %v13724_v14 = vld [vmem:[#allocation6 + $0x264] ss:$8 sps:$4 sm:$0xff]  }
 0x571   :  { %11632 = vmatprep.subr.bf16.mxu1 %v13697_v41  ;;  %v9620_v41 = vpack.c.bf16 %v9600_v56, %v9600_v56  ;;  %v13763_v56 = vld [vmem:[#allocation6 + $0x304] ss:$8 sps:$4 sm:$0xff]  }
 0x573   :  { %11592 = vmatpush2.bf16.msra.mxu0 %v13692_v17  ;;  %v13727_v17 = vld [vmem:[#allocation6 + $0x364] ss:$8 sps:$4 sm:$0xff]  }
 0x574   :  { %11633 = vmatpush2.bf16.msra.mxu1 %v13695_v11  ;;  %11593 = vmatprep.subr.bf16.mxu0 %v13700_v30  ;;  %v9417_v11 = vmax.f32 %v14317_v19, %v14377_v31  ;;  %v13733_v31 = vld [vmem:[#allocation6 + $0x354] ss:$8 sps:$4 sm:$0xff]  }
 0x575   :  { %11634 = vmatprep.subr.bf16.mxu1 %v13703_v45 }
 0x577   :  { %11594 = vmatpush2.bf16.msra.mxu0 %v13698_v43  ;;  %v9419_v43 = vmax.f32 %v14320_v22, %v14380_v35  ;;  %v13728_v35 = vld [vmem:[#allocation6 + $0x250] ss:$8 sps:$4 sm:$0xff]  }
 0x578   :  { %11635 = vmatpush2.bf16.msra.mxu1 %v13701_v1  ;;  %11595 = vmatprep.subr.bf16.mxu0 %v13706_v21  ;;  %v13725_v1 = vld [vmem:[#allocation6 + $0x360] ss:$8 sps:$4 sm:$0xff]   ;;  %v13730_v21 = vld [vmem:[#allocation6 + $0x254] ss:$8 sps:$4 sm:$0xff]  }
 0x579   :  { %11636 = vmatprep.subr.bf16.mxu1 %v13709_v15  ;;  %v13731_v15 = vld [vmem:[#allocation6 + $0x350] ss:$8 sps:$4 sm:$0xff]  }
 0x57b   :  { %11596 = vmatpush2.bf16.msra.mxu0 %v13704_v6  ;;  %v13737_v6 = vld [vmem:[#allocation6 + $0x340] ss:$8 sps:$4 sm:$0xff]  }
 0x57c   :  { %11637 = vmatpush2.bf16.msra.mxu1 %v13707_v62  ;;  %11597 = vmatprep.subr.bf16.mxu0 %v13712_v47  ;;  %v13745_v62 = vld [vmem:[#allocation6 + $0x334] ss:$8 sps:$4 sm:$0xff]   ;;  %v13740_v47 = vld [vmem:[#allocation6 + $0x230] ss:$8 sps:$4 sm:$0xff]  }
 0x57d   :  { %11638 = vmatprep.subr.bf16.mxu1 %v13715_v34  ;;  %v13748_v34 = vld [vmem:[#allocation6 + $0x224] ss:$8 sps:$4 sm:$0xff]  }
 0x57f   :  { %11598 = vmatpush2.bf16.msra.mxu0 %v13710_v50  ;;  %v13749_v50 = vld [vmem:[#allocation6 + $0x320] ss:$8 sps:$4 sm:$0xff]  }
 0x580   :  { %11639 = vmatpush2.bf16.msra.mxu1 %v13713_v0  ;;  %11649 = vmatprep.subr.bf16.mxu0 %v13718_v12  ;;  %v13757_v0 = vld [vmem:[#allocation6 + $0x314] ss:$8 sps:$4 sm:$0xff]   ;;  %v13752_v12 = vld [vmem:[#allocation6 + $0x210] ss:$8 sps:$4 sm:$0xff]  }
 0x581   :  { %11690 = vmatprep.subr.bf16.mxu1 %v13721_v55  ;;  %v13760_v55 = vld [vmem:[#allocation6 + $0x204] ss:$8 sps:$4 sm:$0xff]  }
 0x582   :  { %v9197_v36 = vpop.f32.mrf.mxu0  ;;  %11600 = vmatmul.mubr.bf16.vlgmr.msra.gmra.mxu0 %v9615_v7  ;;  %v9238_v45 = vpop.f32.mrf.mxu1  ;;  %v13766_v7 = vld [vmem:[#allocation6 + $0x2f4] ss:$8 sps:$4 sm:$0xff]  }
 0x583   :  { %v9437_v30 = vmax.f32 %v14437_v18, %v9197_v36  ;;  %11641 = vmatmul.mubr.bf16.vlgmr.msra.gmra.mxu1 %v9617_v38  ;;  %11650 = vmatpush1.bf16.msra.mxu0 %v13716_v42  ;;  %v9439_v16 = vmax.f32 %v14440_v63, %v9238_v45  ;;  %v13758_v42 = vld [vmem:[#allocation6 + $0x200] ss:$8 sps:$4 sm:$0xff]   ;;  %v13764_v38 = vld [vmem:[#allocation6 + $0x2f0] ss:$8 sps:$4 sm:$0xff]   ;;  %v13772_v36 = vld [vmem:[#allocation6 + $0x2e4] ss:$8 sps:$4 sm:$0xff]  }
 0x584   :  { %11681 = vmatprep.mubr.bf16.mxu0 %v9620_v41  ;;  %11691 = vmatpush1.bf16.msra.mxu1 %v13719_v52  ;;  %v14563_v10 = vpop.f32.mrf.mxu0  ;;  %v14567_v19 = vpop.f32.mrf.mxu1  ;;  %v13769_v52 = vld [vmem:[#allocation6 + $0x3f4] ss:$8 sps:$4 sm:$0xff]   ;;  %v13775_v41 = vld [vmem:[#allocation6 + $0x3e4] ss:$8 sps:$4 sm:$0xff]  }
 0x585   :  { %v14565_v4 = vmax.f32 %v9417_v11, %v9437_v30  ;;  %11722 = vmatprep.mubr.bf16.mxu1 %v9622_v13  ;;  %11651 = vmatprep.subr.bf16.mxu0 %v13724_v14  ;;  %v14569_v18 = vmax.f32 %v9419_v43, %v9439_v16  ;;  %v13767_v14 = vld [vmem:[#allocation6 + $0x3f0] ss:$8 sps:$4 sm:$0xff]   ;;  %v13773_v11 = vld [vmem:[#allocation6 + $0x3e0] ss:$8 sps:$4 sm:$0xff]   ;;  %v13778_v30 = vld [vmem:[#allocation6 + $0x2d4] ss:$8 sps:$4 sm:$0xff]  }
 0x586   :  { %v9201_v9 = vpop.f32.mrf.mxu0  ;;  %11692 = vmatprep.subr.bf16.mxu1 %v13727_v17  ;;  %v9242_v22 = vpop.f32.mrf.mxu1  ;;  %v13770_v17 = vld [vmem:[#allocation6 + $0x2e0] ss:$8 sps:$4 sm:$0xff]   ;;  %v13781_v45 = vld [vmem:[#allocation6 + $0x3d4] ss:$8 sps:$4 sm:$0xff]   ;;  %v13776_v13 = vld [vmem:[#allocation6 + $0x2d0] ss:$8 sps:$4 sm:$0xff]  }
 0x587   :  { %11652 = vmatpush1.bf16.msra.mxu0 %v13722_v25  ;;  %v13779_v25 = vld [vmem:[#allocation6 + $0x3d0] ss:$8 sps:$4 sm:$0xff]   ;;  %v13784_v43 = vld [vmem:[#allocation6 + $0x2c4] ss:$8 sps:$4 sm:$0xff]   ;;  %v13793_v9 = vld [vmem:[#allocation6 + $0x3b4] ss:$8 sps:$4 sm:$0xff]  }
 0x588   :  { %11693 = vmatpush1.bf16.msra.mxu1 %v13725_v1  ;;  %v9202_v63 = vpop.f32.mrf.mxu0  ;;  %11653 = vmatprep.subr.bf16.mxu0 %v13730_v21  ;;  %v9243_v59 = vpop.f32.mrf.mxu1  ;;  %v13787_v16 = vld [vmem:[#allocation6 + $0x3c4] ss:$8 sps:$4 sm:$0xff]   ;;  %v13782_v1 = vld [vmem:[#allocation6 + $0x2c0] ss:$8 sps:$4 sm:$0xff]   ;;  %v13788_v22 = vld [vmem:[#allocation6 + $0x2b0] ss:$8 sps:$4 sm:$0xff]  }
 0x589   :  { %11694 = vmatprep.subr.bf16.mxu1 %v13733_v31  ;;  %v13785_v21 = vld [vmem:[#allocation6 + $0x3c0] ss:$8 sps:$4 sm:$0xff]   ;;  %v13790_v31 = vld [vmem:[#allocation6 + $0x2b4] ss:$8 sps:$4 sm:$0xff]   ;;  %v13791_v63 = vld [vmem:[#allocation6 + $0x3b0] ss:$8 sps:$4 sm:$0xff]  }
 0x58a   :  { %v13799_v59 = vld [vmem:[#allocation6 + $0x3a4] ss:$8 sps:$4 sm:$0xff]  }
 0x58b   :  { %11654 = vmatpush1.bf16.msra.mxu0 %v13728_v35  ;;  %v9493_v35 = vsub.s32 4, %v14491_v26 }
 0x58c   :  { %11695 = vmatpush1.bf16.msra.mxu1 %v13731_v15  ;;  %11655 = vmatprep.subr.bf16.mxu0 %v13736_v37  ;;  %v13796_v15 = vld [vmem:[#allocation6 + $0x2a4] ss:$8 sps:$4 sm:$0xff]   ;;  %v9501_v37 = vsub.s32 6, %v14491_v26  ;;  %v13995_v26 = vld [vmem:[#allocation6 + $0x790] ss:$8 sps:$4 sm:$0xff]  }
 0x58d   :  { %11696 = vmatprep.subr.bf16.mxu1 %v13739_v44  ;;  %v9438_v44 = vmax.f32 %v14443_v60, %v14563_v10  ;;  %v13805_v10 = vld [vmem:[#allocation6 + $0x394] ss:$8 sps:$4 sm:$0xff]  }
 0x58e   :  { %v9502_v60 = vrot.slane %v14507_v28, %v9501_v37 }
 0x58f   :  { %11656 = vmatpush1.bf16.msra.mxu0 %v13734_v54  ;;  %v9440_v54 = vmax.f32 %v14445_v20, %v14567_v19  ;;  %v14587_v20 = vld [vmem:[#allocation4 + $0x8] sm:$0xff] }
 0x590   :  { %11697 = vmatpush1.bf16.msra.mxu1 %v13737_v6  ;;  %11657 = vmatprep.subr.bf16.mxu0 %v13742_v58  ;;  %v13794_v6 = vld [vmem:[#allocation6 + $0x2a0] ss:$8 sps:$4 sm:$0xff]   ;;  %v9418_v58 = vmax.f32 %v14323_v24, %v14383_v40  ;;  %v9514_v40 = vrot.slane %v14587_v20, %v14496_v29 }
 0x591   :  { %11698 = vmatprep.subr.bf16.mxu1 %v13745_v62  ;;  %v9494_v62 = vrot.slane %v14507_v28, %v9493_v35  ;;  %v13808_v28 = vld [vmem:[#allocation6 + $0x284] ss:$8 sps:$4 sm:$0xff]  }
 0x592   :  { %v9458_v24 = vmax.f32 %v9418_v58, %v9438_v44  ;;  %v13821_v44 = vld [vmem:[#allocation6 + $0x560] ss:$8 sps:$4 sm:$0xff]   ;;  %v13829_v58 = vld [vmem:[#allocation6 + $0x554] ss:$8 sps:$4 sm:$0xff]  }
 0x593   :  { %11658 = vmatpush1.bf16.msra.mxu0 %v13740_v47  ;;  %v13797_v47 = vld [vmem:[#allocation6 + $0x3a0] ss:$8 sps:$4 sm:$0xff]  }
 0x594   :  { %11699 = vmatpush1.bf16.msra.mxu1 %v13743_v23  ;;  %11659 = vmatprep.subr.bf16.mxu0 %v13748_v34  ;;  %v13802_v23 = vld [vmem:[#allocation6 + $0x294] ss:$8 sps:$4 sm:$0xff]   ;;  %v9420_v34 = vmax.f32 %v14325_v27, %v14385_v46  ;;  %v9579_v27 = vadd.f32 %v9494_v62, %v14523_v53  ;;  %v13803_v46 = vld [vmem:[#allocation6 + $0x390] ss:$8 sps:$4 sm:$0xff]  }
 0x595   :  { %11700 = vmatprep.subr.bf16.mxu1 %v13751_v49  ;;  %v9522_v49 = vrot.slane %v14587_v20, %v14501_v57  ;;  %v13817_v53 = vld [vmem:[#allocation6 + $0x574] ss:$8 sps:$4 sm:$0xff]  }
 0x596   :  { %v9460_v19 = vmax.f32 %v9420_v34, %v9440_v54  ;;  %v13826_v54 = vld [vmem:[#allocation6 + $0x454] ss:$8 sps:$4 sm:$0xff]   ;;  %v13824_v34 = vld [vmem:[#allocation6 + $0x450] ss:$8 sps:$4 sm:$0xff]  }
 0x597   :  { %11660 = vmatpush1.bf16.msra.mxu0 %v13746_v2  ;;  %v13800_v2 = vld [vmem:[#allocation6 + $0x290] ss:$8 sps:$4 sm:$0xff]  }
 0x598   :  { %11701 = vmatpush1.bf16.msra.mxu1 %v13749_v50  ;;  %11661 = vmatprep.subr.bf16.mxu0 %v13754_v39  ;;  %v9581_v50 = vadd.f32 %v9502_v60, %v14527_v51  ;;  %v13811_v39 = vld [vmem:[#allocation6 + $0x384] ss:$8 sps:$4 sm:$0xff]   ;;  %v13815_v51 = vld [vmem:[#allocation6 + $0x570] ss:$8 sps:$4 sm:$0xff]  }
 0x599   :  { %11702 = vmatprep.subr.bf16.mxu1 %v13757_v0  ;;  %v9584_v0 = vadd.f32 %v9514_v40, %v9458_v24  ;;  %v13832_v24 = vld [vmem:[#allocation6 + $0x444] ss:$8 sps:$4 sm:$0xff]  }
 0x59b   :  { %11662 = vmatpush1.bf16.msra.mxu0 %v13752_v12  ;;  %v9586_v12 = vadd.f32 %v9522_v49, %v9460_v19  ;;  %v13835_v19 = vld [vmem:[#allocation6 + $0x544] ss:$8 sps:$4 sm:$0xff]   ;;  %v13830_v49 = vld [vmem:[#allocation6 + $0x440] ss:$8 sps:$4 sm:$0xff]  }
 0x59c   :  { %11703 = vmatpush1.bf16.msra.mxu1 %v13755_v33  ;;  %11663 = vmatprep.subr.bf16.mxu0 %v13760_v55  ;;  %v13806_v33 = vld [vmem:[#allocation6 + $0x280] ss:$8 sps:$4 sm:$0xff]   ;;  %v9599_v55 = vmax.f32 %v9579_v27, 0.0  ;;  %v13838_v27 = vld [vmem:[#allocation6 + $0x434] ss:$8 sps:$4 sm:$0xff]  }
 0x59d   :  { %11704 = vmatprep.subr.bf16.mxu1 %v13763_v56  ;;  %v13809_v56 = vld [vmem:[#allocation6 + $0x380] ss:$8 sps:$4 sm:$0xff]  }
 0x59f   :  { %11664 = vmatpush1.bf16.msra.mxu0 %v13758_v42  ;;  %v13814_v42 = vld [vmem:[#allocation6 + $0x474] ss:$8 sps:$4 sm:$0xff]  }
 0x5a0   :  { %11705 = vmatpush1.bf16.msra.mxu1 %v13761_v32  ;;  %11665 = vmatprep.subr.bf16.mxu0 %v13766_v7  ;;  %v9601_v32 = vmax.f32 %v9581_v50, 0.0  ;;  %v9604_v7 = vmax.f32 %v9584_v0, 0.0  ;;  %v13839_v50 = vld [vmem:[#allocation6 + $0x530] ss:$8 sps:$4 sm:$0xff]   ;;  %v13847_v0 = vld [vmem:[#allocation6 + $0x524] ss:$8 sps:$4 sm:$0xff]  }
 0x5a1   :  { %11706 = vmatprep.subr.bf16.mxu1 %v13769_v52  ;;  %v13812_v52 = vld [vmem:[#allocation6 + $0x470] ss:$8 sps:$4 sm:$0xff]  }
 0x5a3   :  { %11666 = vmatpush2.bf16.msra.mxu0 %v13764_v38  ;;  %v9606_v38 = vmax.f32 %v9586_v12, 0.0  ;;  %v13842_v12 = vld [vmem:[#allocation6 + $0x420] ss:$8 sps:$4 sm:$0xff]  }
 0x5a4   :  { %11707 = vmatpush2.bf16.msra.mxu1 %v13767_v14  ;;  %11667 = vmatprep.subr.bf16.mxu0 %v13772_v36  ;;  %v9619_v14 = vpack.c.bf16 %v9599_v55, %v9599_v55  ;;  %v9621_v36 = vpack.c.bf16 %v9601_v32, %v9601_v32  ;;  %v13850_v55 = vld [vmem:[#allocation6 + $0x414] ss:$8 sps:$4 sm:$0xff]   ;;  %v13851_v32 = vld [vmem:[#allocation6 + $0x510] ss:$8 sps:$4 sm:$0xff]  }
 0x5a5   :  { %11708 = vmatprep.subr.bf16.mxu1 %v13775_v41  ;;  %v13820_v41 = vld [vmem:[#allocation6 + $0x464] ss:$8 sps:$4 sm:$0xff]  }
 0x5a7   :  { %11668 = vmatpush2.bf16.msra.mxu0 %v13770_v17 }
 0x5a8   :  { %11709 = vmatpush2.bf16.msra.mxu1 %v13773_v11  ;;  %11669 = vmatprep.subr.bf16.mxu0 %v13778_v30  ;;  %v9624_v11 = vpack.c.bf16 %v9604_v7, %v9604_v7  ;;  %v13823_v30 = vld [vmem:[#allocation6 + $0x564] ss:$8 sps:$4 sm:$0xff]  }
 0x5a9   :  { %11710 = vmatprep.subr.bf16.mxu1 %v13781_v45  ;;  %v14714_v45 = vld [vmem:[#allocation13_spill] sm:$0xff] }
 0x5aa   :  { %v13859_v7 = vld [vmem:[#allocation6 + $0x504] ss:$8 sps:$4 sm:$0xff]  }
 0x5ab   :  { %11670 = vmatpush2.bf16.msra.mxu0 %v13776_v13  ;;  %v9421_v13 = vmax.f32 %v14714_v45, %v14389_v61  ;;  %v13869_v45 = vld [vmem:[#allocation6 + $0x5e0] ss:$8 sps:$4 sm:$0xff]  }
 0x5ac   :  { %11711 = vmatpush2.bf16.msra.mxu1 %v13779_v25  ;;  %11671 = vmatprep.subr.bf16.mxu0 %v13784_v43  ;;  %v14715_v25 = vld [vmem:[#allocation28_spill] sm:$0xff] }
 0x5ad   :  { %11712 = vmatprep.subr.bf16.mxu1 %v13787_v16 }
 0x5af   :  { %11672 = vmatpush2.bf16.msra.mxu0 %v13782_v1  ;;  %v9626_v1 = vpack.c.bf16 %v9606_v38, %v9606_v38  ;;  %v13857_v38 = vld [vmem:[#allocation6 + $0x500] ss:$8 sps:$4 sm:$0xff]  }
 0x5b0   :  { %11713 = vmatpush2.bf16.msra.mxu1 %v13785_v21  ;;  %11673 = vmatprep.subr.bf16.mxu0 %v13790_v31  ;;  %v13818_v21 = vld [vmem:[#allocation6 + $0x460] ss:$8 sps:$4 sm:$0xff]  }
 0x5b1   :  { %11714 = vmatprep.subr.bf16.mxu1 %v13793_v9  ;;  %v14716_v31 = vld [vmem:[#allocation21_spill] sm:$0xff]  ;;  %v14717_v9 = vld [vmem:[#allocation14_spill] sm:$0xff] }
 0x5b3   :  { %11674 = vmatpush2.bf16.msra.mxu0 %v13788_v22  ;;  %v9423_v22 = vmax.f32 %v14717_v9, %v14716_v31  ;;  %v13878_v31 = vld [vmem:[#allocation6 + $0x4c0] ss:$8 sps:$4 sm:$0xff]  }
 0x5b4   :  { %11715 = vmatpush2.bf16.msra.mxu1 %v13791_v63  ;;  %11675 = vmatprep.subr.bf16.mxu0 %v13796_v15  ;;  %v14718_v63 = vld [vmem:[#allocation29_spill] sm:$0xff] }
 0x5b5   :  { %11716 = vmatprep.subr.bf16.mxu1 %v13799_v59  ;;  %v13881_v9 = vld [vmem:[#allocation6 + $0x5c0] ss:$8 sps:$4 sm:$0xff]  }
 0x5b7   :  { %11676 = vmatpush2.bf16.msra.mxu0 %v13794_v6 }
 0x5b8   :  { %11717 = vmatpush2.bf16.msra.mxu1 %v13797_v47  ;;  %11677 = vmatprep.subr.bf16.mxu0 %v13802_v23 }
 0x5b9   :  { %11718 = vmatprep.subr.bf16.mxu1 %v13805_v10  ;;  %v13827_v10 = vld [vmem:[#allocation6 + $0x550] ss:$8 sps:$4 sm:$0xff]  }
 0x5bb   :  { %11678 = vmatpush2.bf16.msra.mxu0 %v13800_v2  ;;  %v13833_v2 = vld [vmem:[#allocation6 + $0x540] ss:$8 sps:$4 sm:$0xff]  }
 0x5bc   :  { %11719 = vmatpush2.bf16.msra.mxu1 %v13803_v46  ;;  %11679 = vmatprep.subr.bf16.mxu0 %v13808_v28  ;;  %v13841_v46 = vld [vmem:[#allocation6 + $0x534] ss:$8 sps:$4 sm:$0xff]   ;;  %v13836_v28 = vld [vmem:[#allocation6 + $0x430] ss:$8 sps:$4 sm:$0xff]  }
 0x5bd   :  { %11720 = vmatprep.subr.bf16.mxu1 %v13811_v39  ;;  %v13844_v39 = vld [vmem:[#allocation6 + $0x424] ss:$8 sps:$4 sm:$0xff]  }
 0x5bf   :  { %11680 = vmatpush2.bf16.msra.mxu0 %v13806_v33  ;;  %v13845_v33 = vld [vmem:[#allocation6 + $0x520] ss:$8 sps:$4 sm:$0xff]  }
 0x5c0   :  { %11721 = vmatpush2.bf16.msra.mxu1 %v13809_v56  ;;  %11731 = vmatprep.subr.bf16.mxu0 %v13814_v42  ;;  %v13853_v56 = vld [vmem:[#allocation6 + $0x514] ss:$8 sps:$4 sm:$0xff]   ;;  %v13848_v42 = vld [vmem:[#allocation6 + $0x410] ss:$8 sps:$4 sm:$0xff]  }
 0x5c1   :  { %11772 = vmatprep.subr.bf16.mxu1 %v13817_v53  ;;  %v13856_v53 = vld [vmem:[#allocation6 + $0x404] ss:$8 sps:$4 sm:$0xff]  }
 0x5c2   :  { %v9279_v17 = vpop.f32.mrf.mxu0  ;;  %11682 = vmatmul.mubr.bf16.vlgmr.msra.gmra.mxu0 %v9619_v14  ;;  %v9320_v16 = vpop.f32.mrf.mxu1  ;;  %v13862_v14 = vld [vmem:[#allocation6 + $0x4f4] ss:$8 sps:$4 sm:$0xff]  }
 0x5c3   :  { %v9441_v43 = vmax.f32 %v14715_v25, %v9279_v17  ;;  %11723 = vmatmul.mubr.bf16.vlgmr.msra.gmra.mxu1 %v9621_v36  ;;  %11732 = vmatpush1.bf16.msra.mxu0 %v13812_v52  ;;  %v9443_v15 = vmax.f32 %v14718_v63, %v9320_v16  ;;  %v13854_v52 = vld [vmem:[#allocation6 + $0x400] ss:$8 sps:$4 sm:$0xff]   ;;  %v13860_v36 = vld [vmem:[#allocation6 + $0x4f0] ss:$8 sps:$4 sm:$0xff]   ;;  %v13868_v17 = vld [vmem:[#allocation6 + $0x4e4] ss:$8 sps:$4 sm:$0xff]  }
 0x5c4   :  { %11763 = vmatprep.mubr.bf16.mxu0 %v9624_v11  ;;  %11773 = vmatpush1.bf16.msra.mxu1 %v13815_v51  ;;  %v14601_v59 = vpop.f32.mrf.mxu0  ;;  %v14605_v61 = vpop.f32.mrf.mxu1  ;;  %v13865_v51 = vld [vmem:[#allocation6 + $0x5f4] ss:$8 sps:$4 sm:$0xff]   ;;  %v13871_v11 = vld [vmem:[#allocation6 + $0x5e4] ss:$8 sps:$4 sm:$0xff]   ;;  %v13875_v16 = vld [vmem:[#allocation6 + $0x5d0] ss:$8 sps:$4 sm:$0xff]  }
 0x5c5   :  { %v14603_v6 = vmax.f32 %v9421_v13, %v9441_v43  ;;  %11804 = vmatprep.mubr.bf16.mxu1 %v9626_v1  ;;  %11733 = vmatprep.subr.bf16.mxu0 %v13820_v41  ;;  %v14607_v62 = vmax.f32 %v9423_v22, %v9443_v15  ;;  %v13863_v41 = vld [vmem:[#allocation6 + $0x5f0] ss:$8 sps:$4 sm:$0xff]   ;;  %v13874_v13 = vld [vmem:[#allocation6 + $0x4d4] ss:$8 sps:$4 sm:$0xff]   ;;  %v13880_v1 = vld [vmem:[#allocation6 + $0x4c4] ss:$8 sps:$4 sm:$0xff]  }
 0x5c6   :  { %v9283_v47 = vpop.f32.mrf.mxu0  ;;  %11774 = vmatprep.subr.bf16.mxu1 %v13823_v30  ;;  %v9324_v23 = vpop.f32.mrf.mxu1  ;;  %v13866_v30 = vld [vmem:[#allocation6 + $0x4e0] ss:$8 sps:$4 sm:$0xff]   ;;  %v13877_v25 = vld [vmem:[#allocation6 + $0x5d4] ss:$8 sps:$4 sm:$0xff]   ;;  %v13872_v43 = vld [vmem:[#allocation6 + $0x4d0] ss:$8 sps:$4 sm:$0xff]  }
 0x5c7   :  { %11734 = vmatpush1.bf16.msra.mxu0 %v13818_v21  ;;  %v13883_v21 = vld [vmem:[#allocation6 + $0x5c4] ss:$8 sps:$4 sm:$0xff]   ;;  %v13886_v22 = vld [vmem:[#allocation6 + $0x4b4] ss:$8 sps:$4 sm:$0xff]   ;;  %v13884_v15 = vld [vmem:[#allocation6 + $0x4b0] ss:$8 sps:$4 sm:$0xff]  }
 0x5c8   :  { %11775 = vmatpush1.bf16.msra.mxu1 %v13821_v44  ;;  %v9284_v60 = vpop.f32.mrf.mxu0  ;;  %11735 = vmatprep.subr.bf16.mxu0 %v13826_v54  ;;  %v9325_v40 = vpop.f32.mrf.mxu1  ;;  %v13889_v63 = vld [vmem:[#allocation6 + $0x5b4] ss:$8 sps:$4 sm:$0xff]   ;;  %v13887_v44 = vld [vmem:[#allocation6 + $0x5b0] ss:$8 sps:$4 sm:$0xff]   ;;  %v13892_v54 = vld [vmem:[#allocation6 + $0x4a4] ss:$8 sps:$4 sm:$0xff]  }
 0x5c9   :  { %11776 = vmatprep.subr.bf16.mxu1 %v13829_v58  ;;  %v13895_v58 = vld [vmem:[#allocation6 + $0x5a4] ss:$8 sps:$4 sm:$0xff]   ;;  %v14722_v40 = vld [vmem:[#allocation15_spill] sm:$0xff] }
 0x5ca   :  { %v14719_v47 = vld [vmem:[#allocation30_spill] sm:$0xff] }
 0x5cb   :  { %11736 = vmatpush1.bf16.msra.mxu0 %v13824_v34  ;;  %v9442_v23 = vmax.f32 %v14719_v47, %v14601_v59  ;;  %v14720_v34 = vld [vmem:[#allocation31_spill] sm:$0xff]  ;;  %v9518_v59 = vrot.slane %v14587_v20, %v14533_v3 }
 0x5cc   :  { %11777 = vmatpush1.bf16.msra.mxu1 %v13827_v10  ;;  %11737 = vmatprep.subr.bf16.mxu0 %v13832_v24  ;;  %v9444_v60 = vmax.f32 %v14720_v34, %v14605_v61  ;;  %v13890_v10 = vld [vmem:[#allocation6 + $0x4a0] ss:$8 sps:$4 sm:$0xff]   ;;  %v14721_v24 = vld [vmem:[#allocation22_spill] sm:$0xff]  ;;  %v13901_v61 = vld [vmem:[#allocation6 + $0x594] ss:$8 sps:$4 sm:$0xff]  }
 0x5cd   :  { %11778 = vmatprep.subr.bf16.mxu1 %v13835_v19  ;;  %v9422_v19 = vmax.f32 %v14722_v40, %v14721_v24  ;;  %v13922_v24 = vld [vmem:[#allocation6 + $0x654] ss:$8 sps:$4 sm:$0xff]  }
 0x5cf   :  { %11738 = vmatpush1.bf16.msra.mxu0 %v13830_v49  ;;  %v9510_v49 = vrot.slane %v14587_v20, %v14530_v5 }
 0x5d0   :  { %11779 = vmatpush1.bf16.msra.mxu1 %v13833_v2  ;;  %11739 = vmatprep.subr.bf16.mxu0 %v13838_v27  ;;  %v13893_v2 = vld [vmem:[#allocation6 + $0x5a0] ss:$8 sps:$4 sm:$0xff]   ;;  %v13898_v27 = vld [vmem:[#allocation6 + $0x494] ss:$8 sps:$4 sm:$0xff]  }
 0x5d1   :  { %11780 = vmatprep.subr.bf16.mxu1 %v13841_v46  ;;  %v14723_v46 = vld [vmem:[#allocation23_spill] sm:$0xff] }
 0x5d3   :  { %11740 = vmatpush1.bf16.msra.mxu0 %v13836_v28  ;;  %v14724_v28 = vld [vmem:[#allocation16_spill] sm:$0xff] }
 0x5d4   :  { %11781 = vmatpush1.bf16.msra.mxu1 %v13839_v50  ;;  %11741 = vmatprep.subr.bf16.mxu0 %v13844_v39  ;;  %v9424_v50 = vmax.f32 %v14724_v28, %v14723_v46  ;;  %v9462_v39 = vmax.f32 %v9422_v19, %v9442_v23  ;;  %v14730_v23 = vld [vmem:[#allocation33_spill] sm:$0xff]  ;;  %v13920_v28 = vld [vmem:[#allocation6 + $0x650] ss:$8 sps:$4 sm:$0xff]  }
 0x5d5   :  { %11782 = vmatprep.subr.bf16.mxu1 %v13847_v0  ;;  %v9530_v0 = vrot.slane %v14587_v20, %v9497_v8  ;;  %v13902_v8 = vld [vmem:[#allocation6 + $0x480] ss:$8 sps:$4 sm:$0xff]  }
 0x5d7   :  { %11742 = vmatpush1.bf16.msra.mxu0 %v13842_v12  ;;  %v9464_v12 = vmax.f32 %v9424_v50, %v9444_v60 }
 0x5d8   :  { %11783 = vmatpush1.bf16.msra.mxu1 %v13845_v33  ;;  %11743 = vmatprep.subr.bf16.mxu0 %v13850_v55  ;;  %v9538_v33 = vrot.slane %v14587_v20, %v9505_v48  ;;  %v13896_v55 = vld [vmem:[#allocation6 + $0x490] ss:$8 sps:$4 sm:$0xff]   ;;  %v13905_v48 = vld [vmem:[#allocation6 + $0x580] ss:$8 sps:$4 sm:$0xff]  }
 0x5d9   :  { %11784 = vmatprep.subr.bf16.mxu1 %v13853_v56  ;;  %v9583_v56 = vadd.f32 %v9510_v49, %v14565_v4  ;;  %v13913_v4 = vld [vmem:[#allocation6 + $0x774] ss:$8 sps:$4 sm:$0xff]  }
 0x5da   :  { %v13925_v49 = vld [vmem:[#allocation6 + $0x754] ss:$8 sps:$4 sm:$0xff]  }
 0x5db   :  { %11744 = vmatpush1.bf16.msra.mxu0 %v13848_v42  ;;  %v13899_v42 = vld [vmem:[#allocation6 + $0x590] ss:$8 sps:$4 sm:$0xff]  }
 0x5dc   :  { %11785 = vmatpush1.bf16.msra.mxu1 %v13851_v32  ;;  %11745 = vmatprep.subr.bf16.mxu0 %v13856_v53  ;;  %v13904_v32 = vld [vmem:[#allocation6 + $0x484] ss:$8 sps:$4 sm:$0xff]   ;;  %v9585_v53 = vadd.f32 %v9518_v59, %v14569_v18  ;;  %v13911_v18 = vld [vmem:[#allocation6 + $0x770] ss:$8 sps:$4 sm:$0xff]  }
 0x5dd   :  { %11786 = vmatprep.subr.bf16.mxu1 %v13859_v7  ;;  %v13907_v7 = vld [vmem:[#allocation6 + $0x584] ss:$8 sps:$4 sm:$0xff]   ;;  %v13923_v59 = vld [vmem:[#allocation6 + $0x750] ss:$8 sps:$4 sm:$0xff]  }
 0x5df   :  { %11746 = vmatpush1.bf16.msra.mxu0 %v13854_v52  ;;  %v9588_v52 = vadd.f32 %v9530_v0, %v9462_v39  ;;  %v13931_v0 = vld [vmem:[#allocation6 + $0x744] ss:$8 sps:$4 sm:$0xff]  }
 0x5e0   :  { %11787 = vmatpush1.bf16.msra.mxu1 %v13857_v38  ;;  %11747 = vmatprep.subr.bf16.mxu0 %v13862_v14  ;;  %v9590_v38 = vadd.f32 %v9538_v33, %v9464_v12  ;;  %v9603_v14 = vmax.f32 %v9583_v56, 0.0  ;;  %v13926_v12 = vld [vmem:[#allocation6 + $0x640] ss:$8 sps:$4 sm:$0xff]   ;;  %v13937_v56 = vld [vmem:[#allocation6 + $0x734] ss:$8 sps:$4 sm:$0xff]  }
 0x5e1   :  { %11788 = vmatprep.subr.bf16.mxu1 %v13865_v51  ;;  %v13910_v51 = vld [vmem:[#allocation6 + $0x674] ss:$8 sps:$4 sm:$0xff]   ;;  %v13929_v33 = vld [vmem:[#allocation6 + $0x740] ss:$8 sps:$4 sm:$0xff]  }
 0x5e3   :  { %11748 = vmatpush2.bf16.msra.mxu0 %v13860_v36  ;;  %v9605_v36 = vmax.f32 %v9585_v53, 0.0  ;;  %v13940_v53 = vld [vmem:[#allocation6 + $0x624] ss:$8 sps:$4 sm:$0xff]  }
 0x5e4   :  { %11789 = vmatpush2.bf16.msra.mxu1 %v13863_v41  ;;  %11749 = vmatprep.subr.bf16.mxu0 %v13868_v17  ;;  %v9608_v41 = vmax.f32 %v9588_v52, 0.0  ;;  %v13908_v17 = vld [vmem:[#allocation6 + $0x670] ss:$8 sps:$4 sm:$0xff]   ;;  %v13938_v52 = vld [vmem:[#allocation6 + $0x620] ss:$8 sps:$4 sm:$0xff]  }
 0x5e5   :  { %11790 = vmatprep.subr.bf16.mxu1 %v13871_v11  ;;  %v9610_v11 = vmax.f32 %v9590_v38, 0.0  ;;  %v13941_v38 = vld [vmem:[#allocation6 + $0x720] ss:$8 sps:$4 sm:$0xff]  }
 0x5e7   :  { %11750 = vmatpush2.bf16.msra.mxu0 %v13866_v30  ;;  %v9623_v30 = vpack.c.bf16 %v9603_v14, %v9603_v14  ;;  %v13949_v14 = vld [vmem:[#allocation6 + $0x714] ss:$8 sps:$4 sm:$0xff]  }
 0x5e8   :  { %11791 = vmatpush2.bf16.msra.mxu1 %v13869_v45  ;;  %11751 = vmatprep.subr.bf16.mxu0 %v13874_v13  ;;  %v9625_v45 = vpack.c.bf16 %v9605_v36, %v9605_v36  ;;  %v13916_v13 = vld [vmem:[#allocation6 + $0x664] ss:$8 sps:$4 sm:$0xff]  }
 0x5e9   :  { %11792 = vmatprep.subr.bf16.mxu1 %v13877_v25  ;;  %v13952_v36 = vld [vmem:[#allocation6 + $0x604] ss:$8 sps:$4 sm:$0xff]  }
 0x5eb   :  { %11752 = vmatpush2.bf16.msra.mxu0 %v13872_v43  ;;  %v9628_v43 = vpack.c.bf16 %v9608_v41, %v9608_v41  ;;  %v13950_v41 = vld [vmem:[#allocation6 + $0x600] ss:$8 sps:$4 sm:$0xff]  }
 0x5ec   :  { %11793 = vmatpush2.bf16.msra.mxu1 %v13875_v16  ;;  %11753 = vmatprep.subr.bf16.mxu0 %v13880_v1  ;;  %v13919_v16 = vld [vmem:[#allocation6 + $0x764] ss:$8 sps:$4 sm:$0xff]   ;;  %v14725_v1 = vld [vmem:[#allocation24_spill] sm:$0xff] }
 0x5ed   :  { %11794 = vmatprep.subr.bf16.mxu1 %v13883_v21  ;;  %v14726_v21 = vld [vmem:[#allocation17_spill] sm:$0xff] }
 0x5ef   :  { %11754 = vmatpush2.bf16.msra.mxu0 %v13878_v31  ;;  %v9425_v31 = vmax.f32 %v14726_v21, %v14725_v1  ;;  %v13970_v1 = vld [vmem:[#allocation6 + $0x6d4] ss:$8 sps:$4 sm:$0xff]  }
 0x5f0   :  { %11795 = vmatpush2.bf16.msra.mxu1 %v13881_v9  ;;  %11755 = vmatprep.subr.bf16.mxu0 %v13886_v22  ;;  %v14727_v9 = vld [vmem:[#allocation32_spill] sm:$0xff] }
 0x5f1   :  { %11796 = vmatprep.subr.bf16.mxu1 %v13889_v63  ;;  %v13973_v21 = vld [vmem:[#allocation6 + $0x7d4] ss:$8 sps:$4 sm:$0xff]  }
 0x5f3   :  { %11756 = vmatpush2.bf16.msra.mxu0 %v13884_v15  ;;  %v9630_v15 = vpack.c.bf16 %v9610_v11, %v9610_v11  ;;  %v13958_v11 = vld [vmem:[#allocation6 + $0x6f4] ss:$8 sps:$4 sm:$0xff]  }
 0x5f4   :  { %11797 = vmatpush2.bf16.msra.mxu1 %v13887_v44  ;;  %11757 = vmatprep.subr.bf16.mxu0 %v13892_v54  ;;  %v13914_v44 = vld [vmem:[#allocation6 + $0x660] ss:$8 sps:$4 sm:$0xff]  }
 0x5f5   :  { %11798 = vmatprep.subr.bf16.mxu1 %v13895_v58  ;;  %v14728_v54 = vld [vmem:[#allocation25_spill] sm:$0xff]  ;;  %v14729_v58 = vld [vmem:[#allocation18_spill] sm:$0xff] }
 0x5f6   :  { %v9427_v47 = vmax.f32 %v14729_v58, %v14728_v54  ;;  %v13982_v54 = vld [vmem:[#allocation6 + $0x6b4] ss:$8 sps:$4 sm:$0xff]  }
 0x5f7   :  { %11758 = vmatpush2.bf16.msra.mxu0 %v13890_v10  ;;  %v13917_v10 = vld [vmem:[#allocation6 + $0x760] ss:$8 sps:$4 sm:$0xff]   ;;  %v13985_v58 = vld [vmem:[#allocation6 + $0x7b4] ss:$8 sps:$4 sm:$0xff]  }
 0x5f8   :  { %11799 = vmatpush2.bf16.msra.mxu1 %v13893_v2  ;;  %11759 = vmatprep.subr.bf16.mxu0 %v13898_v27 }
 0x5f9   :  { %11800 = vmatprep.subr.bf16.mxu1 %v13901_v61  ;;  %v13928_v61 = vld [vmem:[#allocation6 + $0x644] ss:$8 sps:$4 sm:$0xff]  }
 0x5fb   :  { %11760 = vmatpush2.bf16.msra.mxu0 %v13896_v55  ;;  %v13934_v55 = vld [vmem:[#allocation6 + $0x634] ss:$8 sps:$4 sm:$0xff]  }
 0x5fc   :  { %11801 = vmatpush2.bf16.msra.mxu1 %v13899_v42  ;;  %11761 = vmatprep.subr.bf16.mxu0 %v13904_v32  ;;  %v13932_v42 = vld [vmem:[#allocation6 + $0x630] ss:$8 sps:$4 sm:$0xff]  }
 0x5fd   :  { %11802 = vmatprep.subr.bf16.mxu1 %v13907_v7  ;;  %v13935_v32 = vld [vmem:[#allocation6 + $0x730] ss:$8 sps:$4 sm:$0xff]   ;;  %v13943_v7 = vld [vmem:[#allocation6 + $0x724] ss:$8 sps:$4 sm:$0xff]  }
 0x5ff   :  { %11762 = vmatpush2.bf16.msra.mxu0 %v13902_v8  ;;  %v13946_v8 = vld [vmem:[#allocation6 + $0x614] ss:$8 sps:$4 sm:$0xff]  }
 0x600   :  { %11803 = vmatpush2.bf16.msra.mxu1 %v13905_v48  ;;  %11813 = vmatprep.subr.bf16.mxu0 %v13910_v51  ;;  %v13944_v48 = vld [vmem:[#allocation6 + $0x610] ss:$8 sps:$4 sm:$0xff]  }
 0x601   :  { %11854 = vmatprep.subr.bf16.mxu1 %v13913_v4  ;;  %v13947_v51 = vld [vmem:[#allocation6 + $0x710] ss:$8 sps:$4 sm:$0xff]   ;;  %v13955_v4 = vld [vmem:[#allocation6 + $0x704] ss:$8 sps:$4 sm:$0xff]  }
 0x602   :  { %v9361_v25 = vpop.f32.mrf.mxu0  ;;  %11764 = vmatmul.mubr.bf16.vlgmr.msra.gmra.mxu0 %v9623_v30  ;;  %v9402_v63 = vpop.f32.mrf.mxu1  ;;  %v13961_v30 = vld [vmem:[#allocation6 + $0x7f4] ss:$8 sps:$4 sm:$0xff]  }
 0x603   :  { %v9445_v22 = vmax.f32 %v14727_v9, %v9361_v25  ;;  %11805 = vmatmul.mubr.bf16.vlgmr.msra.gmra.mxu1 %v9625_v45  ;;  %11814 = vmatpush1.bf16.msra.mxu0 %v13908_v17  ;;  %v9447_v34 = vmax.f32 %v14730_v23, %v9402_v63  ;;  %v13953_v17 = vld [vmem:[#allocation6 + $0x700] ss:$8 sps:$4 sm:$0xff]   ;;  %v13959_v45 = vld [vmem:[#allocation6 + $0x7f0] ss:$8 sps:$4 sm:$0xff]   ;;  %v13967_v25 = vld [vmem:[#allocation6 + $0x7e4] ss:$8 sps:$4 sm:$0xff]  }
 0x604   :  { %11845 = vmatprep.mubr.bf16.mxu0 %v9628_v43  ;;  %11855 = vmatpush1.bf16.msra.mxu1 %v13911_v18  ;;  %v14635_v60 = vpop.f32.mrf.mxu0  ;;  %v14639_v19 = vpop.f32.mrf.mxu1  ;;  %v13956_v18 = vld [vmem:[#allocation6 + $0x6f0] ss:$8 sps:$4 sm:$0xff]   ;;  %v13962_v43 = vld [vmem:[#allocation6 + $0x6e0] ss:$8 sps:$4 sm:$0xff]   ;;  %v13979_v63 = vld [vmem:[#allocation6 + $0x7c4] ss:$8 sps:$4 sm:$0xff]  }
 0x605   :  { %v14637_v40 = vmax.f32 %v9425_v31, %v9445_v22  ;;  %11886 = vmatprep.mubr.bf16.mxu1 %v9630_v15  ;;  %11815 = vmatprep.subr.bf16.mxu0 %v13916_v13  ;;  %v14641_v2 = vmax.f32 %v9427_v47, %v9447_v34  ;;  %v13964_v13 = vld [vmem:[#allocation6 + $0x6e4] ss:$8 sps:$4 sm:$0xff]   ;;  %v13968_v31 = vld [vmem:[#allocation6 + $0x6d0] ss:$8 sps:$4 sm:$0xff]   ;;  %v13974_v15 = vld [vmem:[#allocation6 + $0x6c0] ss:$8 sps:$4 sm:$0xff]  }
 0x606   :  { %v9365_v27 = vpop.f32.mrf.mxu0  ;;  %11856 = vmatprep.subr.bf16.mxu1 %v13919_v16  ;;  %v9406_v46 = vpop.f32.mrf.mxu1  ;;  %v13965_v16 = vld [vmem:[#allocation6 + $0x7e0] ss:$8 sps:$4 sm:$0xff]   ;;  %v13971_v9 = vld [vmem:[#allocation6 + $0x7d0] ss:$8 sps:$4 sm:$0xff]   ;;  %v13976_v22 = vld [vmem:[#allocation6 + $0x6c4] ss:$8 sps:$4 sm:$0xff]  }
 0x607   :  { %11816 = vmatpush1.bf16.msra.mxu0 %v13914_v44  ;;  %v13977_v44 = vld [vmem:[#allocation6 + $0x7c0] ss:$8 sps:$4 sm:$0xff]   ;;  %v13980_v47 = vld [vmem:[#allocation6 + $0x6b0] ss:$8 sps:$4 sm:$0xff]   ;;  %v13988_v34 = vld [vmem:[#allocation6 + $0x6a4] ss:$8 sps:$4 sm:$0xff]  }
 0x608   :  { %11857 = vmatpush1.bf16.msra.mxu1 %v13917_v10  ;;  %v9366_v50 = vpop.f32.mrf.mxu0  ;;  %11817 = vmatprep.subr.bf16.mxu0 %v13922_v24  ;;  %v9407_v39 = vpop.f32.mrf.mxu1  ;;  %v13983_v23 = vld [vmem:[#allocation6 + $0x7b0] ss:$8 sps:$4 sm:$0xff]   ;;  %v13991_v10 = vld [vmem:[#allocation6 + $0x7a4] ss:$8 sps:$4 sm:$0xff]  }
 0x609   :  { %11858 = vmatprep.subr.bf16.mxu1 %v13925_v49  ;;  %v14731_v24 = vld [vmem:[#allocation34_spill] sm:$0xff]  ;;  %v14732_v27 = vld [vmem:[#allocation35_spill] sm:$0xff]  ;;  %v9526_v39 = vrot.slane %v14587_v20, %v9493_v35 }
 0x60a   :  { %v9446_v49 = vmax.f32 %v14731_v24, %v14635_v60  ;;  %v9448_v46 = vmax.f32 %v14732_v27, %v14639_v19  ;;  %v14733_v50 = vld [vmem:[#allocation26_spill] sm:$0xff]  ;;  %v9534_v60 = vrot.slane %v14587_v20, %v9501_v37  ;;  %v14657_v19 = vld [vmem:[#allocation4 + $0x10] sm:$0xf] }
 0x60b   :  { %11818 = vmatpush1.bf16.msra.mxu0 %v13920_v28  ;;  %v13986_v28 = vld [vmem:[#allocation6 + $0x6a0] ss:$8 sps:$4 sm:$0xff]   ;;  %v14000_v37 = vld [vmem:[#allocation6 + $0x684] ss:$8 sps:$4 sm:$0xff]  }
 0x60c   :  { %11859 = vmatpush1.bf16.msra.mxu1 %v13923_v59  ;;  %11819 = vmatprep.subr.bf16.mxu0 %v13928_v61  ;;  %v14734_v59 = vld [vmem:[#allocation19_spill] sm:$0xff]  ;;  %v9589_v20 = vadd.f32 %v9534_v60, %v14607_v62 }
 0x60d   :  { %11860 = vmatprep.subr.bf16.mxu1 %v13931_v0  ;;  %v9426_v61 = vmax.f32 %v14734_v59, %v14733_v50  ;;  %v13989_v0 = vld [vmem:[#allocation6 + $0x7a0] ss:$8 sps:$4 sm:$0xff]   ;;  %v14004_v62 = vld [vmem:[#allocation6 + $0x870] ss:$8 sps:$4 sm:$0xff]   ;;  %v14024_v59 = vld [vmem:[#allocation6 + $0x844] ss:$8 sps:$4 sm:$0xff]  }
 0x60e   :  { %v14019_v50 = vld [vmem:[#allocation6 + $0x950] ss:$8 sps:$4 sm:$0xff]  }
 0x60f   :  { %11820 = vmatpush1.bf16.msra.mxu0 %v13926_v12  ;;  %v13994_v12 = vld [vmem:[#allocation6 + $0x694] ss:$8 sps:$4 sm:$0xff]   ;;  %v14031_v60 = vld [vmem:[#allocation6 + $0x930] ss:$8 sps:$4 sm:$0xff]  }
 0x610   :  { %11861 = vmatpush1.bf16.msra.mxu1 %v13929_v33  ;;  %11821 = vmatprep.subr.bf16.mxu0 %v13934_v55  ;;  %v14735_v33 = vld [vmem:[#allocation27_spill] sm:$0xff]  ;;  %v14736_v55 = vld [vmem:[#allocation20_spill] sm:$0xff] }
 0x611   :  { %11862 = vmatprep.subr.bf16.mxu1 %v13937_v56  ;;  %v9428_v56 = vmax.f32 %v14736_v55, %v14735_v33  ;;  %v14030_v33 = vld [vmem:[#allocation6 + $0x834] ss:$8 sps:$4 sm:$0xff]  }
 0x612   :  { %v14033_v55 = vld [vmem:[#allocation6 + $0x934] ss:$8 sps:$4 sm:$0xff]  }
 0x613   :  { %11822 = vmatpush1.bf16.msra.mxu0 %v13932_v42  ;;  %v13997_v42 = vld [vmem:[#allocation6 + $0x794] ss:$8 sps:$4 sm:$0xff]   ;;  %v9468_v35 = vmax.f32 %v9428_v56, %v9448_v46  ;;  %v14016_v46 = vld [vmem:[#allocation6 + $0x850] ss:$8 sps:$4 sm:$0xff]  }
 0x614   :  { %11863 = vmatpush1.bf16.msra.mxu1 %v13935_v32  ;;  %11823 = vmatprep.subr.bf16.mxu0 %v13940_v53  ;;  %v9466_v32 = vmax.f32 %v9426_v61, %v9446_v49  ;;  %v9546_v53 = vrot.slane %v14657_v19, %v14496_v29  ;;  %v14028_v56 = vld [vmem:[#allocation6 + $0x830] ss:$8 sps:$4 sm:$0xff]  }
 0x615   :  { %11864 = vmatprep.subr.bf16.mxu1 %v13943_v7  ;;  %v9554_v7 = vrot.slane %v14657_v19, %v14501_v57  ;;  %v9955_v57 = vld [vmem:[#allocation7] sm:$0x3] }
 0x617   :  { %11824 = vmatpush1.bf16.msra.mxu0 %v13938_v52  ;;  %v13992_v52 = vld [vmem:[#allocation6 + $0x690] ss:$8 sps:$4 sm:$0xff]  }
 0x618   :  { %11865 = vmatpush1.bf16.msra.mxu1 %v13941_v38  ;;  %11825 = vmatprep.subr.bf16.mxu0 %v13946_v8  ;;  %v9587_v38 = vadd.f32 %v9526_v39, %v14603_v6  ;;  %v14003_v8 = vld [vmem:[#allocation6 + $0x784] ss:$8 sps:$4 sm:$0xff]   ;;  %v14009_v6 = vld [vmem:[#allocation6 + $0x974] ss:$8 sps:$4 sm:$0xff]  }
 0x619   :  { %11866 = vmatprep.subr.bf16.mxu1 %v13949_v14  ;;  %v9592_v14 = vadd.f32 %v9546_v53, %v9466_v32  ;;  %v14027_v39 = vld [vmem:[#allocation6 + $0x944] ss:$8 sps:$4 sm:$0xff]   ;;  %v14034_v53 = vld [vmem:[#allocation6 + $0x820] ss:$8 sps:$4 sm:$0xff]  }
 0x61a   :  { %v14039_v32 = vld [vmem:[#allocation6 + $0x924] ss:$8 sps:$4 sm:$0xff]  }
 0x61b   :  { %11826 = vmatpush1.bf16.msra.mxu0 %v13944_v48  ;;  %v9594_v48 = vadd.f32 %v9554_v7, %v9468_v35  ;;  %v14037_v35 = vld [vmem:[#allocation6 + $0x920] ss:$8 sps:$4 sm:$0xff]   ;;  %v14042_v7 = vld [vmem:[#allocation6 + $0x814] ss:$8 sps:$4 sm:$0xff]  }
 0x61c   :  { %11867 = vmatpush1.bf16.msra.mxu1 %v13947_v51  ;;  %11827 = vmatprep.subr.bf16.mxu0 %v13952_v36  ;;  %v13998_v51 = vld [vmem:[#allocation6 + $0x680] ss:$8 sps:$4 sm:$0xff]  }
 0x61d   :  { %11868 = vmatprep.subr.bf16.mxu1 %v13955_v4  ;;  %v14001_v36 = vld [vmem:[#allocation6 + $0x780] ss:$8 sps:$4 sm:$0xff]   ;;  %v9607_v4 = vmax.f32 %v9587_v38, 0.0  ;;  %v14040_v38 = vld [vmem:[#allocation6 + $0x810] ss:$8 sps:$4 sm:$0xff]  }
 0x61f   :  { %11828 = vmatpush1.bf16.msra.mxu0 %v13950_v41  ;;  %v14006_v41 = vld [vmem:[#allocation6 + $0x874] ss:$8 sps:$4 sm:$0xff]  }
 0x620   :  { %11869 = vmatpush1.bf16.msra.mxu1 %v13953_v17  ;;  %11829 = vmatprep.subr.bf16.mxu0 %v13958_v11  ;;  %v9609_v17 = vmax.f32 %v9589_v20, 0.0  ;;  %v9612_v11 = vmax.f32 %v9592_v14, 0.0  ;;  %v14051_v20 = vld [vmem:[#allocation6 + $0x904] ss:$8 sps:$4 sm:$0xff]   ;;  %v14049_v14 = vld [vmem:[#allocation6 + $0x900] ss:$8 sps:$4 sm:$0xff]  }
 0x621   :  { %11870 = vmatprep.subr.bf16.mxu1 %v13961_v30  ;;  %v9960_v30 = vrot.slane %v9955_v57, %v14530_v5 }
 0x623   :  { %11830 = vmatpush2.bf16.msra.mxu0 %v13956_v18  ;;  %v9614_v18 = vmax.f32 %v9594_v48, 0.0  ;;  %v14054_v48 = vld [vmem:[#allocation6 + $0x8f4] ss:$8 sps:$4 sm:$0xff]  }
 0x624   :  { %11871 = vmatpush2.bf16.msra.mxu1 %v13959_v45  ;;  %11831 = vmatprep.subr.bf16.mxu0 %v13964_v13  ;;  %v9627_v45 = vpack.c.bf16 %v9607_v4, %v9607_v4  ;;  %v14007_v13 = vld [vmem:[#allocation6 + $0x970] ss:$8 sps:$4 sm:$0xff]  }
 0x625   :  { %11872 = vmatprep.subr.bf16.mxu1 %v13967_v25  ;;  %v9629_v25 = vpack.c.bf16 %v9609_v17, %v9609_v17  ;;  %v14055_v4 = vld [vmem:[#allocation6 + $0x9f0] ss:$8 sps:$4 sm:$0xff]   ;;  %v14058_v17 = vld [vmem:[#allocation6 + $0x8e0] ss:$8 sps:$4 sm:$0xff]  }
 0x627   :  { %11832 = vmatpush2.bf16.msra.mxu0 %v13962_v43  ;;  %v9964_v43 = vrot.slane %v9955_v57, %v14496_v29  ;;  %v14060_v57 = vld [vmem:[#allocation6 + $0x8e4] ss:$8 sps:$4 sm:$0xff]  }
 0x628   :  { %11873 = vmatpush2.bf16.msra.mxu1 %v13965_v16  ;;  %11833 = vmatprep.subr.bf16.mxu0 %v13970_v1  ;;  %v14012_v16 = vld [vmem:[#allocation6 + $0x864] ss:$8 sps:$4 sm:$0xff]  }
 0x629   :  { %11874 = vmatprep.subr.bf16.mxu1 %v13973_v21  ;;  %v9632_v21 = vpack.c.bf16 %v9612_v11, %v9612_v11  ;;  %v14066_v11 = vld [vmem:[#allocation6 + $0x8d4] ss:$8 sps:$4 sm:$0xff]  }
 0x62b   :  { %11834 = vmatpush2.bf16.msra.mxu0 %v13968_v31  ;;  %v14015_v31 = vld [vmem:[#allocation6 + $0x964] ss:$8 sps:$4 sm:$0xff]  }
 0x62c   :  { %11875 = vmatpush2.bf16.msra.mxu1 %v13971_v9  ;;  %11835 = vmatprep.subr.bf16.mxu0 %v13976_v22 }
 0x62d   :  { %11876 = vmatprep.subr.bf16.mxu1 %v13979_v63  ;;  %v9634_v63 = vpack.c.bf16 %v9614_v18, %v9614_v18  ;;  %v14067_v18 = vld [vmem:[#allocation6 + $0x9d0] ss:$8 sps:$4 sm:$0xff]  }
 0x62f   :  { %11836 = vmatpush2.bf16.msra.mxu0 %v13974_v15  ;;  %v14010_v15 = vld [vmem:[#allocation6 + $0x860] ss:$8 sps:$4 sm:$0xff]  }
 0x630   :  { %11877 = vmatpush2.bf16.msra.mxu1 %v13977_v44  ;;  %11837 = vmatprep.subr.bf16.mxu0 %v13982_v54  ;;  %v14013_v54 = vld [vmem:[#allocation6 + $0x960] ss:$8 sps:$4 sm:$0xff]  }
 0x631   :  { %11878 = vmatprep.subr.bf16.mxu1 %v13985_v58  ;;  %v14018_v58 = vld [vmem:[#allocation6 + $0x854] ss:$8 sps:$4 sm:$0xff]  }
 0x633   :  { %11838 = vmatpush2.bf16.msra.mxu0 %v13980_v47 }
 0x634   :  { %11879 = vmatpush2.bf16.msra.mxu1 %v13983_v23  ;;  %11839 = vmatprep.subr.bf16.mxu0 %v13988_v34 }
 0x635   :  { %11880 = vmatprep.subr.bf16.mxu1 %v13991_v10  ;;  %v14021_v10 = vld [vmem:[#allocation6 + $0x954] ss:$8 sps:$4 sm:$0xff]  }
 0x637   :  { %11840 = vmatpush2.bf16.msra.mxu0 %v13986_v28 }
 0x638   :  { %11881 = vmatpush2.bf16.msra.mxu1 %v13989_v0  ;;  %11841 = vmatprep.subr.bf16.mxu0 %v13994_v12  ;;  %v14022_v0 = vld [vmem:[#allocation6 + $0x840] ss:$8 sps:$4 sm:$0xff]  }
 0x639   :  { %11882 = vmatprep.subr.bf16.mxu1 %v13997_v42  ;;  %v14025_v12 = vld [vmem:[#allocation6 + $0x940] ss:$8 sps:$4 sm:$0xff]   ;;  %v14036_v42 = vld [vmem:[#allocation6 + $0x824] ss:$8 sps:$4 sm:$0xff]  }
 0x63b   :  { %11842 = vmatpush2.bf16.msra.mxu0 %v13992_v52  ;;  %v14045_v52 = vld [vmem:[#allocation6 + $0x914] ss:$8 sps:$4 sm:$0xff]  }
 0x63c   :  { %11883 = vmatpush2.bf16.msra.mxu1 %v13995_v26  ;;  %11843 = vmatprep.subr.bf16.mxu0 %v14000_v37  ;;  %v14043_v26 = vld [vmem:[#allocation6 + $0x910] ss:$8 sps:$4 sm:$0xff]   ;;  %v14048_v37 = vld [vmem:[#allocation6 + $0x804] ss:$8 sps:$4 sm:$0xff]  }
 0x63d   :  { %11884 = vmatprep.subr.bf16.mxu1 %v14003_v8  ;;  %v14046_v8 = vld [vmem:[#allocation6 + $0x800] ss:$8 sps:$4 sm:$0xff]  }
 0x63f   :  { %11844 = vmatpush2.bf16.msra.mxu0 %v13998_v51  ;;  %v14057_v51 = vld [vmem:[#allocation6 + $0x9f4] ss:$8 sps:$4 sm:$0xff]  }
 0x640   :  { %11885 = vmatpush2.bf16.msra.mxu1 %v14001_v36  ;;  %11895 = vmatprep.subr.bf16.mxu0 %v14006_v41  ;;  %v14052_v36 = vld [vmem:[#allocation6 + $0x8f0] ss:$8 sps:$4 sm:$0xff]   ;;  %v14063_v41 = vld [vmem:[#allocation6 + $0x9e4] ss:$8 sps:$4 sm:$0xff]  }
 0x641   :  { %11936 = vmatprep.subr.bf16.mxu1 %v14009_v6  ;;  %v14061_v6 = vld [vmem:[#allocation6 + $0x9e0] ss:$8 sps:$4 sm:$0xff]  }
 0x642   :  { %v11601_v1 = vpop.f32.mrf.mxu0  ;;  %11846 = vmatmul.mubr.bf16.vlgmr.msra.gmra.mxu0 %v9627_v45  ;;  %v14072_v45 = vld [vmem:[#allocation6 + $0x8c4] ss:$8 sps:$4 sm:$0xff]  }
 0x643   :  { %v11602_v9 = vadd.f32 %v11601_v1, %v9960_v30  ;;  %v11642_v22 = vpop.f32.mrf.mxu1  ;;  %11887 = vmatmul.mubr.bf16.vlgmr.msra.gmra.mxu1 %v9629_v25  ;;  %11896 = vmatpush1.bf16.msra.mxu0 %v14004_v62  ;;  %v14069_v30 = vld [vmem:[#allocation6 + $0x9d4] ss:$8 sps:$4 sm:$0xff]   ;;  %v14064_v62 = vld [vmem:[#allocation6 + $0x8d0] ss:$8 sps:$4 sm:$0xff]   ;;  %v14070_v25 = vld [vmem:[#allocation6 + $0x8c0] ss:$8 sps:$4 sm:$0xff]  }
 0x644   :  { %11927 = vmatprep.mubr.bf16.mxu0 %v9632_v21  ;;  %11937 = vmatpush1.bf16.msra.mxu1 %v14007_v13  ;;  %v11603_v44 = vpop.f32.mrf.mxu0  ;;  %v14075_v13 = vld [vmem:[#allocation6 + $0x9c4] ss:$8 sps:$4 sm:$0xff]   ;;  %v14081_v1 = vld [vmem:[#allocation6 + $0x9b4] ss:$8 sps:$4 sm:$0xff]   ;;  %v14076_v21 = vld [vmem:[#allocation6 + $0x8b0] ss:$8 sps:$4 sm:$0xff]  }
 0x645   :  { %v14667_v47 = vadd.f32 %v11642_v22, %v11602_v9  ;;  %11968 = vmatprep.mubr.bf16.mxu1 %v9634_v63  ;;  %v11604_v23 = vadd.f32 %v11603_v44, %v9964_v43  ;;  %v11644_v34 = vpop.f32.mrf.mxu1  ;;  %11897 = vmatprep.subr.bf16.mxu0 %v14012_v16  ;;  %v14073_v43 = vld [vmem:[#allocation6 + $0x9c0] ss:$8 sps:$4 sm:$0xff]   ;;  %v14078_v16 = vld [vmem:[#allocation6 + $0x8b4] ss:$8 sps:$4 sm:$0xff]   ;;  %v14084_v9 = vld [vmem:[#allocation6 + $0x8a4] ss:$8 sps:$4 sm:$0xff]  }
 0x646   :  { %v11605_v24 = vpop.f32.mrf.mxu0  ;;  %11938 = vmatprep.subr.bf16.mxu1 %v14015_v31  ;;  %v14079_v31 = vld [vmem:[#allocation6 + $0x9b0] ss:$8 sps:$4 sm:$0xff]   ;;  %v14087_v22 = vld [vmem:[#allocation6 + $0x9a4] ss:$8 sps:$4 sm:$0xff]   ;;  %v14082_v63 = vld [vmem:[#allocation6 + $0x8a0] ss:$8 sps:$4 sm:$0xff]  }
 0x647   :  { %v14669_v49 = vadd.f32 %v11644_v34, %v11604_v23  ;;  %v11646_v27 = vpop.f32.mrf.mxu1  ;;  %11898 = vmatpush1.bf16.msra.mxu0 %v14010_v15  ;;  %v9542_v15 = vrot.slane %v14657_v19, %v14530_v5  ;;  %v14085_v44 = vld [vmem:[#allocation6 + $0x9a0] ss:$8 sps:$4 sm:$0xff]   ;;  %v14093_v23 = vld [vmem:[#allocation6 + $0x994] ss:$8 sps:$4 sm:$0xff]   ;;  %v14088_v34 = vld [vmem:[#allocation6 + $0x890] ss:$8 sps:$4 sm:$0xff]  }
 0x648   :  { %11939 = vmatpush1.bf16.msra.mxu1 %v14013_v54  ;;  %v11606_v28 = vpop.f32.mrf.mxu0  ;;  %11899 = vmatprep.subr.bf16.mxu0 %v14018_v58  ;;  %v14090_v54 = vld [vmem:[#allocation6 + $0x894] ss:$8 sps:$4 sm:$0xff]   ;;  %v9550_v58 = vrot.slane %v14657_v19, %v14533_v3  ;;  %v14091_v24 = vld [vmem:[#allocation6 + $0x990] ss:$8 sps:$4 sm:$0xff]   ;;  %v14096_v27 = vld [vmem:[#allocation6 + $0x884] ss:$8 sps:$4 sm:$0xff]  }
 0x649   :  { %v11647_v61 = vpop.f32.mrf.mxu1  ;;  %11940 = vmatprep.subr.bf16.mxu1 %v14021_v10  ;;  %v9591_v10 = vadd.f32 %v9542_v15, %v14637_v40  ;;  %v14099_v28 = vld [vmem:[#allocation6 + $0x984] ss:$8 sps:$4 sm:$0xff]   ;;  %v14097_v3 = vld [vmem:[#allocation6 + $0x980] ss:$8 sps:$4 sm:$0xff]  }
 0x64b   :  { %11900 = vmatpush1.bf16.msra.mxu0 %v14016_v46  ;;  %v9593_v46 = vadd.f32 %v9550_v58, %v14641_v2 }
 0x64c   :  { %11941 = vmatpush1.bf16.msra.mxu1 %v14019_v50  ;;  %11901 = vmatprep.subr.bf16.mxu0 %v14024_v59  ;;  %v14094_v50 = vld [vmem:[#allocation6 + $0x880] ss:$8 sps:$4 sm:$0xff]   ;;  %v9611_v59 = vmax.f32 %v9591_v10, 0.0 }
 0x64d   :  { %11942 = vmatprep.subr.bf16.mxu1 %v14027_v39  ;;  %v9613_v19 = vmax.f32 %v9593_v46, 0.0 }
 0x64e   :  { %v9631_v61 = vpack.c.bf16 %v9611_v59, %v9611_v59 }
 0x64f   :  { %11902 = vmatpush1.bf16.msra.mxu0 %v14022_v0  ;;  %v9633_v40 = vpack.c.bf16 %v9613_v19, %v9613_v19 }
 0x650   :  { %11943 = vmatpush1.bf16.msra.mxu1 %v14025_v12  ;;  %11903 = vmatprep.subr.bf16.mxu0 %v14030_v33 }
 0x651   :  { %11944 = vmatprep.subr.bf16.mxu1 %v14033_v55 }
 0x653   :  { %11904 = vmatpush1.bf16.msra.mxu0 %v14028_v56 }
 0x654   :  { %11945 = vmatpush1.bf16.msra.mxu1 %v14031_v60  ;;  %11905 = vmatprep.subr.bf16.mxu0 %v14036_v42 }
 0x655   :  { %11946 = vmatprep.subr.bf16.mxu1 %v14039_v32 }
 0x657   :  { %11906 = vmatpush1.bf16.msra.mxu0 %v14034_v53 }
 0x658   :  { %11947 = vmatpush1.bf16.msra.mxu1 %v14037_v35  ;;  %11907 = vmatprep.subr.bf16.mxu0 %v14042_v7 }
 0x659   :  { %11948 = vmatprep.subr.bf16.mxu1 %v14045_v52 }
 0x65b   :  { %11908 = vmatpush1.bf16.msra.mxu0 %v14040_v38 }
 0x65c   :  { %11949 = vmatpush1.bf16.msra.mxu1 %v14043_v26  ;;  %11909 = vmatprep.subr.bf16.mxu0 %v14048_v37 }
 0x65d   :  { %11950 = vmatprep.subr.bf16.mxu1 %v14051_v20 }
 0x65f   :  { %11910 = vmatpush1.bf16.msra.mxu0 %v14046_v8 }
 0x660   :  { %11951 = vmatpush1.bf16.msra.mxu1 %v14049_v14  ;;  %11911 = vmatprep.subr.bf16.mxu0 %v14054_v48 }
 0x661   :  { %11952 = vmatprep.subr.bf16.mxu1 %v14057_v51 }
 0x663   :  { %11912 = vmatpush2.bf16.msra.mxu0 %v14052_v36 }
 0x664   :  { %11953 = vmatpush2.bf16.msra.mxu1 %v14055_v4  ;;  %11913 = vmatprep.subr.bf16.mxu0 %v14060_v57 }
 0x665   :  { %11954 = vmatprep.subr.bf16.mxu1 %v14063_v41 }
 0x667   :  { %11914 = vmatpush2.bf16.msra.mxu0 %v14058_v17 }
 0x668   :  { %11955 = vmatpush2.bf16.msra.mxu1 %v14061_v6  ;;  %11915 = vmatprep.subr.bf16.mxu0 %v14066_v11 }
 0x669   :  { %11956 = vmatprep.subr.bf16.mxu1 %v14069_v30 }
 0x66b   :  { %11916 = vmatpush2.bf16.msra.mxu0 %v14064_v62 }
 0x66c   :  { %11957 = vmatpush2.bf16.msra.mxu1 %v14067_v18  ;;  %11917 = vmatprep.subr.bf16.mxu0 %v14072_v45 }
 0x66d   :  { %11958 = vmatprep.subr.bf16.mxu1 %v14075_v13 }
 0x66f   :  { %11918 = vmatpush2.bf16.msra.mxu0 %v14070_v25 }
 0x670   :  { %11959 = vmatpush2.bf16.msra.mxu1 %v14073_v43  ;;  %11919 = vmatprep.subr.bf16.mxu0 %v14078_v16 }
 0x671   :  { %11960 = vmatprep.subr.bf16.mxu1 %v14081_v1 }
 0x673   :  { %11920 = vmatpush2.bf16.msra.mxu0 %v14076_v21  ;;  %v11979_v21 = vld [vmem:[#allocation9] sm:$0x3] }
 0x674   :  { %11961 = vmatpush2.bf16.msra.mxu1 %v14079_v31  ;;  %11921 = vmatprep.subr.bf16.mxu0 %v14084_v9  ;;  %v11984_v58 = vrot.slane %v11979_v21, %v14530_v5 }
 0x675   :  { %11962 = vmatprep.subr.bf16.mxu1 %v14087_v22 }
 0x677   :  { %11922 = vmatpush2.bf16.msra.mxu0 %v14082_v63 }
 0x678   :  { %11963 = vmatpush2.bf16.msra.mxu1 %v14085_v44  ;;  %11923 = vmatprep.subr.bf16.mxu0 %v14090_v54 }
 0x679   :  { %11964 = vmatprep.subr.bf16.mxu1 %v14093_v23  ;;  %v11988_v23 = vrot.slane %v11979_v21, %v14496_v29 }
 0x67b   :  { %11924 = vmatpush2.bf16.msra.mxu0 %v14088_v34 }
 0x67c   :  { %11965 = vmatpush2.bf16.msra.mxu1 %v14091_v24  ;;  %11925 = vmatprep.subr.bf16.mxu0 %v14096_v27 }
 0x67d   :  { %11966 = vmatprep.subr.bf16.mxu1 %v14099_v28 }
 0x67f   :  { %11926 = vmatpush2.bf16.msra.mxu0 %v14094_v50 }
 0x680   :  { %11967 = vmatpush2.bf16.msra.mxu1 %v14097_v3 }
 0x682   :  { %v11683_v39 = vpop.f32.mrf.mxu0  ;;  %11928 = vmatmul.mubr.bf16.vlgmr.msra.gmra.mxu0 %v9631_v61 }
 0x683   :  { %v11684_v0 = vadd.f32 %v11683_v39, %v14667_v47  ;;  %v11724_v12 = vpop.f32.mrf.mxu1  ;;  %11969 = vmatmul.mubr.bf16.vlgmr.msra.gmra.mxu1 %v9633_v40 }
 0x684   :  { %v11685_v2 = vpop.f32.mrf.mxu0 }
 0x685   :  { %v11725_v33 = vadd.f32 %v11724_v12, %v11684_v0  ;;  %v11686_v55 = vadd.f32 %v11685_v2, %v14669_v49  ;;  %v11726_v56 = vpop.f32.mrf.mxu1 }
 0x686   :  { %v11687_v60 = vpop.f32.mrf.mxu0 }
 0x687   :  { %v11727_v42 = vadd.f32 %v11726_v56, %v11686_v55  ;;  %v11728_v32 = vpop.f32.mrf.mxu1 }
 0x688   :  { %v11688_v53 = vpop.f32.mrf.mxu0 }
 0x689   :  { %v11729_v35 = vpop.f32.mrf.mxu1 }
 0x6c2   :  { %v11765_v7 = vpop.f32.mrf.mxu0 }
 0x6c3   :  { %v11766_v52 = vadd.f32 %v11765_v7, %v11725_v33  ;;  %v11806_v38 = vpop.f32.mrf.mxu1 }
 0x6c4   :  { %v11767_v26 = vpop.f32.mrf.mxu0 }
 0x6c5   :  { %v11807_v37 = vadd.f32 %v11806_v38, %v11766_v52  ;;  %v11768_v20 = vadd.f32 %v11767_v26, %v11727_v42  ;;  %v11808_v8 = vpop.f32.mrf.mxu1 }
 0x6c6   :  { %v11769_v47 = vpop.f32.mrf.mxu0 }
 0x6c7   :  { %v11809_v14 = vadd.f32 %v11808_v8, %v11768_v20  ;;  %v11810_v48 = vpop.f32.mrf.mxu1 }
 0x6c8   :  { %v11770_v51 = vpop.f32.mrf.mxu0 }
 0x6c9   :  { %v11811_v36 = vpop.f32.mrf.mxu1 }
 0x702   :  { %v11847_v4 = vpop.f32.mrf.mxu0 }
 0x703   :  { %v11888_v49 = vpop.f32.mrf.mxu1  ;;  %v11848_v62 = vadd.f32 %v11847_v4, %v11807_v37 }
 0x704   :  { %v11849_v57 = vpop.f32.mrf.mxu0 }
 0x705   :  { %v11890_v41 = vpop.f32.mrf.mxu1  ;;  %v11850_v18 = vadd.f32 %v11849_v57, %v11809_v14  ;;  %v11889_v45 = vadd.f32 %v11888_v49, %v11848_v62 }
 0x706   :  { %v11851_v17 = vpop.f32.mrf.mxu0 }
 0x707   :  { %v11892_v6 = vpop.f32.mrf.mxu1  ;;  %v11891_v25 = vadd.f32 %v11890_v41, %v11850_v18 }
 0x708   :  { %v11852_v11 = vpop.f32.mrf.mxu0 }
 0x709   :  { %v11893_v30 = vpop.f32.mrf.mxu1 }
 0x742   :  { %v11929_v13 = vpop.f32.mrf.mxu0 }
 0x743   :  { %v11930_v43 = vadd.f32 %v11929_v13, %v11889_v45  ;;  %v11970_v16 = vpop.f32.mrf.mxu1 }
 0x744   :  { %v11931_v1 = vpop.f32.mrf.mxu0 }
 0x745   :  { %v11971_v31 = vadd.f32 %v11970_v16, %v11930_v43  ;;  %v11932_v9 = vadd.f32 %v11931_v1, %v11891_v25  ;;  %v11972_v22 = vpop.f32.mrf.mxu1 }
 0x746   :  { %v11933_v63 = vpop.f32.mrf.mxu0 }
 0x747   :  { %v11977_v15 = vmax.f32 %v11971_v31, 0.0  ;;  %v11973_v44 = vadd.f32 %v11972_v22, %v11932_v9  ;;  %v11974_v54 = vpop.f32.mrf.mxu1 }
 0x748   :  { %v11934_v34 = vpop.f32.mrf.mxu0 }
 0x749   :  { %v11978_v10 = vmax.f32 %v11973_v44, 0.0  ;;  %v11975_v24 = vpop.f32.mrf.mxu1  ;;  %v11991_v27 = vmul.f32 %v11984_v58, %v11977_v15 }
 0x74b   :  { %v11992_v46 = vmul.f32 %v11988_v23, %v11978_v10 }
 0x74d   :  { %v11993_v28 = vadd.f32 %v11992_v46, %v11991_v27 }
 0x74f   :  { %11994 = vadd.xlane.f32.xlu0 %v11993_v28 }
 0x7d8   :  { %v11995_v50 = vpop.xlane.xlu0 %11994 }
 0x7d9   :  { %v11996_v59 = vsub.f32 0.0, %v11995_v50 }
 0x7db   :  { %v11997_v3 = vmul.f32 1.442695, %v11996_v59 }
 0x7dd   :  { %14100 = vpow2.f32 %v11997_v3 }
 0x7ea   :  { %v14101_v19 = vpop.eup %14100 }
 0x7eb   :  { %v11999_v61 = vadd.f32 1.0, %v14101_v19 }
 0x7ed   :  { %14102 = vrcp.f32 %v11999_v61 }
 0x7fa   :  { %v14103_v40 = vpop.eup %14102 }
 0x7fb   :  { %12003 = vst.msk [vmem:[%s14690_s6] sm:$0xff] %vm12002_vm0, %v14103_v40 }
 0x7fc   :  { %12008 = vsyncpa [#allocation3], 1 }
 0x7fd   :  { %12009 = vsyncpa [#allocation5], 1 }
 0x7fe   :  { %12010 = vsyncpa [#allocation8], 1 }

</bundles_post_ra>
